<compile_context>
chip_gen: v7x
topology: tpu7x:2x2x1
jax: 0.10.0
libtpu: 0.0.40
codegen_flags: <defaults>
</compile_context>

<pallas_src>
import numpy as np

import jax
import jax.numpy as jnp
from jax.experimental import pallas as pl
from jax.experimental.pallas import tpu as pltpu

# ----------------------- model config (small synthetic) -----------------------
B = 2            # batch
C_IN = 3         # image channels
IMG = 32         # image height/width
PATCH = 16       # patch size -> 2x2 = 4 patches
N_PATCH = (IMG // PATCH) ** 2
S_ENC = N_PATCH + 1                  # +CLS token
CPP = C_IN * PATCH * PATCH           # flattened patch length
D = 32           # hidden size (encoder == decoder)
NH = 4           # attention heads
DH = D // NH     # head dim
MLP_D = 4 * D
N_ENC_LAYERS = 2
N_DEC_LAYERS = 2
VOCAB = 64
T = 8            # caption length
PAD_ID = 0
BOS_ID = 1
IGNORE_ID = -100                     # HF CrossEntropyLoss ignore_index
LN_EPS = 1e-5
SCALE = 1.0 / (DH ** 0.5)
NEG = -1e9

ENC_KEYS = ("ln1_g", "ln1_b", "w_qkv", "b_qkv", "w_o", "b_o",
            "ln2_g", "ln2_b", "w_fc", "b_fc", "w_proj", "b_proj")
DEC_KEYS = ("ln1_g", "ln1_b", "w_qkv", "b_qkv", "w_o", "b_o",
            "lnx_g", "lnx_b", "xw_q", "xb_q", "xw_kv", "xb_kv", "xw_o", "xb_o",
            "ln2_g", "ln2_b", "w_fc", "b_fc", "w_proj", "b_proj")


# --------------------------- in-kernel math helpers ----------------------------
def _ln(x, g, b):
    """LayerNorm over last dim; x (R, D) f32, g/b (1, D)."""
    mu = jnp.mean(x, axis=-1, keepdims=True)
    var = jnp.mean(jnp.square(x - mu), axis=-1, keepdims=True)
    return (x - mu) * jax.lax.rsqrt(var + LN_EPS) * g + b


def _mha_proj(q, k, v, w_o, bias):
    """Multi-head SDPA + output projection, accumulated per head.

    q: (Rq, D), k/v: (Rk, D) packed heads, w_o: (D, D), bias: (Rq, Rk) additive mask.
    Each head's context is pushed through the matching W_o row-slice and summed into a
    full-width (Rq, D) result, avoiding the lane-width-8 concatenate.
    """
    out = jnp.zeros((q.shape[0], D), jnp.float32)
    nt = (((1,), (1,)), ((), ()))  # contract last dims (q @ k^T without materializing k^T)
    for h in range(NH):
        sl = slice(h * DH, (h + 1) * DH)
        s = jax.lax.dot_general(q[:, sl], k[:, sl], nt,
                                preferred_element_type=jnp.float32) * SCALE + bias
        s = s - jnp.max(s, axis=-1, keepdims=True)
        p = jnp.exp(s)
        p = p * pl.reciprocal(jnp.sum(p, axis=-1, keepdims=True), approx=True)
        ctx = jnp.dot(p, v[:, sl], preferred_element_type=jnp.float32)        # (Rq, DH)
        out = out + jnp.dot(ctx, w_o[sl, :], preferred_element_type=jnp.float32)
    return out


# ------------------------------ fused Pallas kernel -----------------------------
def _imgcap_fused_kernel(
        # data / masks
        patches_ref, enc_bias_ref, dec_self_bias_ref, dec_cross_bias_ref,
        ids_ref, labels_ref,
        # ViT patch embedding
        pw_ref, pb_ref, cls_ref, pos_ref,
        # stacked ViT encoder layers (leading axis = layer)
        e_ln1g, e_ln1b, e_wqkv, e_bqkv, e_wo, e_bo,
        e_ln2g, e_ln2b, e_wfc, e_bfc, e_wproj, e_bproj,
        e_lnfg, e_lnfb,
        # decoder embeddings
        wte_ref, wpe_ref,
        # stacked GPT2 (w/ cross-attn) decoder layers
        d_ln1g, d_ln1b, d_wqkv, d_bqkv, d_wo, d_bo,
        d_lnxg, d_lnxb, d_xwq, d_xbq, d_xwkv, d_xbkv, d_xwo, d_xbo,
        d_ln2g, d_ln2b, d_wfc, d_bfc, d_wproj, d_bproj,
        d_lnfg, d_lnfb,
        # outputs
        logits_ref, loss_ref):
    # ------------------------------ ViT encoder ------------------------------
    # Patch linear (== stride-PATCH Conv2d) over the whole batch slab at once.
    emb = jnp.dot(patches_ref[...], pw_ref[...],
                  preferred_element_type=jnp.float32) + pb_ref[...]      # (B*N_PATCH, D)
    rows = []
    for b in range(B):
        rows.append(cls_ref[...])                                        # (1, D)
        rows.append(emb[b * N_PATCH:(b + 1) * N_PATCH, :])               # (N_PATCH, D)
    pos_full = jnp.concatenate([pos_ref[...]] * B, axis=0)               # (B*S_ENC, D)
    x = jnp.concatenate(rows, axis=0) + pos_full                         # (B*S_ENC, D)

    enc_bias = enc_bias_ref[...]                                         # block-diag batch mask
    for l in range(N_ENC_LAYERS):
        h = _ln(x, e_ln1g[l], e_ln1b[l])
        qkv = jnp.dot(h, e_wqkv[l], preferred_element_type=jnp.float32) + e_bqkv[l]
        x = x + _mha_proj(qkv[:, :D], qkv[:, D:2 * D], qkv[:, 2 * D:],
                          e_wo[l], enc_bias) + e_bo[l]
        h = _ln(x, e_ln2g[l], e_ln2b[l])
        # TODO(synk): HF ViT uses exact (erf) GELU; tanh approximation kept here (it
        # matches GPT2's gelu_new and stays on the guaranteed tanh/EUP Mosaic path).
        m = jax.nn.gelu(jnp.dot(h, e_wfc[l], preferred_element_type=jnp.float32)
                        + e_bfc[l], approximate=True)
        x = x + jnp.dot(m, e_wproj[l], preferred_element_type=jnp.float32) + e_bproj[l]
    enc = _ln(x, e_lnfg[...], e_lnfb[...])                               # (B*S_ENC, D)

    # ------------------------------ GPT2 decoder ------------------------------
    ids = ids_ref[...]                                                   # (B*T, 1) int32
    vocab_iota = jax.lax.broadcasted_iota(jnp.int32, (B * T, VOCAB), 1)
    onehot_ids = (vocab_iota == ids).astype(jnp.float32)                 # (B*T, V)
    tok = jnp.dot(onehot_ids, wte_ref[...], preferred_element_type=jnp.float32)
    x = tok + jnp.concatenate([wpe_ref[...]] * B, axis=0)                # (B*T, D)

    dself = dec_self_bias_ref[...]                                       # causal + batch-block
    dcross = dec_cross_bias_ref[...]                                     # batch-block (B*T, B*S_ENC)
    for l in range(N_DEC_LAYERS):
        # causal self-attention
        h = _ln(x, d_ln1g[l], d_ln1b[l])
        qkv = jnp.dot(h, d_wqkv[l], preferred_element_type=jnp.float32) + d_bqkv[l]
        x = x + _mha_proj(qkv[:, :D], qkv[:, D:2 * D], qkv[:, 2 * D:],
                          d_wo[l], dself) + d_bo[l]
        # cross-attention over encoder hidden states
        h = _ln(x, d_lnxg[l], d_lnxb[l])
        q = jnp.dot(h, d_xwq[l], preferred_element_type=jnp.float32) + d_xbq[l]
        kv = jnp.dot(enc, d_xwkv[l], preferred_element_type=jnp.float32) + d_xbkv[l]
        x = x + _mha_proj(q, kv[:, :D], kv[:, D:], d_xwo[l], dcross) + d_xbo[l]
        # MLP (gelu_new == tanh approximation, matches GPT2)
        h = _ln(x, d_ln2g[l], d_ln2b[l])
        m = jax.nn.gelu(jnp.dot(h, d_wfc[l], preferred_element_type=jnp.float32)
                        + d_bfc[l], approximate=True)
        x = x + jnp.dot(m, d_wproj[l], preferred_element_type=jnp.float32) + d_bproj[l]

    hf = _ln(x, d_lnfg[...], d_lnfb[...])                                # (B*T, D)

    # tied lm_head (HF GPT2 default, bias-free): logits = hf @ wte^T
    logits = jax.lax.dot_general(hf, wte_ref[...], (((1,), (1,)), ((), ())),
                                 preferred_element_type=jnp.float32)     # (B*T, V)
    logits_ref[...] = logits

    # ---------------------- cross-entropy (ignore_index=-100) ----------------------
    labels = labels_ref[...]                                             # (B*T, 1) int32
    mx = jnp.max(logits, axis=-1, keepdims=True)
    lse = jnp.log(jnp.sum(jnp.exp(logits - mx), axis=-1, keepdims=True)) + mx
    tgt_onehot = (vocab_iota == labels).astype(jnp.float32)
    tgt = jnp.sum(logits * tgt_onehot, axis=-1, keepdims=True)
    valid = (labels != IGNORE_ID).astype(jnp.float32)
    denom = jnp.maximum(jnp.sum(valid), jnp.float32(1.0))
    loss_ref[0, 0] = jnp.sum((lse - tgt) * valid) / denom


# ------------------------------- JAX glue / wrapper -----------------------------
def shift_tokens_right(labels, decoder_start_token_id):
    start = jnp.full((labels.shape[0], 1), decoder_start_token_id, labels.dtype)
    shifted = jnp.concatenate([start, labels[:, :-1]], axis=1)
    # HF replaces -100 with pad_token_id in decoder inputs.
    return jnp.where(shifted == IGNORE_ID, jnp.asarray(PAD_ID, labels.dtype), shifted)


def _attn_biases():
    """Static additive attention biases (built once at trace time with numpy)."""
    bid_enc = np.repeat(np.arange(B), S_ENC)                             # (B*S_ENC,)
    bid_dec = np.repeat(np.arange(B), T)                                 # (B*T,)
    pos_dec = np.tile(np.arange(T), B)
    enc_bias = np.where(bid_enc[:, None] == bid_enc[None, :], 0.0, NEG).astype(np.float32)
    dec_self = np.where((bid_dec[:, None] == bid_dec[None, :]) &
                        (pos_dec[None, :] <= pos_dec[:, None]), 0.0, NEG).astype(np.float32)
    dec_cross = np.where(bid_dec[:, None] == bid_enc[None, :], 0.0, NEG).astype(np.float32)
    return jnp.asarray(enc_bias), jnp.asarray(dec_self), jnp.asarray(dec_cross)


def imgcap_forward(params, pixel_values, labels):
    """VisionEncoderDecoder-style forward: returns (loss, logits)."""
    Hs = Ws = IMG // PATCH
    # im2col: Conv2d(kernel=stride=PATCH) == linear on flattened (C, P, P) patches.
    x = pixel_values.reshape(B, C_IN, Hs, PATCH, Ws, PATCH)
    patches = jnp.transpose(x, (0, 2, 4, 1, 3, 5)).reshape(B * N_PATCH, CPP)

    dec_ids = shift_tokens_right(labels, BOS_ID).reshape(B * T, 1).astype(jnp.int32)
    labels2d = labels.reshape(B * T, 1).astype(jnp.int32)
    enc_bias, dec_self_bias, dec_cross_bias = _attn_biases()

    args = (patches, enc_bias, dec_self_bias, dec_cross_bias, dec_ids, labels2d,
            params["patch_w"], params["patch_b"], params["cls"], params["pos_emb"],
            *[params["enc"][k] for k in ENC_KEYS],
            params["enc_lnf_g"], params["enc_lnf_b"],
            params["wte"], params["wpe"],
            *[params["dec"][k] for k in DEC_KEYS],
            params["dec_lnf_g"], params["dec_lnf_b"])

    logits2d, loss = pl.pallas_call(
        _imgcap_fused_kernel,
        out_shape=(jax.ShapeDtypeStruct((B * T, VOCAB), jnp.float32),
                   jax.ShapeDtypeStruct((1, 1), jnp.float32)),
        in_specs=[pl.BlockSpec(memory_space=pltpu.MemorySpace.VMEM)] * len(args),
        out_specs=(pl.BlockSpec(memory_space=pltpu.MemorySpace.VMEM),
                   pl.BlockSpec(memory_space=pltpu.MemorySpace.SMEM)),
    )(*args)
    return loss[0, 0], logits2d.reshape(B, T, VOCAB)


# ------------------------------ parameter init ---------------------------------
def _normal(key, shape, std=0.02):
    return std * jax.random.normal(key, shape, jnp.float32)


def init_enc_layer(key):
    kq, kk, kv, ko, k1, k2 = jax.random.split(key, 6)
    return {
        "ln1_g": jnp.ones((1, D), jnp.float32), "ln1_b": jnp.zeros((1, D), jnp.float32),
        "w_qkv": jnp.concatenate([_normal(kq, (D, D)), _normal(kk, (D, D)),
                                  _normal(kv, (D, D))], axis=1),
        "b_qkv": jnp.zeros((1, 3 * D), jnp.float32),
        "w_o": _normal(ko, (D, D)), "b_o": jnp.zeros((1, D), jnp.float32),
        "ln2_g": jnp.ones((1, D), jnp.float32), "ln2_b": jnp.zeros((1, D), jnp.float32),
        "w_fc": _normal(k1, (D, MLP_D)), "b_fc": jnp.zeros((1, MLP_D), jnp.float32),
        "w_proj": _normal(k2, (MLP_D, D)), "b_proj": jnp.zeros((1, D), jnp.float32),
    }


def init_dec_layer(key):
    kq, kk, kv, ko, xq, xk, xv, xo, k1, k2 = jax.random.split(key, 10)
    return {
        "ln1_g": jnp.ones((1, D), jnp.float32), "ln1_b": jnp.zeros((1, D), jnp.float32),
        "w_qkv": jnp.concatenate([_normal(kq, (D, D)), _normal(kk, (D, D)),
                                  _normal(kv, (D, D))], axis=1),
        "b_qkv": jnp.zeros((1, 3 * D), jnp.float32),
        "w_o": _normal(ko, (D, D)), "b_o": jnp.zeros((1, D), jnp.float32),
        "lnx_g": jnp.ones((1, D), jnp.float32), "lnx_b": jnp.zeros((1, D), jnp.float32),
        "xw_q": _normal(xq, (D, D)), "xb_q": jnp.zeros((1, D), jnp.float32),
        "xw_kv": jnp.concatenate([_normal(xk, (D, D)), _normal(xv, (D, D))], axis=1),
        "xb_kv": jnp.zeros((1, 2 * D), jnp.float32),
        "xw_o": _normal(xo, (D, D)), "xb_o": jnp.zeros((1, D), jnp.float32),
        "ln2_g": jnp.ones((1, D), jnp.float32), "ln2_b": jnp.zeros((1, D), jnp.float32),
        "w_fc": _normal(k1, (D, MLP_D)), "b_fc": jnp.zeros((1, MLP_D), jnp.float32),
        "w_proj": _normal(k2, (MLP_D, D)), "b_proj": jnp.zeros((1, D), jnp.float32),
    }


def _stack(layer_dicts):
    return {k: jnp.stack([d[k] for d in layer_dicts], axis=0) for k in layer_dicts[0]}


def init_params(key):
    k_pw, k_cls, k_pos, k_wte, k_wpe, k_enc, k_dec = jax.random.split(key, 7)
    enc_layers = [init_enc_layer(k) for k in jax.random.split(k_enc, N_ENC_LAYERS)]
    dec_layers = [init_dec_layer(k) for k in jax.random.split(k_dec, N_DEC_LAYERS)]
    return {
        "patch_w": _normal(k_pw, (CPP, D)),
        "patch_b": jnp.zeros((1, D), jnp.float32),
        "cls": _normal(k_cls, (1, D)),
        "pos_emb": _normal(k_pos, (S_ENC, D)),
        "enc": _stack(enc_layers),
        "enc_lnf_g": jnp.ones((1, D), jnp.float32),
        "enc_lnf_b": jnp.zeros((1, D), jnp.float32),
        "wte": _normal(k_wte, (VOCAB, D)),   # lm_head is tied to wte (HF GPT2 default)
        "wpe": _normal(k_wpe, (T, D)),
        "dec": _stack(dec_layers),
        "dec_lnf_g": jnp.ones((1, D), jnp.float32),
        "dec_lnf_b": jnp.zeros((1, D), jnp.float32),
    }


# ----------------------------------- main ---------------------------------------
if __name__ == "__main__":
    root = jax.random.PRNGKey(0)
    k_params, k_img, k_lbl = jax.random.split(root, 3)

    params = init_params(k_params)
    # "image" already preprocessed to pixel_values (the HF image_processor / tokenizer
    # steps are host-side preprocessing, not tensor compute).
    pixel_values = jax.random.normal(k_img, (B, C_IN, IMG, IMG), jnp.float32)
    labels = jax.random.randint(k_lbl, (B, T), 2, VOCAB, dtype=jnp.int32)

    fwd = jax.jit(imgcap_forward)
    loss, logits = fwd(params, pixel_values, labels)
    jax.block_until_ready((loss, logits))

    assert logits.shape == (B, T, VOCAB)
    assert loss.shape == ()
    assert bool(jnp.isfinite(loss))
    print("KERNEL_OK")
</pallas_src>

<mosaic_0001>
module attributes {stable_mosaic.version = 11 : i64} {
  func.func @_imgcap_fused_kernel(%arg0: memref<8x768xf32, #tpu.memory_space<vmem>>, %arg1: memref<10x10xf32, #tpu.memory_space<vmem>>, %arg2: memref<16x16xf32, #tpu.memory_space<vmem>>, %arg3: memref<16x10xf32, #tpu.memory_space<vmem>>, %arg4: memref<16x1xi32, #tpu.memory_space<vmem>>, %arg5: memref<16x1xi32, #tpu.memory_space<vmem>>, %arg6: memref<768x32xf32, #tpu.memory_space<vmem>>, %arg7: memref<1x32xf32, #tpu.memory_space<vmem>>, %arg8: memref<1x32xf32, #tpu.memory_space<vmem>>, %arg9: memref<5x32xf32, #tpu.memory_space<vmem>>, %arg10: memref<2x1x32xf32, #tpu.memory_space<vmem>>, %arg11: memref<2x1x32xf32, #tpu.memory_space<vmem>>, %arg12: memref<2x32x96xf32, #tpu.memory_space<vmem>>, %arg13: memref<2x1x96xf32, #tpu.memory_space<vmem>>, %arg14: memref<2x32x32xf32, #tpu.memory_space<vmem>>, %arg15: memref<2x1x32xf32, #tpu.memory_space<vmem>>, %arg16: memref<2x1x32xf32, #tpu.memory_space<vmem>>, %arg17: memref<2x1x32xf32, #tpu.memory_space<vmem>>, %arg18: memref<2x32x128xf32, #tpu.memory_space<vmem>>, %arg19: memref<2x1x128xf32, #tpu.memory_space<vmem>>, %arg20: memref<2x128x32xf32, #tpu.memory_space<vmem>>, %arg21: memref<2x1x32xf32, #tpu.memory_space<vmem>>, %arg22: memref<1x32xf32, #tpu.memory_space<vmem>>, %arg23: memref<1x32xf32, #tpu.memory_space<vmem>>, %arg24: memref<64x32xf32, #tpu.memory_space<vmem>>, %arg25: memref<8x32xf32, #tpu.memory_space<vmem>>, %arg26: memref<2x1x32xf32, #tpu.memory_space<vmem>>, %arg27: memref<2x1x32xf32, #tpu.memory_space<vmem>>, %arg28: memref<2x32x96xf32, #tpu.memory_space<vmem>>, %arg29: memref<2x1x96xf32, #tpu.memory_space<vmem>>, %arg30: memref<2x32x32xf32, #tpu.memory_space<vmem>>, %arg31: memref<2x1x32xf32, #tpu.memory_space<vmem>>, %arg32: memref<2x1x32xf32, #tpu.memory_space<vmem>>, %arg33: memref<2x1x32xf32, #tpu.memory_space<vmem>>, %arg34: memref<2x32x32xf32, #tpu.memory_space<vmem>>, %arg35: memref<2x1x32xf32, #tpu.memory_space<vmem>>, %arg36: memref<2x32x64xf32, #tpu.memory_space<vmem>>, %arg37: memref<2x1x64xf32, #tpu.memory_space<vmem>>, %arg38: memref<2x32x32xf32, #tpu.memory_space<vmem>>, %arg39: memref<2x1x32xf32, #tpu.memory_space<vmem>>, %arg40: memref<2x1x32xf32, #tpu.memory_space<vmem>>, %arg41: memref<2x1x32xf32, #tpu.memory_space<vmem>>, %arg42: memref<2x32x128xf32, #tpu.memory_space<vmem>>, %arg43: memref<2x1x128xf32, #tpu.memory_space<vmem>>, %arg44: memref<2x128x32xf32, #tpu.memory_space<vmem>>, %arg45: memref<2x1x32xf32, #tpu.memory_space<vmem>>, %arg46: memref<1x32xf32, #tpu.memory_space<vmem>>, %arg47: memref<1x32xf32, #tpu.memory_space<vmem>>, %arg48: memref<16x64xf32, #tpu.memory_space<vmem>>, %arg49: memref<1x1xf32, #tpu.memory_space<smem>>) attributes {dimension_semantics = [], scalar_prefetch = 0 : i64, scratch_operands = 0 : i64, tpu.core_type = #tpu.core_type<tc>} {
    %c0 = arith.constant 0 : index
    %c0_0 = arith.constant 0 : index
    %0 = vector.load %arg0[%c0, %c0_0] : memref<8x768xf32, #tpu.memory_space<vmem>>, vector<8x768xf32>
    %c0_1 = arith.constant 0 : index
    %c0_2 = arith.constant 0 : index
    %1 = vector.load %arg6[%c0_1, %c0_2] : memref<768x32xf32, #tpu.memory_space<vmem>>, vector<768x32xf32>
    %cst = arith.constant dense<0.000000e+00> : vector<8x32xf32>
    %2 = tpu.matmul %0, %1, %cst {dimension_numbers = #tpu.dot_dimension_numbers<[1], [0], [0], [1], [0, 0, 1, 1], [], []>} : vector<8x768xf32>, vector<768x32xf32>, vector<8x32xf32> -> vector<8x32xf32>
    %c0_3 = arith.constant 0 : index
    %c0_4 = arith.constant 0 : index
    %3 = vector.load %arg7[%c0_3, %c0_4] : memref<1x32xf32, #tpu.memory_space<vmem>>, vector<1x32xf32>
    %4 = vector.broadcast %3 : vector<1x32xf32> to vector<8x32xf32>
    %5 = arith.addf %2, %4 : vector<8x32xf32>
    %c0_5 = arith.constant 0 : index
    %c0_6 = arith.constant 0 : index
    %6 = vector.load %arg8[%c0_5, %c0_6] : memref<1x32xf32, #tpu.memory_space<vmem>>, vector<1x32xf32>
    %7 = vector.extract_strided_slice %5 {offsets = [0, 0], sizes = [4, 32], strides = [1, 1]} : vector<8x32xf32> to vector<4x32xf32>
    %c0_7 = arith.constant 0 : index
    %c0_8 = arith.constant 0 : index
    %8 = vector.load %arg8[%c0_7, %c0_8] : memref<1x32xf32, #tpu.memory_space<vmem>>, vector<1x32xf32>
    %9 = vector.extract_strided_slice %5 {offsets = [4, 0], sizes = [4, 32], strides = [1, 1]} : vector<8x32xf32> to vector<4x32xf32>
    %c0_9 = arith.constant 0 : index
    %c0_10 = arith.constant 0 : index
    %10 = vector.load %arg9[%c0_9, %c0_10] : memref<5x32xf32, #tpu.memory_space<vmem>>, vector<5x32xf32>
    %11 = tpu.concatenate %10, %10 in 0 : vector<5x32xf32>, vector<5x32xf32> -> vector<10x32xf32>
    %12 = tpu.concatenate %6, %7, %8, %9 in 0 : vector<1x32xf32>, vector<4x32xf32>, vector<1x32xf32>, vector<4x32xf32> -> vector<10x32xf32>
    %13 = arith.addf %12, %11 : vector<10x32xf32>
    %c0_11 = arith.constant 0 : index
    %c0_12 = arith.constant 0 : index
    %14 = vector.load %arg1[%c0_11, %c0_12] : memref<10x10xf32, #tpu.memory_space<vmem>>, vector<10x10xf32>
    %c0_13 = arith.constant 0 : index
    %c0_14 = arith.constant 0 : index
    %c0_15 = arith.constant 0 : index
    %15 = vector.load %arg10[%c0_13, %c0_14, %c0_15] : memref<2x1x32xf32, #tpu.memory_space<vmem>>, vector<1x1x32xf32>
    %16 = vector.shape_cast %15 : vector<1x1x32xf32> to vector<1x32xf32>
    %c0_16 = arith.constant 0 : index
    %c0_17 = arith.constant 0 : index
    %c0_18 = arith.constant 0 : index
    %17 = vector.load %arg11[%c0_16, %c0_17, %c0_18] : memref<2x1x32xf32, #tpu.memory_space<vmem>>, vector<1x1x32xf32>
    %18 = vector.shape_cast %17 : vector<1x1x32xf32> to vector<1x32xf32>
    %cst_19 = arith.constant dense<0.000000e+00> : vector<10xf32>
    %19 = vector.multi_reduction <add>, %13, %cst_19 [1] : vector<10x32xf32> to vector<10xf32>
    %20 = vector.shape_cast %19 : vector<10xf32> to vector<10x1xf32>
    %cst_20 = arith.constant 3.200000e+01 : f32
    %21 = vector.broadcast %cst_20 : f32 to vector<10x1xf32>
    %22 = arith.divf %20, %21 : vector<10x1xf32>
    %23 = vector.broadcast %22 : vector<10x1xf32> to vector<10x32xf32>
    %24 = arith.subf %13, %23 : vector<10x32xf32>
    %25 = arith.mulf %24, %24 : vector<10x32xf32>
    %cst_21 = arith.constant dense<0.000000e+00> : vector<10xf32>
    %26 = vector.multi_reduction <add>, %25, %cst_21 [1] : vector<10x32xf32> to vector<10xf32>
    %27 = vector.shape_cast %26 : vector<10xf32> to vector<10x1xf32>
    %cst_22 = arith.constant 3.200000e+01 : f32
    %28 = vector.broadcast %cst_22 : f32 to vector<10x1xf32>
    %29 = arith.divf %27, %28 : vector<10x1xf32>
    %30 = vector.broadcast %22 : vector<10x1xf32> to vector<10x32xf32>
    %31 = arith.subf %13, %30 : vector<10x32xf32>
    %cst_23 = arith.constant 9.99999974E-6 : f32
    %32 = vector.broadcast %cst_23 : f32 to vector<10x1xf32>
    %33 = arith.addf %29, %32 : vector<10x1xf32>
    %34 = math.rsqrt %33 : vector<10x1xf32>
    %35 = vector.broadcast %34 : vector<10x1xf32> to vector<10x32xf32>
    %36 = arith.mulf %31, %35 : vector<10x32xf32>
    %37 = vector.broadcast %16 : vector<1x32xf32> to vector<10x32xf32>
    %38 = arith.mulf %36, %37 : vector<10x32xf32>
    %39 = vector.broadcast %18 : vector<1x32xf32> to vector<10x32xf32>
    %40 = arith.addf %38, %39 : vector<10x32xf32>
    %c0_24 = arith.constant 0 : index
    %c0_25 = arith.constant 0 : index
    %c0_26 = arith.constant 0 : index
    %41 = vector.load %arg12[%c0_24, %c0_25, %c0_26] : memref<2x32x96xf32, #tpu.memory_space<vmem>>, vector<1x32x96xf32>
    %42 = vector.shape_cast %41 : vector<1x32x96xf32> to vector<32x96xf32>
    %cst_27 = arith.constant dense<0.000000e+00> : vector<10x96xf32>
    %43 = tpu.matmul %40, %42, %cst_27 {dimension_numbers = #tpu.dot_dimension_numbers<[1], [0], [0], [1], [0, 0, 1, 1], [], []>} : vector<10x32xf32>, vector<32x96xf32>, vector<10x96xf32> -> vector<10x96xf32>
    %c0_28 = arith.constant 0 : index
    %c0_29 = arith.constant 0 : index
    %c0_30 = arith.constant 0 : index
    %44 = vector.load %arg13[%c0_28, %c0_29, %c0_30] : memref<2x1x96xf32, #tpu.memory_space<vmem>>, vector<1x1x96xf32>
    %45 = vector.shape_cast %44 : vector<1x1x96xf32> to vector<1x96xf32>
    %46 = vector.broadcast %45 : vector<1x96xf32> to vector<10x96xf32>
    %47 = arith.addf %43, %46 : vector<10x96xf32>
    %48 = vector.extract_strided_slice %47 {offsets = [0, 0], sizes = [10, 32], strides = [1, 1]} : vector<10x96xf32> to vector<10x32xf32>
    %49 = vector.extract_strided_slice %47 {offsets = [0, 32], sizes = [10, 32], strides = [1, 1]} : vector<10x96xf32> to vector<10x32xf32>
    %50 = vector.extract_strided_slice %47 {offsets = [0, 64], sizes = [10, 32], strides = [1, 1]} : vector<10x96xf32> to vector<10x32xf32>
    %c0_31 = arith.constant 0 : index
    %c0_32 = arith.constant 0 : index
    %c0_33 = arith.constant 0 : index
    %51 = vector.load %arg14[%c0_31, %c0_32, %c0_33] : memref<2x32x32xf32, #tpu.memory_space<vmem>>, vector<1x32x32xf32>
    %52 = vector.shape_cast %51 : vector<1x32x32xf32> to vector<32x32xf32>
    %cst_34 = arith.constant 0.000000e+00 : f32
    %53 = vector.broadcast %cst_34 : f32 to vector<10x32xf32>
    %54 = vector.extract_strided_slice %48 {offsets = [0, 0], sizes = [10, 8], strides = [1, 1]} : vector<10x32xf32> to vector<10x8xf32>
    %55 = vector.extract_strided_slice %49 {offsets = [0, 0], sizes = [10, 8], strides = [1, 1]} : vector<10x32xf32> to vector<10x8xf32>
    %cst_35 = arith.constant dense<0.000000e+00> : vector<10x10xf32>
    %56 = tpu.matmul %54, %55, %cst_35 {dimension_numbers = #tpu.dot_dimension_numbers<[1], [1], [0], [0], [0, 0, 1, 0], [], []>} : vector<10x8xf32>, vector<10x8xf32>, vector<10x10xf32> -> vector<10x10xf32>
    %cst_36 = arith.constant 0.353553385 : f32
    %57 = vector.broadcast %cst_36 : f32 to vector<10x10xf32>
    %58 = arith.mulf %56, %57 : vector<10x10xf32>
    %59 = arith.addf %58, %14 : vector<10x10xf32>
    %cst_37 = arith.constant dense<0xFF800000> : vector<10xf32>
    %60 = vector.multi_reduction <maximumf>, %59, %cst_37 [1] : vector<10x10xf32> to vector<10xf32>
    %61 = vector.shape_cast %60 : vector<10xf32> to vector<10x1xf32>
    %62 = vector.broadcast %61 : vector<10x1xf32> to vector<10x10xf32>
    %63 = arith.subf %59, %62 : vector<10x10xf32>
    %64 = math.exp %63 : vector<10x10xf32>
    %cst_38 = arith.constant dense<0.000000e+00> : vector<10xf32>
    %65 = vector.multi_reduction <add>, %64, %cst_38 [1] : vector<10x10xf32> to vector<10xf32>
    %66 = vector.shape_cast %65 : vector<10xf32> to vector<10x1xf32>
    %67 = tpu.reciprocal %66 {approx = true} : vector<10x1xf32> -> vector<10x1xf32>
    %68 = vector.broadcast %67 : vector<10x1xf32> to vector<10x10xf32>
    %69 = arith.mulf %64, %68 : vector<10x10xf32>
    %70 = vector.extract_strided_slice %50 {offsets = [0, 0], sizes = [10, 8], strides = [1, 1]} : vector<10x32xf32> to vector<10x8xf32>
    %cst_39 = arith.constant dense<0.000000e+00> : vector<10x8xf32>
    %71 = tpu.matmul %69, %70, %cst_39 {dimension_numbers = #tpu.dot_dimension_numbers<[1], [0], [0], [1], [0, 0, 1, 1], [], []>} : vector<10x10xf32>, vector<10x8xf32>, vector<10x8xf32> -> vector<10x8xf32>
    %72 = vector.extract_strided_slice %52 {offsets = [0, 0], sizes = [8, 32], strides = [1, 1]} : vector<32x32xf32> to vector<8x32xf32>
    %cst_40 = arith.constant dense<0.000000e+00> : vector<10x32xf32>
    %73 = tpu.matmul %71, %72, %cst_40 {dimension_numbers = #tpu.dot_dimension_numbers<[1], [0], [0], [1], [0, 0, 1, 1], [], []>} : vector<10x8xf32>, vector<8x32xf32>, vector<10x32xf32> -> vector<10x32xf32>
    %74 = arith.addf %53, %73 : vector<10x32xf32>
    %75 = vector.extract_strided_slice %48 {offsets = [0, 8], sizes = [10, 8], strides = [1, 1]} : vector<10x32xf32> to vector<10x8xf32>
    %76 = vector.extract_strided_slice %49 {offsets = [0, 8], sizes = [10, 8], strides = [1, 1]} : vector<10x32xf32> to vector<10x8xf32>
    %cst_41 = arith.constant dense<0.000000e+00> : vector<10x10xf32>
    %77 = tpu.matmul %75, %76, %cst_41 {dimension_numbers = #tpu.dot_dimension_numbers<[1], [1], [0], [0], [0, 0, 1, 0], [], []>} : vector<10x8xf32>, vector<10x8xf32>, vector<10x10xf32> -> vector<10x10xf32>
    %cst_42 = arith.constant 0.353553385 : f32
    %78 = vector.broadcast %cst_42 : f32 to vector<10x10xf32>
    %79 = arith.mulf %77, %78 : vector<10x10xf32>
    %80 = arith.addf %79, %14 : vector<10x10xf32>
    %cst_43 = arith.constant dense<0xFF800000> : vector<10xf32>
    %81 = vector.multi_reduction <maximumf>, %80, %cst_43 [1] : vector<10x10xf32> to vector<10xf32>
    %82 = vector.shape_cast %81 : vector<10xf32> to vector<10x1xf32>
    %83 = vector.broadcast %82 : vector<10x1xf32> to vector<10x10xf32>
    %84 = arith.subf %80, %83 : vector<10x10xf32>
    %85 = math.exp %84 : vector<10x10xf32>
    %cst_44 = arith.constant dense<0.000000e+00> : vector<10xf32>
    %86 = vector.multi_reduction <add>, %85, %cst_44 [1] : vector<10x10xf32> to vector<10xf32>
    %87 = vector.shape_cast %86 : vector<10xf32> to vector<10x1xf32>
    %88 = tpu.reciprocal %87 {approx = true} : vector<10x1xf32> -> vector<10x1xf32>
    %89 = vector.broadcast %88 : vector<10x1xf32> to vector<10x10xf32>
    %90 = arith.mulf %85, %89 : vector<10x10xf32>
    %91 = vector.extract_strided_slice %50 {offsets = [0, 8], sizes = [10, 8], strides = [1, 1]} : vector<10x32xf32> to vector<10x8xf32>
    %cst_45 = arith.constant dense<0.000000e+00> : vector<10x8xf32>
    %92 = tpu.matmul %90, %91, %cst_45 {dimension_numbers = #tpu.dot_dimension_numbers<[1], [0], [0], [1], [0, 0, 1, 1], [], []>} : vector<10x10xf32>, vector<10x8xf32>, vector<10x8xf32> -> vector<10x8xf32>
    %93 = vector.extract_strided_slice %52 {offsets = [8, 0], sizes = [8, 32], strides = [1, 1]} : vector<32x32xf32> to vector<8x32xf32>
    %cst_46 = arith.constant dense<0.000000e+00> : vector<10x32xf32>
    %94 = tpu.matmul %92, %93, %cst_46 {dimension_numbers = #tpu.dot_dimension_numbers<[1], [0], [0], [1], [0, 0, 1, 1], [], []>} : vector<10x8xf32>, vector<8x32xf32>, vector<10x32xf32> -> vector<10x32xf32>
    %95 = arith.addf %74, %94 : vector<10x32xf32>
    %96 = vector.extract_strided_slice %48 {offsets = [0, 16], sizes = [10, 8], strides = [1, 1]} : vector<10x32xf32> to vector<10x8xf32>
    %97 = vector.extract_strided_slice %49 {offsets = [0, 16], sizes = [10, 8], strides = [1, 1]} : vector<10x32xf32> to vector<10x8xf32>
    %cst_47 = arith.constant dense<0.000000e+00> : vector<10x10xf32>
    %98 = tpu.matmul %96, %97, %cst_47 {dimension_numbers = #tpu.dot_dimension_numbers<[1], [1], [0], [0], [0, 0, 1, 0], [], []>} : vector<10x8xf32>, vector<10x8xf32>, vector<10x10xf32> -> vector<10x10xf32>
    %cst_48 = arith.constant 0.353553385 : f32
    %99 = vector.broadcast %cst_48 : f32 to vector<10x10xf32>
    %100 = arith.mulf %98, %99 : vector<10x10xf32>
    %101 = arith.addf %100, %14 : vector<10x10xf32>
    %cst_49 = arith.constant dense<0xFF800000> : vector<10xf32>
    %102 = vector.multi_reduction <maximumf>, %101, %cst_49 [1] : vector<10x10xf32> to vector<10xf32>
    %103 = vector.shape_cast %102 : vector<10xf32> to vector<10x1xf32>
    %104 = vector.broadcast %103 : vector<10x1xf32> to vector<10x10xf32>
    %105 = arith.subf %101, %104 : vector<10x10xf32>
    %106 = math.exp %105 : vector<10x10xf32>
    %cst_50 = arith.constant dense<0.000000e+00> : vector<10xf32>
    %107 = vector.multi_reduction <add>, %106, %cst_50 [1] : vector<10x10xf32> to vector<10xf32>
    %108 = vector.shape_cast %107 : vector<10xf32> to vector<10x1xf32>
    %109 = tpu.reciprocal %108 {approx = true} : vector<10x1xf32> -> vector<10x1xf32>
    %110 = vector.broadcast %109 : vector<10x1xf32> to vector<10x10xf32>
    %111 = arith.mulf %106, %110 : vector<10x10xf32>
    %112 = vector.extract_strided_slice %50 {offsets = [0, 16], sizes = [10, 8], strides = [1, 1]} : vector<10x32xf32> to vector<10x8xf32>
    %cst_51 = arith.constant dense<0.000000e+00> : vector<10x8xf32>
    %113 = tpu.matmul %111, %112, %cst_51 {dimension_numbers = #tpu.dot_dimension_numbers<[1], [0], [0], [1], [0, 0, 1, 1], [], []>} : vector<10x10xf32>, vector<10x8xf32>, vector<10x8xf32> -> vector<10x8xf32>
    %114 = vector.extract_strided_slice %52 {offsets = [16, 0], sizes = [8, 32], strides = [1, 1]} : vector<32x32xf32> to vector<8x32xf32>
    %cst_52 = arith.constant dense<0.000000e+00> : vector<10x32xf32>
    %115 = tpu.matmul %113, %114, %cst_52 {dimension_numbers = #tpu.dot_dimension_numbers<[1], [0], [0], [1], [0, 0, 1, 1], [], []>} : vector<10x8xf32>, vector<8x32xf32>, vector<10x32xf32> -> vector<10x32xf32>
    %116 = arith.addf %95, %115 : vector<10x32xf32>
    %117 = vector.extract_strided_slice %48 {offsets = [0, 24], sizes = [10, 8], strides = [1, 1]} : vector<10x32xf32> to vector<10x8xf32>
    %118 = vector.extract_strided_slice %49 {offsets = [0, 24], sizes = [10, 8], strides = [1, 1]} : vector<10x32xf32> to vector<10x8xf32>
    %cst_53 = arith.constant dense<0.000000e+00> : vector<10x10xf32>
    %119 = tpu.matmul %117, %118, %cst_53 {dimension_numbers = #tpu.dot_dimension_numbers<[1], [1], [0], [0], [0, 0, 1, 0], [], []>} : vector<10x8xf32>, vector<10x8xf32>, vector<10x10xf32> -> vector<10x10xf32>
    %cst_54 = arith.constant 0.353553385 : f32
    %120 = vector.broadcast %cst_54 : f32 to vector<10x10xf32>
    %121 = arith.mulf %119, %120 : vector<10x10xf32>
    %122 = arith.addf %121, %14 : vector<10x10xf32>
    %cst_55 = arith.constant dense<0xFF800000> : vector<10xf32>
    %123 = vector.multi_reduction <maximumf>, %122, %cst_55 [1] : vector<10x10xf32> to vector<10xf32>
    %124 = vector.shape_cast %123 : vector<10xf32> to vector<10x1xf32>
    %125 = vector.broadcast %124 : vector<10x1xf32> to vector<10x10xf32>
    %126 = arith.subf %122, %125 : vector<10x10xf32>
    %127 = math.exp %126 : vector<10x10xf32>
    %cst_56 = arith.constant dense<0.000000e+00> : vector<10xf32>
    %128 = vector.multi_reduction <add>, %127, %cst_56 [1] : vector<10x10xf32> to vector<10xf32>
    %129 = vector.shape_cast %128 : vector<10xf32> to vector<10x1xf32>
    %130 = tpu.reciprocal %129 {approx = true} : vector<10x1xf32> -> vector<10x1xf32>
    %131 = vector.broadcast %130 : vector<10x1xf32> to vector<10x10xf32>
    %132 = arith.mulf %127, %131 : vector<10x10xf32>
    %133 = vector.extract_strided_slice %50 {offsets = [0, 24], sizes = [10, 8], strides = [1, 1]} : vector<10x32xf32> to vector<10x8xf32>
    %cst_57 = arith.constant dense<0.000000e+00> : vector<10x8xf32>
    %134 = tpu.matmul %132, %133, %cst_57 {dimension_numbers = #tpu.dot_dimension_numbers<[1], [0], [0], [1], [0, 0, 1, 1], [], []>} : vector<10x10xf32>, vector<10x8xf32>, vector<10x8xf32> -> vector<10x8xf32>
    %135 = vector.extract_strided_slice %52 {offsets = [24, 0], sizes = [8, 32], strides = [1, 1]} : vector<32x32xf32> to vector<8x32xf32>
    %cst_58 = arith.constant dense<0.000000e+00> : vector<10x32xf32>
    %136 = tpu.matmul %134, %135, %cst_58 {dimension_numbers = #tpu.dot_dimension_numbers<[1], [0], [0], [1], [0, 0, 1, 1], [], []>} : vector<10x8xf32>, vector<8x32xf32>, vector<10x32xf32> -> vector<10x32xf32>
    %137 = arith.addf %116, %136 : vector<10x32xf32>
    %138 = arith.addf %13, %137 : vector<10x32xf32>
    %c0_59 = arith.constant 0 : index
    %c0_60 = arith.constant 0 : index
    %c0_61 = arith.constant 0 : index
    %139 = vector.load %arg15[%c0_59, %c0_60, %c0_61] : memref<2x1x32xf32, #tpu.memory_space<vmem>>, vector<1x1x32xf32>
    %140 = vector.shape_cast %139 : vector<1x1x32xf32> to vector<1x32xf32>
    %141 = vector.broadcast %140 : vector<1x32xf32> to vector<10x32xf32>
    %142 = arith.addf %138, %141 : vector<10x32xf32>
    %c0_62 = arith.constant 0 : index
    %c0_63 = arith.constant 0 : index
    %c0_64 = arith.constant 0 : index
    %143 = vector.load %arg16[%c0_62, %c0_63, %c0_64] : memref<2x1x32xf32, #tpu.memory_space<vmem>>, vector<1x1x32xf32>
    %144 = vector.shape_cast %143 : vector<1x1x32xf32> to vector<1x32xf32>
    %c0_65 = arith.constant 0 : index
    %c0_66 = arith.constant 0 : index
    %c0_67 = arith.constant 0 : index
    %145 = vector.load %arg17[%c0_65, %c0_66, %c0_67] : memref<2x1x32xf32, #tpu.memory_space<vmem>>, vector<1x1x32xf32>
    %146 = vector.shape_cast %145 : vector<1x1x32xf32> to vector<1x32xf32>
    %cst_68 = arith.constant dense<0.000000e+00> : vector<10xf32>
    %147 = vector.multi_reduction <add>, %142, %cst_68 [1] : vector<10x32xf32> to vector<10xf32>
    %148 = vector.shape_cast %147 : vector<10xf32> to vector<10x1xf32>
    %cst_69 = arith.constant 3.200000e+01 : f32
    %149 = vector.broadcast %cst_69 : f32 to vector<10x1xf32>
    %150 = arith.divf %148, %149 : vector<10x1xf32>
    %151 = vector.broadcast %150 : vector<10x1xf32> to vector<10x32xf32>
    %152 = arith.subf %142, %151 : vector<10x32xf32>
    %153 = arith.mulf %152, %152 : vector<10x32xf32>
    %cst_70 = arith.constant dense<0.000000e+00> : vector<10xf32>
    %154 = vector.multi_reduction <add>, %153, %cst_70 [1] : vector<10x32xf32> to vector<10xf32>
    %155 = vector.shape_cast %154 : vector<10xf32> to vector<10x1xf32>
    %cst_71 = arith.constant 3.200000e+01 : f32
    %156 = vector.broadcast %cst_71 : f32 to vector<10x1xf32>
    %157 = arith.divf %155, %156 : vector<10x1xf32>
    %158 = vector.broadcast %150 : vector<10x1xf32> to vector<10x32xf32>
    %159 = arith.subf %142, %158 : vector<10x32xf32>
    %cst_72 = arith.constant 9.99999974E-6 : f32
    %160 = vector.broadcast %cst_72 : f32 to vector<10x1xf32>
    %161 = arith.addf %157, %160 : vector<10x1xf32>
    %162 = math.rsqrt %161 : vector<10x1xf32>
    %163 = vector.broadcast %162 : vector<10x1xf32> to vector<10x32xf32>
    %164 = arith.mulf %159, %163 : vector<10x32xf32>
    %165 = vector.broadcast %144 : vector<1x32xf32> to vector<10x32xf32>
    %166 = arith.mulf %164, %165 : vector<10x32xf32>
    %167 = vector.broadcast %146 : vector<1x32xf32> to vector<10x32xf32>
    %168 = arith.addf %166, %167 : vector<10x32xf32>
    %c0_73 = arith.constant 0 : index
    %c0_74 = arith.constant 0 : index
    %c0_75 = arith.constant 0 : index
    %169 = vector.load %arg18[%c0_73, %c0_74, %c0_75] : memref<2x32x128xf32, #tpu.memory_space<vmem>>, vector<1x32x128xf32>
    %170 = vector.shape_cast %169 : vector<1x32x128xf32> to vector<32x128xf32>
    %cst_76 = arith.constant dense<0.000000e+00> : vector<10x128xf32>
    %171 = tpu.matmul %168, %170, %cst_76 {dimension_numbers = #tpu.dot_dimension_numbers<[1], [0], [0], [1], [0, 0, 1, 1], [], []>} : vector<10x32xf32>, vector<32x128xf32>, vector<10x128xf32> -> vector<10x128xf32>
    %c0_77 = arith.constant 0 : index
    %c0_78 = arith.constant 0 : index
    %c0_79 = arith.constant 0 : index
    %172 = vector.load %arg19[%c0_77, %c0_78, %c0_79] : memref<2x1x128xf32, #tpu.memory_space<vmem>>, vector<1x1x128xf32>
    %173 = vector.shape_cast %172 : vector<1x1x128xf32> to vector<1x128xf32>
    %174 = vector.broadcast %173 : vector<1x128xf32> to vector<10x128xf32>
    %175 = arith.addf %171, %174 : vector<10x128xf32>
    %176 = arith.mulf %175, %175 : vector<10x128xf32>
    %177 = arith.mulf %175, %176 : vector<10x128xf32>
    %cst_80 = arith.constant 4.471500e-02 : f32
    %178 = vector.broadcast %cst_80 : f32 to vector<10x128xf32>
    %179 = arith.mulf %178, %177 : vector<10x128xf32>
    %180 = arith.addf %175, %179 : vector<10x128xf32>
    %cst_81 = arith.constant 0.797884583 : f32
    %181 = vector.broadcast %cst_81 : f32 to vector<10x128xf32>
    %182 = arith.mulf %181, %180 : vector<10x128xf32>
    %183 = math.tanh %182 : vector<10x128xf32>
    %cst_82 = arith.constant 1.000000e+00 : f32
    %184 = vector.broadcast %cst_82 : f32 to vector<10x128xf32>
    %185 = arith.addf %184, %183 : vector<10x128xf32>
    %cst_83 = arith.constant 5.000000e-01 : f32
    %186 = vector.broadcast %cst_83 : f32 to vector<10x128xf32>
    %187 = arith.mulf %186, %185 : vector<10x128xf32>
    %188 = arith.mulf %175, %187 : vector<10x128xf32>
    %c0_84 = arith.constant 0 : index
    %c0_85 = arith.constant 0 : index
    %c0_86 = arith.constant 0 : index
    %189 = vector.load %arg20[%c0_84, %c0_85, %c0_86] : memref<2x128x32xf32, #tpu.memory_space<vmem>>, vector<1x128x32xf32>
    %190 = vector.shape_cast %189 : vector<1x128x32xf32> to vector<128x32xf32>
    %cst_87 = arith.constant dense<0.000000e+00> : vector<10x32xf32>
    %191 = tpu.matmul %188, %190, %cst_87 {dimension_numbers = #tpu.dot_dimension_numbers<[1], [0], [0], [1], [0, 0, 1, 1], [], []>} : vector<10x128xf32>, vector<128x32xf32>, vector<10x32xf32> -> vector<10x32xf32>
    %192 = arith.addf %142, %191 : vector<10x32xf32>
    %c0_88 = arith.constant 0 : index
    %c0_89 = arith.constant 0 : index
    %c0_90 = arith.constant 0 : index
    %193 = vector.load %arg21[%c0_88, %c0_89, %c0_90] : memref<2x1x32xf32, #tpu.memory_space<vmem>>, vector<1x1x32xf32>
    %194 = vector.shape_cast %193 : vector<1x1x32xf32> to vector<1x32xf32>
    %195 = vector.broadcast %194 : vector<1x32xf32> to vector<10x32xf32>
    %196 = arith.addf %192, %195 : vector<10x32xf32>
    %c1 = arith.constant 1 : index
    %c0_91 = arith.constant 0 : index
    %c0_92 = arith.constant 0 : index
    %197 = vector.load %arg10[%c1, %c0_91, %c0_92] : memref<2x1x32xf32, #tpu.memory_space<vmem>>, vector<1x1x32xf32>
    %198 = vector.shape_cast %197 : vector<1x1x32xf32> to vector<1x32xf32>
    %c1_93 = arith.constant 1 : index
    %c0_94 = arith.constant 0 : index
    %c0_95 = arith.constant 0 : index
    %199 = vector.load %arg11[%c1_93, %c0_94, %c0_95] : memref<2x1x32xf32, #tpu.memory_space<vmem>>, vector<1x1x32xf32>
    %200 = vector.shape_cast %199 : vector<1x1x32xf32> to vector<1x32xf32>
    %cst_96 = arith.constant dense<0.000000e+00> : vector<10xf32>
    %201 = vector.multi_reduction <add>, %196, %cst_96 [1] : vector<10x32xf32> to vector<10xf32>
    %202 = vector.shape_cast %201 : vector<10xf32> to vector<10x1xf32>
    %cst_97 = arith.constant 3.200000e+01 : f32
    %203 = vector.broadcast %cst_97 : f32 to vector<10x1xf32>
    %204 = arith.divf %202, %203 : vector<10x1xf32>
    %205 = vector.broadcast %204 : vector<10x1xf32> to vector<10x32xf32>
    %206 = arith.subf %196, %205 : vector<10x32xf32>
    %207 = arith.mulf %206, %206 : vector<10x32xf32>
    %cst_98 = arith.constant dense<0.000000e+00> : vector<10xf32>
    %208 = vector.multi_reduction <add>, %207, %cst_98 [1] : vector<10x32xf32> to vector<10xf32>
    %209 = vector.shape_cast %208 : vector<10xf32> to vector<10x1xf32>
    %cst_99 = arith.constant 3.200000e+01 : f32
    %210 = vector.broadcast %cst_99 : f32 to vector<10x1xf32>
    %211 = arith.divf %209, %210 : vector<10x1xf32>
    %212 = vector.broadcast %204 : vector<10x1xf32> to vector<10x32xf32>
    %213 = arith.subf %196, %212 : vector<10x32xf32>
    %cst_100 = arith.constant 9.99999974E-6 : f32
    %214 = vector.broadcast %cst_100 : f32 to vector<10x1xf32>
    %215 = arith.addf %211, %214 : vector<10x1xf32>
    %216 = math.rsqrt %215 : vector<10x1xf32>
    %217 = vector.broadcast %216 : vector<10x1xf32> to vector<10x32xf32>
    %218 = arith.mulf %213, %217 : vector<10x32xf32>
    %219 = vector.broadcast %198 : vector<1x32xf32> to vector<10x32xf32>
    %220 = arith.mulf %218, %219 : vector<10x32xf32>
    %221 = vector.broadcast %200 : vector<1x32xf32> to vector<10x32xf32>
    %222 = arith.addf %220, %221 : vector<10x32xf32>
    %c1_101 = arith.constant 1 : index
    %c0_102 = arith.constant 0 : index
    %c0_103 = arith.constant 0 : index
    %223 = vector.load %arg12[%c1_101, %c0_102, %c0_103] : memref<2x32x96xf32, #tpu.memory_space<vmem>>, vector<1x32x96xf32>
    %224 = vector.shape_cast %223 : vector<1x32x96xf32> to vector<32x96xf32>
    %cst_104 = arith.constant dense<0.000000e+00> : vector<10x96xf32>
    %225 = tpu.matmul %222, %224, %cst_104 {dimension_numbers = #tpu.dot_dimension_numbers<[1], [0], [0], [1], [0, 0, 1, 1], [], []>} : vector<10x32xf32>, vector<32x96xf32>, vector<10x96xf32> -> vector<10x96xf32>
    %c1_105 = arith.constant 1 : index
    %c0_106 = arith.constant 0 : index
    %c0_107 = arith.constant 0 : index
    %226 = vector.load %arg13[%c1_105, %c0_106, %c0_107] : memref<2x1x96xf32, #tpu.memory_space<vmem>>, vector<1x1x96xf32>
    %227 = vector.shape_cast %226 : vector<1x1x96xf32> to vector<1x96xf32>
    %228 = vector.broadcast %227 : vector<1x96xf32> to vector<10x96xf32>
    %229 = arith.addf %225, %228 : vector<10x96xf32>
    %230 = vector.extract_strided_slice %229 {offsets = [0, 0], sizes = [10, 32], strides = [1, 1]} : vector<10x96xf32> to vector<10x32xf32>
    %231 = vector.extract_strided_slice %229 {offsets = [0, 32], sizes = [10, 32], strides = [1, 1]} : vector<10x96xf32> to vector<10x32xf32>
    %232 = vector.extract_strided_slice %229 {offsets = [0, 64], sizes = [10, 32], strides = [1, 1]} : vector<10x96xf32> to vector<10x32xf32>
    %c1_108 = arith.constant 1 : index
    %c0_109 = arith.constant 0 : index
    %c0_110 = arith.constant 0 : index
    %233 = vector.load %arg14[%c1_108, %c0_109, %c0_110] : memref<2x32x32xf32, #tpu.memory_space<vmem>>, vector<1x32x32xf32>
    %234 = vector.shape_cast %233 : vector<1x32x32xf32> to vector<32x32xf32>
    %cst_111 = arith.constant 0.000000e+00 : f32
    %235 = vector.broadcast %cst_111 : f32 to vector<10x32xf32>
    %236 = vector.extract_strided_slice %230 {offsets = [0, 0], sizes = [10, 8], strides = [1, 1]} : vector<10x32xf32> to vector<10x8xf32>
    %237 = vector.extract_strided_slice %231 {offsets = [0, 0], sizes = [10, 8], strides = [1, 1]} : vector<10x32xf32> to vector<10x8xf32>
    %cst_112 = arith.constant dense<0.000000e+00> : vector<10x10xf32>
    %238 = tpu.matmul %236, %237, %cst_112 {dimension_numbers = #tpu.dot_dimension_numbers<[1], [1], [0], [0], [0, 0, 1, 0], [], []>} : vector<10x8xf32>, vector<10x8xf32>, vector<10x10xf32> -> vector<10x10xf32>
    %cst_113 = arith.constant 0.353553385 : f32
    %239 = vector.broadcast %cst_113 : f32 to vector<10x10xf32>
    %240 = arith.mulf %238, %239 : vector<10x10xf32>
    %241 = arith.addf %240, %14 : vector<10x10xf32>
    %cst_114 = arith.constant dense<0xFF800000> : vector<10xf32>
    %242 = vector.multi_reduction <maximumf>, %241, %cst_114 [1] : vector<10x10xf32> to vector<10xf32>
    %243 = vector.shape_cast %242 : vector<10xf32> to vector<10x1xf32>
    %244 = vector.broadcast %243 : vector<10x1xf32> to vector<10x10xf32>
    %245 = arith.subf %241, %244 : vector<10x10xf32>
    %246 = math.exp %245 : vector<10x10xf32>
    %cst_115 = arith.constant dense<0.000000e+00> : vector<10xf32>
    %247 = vector.multi_reduction <add>, %246, %cst_115 [1] : vector<10x10xf32> to vector<10xf32>
    %248 = vector.shape_cast %247 : vector<10xf32> to vector<10x1xf32>
    %249 = tpu.reciprocal %248 {approx = true} : vector<10x1xf32> -> vector<10x1xf32>
    %250 = vector.broadcast %249 : vector<10x1xf32> to vector<10x10xf32>
    %251 = arith.mulf %246, %250 : vector<10x10xf32>
    %252 = vector.extract_strided_slice %232 {offsets = [0, 0], sizes = [10, 8], strides = [1, 1]} : vector<10x32xf32> to vector<10x8xf32>
    %cst_116 = arith.constant dense<0.000000e+00> : vector<10x8xf32>
    %253 = tpu.matmul %251, %252, %cst_116 {dimension_numbers = #tpu.dot_dimension_numbers<[1], [0], [0], [1], [0, 0, 1, 1], [], []>} : vector<10x10xf32>, vector<10x8xf32>, vector<10x8xf32> -> vector<10x8xf32>
    %254 = vector.extract_strided_slice %234 {offsets = [0, 0], sizes = [8, 32], strides = [1, 1]} : vector<32x32xf32> to vector<8x32xf32>
    %cst_117 = arith.constant dense<0.000000e+00> : vector<10x32xf32>
    %255 = tpu.matmul %253, %254, %cst_117 {dimension_numbers = #tpu.dot_dimension_numbers<[1], [0], [0], [1], [0, 0, 1, 1], [], []>} : vector<10x8xf32>, vector<8x32xf32>, vector<10x32xf32> -> vector<10x32xf32>
    %256 = arith.addf %235, %255 : vector<10x32xf32>
    %257 = vector.extract_strided_slice %230 {offsets = [0, 8], sizes = [10, 8], strides = [1, 1]} : vector<10x32xf32> to vector<10x8xf32>
    %258 = vector.extract_strided_slice %231 {offsets = [0, 8], sizes = [10, 8], strides = [1, 1]} : vector<10x32xf32> to vector<10x8xf32>
    %cst_118 = arith.constant dense<0.000000e+00> : vector<10x10xf32>
    %259 = tpu.matmul %257, %258, %cst_118 {dimension_numbers = #tpu.dot_dimension_numbers<[1], [1], [0], [0], [0, 0, 1, 0], [], []>} : vector<10x8xf32>, vector<10x8xf32>, vector<10x10xf32> -> vector<10x10xf32>
    %cst_119 = arith.constant 0.353553385 : f32
    %260 = vector.broadcast %cst_119 : f32 to vector<10x10xf32>
    %261 = arith.mulf %259, %260 : vector<10x10xf32>
    %262 = arith.addf %261, %14 : vector<10x10xf32>
    %cst_120 = arith.constant dense<0xFF800000> : vector<10xf32>
    %263 = vector.multi_reduction <maximumf>, %262, %cst_120 [1] : vector<10x10xf32> to vector<10xf32>
    %264 = vector.shape_cast %263 : vector<10xf32> to vector<10x1xf32>
    %265 = vector.broadcast %264 : vector<10x1xf32> to vector<10x10xf32>
    %266 = arith.subf %262, %265 : vector<10x10xf32>
    %267 = math.exp %266 : vector<10x10xf32>
    %cst_121 = arith.constant dense<0.000000e+00> : vector<10xf32>
    %268 = vector.multi_reduction <add>, %267, %cst_121 [1] : vector<10x10xf32> to vector<10xf32>
    %269 = vector.shape_cast %268 : vector<10xf32> to vector<10x1xf32>
    %270 = tpu.reciprocal %269 {approx = true} : vector<10x1xf32> -> vector<10x1xf32>
    %271 = vector.broadcast %270 : vector<10x1xf32> to vector<10x10xf32>
    %272 = arith.mulf %267, %271 : vector<10x10xf32>
    %273 = vector.extract_strided_slice %232 {offsets = [0, 8], sizes = [10, 8], strides = [1, 1]} : vector<10x32xf32> to vector<10x8xf32>
    %cst_122 = arith.constant dense<0.000000e+00> : vector<10x8xf32>
    %274 = tpu.matmul %272, %273, %cst_122 {dimension_numbers = #tpu.dot_dimension_numbers<[1], [0], [0], [1], [0, 0, 1, 1], [], []>} : vector<10x10xf32>, vector<10x8xf32>, vector<10x8xf32> -> vector<10x8xf32>
    %275 = vector.extract_strided_slice %234 {offsets = [8, 0], sizes = [8, 32], strides = [1, 1]} : vector<32x32xf32> to vector<8x32xf32>
    %cst_123 = arith.constant dense<0.000000e+00> : vector<10x32xf32>
    %276 = tpu.matmul %274, %275, %cst_123 {dimension_numbers = #tpu.dot_dimension_numbers<[1], [0], [0], [1], [0, 0, 1, 1], [], []>} : vector<10x8xf32>, vector<8x32xf32>, vector<10x32xf32> -> vector<10x32xf32>
    %277 = arith.addf %256, %276 : vector<10x32xf32>
    %278 = vector.extract_strided_slice %230 {offsets = [0, 16], sizes = [10, 8], strides = [1, 1]} : vector<10x32xf32> to vector<10x8xf32>
    %279 = vector.extract_strided_slice %231 {offsets = [0, 16], sizes = [10, 8], strides = [1, 1]} : vector<10x32xf32> to vector<10x8xf32>
    %cst_124 = arith.constant dense<0.000000e+00> : vector<10x10xf32>
    %280 = tpu.matmul %278, %279, %cst_124 {dimension_numbers = #tpu.dot_dimension_numbers<[1], [1], [0], [0], [0, 0, 1, 0], [], []>} : vector<10x8xf32>, vector<10x8xf32>, vector<10x10xf32> -> vector<10x10xf32>
    %cst_125 = arith.constant 0.353553385 : f32
    %281 = vector.broadcast %cst_125 : f32 to vector<10x10xf32>
    %282 = arith.mulf %280, %281 : vector<10x10xf32>
    %283 = arith.addf %282, %14 : vector<10x10xf32>
    %cst_126 = arith.constant dense<0xFF800000> : vector<10xf32>
    %284 = vector.multi_reduction <maximumf>, %283, %cst_126 [1] : vector<10x10xf32> to vector<10xf32>
    %285 = vector.shape_cast %284 : vector<10xf32> to vector<10x1xf32>
    %286 = vector.broadcast %285 : vector<10x1xf32> to vector<10x10xf32>
    %287 = arith.subf %283, %286 : vector<10x10xf32>
    %288 = math.exp %287 : vector<10x10xf32>
    %cst_127 = arith.constant dense<0.000000e+00> : vector<10xf32>
    %289 = vector.multi_reduction <add>, %288, %cst_127 [1] : vector<10x10xf32> to vector<10xf32>
    %290 = vector.shape_cast %289 : vector<10xf32> to vector<10x1xf32>
    %291 = tpu.reciprocal %290 {approx = true} : vector<10x1xf32> -> vector<10x1xf32>
    %292 = vector.broadcast %291 : vector<10x1xf32> to vector<10x10xf32>
    %293 = arith.mulf %288, %292 : vector<10x10xf32>
    %294 = vector.extract_strided_slice %232 {offsets = [0, 16], sizes = [10, 8], strides = [1, 1]} : vector<10x32xf32> to vector<10x8xf32>
    %cst_128 = arith.constant dense<0.000000e+00> : vector<10x8xf32>
    %295 = tpu.matmul %293, %294, %cst_128 {dimension_numbers = #tpu.dot_dimension_numbers<[1], [0], [0], [1], [0, 0, 1, 1], [], []>} : vector<10x10xf32>, vector<10x8xf32>, vector<10x8xf32> -> vector<10x8xf32>
    %296 = vector.extract_strided_slice %234 {offsets = [16, 0], sizes = [8, 32], strides = [1, 1]} : vector<32x32xf32> to vector<8x32xf32>
    %cst_129 = arith.constant dense<0.000000e+00> : vector<10x32xf32>
    %297 = tpu.matmul %295, %296, %cst_129 {dimension_numbers = #tpu.dot_dimension_numbers<[1], [0], [0], [1], [0, 0, 1, 1], [], []>} : vector<10x8xf32>, vector<8x32xf32>, vector<10x32xf32> -> vector<10x32xf32>
    %298 = arith.addf %277, %297 : vector<10x32xf32>
    %299 = vector.extract_strided_slice %230 {offsets = [0, 24], sizes = [10, 8], strides = [1, 1]} : vector<10x32xf32> to vector<10x8xf32>
    %300 = vector.extract_strided_slice %231 {offsets = [0, 24], sizes = [10, 8], strides = [1, 1]} : vector<10x32xf32> to vector<10x8xf32>
    %cst_130 = arith.constant dense<0.000000e+00> : vector<10x10xf32>
    %301 = tpu.matmul %299, %300, %cst_130 {dimension_numbers = #tpu.dot_dimension_numbers<[1], [1], [0], [0], [0, 0, 1, 0], [], []>} : vector<10x8xf32>, vector<10x8xf32>, vector<10x10xf32> -> vector<10x10xf32>
    %cst_131 = arith.constant 0.353553385 : f32
    %302 = vector.broadcast %cst_131 : f32 to vector<10x10xf32>
    %303 = arith.mulf %301, %302 : vector<10x10xf32>
    %304 = arith.addf %303, %14 : vector<10x10xf32>
    %cst_132 = arith.constant dense<0xFF800000> : vector<10xf32>
    %305 = vector.multi_reduction <maximumf>, %304, %cst_132 [1] : vector<10x10xf32> to vector<10xf32>
    %306 = vector.shape_cast %305 : vector<10xf32> to vector<10x1xf32>
    %307 = vector.broadcast %306 : vector<10x1xf32> to vector<10x10xf32>
    %308 = arith.subf %304, %307 : vector<10x10xf32>
    %309 = math.exp %308 : vector<10x10xf32>
    %cst_133 = arith.constant dense<0.000000e+00> : vector<10xf32>
    %310 = vector.multi_reduction <add>, %309, %cst_133 [1] : vector<10x10xf32> to vector<10xf32>
    %311 = vector.shape_cast %310 : vector<10xf32> to vector<10x1xf32>
    %312 = tpu.reciprocal %311 {approx = true} : vector<10x1xf32> -> vector<10x1xf32>
    %313 = vector.broadcast %312 : vector<10x1xf32> to vector<10x10xf32>
    %314 = arith.mulf %309, %313 : vector<10x10xf32>
    %315 = vector.extract_strided_slice %232 {offsets = [0, 24], sizes = [10, 8], strides = [1, 1]} : vector<10x32xf32> to vector<10x8xf32>
    %cst_134 = arith.constant dense<0.000000e+00> : vector<10x8xf32>
    %316 = tpu.matmul %314, %315, %cst_134 {dimension_numbers = #tpu.dot_dimension_numbers<[1], [0], [0], [1], [0, 0, 1, 1], [], []>} : vector<10x10xf32>, vector<10x8xf32>, vector<10x8xf32> -> vector<10x8xf32>
    %317 = vector.extract_strided_slice %234 {offsets = [24, 0], sizes = [8, 32], strides = [1, 1]} : vector<32x32xf32> to vector<8x32xf32>
    %cst_135 = arith.constant dense<0.000000e+00> : vector<10x32xf32>
    %318 = tpu.matmul %316, %317, %cst_135 {dimension_numbers = #tpu.dot_dimension_numbers<[1], [0], [0], [1], [0, 0, 1, 1], [], []>} : vector<10x8xf32>, vector<8x32xf32>, vector<10x32xf32> -> vector<10x32xf32>
    %319 = arith.addf %298, %318 : vector<10x32xf32>
    %320 = arith.addf %196, %319 : vector<10x32xf32>
    %c1_136 = arith.constant 1 : index
    %c0_137 = arith.constant 0 : index
    %c0_138 = arith.constant 0 : index
    %321 = vector.load %arg15[%c1_136, %c0_137, %c0_138] : memref<2x1x32xf32, #tpu.memory_space<vmem>>, vector<1x1x32xf32>
    %322 = vector.shape_cast %321 : vector<1x1x32xf32> to vector<1x32xf32>
    %323 = vector.broadcast %322 : vector<1x32xf32> to vector<10x32xf32>
    %324 = arith.addf %320, %323 : vector<10x32xf32>
    %c1_139 = arith.constant 1 : index
    %c0_140 = arith.constant 0 : index
    %c0_141 = arith.constant 0 : index
    %325 = vector.load %arg16[%c1_139, %c0_140, %c0_141] : memref<2x1x32xf32, #tpu.memory_space<vmem>>, vector<1x1x32xf32>
    %326 = vector.shape_cast %325 : vector<1x1x32xf32> to vector<1x32xf32>
    %c1_142 = arith.constant 1 : index
    %c0_143 = arith.constant 0 : index
    %c0_144 = arith.constant 0 : index
    %327 = vector.load %arg17[%c1_142, %c0_143, %c0_144] : memref<2x1x32xf32, #tpu.memory_space<vmem>>, vector<1x1x32xf32>
    %328 = vector.shape_cast %327 : vector<1x1x32xf32> to vector<1x32xf32>
    %cst_145 = arith.constant dense<0.000000e+00> : vector<10xf32>
    %329 = vector.multi_reduction <add>, %324, %cst_145 [1] : vector<10x32xf32> to vector<10xf32>
    %330 = vector.shape_cast %329 : vector<10xf32> to vector<10x1xf32>
    %cst_146 = arith.constant 3.200000e+01 : f32
    %331 = vector.broadcast %cst_146 : f32 to vector<10x1xf32>
    %332 = arith.divf %330, %331 : vector<10x1xf32>
    %333 = vector.broadcast %332 : vector<10x1xf32> to vector<10x32xf32>
    %334 = arith.subf %324, %333 : vector<10x32xf32>
    %335 = arith.mulf %334, %334 : vector<10x32xf32>
    %cst_147 = arith.constant dense<0.000000e+00> : vector<10xf32>
    %336 = vector.multi_reduction <add>, %335, %cst_147 [1] : vector<10x32xf32> to vector<10xf32>
    %337 = vector.shape_cast %336 : vector<10xf32> to vector<10x1xf32>
    %cst_148 = arith.constant 3.200000e+01 : f32
    %338 = vector.broadcast %cst_148 : f32 to vector<10x1xf32>
    %339 = arith.divf %337, %338 : vector<10x1xf32>
    %340 = vector.broadcast %332 : vector<10x1xf32> to vector<10x32xf32>
    %341 = arith.subf %324, %340 : vector<10x32xf32>
    %cst_149 = arith.constant 9.99999974E-6 : f32
    %342 = vector.broadcast %cst_149 : f32 to vector<10x1xf32>
    %343 = arith.addf %339, %342 : vector<10x1xf32>
    %344 = math.rsqrt %343 : vector<10x1xf32>
    %345 = vector.broadcast %344 : vector<10x1xf32> to vector<10x32xf32>
    %346 = arith.mulf %341, %345 : vector<10x32xf32>
    %347 = vector.broadcast %326 : vector<1x32xf32> to vector<10x32xf32>
    %348 = arith.mulf %346, %347 : vector<10x32xf32>
    %349 = vector.broadcast %328 : vector<1x32xf32> to vector<10x32xf32>
    %350 = arith.addf %348, %349 : vector<10x32xf32>
    %c1_150 = arith.constant 1 : index
    %c0_151 = arith.constant 0 : index
    %c0_152 = arith.constant 0 : index
    %351 = vector.load %arg18[%c1_150, %c0_151, %c0_152] : memref<2x32x128xf32, #tpu.memory_space<vmem>>, vector<1x32x128xf32>
    %352 = vector.shape_cast %351 : vector<1x32x128xf32> to vector<32x128xf32>
    %cst_153 = arith.constant dense<0.000000e+00> : vector<10x128xf32>
    %353 = tpu.matmul %350, %352, %cst_153 {dimension_numbers = #tpu.dot_dimension_numbers<[1], [0], [0], [1], [0, 0, 1, 1], [], []>} : vector<10x32xf32>, vector<32x128xf32>, vector<10x128xf32> -> vector<10x128xf32>
    %c1_154 = arith.constant 1 : index
    %c0_155 = arith.constant 0 : index
    %c0_156 = arith.constant 0 : index
    %354 = vector.load %arg19[%c1_154, %c0_155, %c0_156] : memref<2x1x128xf32, #tpu.memory_space<vmem>>, vector<1x1x128xf32>
    %355 = vector.shape_cast %354 : vector<1x1x128xf32> to vector<1x128xf32>
    %356 = vector.broadcast %355 : vector<1x128xf32> to vector<10x128xf32>
    %357 = arith.addf %353, %356 : vector<10x128xf32>
    %358 = arith.mulf %357, %357 : vector<10x128xf32>
    %359 = arith.mulf %357, %358 : vector<10x128xf32>
    %cst_157 = arith.constant 4.471500e-02 : f32
    %360 = vector.broadcast %cst_157 : f32 to vector<10x128xf32>
    %361 = arith.mulf %360, %359 : vector<10x128xf32>
    %362 = arith.addf %357, %361 : vector<10x128xf32>
    %cst_158 = arith.constant 0.797884583 : f32
    %363 = vector.broadcast %cst_158 : f32 to vector<10x128xf32>
    %364 = arith.mulf %363, %362 : vector<10x128xf32>
    %365 = math.tanh %364 : vector<10x128xf32>
    %cst_159 = arith.constant 1.000000e+00 : f32
    %366 = vector.broadcast %cst_159 : f32 to vector<10x128xf32>
    %367 = arith.addf %366, %365 : vector<10x128xf32>
    %cst_160 = arith.constant 5.000000e-01 : f32
    %368 = vector.broadcast %cst_160 : f32 to vector<10x128xf32>
    %369 = arith.mulf %368, %367 : vector<10x128xf32>
    %370 = arith.mulf %357, %369 : vector<10x128xf32>
    %c1_161 = arith.constant 1 : index
    %c0_162 = arith.constant 0 : index
    %c0_163 = arith.constant 0 : index
    %371 = vector.load %arg20[%c1_161, %c0_162, %c0_163] : memref<2x128x32xf32, #tpu.memory_space<vmem>>, vector<1x128x32xf32>
    %372 = vector.shape_cast %371 : vector<1x128x32xf32> to vector<128x32xf32>
    %cst_164 = arith.constant dense<0.000000e+00> : vector<10x32xf32>
    %373 = tpu.matmul %370, %372, %cst_164 {dimension_numbers = #tpu.dot_dimension_numbers<[1], [0], [0], [1], [0, 0, 1, 1], [], []>} : vector<10x128xf32>, vector<128x32xf32>, vector<10x32xf32> -> vector<10x32xf32>
    %374 = arith.addf %324, %373 : vector<10x32xf32>
    %c1_165 = arith.constant 1 : index
    %c0_166 = arith.constant 0 : index
    %c0_167 = arith.constant 0 : index
    %375 = vector.load %arg21[%c1_165, %c0_166, %c0_167] : memref<2x1x32xf32, #tpu.memory_space<vmem>>, vector<1x1x32xf32>
    %376 = vector.shape_cast %375 : vector<1x1x32xf32> to vector<1x32xf32>
    %377 = vector.broadcast %376 : vector<1x32xf32> to vector<10x32xf32>
    %378 = arith.addf %374, %377 : vector<10x32xf32>
    %c0_168 = arith.constant 0 : index
    %c0_169 = arith.constant 0 : index
    %379 = vector.load %arg22[%c0_168, %c0_169] : memref<1x32xf32, #tpu.memory_space<vmem>>, vector<1x32xf32>
    %c0_170 = arith.constant 0 : index
    %c0_171 = arith.constant 0 : index
    %380 = vector.load %arg23[%c0_170, %c0_171] : memref<1x32xf32, #tpu.memory_space<vmem>>, vector<1x32xf32>
    %cst_172 = arith.constant dense<0.000000e+00> : vector<10xf32>
    %381 = vector.multi_reduction <add>, %378, %cst_172 [1] : vector<10x32xf32> to vector<10xf32>
    %382 = vector.shape_cast %381 : vector<10xf32> to vector<10x1xf32>
    %cst_173 = arith.constant 3.200000e+01 : f32
    %383 = vector.broadcast %cst_173 : f32 to vector<10x1xf32>
    %384 = arith.divf %382, %383 : vector<10x1xf32>
    %385 = vector.broadcast %384 : vector<10x1xf32> to vector<10x32xf32>
    %386 = arith.subf %378, %385 : vector<10x32xf32>
    %387 = arith.mulf %386, %386 : vector<10x32xf32>
    %cst_174 = arith.constant dense<0.000000e+00> : vector<10xf32>
    %388 = vector.multi_reduction <add>, %387, %cst_174 [1] : vector<10x32xf32> to vector<10xf32>
    %389 = vector.shape_cast %388 : vector<10xf32> to vector<10x1xf32>
    %cst_175 = arith.constant 3.200000e+01 : f32
    %390 = vector.broadcast %cst_175 : f32 to vector<10x1xf32>
    %391 = arith.divf %389, %390 : vector<10x1xf32>
    %392 = vector.broadcast %384 : vector<10x1xf32> to vector<10x32xf32>
    %393 = arith.subf %378, %392 : vector<10x32xf32>
    %cst_176 = arith.constant 9.99999974E-6 : f32
    %394 = vector.broadcast %cst_176 : f32 to vector<10x1xf32>
    %395 = arith.addf %391, %394 : vector<10x1xf32>
    %396 = math.rsqrt %395 : vector<10x1xf32>
    %397 = vector.broadcast %396 : vector<10x1xf32> to vector<10x32xf32>
    %398 = arith.mulf %393, %397 : vector<10x32xf32>
    %399 = vector.broadcast %379 : vector<1x32xf32> to vector<10x32xf32>
    %400 = arith.mulf %398, %399 : vector<10x32xf32>
    %401 = vector.broadcast %380 : vector<1x32xf32> to vector<10x32xf32>
    %402 = arith.addf %400, %401 : vector<10x32xf32>
    %c0_177 = arith.constant 0 : index
    %c0_178 = arith.constant 0 : index
    %403 = vector.load %arg4[%c0_177, %c0_178] : memref<16x1xi32, #tpu.memory_space<vmem>>, vector<16x1xi32>
    %404 = tpu.iota {dimensions = array<i32: 1>} : vector<16x64xi32>
    %405 = vector.broadcast %403 : vector<16x1xi32> to vector<16x64xi32>
    %406 = arith.cmpi eq, %404, %405 : vector<16x64xi32>
    %407 = arith.extui %406 : vector<16x64xi1> to vector<16x64xi32>
    %408 = arith.sitofp %407 : vector<16x64xi32> to vector<16x64xf32>
    %c0_179 = arith.constant 0 : index
    %c0_180 = arith.constant 0 : index
    %409 = vector.load %arg24[%c0_179, %c0_180] : memref<64x32xf32, #tpu.memory_space<vmem>>, vector<64x32xf32>
    %cst_181 = arith.constant dense<0.000000e+00> : vector<16x32xf32>
    %410 = tpu.matmul %408, %409, %cst_181 {dimension_numbers = #tpu.dot_dimension_numbers<[1], [0], [0], [1], [0, 0, 1, 1], [], []>} : vector<16x64xf32>, vector<64x32xf32>, vector<16x32xf32> -> vector<16x32xf32>
    %c0_182 = arith.constant 0 : index
    %c0_183 = arith.constant 0 : index
    %411 = vector.load %arg25[%c0_182, %c0_183] : memref<8x32xf32, #tpu.memory_space<vmem>>, vector<8x32xf32>
    %412 = tpu.concatenate %411, %411 in 0 : vector<8x32xf32>, vector<8x32xf32> -> vector<16x32xf32>
    %413 = arith.addf %410, %412 : vector<16x32xf32>
    %c0_184 = arith.constant 0 : index
    %c0_185 = arith.constant 0 : index
    %414 = vector.load %arg2[%c0_184, %c0_185] : memref<16x16xf32, #tpu.memory_space<vmem>>, vector<16x16xf32>
    %c0_186 = arith.constant 0 : index
    %c0_187 = arith.constant 0 : index
    %415 = vector.load %arg3[%c0_186, %c0_187] : memref<16x10xf32, #tpu.memory_space<vmem>>, vector<16x10xf32>
    %c0_188 = arith.constant 0 : index
    %c0_189 = arith.constant 0 : index
    %c0_190 = arith.constant 0 : index
    %416 = vector.load %arg26[%c0_188, %c0_189, %c0_190] : memref<2x1x32xf32, #tpu.memory_space<vmem>>, vector<1x1x32xf32>
    %417 = vector.shape_cast %416 : vector<1x1x32xf32> to vector<1x32xf32>
    %c0_191 = arith.constant 0 : index
    %c0_192 = arith.constant 0 : index
    %c0_193 = arith.constant 0 : index
    %418 = vector.load %arg27[%c0_191, %c0_192, %c0_193] : memref<2x1x32xf32, #tpu.memory_space<vmem>>, vector<1x1x32xf32>
    %419 = vector.shape_cast %418 : vector<1x1x32xf32> to vector<1x32xf32>
    %cst_194 = arith.constant dense<0.000000e+00> : vector<16xf32>
    %420 = vector.multi_reduction <add>, %413, %cst_194 [1] : vector<16x32xf32> to vector<16xf32>
    %421 = vector.shape_cast %420 : vector<16xf32> to vector<16x1xf32>
    %cst_195 = arith.constant 3.200000e+01 : f32
    %422 = vector.broadcast %cst_195 : f32 to vector<16x1xf32>
    %423 = arith.divf %421, %422 : vector<16x1xf32>
    %424 = vector.broadcast %423 : vector<16x1xf32> to vector<16x32xf32>
    %425 = arith.subf %413, %424 : vector<16x32xf32>
    %426 = arith.mulf %425, %425 : vector<16x32xf32>
    %cst_196 = arith.constant dense<0.000000e+00> : vector<16xf32>
    %427 = vector.multi_reduction <add>, %426, %cst_196 [1] : vector<16x32xf32> to vector<16xf32>
    %428 = vector.shape_cast %427 : vector<16xf32> to vector<16x1xf32>
    %cst_197 = arith.constant 3.200000e+01 : f32
    %429 = vector.broadcast %cst_197 : f32 to vector<16x1xf32>
    %430 = arith.divf %428, %429 : vector<16x1xf32>
    %431 = vector.broadcast %423 : vector<16x1xf32> to vector<16x32xf32>
    %432 = arith.subf %413, %431 : vector<16x32xf32>
    %cst_198 = arith.constant 9.99999974E-6 : f32
    %433 = vector.broadcast %cst_198 : f32 to vector<16x1xf32>
    %434 = arith.addf %430, %433 : vector<16x1xf32>
    %435 = math.rsqrt %434 : vector<16x1xf32>
    %436 = vector.broadcast %435 : vector<16x1xf32> to vector<16x32xf32>
    %437 = arith.mulf %432, %436 : vector<16x32xf32>
    %438 = vector.broadcast %417 : vector<1x32xf32> to vector<16x32xf32>
    %439 = arith.mulf %437, %438 : vector<16x32xf32>
    %440 = vector.broadcast %419 : vector<1x32xf32> to vector<16x32xf32>
    %441 = arith.addf %439, %440 : vector<16x32xf32>
    %c0_199 = arith.constant 0 : index
    %c0_200 = arith.constant 0 : index
    %c0_201 = arith.constant 0 : index
    %442 = vector.load %arg28[%c0_199, %c0_200, %c0_201] : memref<2x32x96xf32, #tpu.memory_space<vmem>>, vector<1x32x96xf32>
    %443 = vector.shape_cast %442 : vector<1x32x96xf32> to vector<32x96xf32>
    %cst_202 = arith.constant dense<0.000000e+00> : vector<16x96xf32>
    %444 = tpu.matmul %441, %443, %cst_202 {dimension_numbers = #tpu.dot_dimension_numbers<[1], [0], [0], [1], [0, 0, 1, 1], [], []>} : vector<16x32xf32>, vector<32x96xf32>, vector<16x96xf32> -> vector<16x96xf32>
    %c0_203 = arith.constant 0 : index
    %c0_204 = arith.constant 0 : index
    %c0_205 = arith.constant 0 : index
    %445 = vector.load %arg29[%c0_203, %c0_204, %c0_205] : memref<2x1x96xf32, #tpu.memory_space<vmem>>, vector<1x1x96xf32>
    %446 = vector.shape_cast %445 : vector<1x1x96xf32> to vector<1x96xf32>
    %447 = vector.broadcast %446 : vector<1x96xf32> to vector<16x96xf32>
    %448 = arith.addf %444, %447 : vector<16x96xf32>
    %449 = vector.extract_strided_slice %448 {offsets = [0, 0], sizes = [16, 32], strides = [1, 1]} : vector<16x96xf32> to vector<16x32xf32>
    %450 = vector.extract_strided_slice %448 {offsets = [0, 32], sizes = [16, 32], strides = [1, 1]} : vector<16x96xf32> to vector<16x32xf32>
    %451 = vector.extract_strided_slice %448 {offsets = [0, 64], sizes = [16, 32], strides = [1, 1]} : vector<16x96xf32> to vector<16x32xf32>
    %c0_206 = arith.constant 0 : index
    %c0_207 = arith.constant 0 : index
    %c0_208 = arith.constant 0 : index
    %452 = vector.load %arg30[%c0_206, %c0_207, %c0_208] : memref<2x32x32xf32, #tpu.memory_space<vmem>>, vector<1x32x32xf32>
    %453 = vector.shape_cast %452 : vector<1x32x32xf32> to vector<32x32xf32>
    %cst_209 = arith.constant 0.000000e+00 : f32
    %454 = vector.broadcast %cst_209 : f32 to vector<16x32xf32>
    %455 = vector.extract_strided_slice %449 {offsets = [0, 0], sizes = [16, 8], strides = [1, 1]} : vector<16x32xf32> to vector<16x8xf32>
    %456 = vector.extract_strided_slice %450 {offsets = [0, 0], sizes = [16, 8], strides = [1, 1]} : vector<16x32xf32> to vector<16x8xf32>
    %cst_210 = arith.constant dense<0.000000e+00> : vector<16x16xf32>
    %457 = tpu.matmul %455, %456, %cst_210 {dimension_numbers = #tpu.dot_dimension_numbers<[1], [1], [0], [0], [0, 0, 1, 0], [], []>} : vector<16x8xf32>, vector<16x8xf32>, vector<16x16xf32> -> vector<16x16xf32>
    %cst_211 = arith.constant 0.353553385 : f32
    %458 = vector.broadcast %cst_211 : f32 to vector<16x16xf32>
    %459 = arith.mulf %457, %458 : vector<16x16xf32>
    %460 = arith.addf %459, %414 : vector<16x16xf32>
    %cst_212 = arith.constant dense<0xFF800000> : vector<16xf32>
    %461 = vector.multi_reduction <maximumf>, %460, %cst_212 [1] : vector<16x16xf32> to vector<16xf32>
    %462 = vector.shape_cast %461 : vector<16xf32> to vector<16x1xf32>
    %463 = vector.broadcast %462 : vector<16x1xf32> to vector<16x16xf32>
    %464 = arith.subf %460, %463 : vector<16x16xf32>
    %465 = math.exp %464 : vector<16x16xf32>
    %cst_213 = arith.constant dense<0.000000e+00> : vector<16xf32>
    %466 = vector.multi_reduction <add>, %465, %cst_213 [1] : vector<16x16xf32> to vector<16xf32>
    %467 = vector.shape_cast %466 : vector<16xf32> to vector<16x1xf32>
    %468 = tpu.reciprocal %467 {approx = true} : vector<16x1xf32> -> vector<16x1xf32>
    %469 = vector.broadcast %468 : vector<16x1xf32> to vector<16x16xf32>
    %470 = arith.mulf %465, %469 : vector<16x16xf32>
    %471 = vector.extract_strided_slice %451 {offsets = [0, 0], sizes = [16, 8], strides = [1, 1]} : vector<16x32xf32> to vector<16x8xf32>
    %cst_214 = arith.constant dense<0.000000e+00> : vector<16x8xf32>
    %472 = tpu.matmul %470, %471, %cst_214 {dimension_numbers = #tpu.dot_dimension_numbers<[1], [0], [0], [1], [0, 0, 1, 1], [], []>} : vector<16x16xf32>, vector<16x8xf32>, vector<16x8xf32> -> vector<16x8xf32>
    %473 = vector.extract_strided_slice %453 {offsets = [0, 0], sizes = [8, 32], strides = [1, 1]} : vector<32x32xf32> to vector<8x32xf32>
    %cst_215 = arith.constant dense<0.000000e+00> : vector<16x32xf32>
    %474 = tpu.matmul %472, %473, %cst_215 {dimension_numbers = #tpu.dot_dimension_numbers<[1], [0], [0], [1], [0, 0, 1, 1], [], []>} : vector<16x8xf32>, vector<8x32xf32>, vector<16x32xf32> -> vector<16x32xf32>
    %475 = arith.addf %454, %474 : vector<16x32xf32>
    %476 = vector.extract_strided_slice %449 {offsets = [0, 8], sizes = [16, 8], strides = [1, 1]} : vector<16x32xf32> to vector<16x8xf32>
    %477 = vector.extract_strided_slice %450 {offsets = [0, 8], sizes = [16, 8], strides = [1, 1]} : vector<16x32xf32> to vector<16x8xf32>
    %cst_216 = arith.constant dense<0.000000e+00> : vector<16x16xf32>
    %478 = tpu.matmul %476, %477, %cst_216 {dimension_numbers = #tpu.dot_dimension_numbers<[1], [1], [0], [0], [0, 0, 1, 0], [], []>} : vector<16x8xf32>, vector<16x8xf32>, vector<16x16xf32> -> vector<16x16xf32>
    %cst_217 = arith.constant 0.353553385 : f32
    %479 = vector.broadcast %cst_217 : f32 to vector<16x16xf32>
    %480 = arith.mulf %478, %479 : vector<16x16xf32>
    %481 = arith.addf %480, %414 : vector<16x16xf32>
    %cst_218 = arith.constant dense<0xFF800000> : vector<16xf32>
    %482 = vector.multi_reduction <maximumf>, %481, %cst_218 [1] : vector<16x16xf32> to vector<16xf32>
    %483 = vector.shape_cast %482 : vector<16xf32> to vector<16x1xf32>
    %484 = vector.broadcast %483 : vector<16x1xf32> to vector<16x16xf32>
    %485 = arith.subf %481, %484 : vector<16x16xf32>
    %486 = math.exp %485 : vector<16x16xf32>
    %cst_219 = arith.constant dense<0.000000e+00> : vector<16xf32>
    %487 = vector.multi_reduction <add>, %486, %cst_219 [1] : vector<16x16xf32> to vector<16xf32>
    %488 = vector.shape_cast %487 : vector<16xf32> to vector<16x1xf32>
    %489 = tpu.reciprocal %488 {approx = true} : vector<16x1xf32> -> vector<16x1xf32>
    %490 = vector.broadcast %489 : vector<16x1xf32> to vector<16x16xf32>
    %491 = arith.mulf %486, %490 : vector<16x16xf32>
    %492 = vector.extract_strided_slice %451 {offsets = [0, 8], sizes = [16, 8], strides = [1, 1]} : vector<16x32xf32> to vector<16x8xf32>
    %cst_220 = arith.constant dense<0.000000e+00> : vector<16x8xf32>
    %493 = tpu.matmul %491, %492, %cst_220 {dimension_numbers = #tpu.dot_dimension_numbers<[1], [0], [0], [1], [0, 0, 1, 1], [], []>} : vector<16x16xf32>, vector<16x8xf32>, vector<16x8xf32> -> vector<16x8xf32>
    %494 = vector.extract_strided_slice %453 {offsets = [8, 0], sizes = [8, 32], strides = [1, 1]} : vector<32x32xf32> to vector<8x32xf32>
    %cst_221 = arith.constant dense<0.000000e+00> : vector<16x32xf32>
    %495 = tpu.matmul %493, %494, %cst_221 {dimension_numbers = #tpu.dot_dimension_numbers<[1], [0], [0], [1], [0, 0, 1, 1], [], []>} : vector<16x8xf32>, vector<8x32xf32>, vector<16x32xf32> -> vector<16x32xf32>
    %496 = arith.addf %475, %495 : vector<16x32xf32>
    %497 = vector.extract_strided_slice %449 {offsets = [0, 16], sizes = [16, 8], strides = [1, 1]} : vector<16x32xf32> to vector<16x8xf32>
    %498 = vector.extract_strided_slice %450 {offsets = [0, 16], sizes = [16, 8], strides = [1, 1]} : vector<16x32xf32> to vector<16x8xf32>
    %cst_222 = arith.constant dense<0.000000e+00> : vector<16x16xf32>
    %499 = tpu.matmul %497, %498, %cst_222 {dimension_numbers = #tpu.dot_dimension_numbers<[1], [1], [0], [0], [0, 0, 1, 0], [], []>} : vector<16x8xf32>, vector<16x8xf32>, vector<16x16xf32> -> vector<16x16xf32>
    %cst_223 = arith.constant 0.353553385 : f32
    %500 = vector.broadcast %cst_223 : f32 to vector<16x16xf32>
    %501 = arith.mulf %499, %500 : vector<16x16xf32>
    %502 = arith.addf %501, %414 : vector<16x16xf32>
    %cst_224 = arith.constant dense<0xFF800000> : vector<16xf32>
    %503 = vector.multi_reduction <maximumf>, %502, %cst_224 [1] : vector<16x16xf32> to vector<16xf32>
    %504 = vector.shape_cast %503 : vector<16xf32> to vector<16x1xf32>
    %505 = vector.broadcast %504 : vector<16x1xf32> to vector<16x16xf32>
    %506 = arith.subf %502, %505 : vector<16x16xf32>
    %507 = math.exp %506 : vector<16x16xf32>
    %cst_225 = arith.constant dense<0.000000e+00> : vector<16xf32>
    %508 = vector.multi_reduction <add>, %507, %cst_225 [1] : vector<16x16xf32> to vector<16xf32>
    %509 = vector.shape_cast %508 : vector<16xf32> to vector<16x1xf32>
    %510 = tpu.reciprocal %509 {approx = true} : vector<16x1xf32> -> vector<16x1xf32>
    %511 = vector.broadcast %510 : vector<16x1xf32> to vector<16x16xf32>
    %512 = arith.mulf %507, %511 : vector<16x16xf32>
    %513 = vector.extract_strided_slice %451 {offsets = [0, 16], sizes = [16, 8], strides = [1, 1]} : vector<16x32xf32> to vector<16x8xf32>
    %cst_226 = arith.constant dense<0.000000e+00> : vector<16x8xf32>
    %514 = tpu.matmul %512, %513, %cst_226 {dimension_numbers = #tpu.dot_dimension_numbers<[1], [0], [0], [1], [0, 0, 1, 1], [], []>} : vector<16x16xf32>, vector<16x8xf32>, vector<16x8xf32> -> vector<16x8xf32>
    %515 = vector.extract_strided_slice %453 {offsets = [16, 0], sizes = [8, 32], strides = [1, 1]} : vector<32x32xf32> to vector<8x32xf32>
    %cst_227 = arith.constant dense<0.000000e+00> : vector<16x32xf32>
    %516 = tpu.matmul %514, %515, %cst_227 {dimension_numbers = #tpu.dot_dimension_numbers<[1], [0], [0], [1], [0, 0, 1, 1], [], []>} : vector<16x8xf32>, vector<8x32xf32>, vector<16x32xf32> -> vector<16x32xf32>
    %517 = arith.addf %496, %516 : vector<16x32xf32>
    %518 = vector.extract_strided_slice %449 {offsets = [0, 24], sizes = [16, 8], strides = [1, 1]} : vector<16x32xf32> to vector<16x8xf32>
    %519 = vector.extract_strided_slice %450 {offsets = [0, 24], sizes = [16, 8], strides = [1, 1]} : vector<16x32xf32> to vector<16x8xf32>
    %cst_228 = arith.constant dense<0.000000e+00> : vector<16x16xf32>
    %520 = tpu.matmul %518, %519, %cst_228 {dimension_numbers = #tpu.dot_dimension_numbers<[1], [1], [0], [0], [0, 0, 1, 0], [], []>} : vector<16x8xf32>, vector<16x8xf32>, vector<16x16xf32> -> vector<16x16xf32>
    %cst_229 = arith.constant 0.353553385 : f32
    %521 = vector.broadcast %cst_229 : f32 to vector<16x16xf32>
    %522 = arith.mulf %520, %521 : vector<16x16xf32>
    %523 = arith.addf %522, %414 : vector<16x16xf32>
    %cst_230 = arith.constant dense<0xFF800000> : vector<16xf32>
    %524 = vector.multi_reduction <maximumf>, %523, %cst_230 [1] : vector<16x16xf32> to vector<16xf32>
    %525 = vector.shape_cast %524 : vector<16xf32> to vector<16x1xf32>
    %526 = vector.broadcast %525 : vector<16x1xf32> to vector<16x16xf32>
    %527 = arith.subf %523, %526 : vector<16x16xf32>
    %528 = math.exp %527 : vector<16x16xf32>
    %cst_231 = arith.constant dense<0.000000e+00> : vector<16xf32>
    %529 = vector.multi_reduction <add>, %528, %cst_231 [1] : vector<16x16xf32> to vector<16xf32>
    %530 = vector.shape_cast %529 : vector<16xf32> to vector<16x1xf32>
    %531 = tpu.reciprocal %530 {approx = true} : vector<16x1xf32> -> vector<16x1xf32>
    %532 = vector.broadcast %531 : vector<16x1xf32> to vector<16x16xf32>
    %533 = arith.mulf %528, %532 : vector<16x16xf32>
    %534 = vector.extract_strided_slice %451 {offsets = [0, 24], sizes = [16, 8], strides = [1, 1]} : vector<16x32xf32> to vector<16x8xf32>
    %cst_232 = arith.constant dense<0.000000e+00> : vector<16x8xf32>
    %535 = tpu.matmul %533, %534, %cst_232 {dimension_numbers = #tpu.dot_dimension_numbers<[1], [0], [0], [1], [0, 0, 1, 1], [], []>} : vector<16x16xf32>, vector<16x8xf32>, vector<16x8xf32> -> vector<16x8xf32>
    %536 = vector.extract_strided_slice %453 {offsets = [24, 0], sizes = [8, 32], strides = [1, 1]} : vector<32x32xf32> to vector<8x32xf32>
    %cst_233 = arith.constant dense<0.000000e+00> : vector<16x32xf32>
    %537 = tpu.matmul %535, %536, %cst_233 {dimension_numbers = #tpu.dot_dimension_numbers<[1], [0], [0], [1], [0, 0, 1, 1], [], []>} : vector<16x8xf32>, vector<8x32xf32>, vector<16x32xf32> -> vector<16x32xf32>
    %538 = arith.addf %517, %537 : vector<16x32xf32>
    %539 = arith.addf %413, %538 : vector<16x32xf32>
    %c0_234 = arith.constant 0 : index
    %c0_235 = arith.constant 0 : index
    %c0_236 = arith.constant 0 : index
    %540 = vector.load %arg31[%c0_234, %c0_235, %c0_236] : memref<2x1x32xf32, #tpu.memory_space<vmem>>, vector<1x1x32xf32>
    %541 = vector.shape_cast %540 : vector<1x1x32xf32> to vector<1x32xf32>
    %542 = vector.broadcast %541 : vector<1x32xf32> to vector<16x32xf32>
    %543 = arith.addf %539, %542 : vector<16x32xf32>
    %c0_237 = arith.constant 0 : index
    %c0_238 = arith.constant 0 : index
    %c0_239 = arith.constant 0 : index
    %544 = vector.load %arg32[%c0_237, %c0_238, %c0_239] : memref<2x1x32xf32, #tpu.memory_space<vmem>>, vector<1x1x32xf32>
    %545 = vector.shape_cast %544 : vector<1x1x32xf32> to vector<1x32xf32>
    %c0_240 = arith.constant 0 : index
    %c0_241 = arith.constant 0 : index
    %c0_242 = arith.constant 0 : index
    %546 = vector.load %arg33[%c0_240, %c0_241, %c0_242] : memref<2x1x32xf32, #tpu.memory_space<vmem>>, vector<1x1x32xf32>
    %547 = vector.shape_cast %546 : vector<1x1x32xf32> to vector<1x32xf32>
    %cst_243 = arith.constant dense<0.000000e+00> : vector<16xf32>
    %548 = vector.multi_reduction <add>, %543, %cst_243 [1] : vector<16x32xf32> to vector<16xf32>
    %549 = vector.shape_cast %548 : vector<16xf32> to vector<16x1xf32>
    %cst_244 = arith.constant 3.200000e+01 : f32
    %550 = vector.broadcast %cst_244 : f32 to vector<16x1xf32>
    %551 = arith.divf %549, %550 : vector<16x1xf32>
    %552 = vector.broadcast %551 : vector<16x1xf32> to vector<16x32xf32>
    %553 = arith.subf %543, %552 : vector<16x32xf32>
    %554 = arith.mulf %553, %553 : vector<16x32xf32>
    %cst_245 = arith.constant dense<0.000000e+00> : vector<16xf32>
    %555 = vector.multi_reduction <add>, %554, %cst_245 [1] : vector<16x32xf32> to vector<16xf32>
    %556 = vector.shape_cast %555 : vector<16xf32> to vector<16x1xf32>
    %cst_246 = arith.constant 3.200000e+01 : f32
    %557 = vector.broadcast %cst_246 : f32 to vector<16x1xf32>
    %558 = arith.divf %556, %557 : vector<16x1xf32>
    %559 = vector.broadcast %551 : vector<16x1xf32> to vector<16x32xf32>
    %560 = arith.subf %543, %559 : vector<16x32xf32>
    %cst_247 = arith.constant 9.99999974E-6 : f32
    %561 = vector.broadcast %cst_247 : f32 to vector<16x1xf32>
    %562 = arith.addf %558, %561 : vector<16x1xf32>
    %563 = math.rsqrt %562 : vector<16x1xf32>
    %564 = vector.broadcast %563 : vector<16x1xf32> to vector<16x32xf32>
    %565 = arith.mulf %560, %564 : vector<16x32xf32>
    %566 = vector.broadcast %545 : vector<1x32xf32> to vector<16x32xf32>
    %567 = arith.mulf %565, %566 : vector<16x32xf32>
    %568 = vector.broadcast %547 : vector<1x32xf32> to vector<16x32xf32>
    %569 = arith.addf %567, %568 : vector<16x32xf32>
    %c0_248 = arith.constant 0 : index
    %c0_249 = arith.constant 0 : index
    %c0_250 = arith.constant 0 : index
    %570 = vector.load %arg34[%c0_248, %c0_249, %c0_250] : memref<2x32x32xf32, #tpu.memory_space<vmem>>, vector<1x32x32xf32>
    %571 = vector.shape_cast %570 : vector<1x32x32xf32> to vector<32x32xf32>
    %cst_251 = arith.constant dense<0.000000e+00> : vector<16x32xf32>
    %572 = tpu.matmul %569, %571, %cst_251 {dimension_numbers = #tpu.dot_dimension_numbers<[1], [0], [0], [1], [0, 0, 1, 1], [], []>} : vector<16x32xf32>, vector<32x32xf32>, vector<16x32xf32> -> vector<16x32xf32>
    %c0_252 = arith.constant 0 : index
    %c0_253 = arith.constant 0 : index
    %c0_254 = arith.constant 0 : index
    %573 = vector.load %arg35[%c0_252, %c0_253, %c0_254] : memref<2x1x32xf32, #tpu.memory_space<vmem>>, vector<1x1x32xf32>
    %574 = vector.shape_cast %573 : vector<1x1x32xf32> to vector<1x32xf32>
    %575 = vector.broadcast %574 : vector<1x32xf32> to vector<16x32xf32>
    %576 = arith.addf %572, %575 : vector<16x32xf32>
    %c0_255 = arith.constant 0 : index
    %c0_256 = arith.constant 0 : index
    %c0_257 = arith.constant 0 : index
    %577 = vector.load %arg36[%c0_255, %c0_256, %c0_257] : memref<2x32x64xf32, #tpu.memory_space<vmem>>, vector<1x32x64xf32>
    %578 = vector.shape_cast %577 : vector<1x32x64xf32> to vector<32x64xf32>
    %cst_258 = arith.constant dense<0.000000e+00> : vector<10x64xf32>
    %579 = tpu.matmul %402, %578, %cst_258 {dimension_numbers = #tpu.dot_dimension_numbers<[1], [0], [0], [1], [0, 0, 1, 1], [], []>} : vector<10x32xf32>, vector<32x64xf32>, vector<10x64xf32> -> vector<10x64xf32>
    %c0_259 = arith.constant 0 : index
    %c0_260 = arith.constant 0 : index
    %c0_261 = arith.constant 0 : index
    %580 = vector.load %arg37[%c0_259, %c0_260, %c0_261] : memref<2x1x64xf32, #tpu.memory_space<vmem>>, vector<1x1x64xf32>
    %581 = vector.shape_cast %580 : vector<1x1x64xf32> to vector<1x64xf32>
    %582 = vector.broadcast %581 : vector<1x64xf32> to vector<10x64xf32>
    %583 = arith.addf %579, %582 : vector<10x64xf32>
    %584 = vector.extract_strided_slice %583 {offsets = [0, 0], sizes = [10, 32], strides = [1, 1]} : vector<10x64xf32> to vector<10x32xf32>
    %585 = vector.extract_strided_slice %583 {offsets = [0, 32], sizes = [10, 32], strides = [1, 1]} : vector<10x64xf32> to vector<10x32xf32>
    %c0_262 = arith.constant 0 : index
    %c0_263 = arith.constant 0 : index
    %c0_264 = arith.constant 0 : index
    %586 = vector.load %arg38[%c0_262, %c0_263, %c0_264] : memref<2x32x32xf32, #tpu.memory_space<vmem>>, vector<1x32x32xf32>
    %587 = vector.shape_cast %586 : vector<1x32x32xf32> to vector<32x32xf32>
    %cst_265 = arith.constant 0.000000e+00 : f32
    %588 = vector.broadcast %cst_265 : f32 to vector<16x32xf32>
    %589 = vector.extract_strided_slice %576 {offsets = [0, 0], sizes = [16, 8], strides = [1, 1]} : vector<16x32xf32> to vector<16x8xf32>
    %590 = vector.extract_strided_slice %584 {offsets = [0, 0], sizes = [10, 8], strides = [1, 1]} : vector<10x32xf32> to vector<10x8xf32>
    %cst_266 = arith.constant dense<0.000000e+00> : vector<16x10xf32>
    %591 = tpu.matmul %589, %590, %cst_266 {dimension_numbers = #tpu.dot_dimension_numbers<[1], [1], [0], [0], [0, 0, 1, 0], [], []>} : vector<16x8xf32>, vector<10x8xf32>, vector<16x10xf32> -> vector<16x10xf32>
    %cst_267 = arith.constant 0.353553385 : f32
    %592 = vector.broadcast %cst_267 : f32 to vector<16x10xf32>
    %593 = arith.mulf %591, %592 : vector<16x10xf32>
    %594 = arith.addf %593, %415 : vector<16x10xf32>
    %cst_268 = arith.constant dense<0xFF800000> : vector<16xf32>
    %595 = vector.multi_reduction <maximumf>, %594, %cst_268 [1] : vector<16x10xf32> to vector<16xf32>
    %596 = vector.shape_cast %595 : vector<16xf32> to vector<16x1xf32>
    %597 = vector.broadcast %596 : vector<16x1xf32> to vector<16x10xf32>
    %598 = arith.subf %594, %597 : vector<16x10xf32>
    %599 = math.exp %598 : vector<16x10xf32>
    %cst_269 = arith.constant dense<0.000000e+00> : vector<16xf32>
    %600 = vector.multi_reduction <add>, %599, %cst_269 [1] : vector<16x10xf32> to vector<16xf32>
    %601 = vector.shape_cast %600 : vector<16xf32> to vector<16x1xf32>
    %602 = tpu.reciprocal %601 {approx = true} : vector<16x1xf32> -> vector<16x1xf32>
    %603 = vector.broadcast %602 : vector<16x1xf32> to vector<16x10xf32>
    %604 = arith.mulf %599, %603 : vector<16x10xf32>
    %605 = vector.extract_strided_slice %585 {offsets = [0, 0], sizes = [10, 8], strides = [1, 1]} : vector<10x32xf32> to vector<10x8xf32>
    %cst_270 = arith.constant dense<0.000000e+00> : vector<16x8xf32>
    %606 = tpu.matmul %604, %605, %cst_270 {dimension_numbers = #tpu.dot_dimension_numbers<[1], [0], [0], [1], [0, 0, 1, 1], [], []>} : vector<16x10xf32>, vector<10x8xf32>, vector<16x8xf32> -> vector<16x8xf32>
    %607 = vector.extract_strided_slice %587 {offsets = [0, 0], sizes = [8, 32], strides = [1, 1]} : vector<32x32xf32> to vector<8x32xf32>
    %cst_271 = arith.constant dense<0.000000e+00> : vector<16x32xf32>
    %608 = tpu.matmul %606, %607, %cst_271 {dimension_numbers = #tpu.dot_dimension_numbers<[1], [0], [0], [1], [0, 0, 1, 1], [], []>} : vector<16x8xf32>, vector<8x32xf32>, vector<16x32xf32> -> vector<16x32xf32>
    %609 = arith.addf %588, %608 : vector<16x32xf32>
    %610 = vector.extract_strided_slice %576 {offsets = [0, 8], sizes = [16, 8], strides = [1, 1]} : vector<16x32xf32> to vector<16x8xf32>
    %611 = vector.extract_strided_slice %584 {offsets = [0, 8], sizes = [10, 8], strides = [1, 1]} : vector<10x32xf32> to vector<10x8xf32>
    %cst_272 = arith.constant dense<0.000000e+00> : vector<16x10xf32>
    %612 = tpu.matmul %610, %611, %cst_272 {dimension_numbers = #tpu.dot_dimension_numbers<[1], [1], [0], [0], [0, 0, 1, 0], [], []>} : vector<16x8xf32>, vector<10x8xf32>, vector<16x10xf32> -> vector<16x10xf32>
    %cst_273 = arith.constant 0.353553385 : f32
    %613 = vector.broadcast %cst_273 : f32 to vector<16x10xf32>
    %614 = arith.mulf %612, %613 : vector<16x10xf32>
    %615 = arith.addf %614, %415 : vector<16x10xf32>
    %cst_274 = arith.constant dense<0xFF800000> : vector<16xf32>
    %616 = vector.multi_reduction <maximumf>, %615, %cst_274 [1] : vector<16x10xf32> to vector<16xf32>
    %617 = vector.shape_cast %616 : vector<16xf32> to vector<16x1xf32>
    %618 = vector.broadcast %617 : vector<16x1xf32> to vector<16x10xf32>
    %619 = arith.subf %615, %618 : vector<16x10xf32>
    %620 = math.exp %619 : vector<16x10xf32>
    %cst_275 = arith.constant dense<0.000000e+00> : vector<16xf32>
    %621 = vector.multi_reduction <add>, %620, %cst_275 [1] : vector<16x10xf32> to vector<16xf32>
    %622 = vector.shape_cast %621 : vector<16xf32> to vector<16x1xf32>
    %623 = tpu.reciprocal %622 {approx = true} : vector<16x1xf32> -> vector<16x1xf32>
    %624 = vector.broadcast %623 : vector<16x1xf32> to vector<16x10xf32>
    %625 = arith.mulf %620, %624 : vector<16x10xf32>
    %626 = vector.extract_strided_slice %585 {offsets = [0, 8], sizes = [10, 8], strides = [1, 1]} : vector<10x32xf32> to vector<10x8xf32>
    %cst_276 = arith.constant dense<0.000000e+00> : vector<16x8xf32>
    %627 = tpu.matmul %625, %626, %cst_276 {dimension_numbers = #tpu.dot_dimension_numbers<[1], [0], [0], [1], [0, 0, 1, 1], [], []>} : vector<16x10xf32>, vector<10x8xf32>, vector<16x8xf32> -> vector<16x8xf32>
    %628 = vector.extract_strided_slice %587 {offsets = [8, 0], sizes = [8, 32], strides = [1, 1]} : vector<32x32xf32> to vector<8x32xf32>
    %cst_277 = arith.constant dense<0.000000e+00> : vector<16x32xf32>
    %629 = tpu.matmul %627, %628, %cst_277 {dimension_numbers = #tpu.dot_dimension_numbers<[1], [0], [0], [1], [0, 0, 1, 1], [], []>} : vector<16x8xf32>, vector<8x32xf32>, vector<16x32xf32> -> vector<16x32xf32>
    %630 = arith.addf %609, %629 : vector<16x32xf32>
    %631 = vector.extract_strided_slice %576 {offsets = [0, 16], sizes = [16, 8], strides = [1, 1]} : vector<16x32xf32> to vector<16x8xf32>
    %632 = vector.extract_strided_slice %584 {offsets = [0, 16], sizes = [10, 8], strides = [1, 1]} : vector<10x32xf32> to vector<10x8xf32>
    %cst_278 = arith.constant dense<0.000000e+00> : vector<16x10xf32>
    %633 = tpu.matmul %631, %632, %cst_278 {dimension_numbers = #tpu.dot_dimension_numbers<[1], [1], [0], [0], [0, 0, 1, 0], [], []>} : vector<16x8xf32>, vector<10x8xf32>, vector<16x10xf32> -> vector<16x10xf32>
    %cst_279 = arith.constant 0.353553385 : f32
    %634 = vector.broadcast %cst_279 : f32 to vector<16x10xf32>
    %635 = arith.mulf %633, %634 : vector<16x10xf32>
    %636 = arith.addf %635, %415 : vector<16x10xf32>
    %cst_280 = arith.constant dense<0xFF800000> : vector<16xf32>
    %637 = vector.multi_reduction <maximumf>, %636, %cst_280 [1] : vector<16x10xf32> to vector<16xf32>
    %638 = vector.shape_cast %637 : vector<16xf32> to vector<16x1xf32>
    %639 = vector.broadcast %638 : vector<16x1xf32> to vector<16x10xf32>
    %640 = arith.subf %636, %639 : vector<16x10xf32>
    %641 = math.exp %640 : vector<16x10xf32>
    %cst_281 = arith.constant dense<0.000000e+00> : vector<16xf32>
    %642 = vector.multi_reduction <add>, %641, %cst_281 [1] : vector<16x10xf32> to vector<16xf32>
    %643 = vector.shape_cast %642 : vector<16xf32> to vector<16x1xf32>
    %644 = tpu.reciprocal %643 {approx = true} : vector<16x1xf32> -> vector<16x1xf32>
    %645 = vector.broadcast %644 : vector<16x1xf32> to vector<16x10xf32>
    %646 = arith.mulf %641, %645 : vector<16x10xf32>
    %647 = vector.extract_strided_slice %585 {offsets = [0, 16], sizes = [10, 8], strides = [1, 1]} : vector<10x32xf32> to vector<10x8xf32>
    %cst_282 = arith.constant dense<0.000000e+00> : vector<16x8xf32>
    %648 = tpu.matmul %646, %647, %cst_282 {dimension_numbers = #tpu.dot_dimension_numbers<[1], [0], [0], [1], [0, 0, 1, 1], [], []>} : vector<16x10xf32>, vector<10x8xf32>, vector<16x8xf32> -> vector<16x8xf32>
    %649 = vector.extract_strided_slice %587 {offsets = [16, 0], sizes = [8, 32], strides = [1, 1]} : vector<32x32xf32> to vector<8x32xf32>
    %cst_283 = arith.constant dense<0.000000e+00> : vector<16x32xf32>
    %650 = tpu.matmul %648, %649, %cst_283 {dimension_numbers = #tpu.dot_dimension_numbers<[1], [0], [0], [1], [0, 0, 1, 1], [], []>} : vector<16x8xf32>, vector<8x32xf32>, vector<16x32xf32> -> vector<16x32xf32>
    %651 = arith.addf %630, %650 : vector<16x32xf32>
    %652 = vector.extract_strided_slice %576 {offsets = [0, 24], sizes = [16, 8], strides = [1, 1]} : vector<16x32xf32> to vector<16x8xf32>
    %653 = vector.extract_strided_slice %584 {offsets = [0, 24], sizes = [10, 8], strides = [1, 1]} : vector<10x32xf32> to vector<10x8xf32>
    %cst_284 = arith.constant dense<0.000000e+00> : vector<16x10xf32>
    %654 = tpu.matmul %652, %653, %cst_284 {dimension_numbers = #tpu.dot_dimension_numbers<[1], [1], [0], [0], [0, 0, 1, 0], [], []>} : vector<16x8xf32>, vector<10x8xf32>, vector<16x10xf32> -> vector<16x10xf32>
    %cst_285 = arith.constant 0.353553385 : f32
    %655 = vector.broadcast %cst_285 : f32 to vector<16x10xf32>
    %656 = arith.mulf %654, %655 : vector<16x10xf32>
    %657 = arith.addf %656, %415 : vector<16x10xf32>
    %cst_286 = arith.constant dense<0xFF800000> : vector<16xf32>
    %658 = vector.multi_reduction <maximumf>, %657, %cst_286 [1] : vector<16x10xf32> to vector<16xf32>
    %659 = vector.shape_cast %658 : vector<16xf32> to vector<16x1xf32>
    %660 = vector.broadcast %659 : vector<16x1xf32> to vector<16x10xf32>
    %661 = arith.subf %657, %660 : vector<16x10xf32>
    %662 = math.exp %661 : vector<16x10xf32>
    %cst_287 = arith.constant dense<0.000000e+00> : vector<16xf32>
    %663 = vector.multi_reduction <add>, %662, %cst_287 [1] : vector<16x10xf32> to vector<16xf32>
    %664 = vector.shape_cast %663 : vector<16xf32> to vector<16x1xf32>
    %665 = tpu.reciprocal %664 {approx = true} : vector<16x1xf32> -> vector<16x1xf32>
    %666 = vector.broadcast %665 : vector<16x1xf32> to vector<16x10xf32>
    %667 = arith.mulf %662, %666 : vector<16x10xf32>
    %668 = vector.extract_strided_slice %585 {offsets = [0, 24], sizes = [10, 8], strides = [1, 1]} : vector<10x32xf32> to vector<10x8xf32>
    %cst_288 = arith.constant dense<0.000000e+00> : vector<16x8xf32>
    %669 = tpu.matmul %667, %668, %cst_288 {dimension_numbers = #tpu.dot_dimension_numbers<[1], [0], [0], [1], [0, 0, 1, 1], [], []>} : vector<16x10xf32>, vector<10x8xf32>, vector<16x8xf32> -> vector<16x8xf32>
    %670 = vector.extract_strided_slice %587 {offsets = [24, 0], sizes = [8, 32], strides = [1, 1]} : vector<32x32xf32> to vector<8x32xf32>
    %cst_289 = arith.constant dense<0.000000e+00> : vector<16x32xf32>
    %671 = tpu.matmul %669, %670, %cst_289 {dimension_numbers = #tpu.dot_dimension_numbers<[1], [0], [0], [1], [0, 0, 1, 1], [], []>} : vector<16x8xf32>, vector<8x32xf32>, vector<16x32xf32> -> vector<16x32xf32>
    %672 = arith.addf %651, %671 : vector<16x32xf32>
    %673 = arith.addf %543, %672 : vector<16x32xf32>
    %c0_290 = arith.constant 0 : index
    %c0_291 = arith.constant 0 : index
    %c0_292 = arith.constant 0 : index
    %674 = vector.load %arg39[%c0_290, %c0_291, %c0_292] : memref<2x1x32xf32, #tpu.memory_space<vmem>>, vector<1x1x32xf32>
    %675 = vector.shape_cast %674 : vector<1x1x32xf32> to vector<1x32xf32>
    %676 = vector.broadcast %675 : vector<1x32xf32> to vector<16x32xf32>
    %677 = arith.addf %673, %676 : vector<16x32xf32>
    %c0_293 = arith.constant 0 : index
    %c0_294 = arith.constant 0 : index
    %c0_295 = arith.constant 0 : index
    %678 = vector.load %arg40[%c0_293, %c0_294, %c0_295] : memref<2x1x32xf32, #tpu.memory_space<vmem>>, vector<1x1x32xf32>
    %679 = vector.shape_cast %678 : vector<1x1x32xf32> to vector<1x32xf32>
    %c0_296 = arith.constant 0 : index
    %c0_297 = arith.constant 0 : index
    %c0_298 = arith.constant 0 : index
    %680 = vector.load %arg41[%c0_296, %c0_297, %c0_298] : memref<2x1x32xf32, #tpu.memory_space<vmem>>, vector<1x1x32xf32>
    %681 = vector.shape_cast %680 : vector<1x1x32xf32> to vector<1x32xf32>
    %cst_299 = arith.constant dense<0.000000e+00> : vector<16xf32>
    %682 = vector.multi_reduction <add>, %677, %cst_299 [1] : vector<16x32xf32> to vector<16xf32>
    %683 = vector.shape_cast %682 : vector<16xf32> to vector<16x1xf32>
    %cst_300 = arith.constant 3.200000e+01 : f32
    %684 = vector.broadcast %cst_300 : f32 to vector<16x1xf32>
    %685 = arith.divf %683, %684 : vector<16x1xf32>
    %686 = vector.broadcast %685 : vector<16x1xf32> to vector<16x32xf32>
    %687 = arith.subf %677, %686 : vector<16x32xf32>
    %688 = arith.mulf %687, %687 : vector<16x32xf32>
    %cst_301 = arith.constant dense<0.000000e+00> : vector<16xf32>
    %689 = vector.multi_reduction <add>, %688, %cst_301 [1] : vector<16x32xf32> to vector<16xf32>
    %690 = vector.shape_cast %689 : vector<16xf32> to vector<16x1xf32>
    %cst_302 = arith.constant 3.200000e+01 : f32
    %691 = vector.broadcast %cst_302 : f32 to vector<16x1xf32>
    %692 = arith.divf %690, %691 : vector<16x1xf32>
    %693 = vector.broadcast %685 : vector<16x1xf32> to vector<16x32xf32>
    %694 = arith.subf %677, %693 : vector<16x32xf32>
    %cst_303 = arith.constant 9.99999974E-6 : f32
    %695 = vector.broadcast %cst_303 : f32 to vector<16x1xf32>
    %696 = arith.addf %692, %695 : vector<16x1xf32>
    %697 = math.rsqrt %696 : vector<16x1xf32>
    %698 = vector.broadcast %697 : vector<16x1xf32> to vector<16x32xf32>
    %699 = arith.mulf %694, %698 : vector<16x32xf32>
    %700 = vector.broadcast %679 : vector<1x32xf32> to vector<16x32xf32>
    %701 = arith.mulf %699, %700 : vector<16x32xf32>
    %702 = vector.broadcast %681 : vector<1x32xf32> to vector<16x32xf32>
    %703 = arith.addf %701, %702 : vector<16x32xf32>
    %c0_304 = arith.constant 0 : index
    %c0_305 = arith.constant 0 : index
    %c0_306 = arith.constant 0 : index
    %704 = vector.load %arg42[%c0_304, %c0_305, %c0_306] : memref<2x32x128xf32, #tpu.memory_space<vmem>>, vector<1x32x128xf32>
    %705 = vector.shape_cast %704 : vector<1x32x128xf32> to vector<32x128xf32>
    %cst_307 = arith.constant dense<0.000000e+00> : vector<16x128xf32>
    %706 = tpu.matmul %703, %705, %cst_307 {dimension_numbers = #tpu.dot_dimension_numbers<[1], [0], [0], [1], [0, 0, 1, 1], [], []>} : vector<16x32xf32>, vector<32x128xf32>, vector<16x128xf32> -> vector<16x128xf32>
    %c0_308 = arith.constant 0 : index
    %c0_309 = arith.constant 0 : index
    %c0_310 = arith.constant 0 : index
    %707 = vector.load %arg43[%c0_308, %c0_309, %c0_310] : memref<2x1x128xf32, #tpu.memory_space<vmem>>, vector<1x1x128xf32>
    %708 = vector.shape_cast %707 : vector<1x1x128xf32> to vector<1x128xf32>
    %709 = vector.broadcast %708 : vector<1x128xf32> to vector<16x128xf32>
    %710 = arith.addf %706, %709 : vector<16x128xf32>
    %711 = arith.mulf %710, %710 : vector<16x128xf32>
    %712 = arith.mulf %710, %711 : vector<16x128xf32>
    %cst_311 = arith.constant 4.471500e-02 : f32
    %713 = vector.broadcast %cst_311 : f32 to vector<16x128xf32>
    %714 = arith.mulf %713, %712 : vector<16x128xf32>
    %715 = arith.addf %710, %714 : vector<16x128xf32>
    %cst_312 = arith.constant 0.797884583 : f32
    %716 = vector.broadcast %cst_312 : f32 to vector<16x128xf32>
    %717 = arith.mulf %716, %715 : vector<16x128xf32>
    %718 = math.tanh %717 : vector<16x128xf32>
    %cst_313 = arith.constant 1.000000e+00 : f32
    %719 = vector.broadcast %cst_313 : f32 to vector<16x128xf32>
    %720 = arith.addf %719, %718 : vector<16x128xf32>
    %cst_314 = arith.constant 5.000000e-01 : f32
    %721 = vector.broadcast %cst_314 : f32 to vector<16x128xf32>
    %722 = arith.mulf %721, %720 : vector<16x128xf32>
    %723 = arith.mulf %710, %722 : vector<16x128xf32>
    %c0_315 = arith.constant 0 : index
    %c0_316 = arith.constant 0 : index
    %c0_317 = arith.constant 0 : index
    %724 = vector.load %arg44[%c0_315, %c0_316, %c0_317] : memref<2x128x32xf32, #tpu.memory_space<vmem>>, vector<1x128x32xf32>
    %725 = vector.shape_cast %724 : vector<1x128x32xf32> to vector<128x32xf32>
    %cst_318 = arith.constant dense<0.000000e+00> : vector<16x32xf32>
    %726 = tpu.matmul %723, %725, %cst_318 {dimension_numbers = #tpu.dot_dimension_numbers<[1], [0], [0], [1], [0, 0, 1, 1], [], []>} : vector<16x128xf32>, vector<128x32xf32>, vector<16x32xf32> -> vector<16x32xf32>
    %727 = arith.addf %677, %726 : vector<16x32xf32>
    %c0_319 = arith.constant 0 : index
    %c0_320 = arith.constant 0 : index
    %c0_321 = arith.constant 0 : index
    %728 = vector.load %arg45[%c0_319, %c0_320, %c0_321] : memref<2x1x32xf32, #tpu.memory_space<vmem>>, vector<1x1x32xf32>
    %729 = vector.shape_cast %728 : vector<1x1x32xf32> to vector<1x32xf32>
    %730 = vector.broadcast %729 : vector<1x32xf32> to vector<16x32xf32>
    %731 = arith.addf %727, %730 : vector<16x32xf32>
    %c1_322 = arith.constant 1 : index
    %c0_323 = arith.constant 0 : index
    %c0_324 = arith.constant 0 : index
    %732 = vector.load %arg26[%c1_322, %c0_323, %c0_324] : memref<2x1x32xf32, #tpu.memory_space<vmem>>, vector<1x1x32xf32>
    %733 = vector.shape_cast %732 : vector<1x1x32xf32> to vector<1x32xf32>
    %c1_325 = arith.constant 1 : index
    %c0_326 = arith.constant 0 : index
    %c0_327 = arith.constant 0 : index
    %734 = vector.load %arg27[%c1_325, %c0_326, %c0_327] : memref<2x1x32xf32, #tpu.memory_space<vmem>>, vector<1x1x32xf32>
    %735 = vector.shape_cast %734 : vector<1x1x32xf32> to vector<1x32xf32>
    %cst_328 = arith.constant dense<0.000000e+00> : vector<16xf32>
    %736 = vector.multi_reduction <add>, %731, %cst_328 [1] : vector<16x32xf32> to vector<16xf32>
    %737 = vector.shape_cast %736 : vector<16xf32> to vector<16x1xf32>
    %cst_329 = arith.constant 3.200000e+01 : f32
    %738 = vector.broadcast %cst_329 : f32 to vector<16x1xf32>
    %739 = arith.divf %737, %738 : vector<16x1xf32>
    %740 = vector.broadcast %739 : vector<16x1xf32> to vector<16x32xf32>
    %741 = arith.subf %731, %740 : vector<16x32xf32>
    %742 = arith.mulf %741, %741 : vector<16x32xf32>
    %cst_330 = arith.constant dense<0.000000e+00> : vector<16xf32>
    %743 = vector.multi_reduction <add>, %742, %cst_330 [1] : vector<16x32xf32> to vector<16xf32>
    %744 = vector.shape_cast %743 : vector<16xf32> to vector<16x1xf32>
    %cst_331 = arith.constant 3.200000e+01 : f32
    %745 = vector.broadcast %cst_331 : f32 to vector<16x1xf32>
    %746 = arith.divf %744, %745 : vector<16x1xf32>
    %747 = vector.broadcast %739 : vector<16x1xf32> to vector<16x32xf32>
    %748 = arith.subf %731, %747 : vector<16x32xf32>
    %cst_332 = arith.constant 9.99999974E-6 : f32
    %749 = vector.broadcast %cst_332 : f32 to vector<16x1xf32>
    %750 = arith.addf %746, %749 : vector<16x1xf32>
    %751 = math.rsqrt %750 : vector<16x1xf32>
    %752 = vector.broadcast %751 : vector<16x1xf32> to vector<16x32xf32>
    %753 = arith.mulf %748, %752 : vector<16x32xf32>
    %754 = vector.broadcast %733 : vector<1x32xf32> to vector<16x32xf32>
    %755 = arith.mulf %753, %754 : vector<16x32xf32>
    %756 = vector.broadcast %735 : vector<1x32xf32> to vector<16x32xf32>
    %757 = arith.addf %755, %756 : vector<16x32xf32>
    %c1_333 = arith.constant 1 : index
    %c0_334 = arith.constant 0 : index
    %c0_335 = arith.constant 0 : index
    %758 = vector.load %arg28[%c1_333, %c0_334, %c0_335] : memref<2x32x96xf32, #tpu.memory_space<vmem>>, vector<1x32x96xf32>
    %759 = vector.shape_cast %758 : vector<1x32x96xf32> to vector<32x96xf32>
    %cst_336 = arith.constant dense<0.000000e+00> : vector<16x96xf32>
    %760 = tpu.matmul %757, %759, %cst_336 {dimension_numbers = #tpu.dot_dimension_numbers<[1], [0], [0], [1], [0, 0, 1, 1], [], []>} : vector<16x32xf32>, vector<32x96xf32>, vector<16x96xf32> -> vector<16x96xf32>
    %c1_337 = arith.constant 1 : index
    %c0_338 = arith.constant 0 : index
    %c0_339 = arith.constant 0 : index
    %761 = vector.load %arg29[%c1_337, %c0_338, %c0_339] : memref<2x1x96xf32, #tpu.memory_space<vmem>>, vector<1x1x96xf32>
    %762 = vector.shape_cast %761 : vector<1x1x96xf32> to vector<1x96xf32>
    %763 = vector.broadcast %762 : vector<1x96xf32> to vector<16x96xf32>
    %764 = arith.addf %760, %763 : vector<16x96xf32>
    %765 = vector.extract_strided_slice %764 {offsets = [0, 0], sizes = [16, 32], strides = [1, 1]} : vector<16x96xf32> to vector<16x32xf32>
    %766 = vector.extract_strided_slice %764 {offsets = [0, 32], sizes = [16, 32], strides = [1, 1]} : vector<16x96xf32> to vector<16x32xf32>
    %767 = vector.extract_strided_slice %764 {offsets = [0, 64], sizes = [16, 32], strides = [1, 1]} : vector<16x96xf32> to vector<16x32xf32>
    %c1_340 = arith.constant 1 : index
    %c0_341 = arith.constant 0 : index
    %c0_342 = arith.constant 0 : index
    %768 = vector.load %arg30[%c1_340, %c0_341, %c0_342] : memref<2x32x32xf32, #tpu.memory_space<vmem>>, vector<1x32x32xf32>
    %769 = vector.shape_cast %768 : vector<1x32x32xf32> to vector<32x32xf32>
    %cst_343 = arith.constant 0.000000e+00 : f32
    %770 = vector.broadcast %cst_343 : f32 to vector<16x32xf32>
    %771 = vector.extract_strided_slice %765 {offsets = [0, 0], sizes = [16, 8], strides = [1, 1]} : vector<16x32xf32> to vector<16x8xf32>
    %772 = vector.extract_strided_slice %766 {offsets = [0, 0], sizes = [16, 8], strides = [1, 1]} : vector<16x32xf32> to vector<16x8xf32>
    %cst_344 = arith.constant dense<0.000000e+00> : vector<16x16xf32>
    %773 = tpu.matmul %771, %772, %cst_344 {dimension_numbers = #tpu.dot_dimension_numbers<[1], [1], [0], [0], [0, 0, 1, 0], [], []>} : vector<16x8xf32>, vector<16x8xf32>, vector<16x16xf32> -> vector<16x16xf32>
    %cst_345 = arith.constant 0.353553385 : f32
    %774 = vector.broadcast %cst_345 : f32 to vector<16x16xf32>
    %775 = arith.mulf %773, %774 : vector<16x16xf32>
    %776 = arith.addf %775, %414 : vector<16x16xf32>
    %cst_346 = arith.constant dense<0xFF800000> : vector<16xf32>
    %777 = vector.multi_reduction <maximumf>, %776, %cst_346 [1] : vector<16x16xf32> to vector<16xf32>
    %778 = vector.shape_cast %777 : vector<16xf32> to vector<16x1xf32>
    %779 = vector.broadcast %778 : vector<16x1xf32> to vector<16x16xf32>
    %780 = arith.subf %776, %779 : vector<16x16xf32>
    %781 = math.exp %780 : vector<16x16xf32>
    %cst_347 = arith.constant dense<0.000000e+00> : vector<16xf32>
    %782 = vector.multi_reduction <add>, %781, %cst_347 [1] : vector<16x16xf32> to vector<16xf32>
    %783 = vector.shape_cast %782 : vector<16xf32> to vector<16x1xf32>
    %784 = tpu.reciprocal %783 {approx = true} : vector<16x1xf32> -> vector<16x1xf32>
    %785 = vector.broadcast %784 : vector<16x1xf32> to vector<16x16xf32>
    %786 = arith.mulf %781, %785 : vector<16x16xf32>
    %787 = vector.extract_strided_slice %767 {offsets = [0, 0], sizes = [16, 8], strides = [1, 1]} : vector<16x32xf32> to vector<16x8xf32>
    %cst_348 = arith.constant dense<0.000000e+00> : vector<16x8xf32>
    %788 = tpu.matmul %786, %787, %cst_348 {dimension_numbers = #tpu.dot_dimension_numbers<[1], [0], [0], [1], [0, 0, 1, 1], [], []>} : vector<16x16xf32>, vector<16x8xf32>, vector<16x8xf32> -> vector<16x8xf32>
    %789 = vector.extract_strided_slice %769 {offsets = [0, 0], sizes = [8, 32], strides = [1, 1]} : vector<32x32xf32> to vector<8x32xf32>
    %cst_349 = arith.constant dense<0.000000e+00> : vector<16x32xf32>
    %790 = tpu.matmul %788, %789, %cst_349 {dimension_numbers = #tpu.dot_dimension_numbers<[1], [0], [0], [1], [0, 0, 1, 1], [], []>} : vector<16x8xf32>, vector<8x32xf32>, vector<16x32xf32> -> vector<16x32xf32>
    %791 = arith.addf %770, %790 : vector<16x32xf32>
    %792 = vector.extract_strided_slice %765 {offsets = [0, 8], sizes = [16, 8], strides = [1, 1]} : vector<16x32xf32> to vector<16x8xf32>
    %793 = vector.extract_strided_slice %766 {offsets = [0, 8], sizes = [16, 8], strides = [1, 1]} : vector<16x32xf32> to vector<16x8xf32>
    %cst_350 = arith.constant dense<0.000000e+00> : vector<16x16xf32>
    %794 = tpu.matmul %792, %793, %cst_350 {dimension_numbers = #tpu.dot_dimension_numbers<[1], [1], [0], [0], [0, 0, 1, 0], [], []>} : vector<16x8xf32>, vector<16x8xf32>, vector<16x16xf32> -> vector<16x16xf32>
    %cst_351 = arith.constant 0.353553385 : f32
    %795 = vector.broadcast %cst_351 : f32 to vector<16x16xf32>
    %796 = arith.mulf %794, %795 : vector<16x16xf32>
    %797 = arith.addf %796, %414 : vector<16x16xf32>
    %cst_352 = arith.constant dense<0xFF800000> : vector<16xf32>
    %798 = vector.multi_reduction <maximumf>, %797, %cst_352 [1] : vector<16x16xf32> to vector<16xf32>
    %799 = vector.shape_cast %798 : vector<16xf32> to vector<16x1xf32>
    %800 = vector.broadcast %799 : vector<16x1xf32> to vector<16x16xf32>
    %801 = arith.subf %797, %800 : vector<16x16xf32>
    %802 = math.exp %801 : vector<16x16xf32>
    %cst_353 = arith.constant dense<0.000000e+00> : vector<16xf32>
    %803 = vector.multi_reduction <add>, %802, %cst_353 [1] : vector<16x16xf32> to vector<16xf32>
    %804 = vector.shape_cast %803 : vector<16xf32> to vector<16x1xf32>
    %805 = tpu.reciprocal %804 {approx = true} : vector<16x1xf32> -> vector<16x1xf32>
    %806 = vector.broadcast %805 : vector<16x1xf32> to vector<16x16xf32>
    %807 = arith.mulf %802, %806 : vector<16x16xf32>
    %808 = vector.extract_strided_slice %767 {offsets = [0, 8], sizes = [16, 8], strides = [1, 1]} : vector<16x32xf32> to vector<16x8xf32>
    %cst_354 = arith.constant dense<0.000000e+00> : vector<16x8xf32>
    %809 = tpu.matmul %807, %808, %cst_354 {dimension_numbers = #tpu.dot_dimension_numbers<[1], [0], [0], [1], [0, 0, 1, 1], [], []>} : vector<16x16xf32>, vector<16x8xf32>, vector<16x8xf32> -> vector<16x8xf32>
    %810 = vector.extract_strided_slice %769 {offsets = [8, 0], sizes = [8, 32], strides = [1, 1]} : vector<32x32xf32> to vector<8x32xf32>
    %cst_355 = arith.constant dense<0.000000e+00> : vector<16x32xf32>
    %811 = tpu.matmul %809, %810, %cst_355 {dimension_numbers = #tpu.dot_dimension_numbers<[1], [0], [0], [1], [0, 0, 1, 1], [], []>} : vector<16x8xf32>, vector<8x32xf32>, vector<16x32xf32> -> vector<16x32xf32>
    %812 = arith.addf %791, %811 : vector<16x32xf32>
    %813 = vector.extract_strided_slice %765 {offsets = [0, 16], sizes = [16, 8], strides = [1, 1]} : vector<16x32xf32> to vector<16x8xf32>
    %814 = vector.extract_strided_slice %766 {offsets = [0, 16], sizes = [16, 8], strides = [1, 1]} : vector<16x32xf32> to vector<16x8xf32>
    %cst_356 = arith.constant dense<0.000000e+00> : vector<16x16xf32>
    %815 = tpu.matmul %813, %814, %cst_356 {dimension_numbers = #tpu.dot_dimension_numbers<[1], [1], [0], [0], [0, 0, 1, 0], [], []>} : vector<16x8xf32>, vector<16x8xf32>, vector<16x16xf32> -> vector<16x16xf32>
    %cst_357 = arith.constant 0.353553385 : f32
    %816 = vector.broadcast %cst_357 : f32 to vector<16x16xf32>
    %817 = arith.mulf %815, %816 : vector<16x16xf32>
    %818 = arith.addf %817, %414 : vector<16x16xf32>
    %cst_358 = arith.constant dense<0xFF800000> : vector<16xf32>
    %819 = vector.multi_reduction <maximumf>, %818, %cst_358 [1] : vector<16x16xf32> to vector<16xf32>
    %820 = vector.shape_cast %819 : vector<16xf32> to vector<16x1xf32>
    %821 = vector.broadcast %820 : vector<16x1xf32> to vector<16x16xf32>
    %822 = arith.subf %818, %821 : vector<16x16xf32>
    %823 = math.exp %822 : vector<16x16xf32>
    %cst_359 = arith.constant dense<0.000000e+00> : vector<16xf32>
    %824 = vector.multi_reduction <add>, %823, %cst_359 [1] : vector<16x16xf32> to vector<16xf32>
    %825 = vector.shape_cast %824 : vector<16xf32> to vector<16x1xf32>
    %826 = tpu.reciprocal %825 {approx = true} : vector<16x1xf32> -> vector<16x1xf32>
    %827 = vector.broadcast %826 : vector<16x1xf32> to vector<16x16xf32>
    %828 = arith.mulf %823, %827 : vector<16x16xf32>
    %829 = vector.extract_strided_slice %767 {offsets = [0, 16], sizes = [16, 8], strides = [1, 1]} : vector<16x32xf32> to vector<16x8xf32>
    %cst_360 = arith.constant dense<0.000000e+00> : vector<16x8xf32>
    %830 = tpu.matmul %828, %829, %cst_360 {dimension_numbers = #tpu.dot_dimension_numbers<[1], [0], [0], [1], [0, 0, 1, 1], [], []>} : vector<16x16xf32>, vector<16x8xf32>, vector<16x8xf32> -> vector<16x8xf32>
    %831 = vector.extract_strided_slice %769 {offsets = [16, 0], sizes = [8, 32], strides = [1, 1]} : vector<32x32xf32> to vector<8x32xf32>
    %cst_361 = arith.constant dense<0.000000e+00> : vector<16x32xf32>
    %832 = tpu.matmul %830, %831, %cst_361 {dimension_numbers = #tpu.dot_dimension_numbers<[1], [0], [0], [1], [0, 0, 1, 1], [], []>} : vector<16x8xf32>, vector<8x32xf32>, vector<16x32xf32> -> vector<16x32xf32>
    %833 = arith.addf %812, %832 : vector<16x32xf32>
    %834 = vector.extract_strided_slice %765 {offsets = [0, 24], sizes = [16, 8], strides = [1, 1]} : vector<16x32xf32> to vector<16x8xf32>
    %835 = vector.extract_strided_slice %766 {offsets = [0, 24], sizes = [16, 8], strides = [1, 1]} : vector<16x32xf32> to vector<16x8xf32>
    %cst_362 = arith.constant dense<0.000000e+00> : vector<16x16xf32>
    %836 = tpu.matmul %834, %835, %cst_362 {dimension_numbers = #tpu.dot_dimension_numbers<[1], [1], [0], [0], [0, 0, 1, 0], [], []>} : vector<16x8xf32>, vector<16x8xf32>, vector<16x16xf32> -> vector<16x16xf32>
    %cst_363 = arith.constant 0.353553385 : f32
    %837 = vector.broadcast %cst_363 : f32 to vector<16x16xf32>
    %838 = arith.mulf %836, %837 : vector<16x16xf32>
    %839 = arith.addf %838, %414 : vector<16x16xf32>
    %cst_364 = arith.constant dense<0xFF800000> : vector<16xf32>
    %840 = vector.multi_reduction <maximumf>, %839, %cst_364 [1] : vector<16x16xf32> to vector<16xf32>
    %841 = vector.shape_cast %840 : vector<16xf32> to vector<16x1xf32>
    %842 = vector.broadcast %841 : vector<16x1xf32> to vector<16x16xf32>
    %843 = arith.subf %839, %842 : vector<16x16xf32>
    %844 = math.exp %843 : vector<16x16xf32>
    %cst_365 = arith.constant dense<0.000000e+00> : vector<16xf32>
    %845 = vector.multi_reduction <add>, %844, %cst_365 [1] : vector<16x16xf32> to vector<16xf32>
    %846 = vector.shape_cast %845 : vector<16xf32> to vector<16x1xf32>
    %847 = tpu.reciprocal %846 {approx = true} : vector<16x1xf32> -> vector<16x1xf32>
    %848 = vector.broadcast %847 : vector<16x1xf32> to vector<16x16xf32>
    %849 = arith.mulf %844, %848 : vector<16x16xf32>
    %850 = vector.extract_strided_slice %767 {offsets = [0, 24], sizes = [16, 8], strides = [1, 1]} : vector<16x32xf32> to vector<16x8xf32>
    %cst_366 = arith.constant dense<0.000000e+00> : vector<16x8xf32>
    %851 = tpu.matmul %849, %850, %cst_366 {dimension_numbers = #tpu.dot_dimension_numbers<[1], [0], [0], [1], [0, 0, 1, 1], [], []>} : vector<16x16xf32>, vector<16x8xf32>, vector<16x8xf32> -> vector<16x8xf32>
    %852 = vector.extract_strided_slice %769 {offsets = [24, 0], sizes = [8, 32], strides = [1, 1]} : vector<32x32xf32> to vector<8x32xf32>
    %cst_367 = arith.constant dense<0.000000e+00> : vector<16x32xf32>
    %853 = tpu.matmul %851, %852, %cst_367 {dimension_numbers = #tpu.dot_dimension_numbers<[1], [0], [0], [1], [0, 0, 1, 1], [], []>} : vector<16x8xf32>, vector<8x32xf32>, vector<16x32xf32> -> vector<16x32xf32>
    %854 = arith.addf %833, %853 : vector<16x32xf32>
    %855 = arith.addf %731, %854 : vector<16x32xf32>
    %c1_368 = arith.constant 1 : index
    %c0_369 = arith.constant 0 : index
    %c0_370 = arith.constant 0 : index
    %856 = vector.load %arg31[%c1_368, %c0_369, %c0_370] : memref<2x1x32xf32, #tpu.memory_space<vmem>>, vector<1x1x32xf32>
    %857 = vector.shape_cast %856 : vector<1x1x32xf32> to vector<1x32xf32>
    %858 = vector.broadcast %857 : vector<1x32xf32> to vector<16x32xf32>
    %859 = arith.addf %855, %858 : vector<16x32xf32>
    %c1_371 = arith.constant 1 : index
    %c0_372 = arith.constant 0 : index
    %c0_373 = arith.constant 0 : index
    %860 = vector.load %arg32[%c1_371, %c0_372, %c0_373] : memref<2x1x32xf32, #tpu.memory_space<vmem>>, vector<1x1x32xf32>
    %861 = vector.shape_cast %860 : vector<1x1x32xf32> to vector<1x32xf32>
    %c1_374 = arith.constant 1 : index
    %c0_375 = arith.constant 0 : index
    %c0_376 = arith.constant 0 : index
    %862 = vector.load %arg33[%c1_374, %c0_375, %c0_376] : memref<2x1x32xf32, #tpu.memory_space<vmem>>, vector<1x1x32xf32>
    %863 = vector.shape_cast %862 : vector<1x1x32xf32> to vector<1x32xf32>
    %cst_377 = arith.constant dense<0.000000e+00> : vector<16xf32>
    %864 = vector.multi_reduction <add>, %859, %cst_377 [1] : vector<16x32xf32> to vector<16xf32>
    %865 = vector.shape_cast %864 : vector<16xf32> to vector<16x1xf32>
    %cst_378 = arith.constant 3.200000e+01 : f32
    %866 = vector.broadcast %cst_378 : f32 to vector<16x1xf32>
    %867 = arith.divf %865, %866 : vector<16x1xf32>
    %868 = vector.broadcast %867 : vector<16x1xf32> to vector<16x32xf32>
    %869 = arith.subf %859, %868 : vector<16x32xf32>
    %870 = arith.mulf %869, %869 : vector<16x32xf32>
    %cst_379 = arith.constant dense<0.000000e+00> : vector<16xf32>
    %871 = vector.multi_reduction <add>, %870, %cst_379 [1] : vector<16x32xf32> to vector<16xf32>
    %872 = vector.shape_cast %871 : vector<16xf32> to vector<16x1xf32>
    %cst_380 = arith.constant 3.200000e+01 : f32
    %873 = vector.broadcast %cst_380 : f32 to vector<16x1xf32>
    %874 = arith.divf %872, %873 : vector<16x1xf32>
    %875 = vector.broadcast %867 : vector<16x1xf32> to vector<16x32xf32>
    %876 = arith.subf %859, %875 : vector<16x32xf32>
    %cst_381 = arith.constant 9.99999974E-6 : f32
    %877 = vector.broadcast %cst_381 : f32 to vector<16x1xf32>
    %878 = arith.addf %874, %877 : vector<16x1xf32>
    %879 = math.rsqrt %878 : vector<16x1xf32>
    %880 = vector.broadcast %879 : vector<16x1xf32> to vector<16x32xf32>
    %881 = arith.mulf %876, %880 : vector<16x32xf32>
    %882 = vector.broadcast %861 : vector<1x32xf32> to vector<16x32xf32>
    %883 = arith.mulf %881, %882 : vector<16x32xf32>
    %884 = vector.broadcast %863 : vector<1x32xf32> to vector<16x32xf32>
    %885 = arith.addf %883, %884 : vector<16x32xf32>
    %c1_382 = arith.constant 1 : index
    %c0_383 = arith.constant 0 : index
    %c0_384 = arith.constant 0 : index
    %886 = vector.load %arg34[%c1_382, %c0_383, %c0_384] : memref<2x32x32xf32, #tpu.memory_space<vmem>>, vector<1x32x32xf32>
    %887 = vector.shape_cast %886 : vector<1x32x32xf32> to vector<32x32xf32>
    %cst_385 = arith.constant dense<0.000000e+00> : vector<16x32xf32>
    %888 = tpu.matmul %885, %887, %cst_385 {dimension_numbers = #tpu.dot_dimension_numbers<[1], [0], [0], [1], [0, 0, 1, 1], [], []>} : vector<16x32xf32>, vector<32x32xf32>, vector<16x32xf32> -> vector<16x32xf32>
    %c1_386 = arith.constant 1 : index
    %c0_387 = arith.constant 0 : index
    %c0_388 = arith.constant 0 : index
    %889 = vector.load %arg35[%c1_386, %c0_387, %c0_388] : memref<2x1x32xf32, #tpu.memory_space<vmem>>, vector<1x1x32xf32>
    %890 = vector.shape_cast %889 : vector<1x1x32xf32> to vector<1x32xf32>
    %891 = vector.broadcast %890 : vector<1x32xf32> to vector<16x32xf32>
    %892 = arith.addf %888, %891 : vector<16x32xf32>
    %c1_389 = arith.constant 1 : index
    %c0_390 = arith.constant 0 : index
    %c0_391 = arith.constant 0 : index
    %893 = vector.load %arg36[%c1_389, %c0_390, %c0_391] : memref<2x32x64xf32, #tpu.memory_space<vmem>>, vector<1x32x64xf32>
    %894 = vector.shape_cast %893 : vector<1x32x64xf32> to vector<32x64xf32>
    %cst_392 = arith.constant dense<0.000000e+00> : vector<10x64xf32>
    %895 = tpu.matmul %402, %894, %cst_392 {dimension_numbers = #tpu.dot_dimension_numbers<[1], [0], [0], [1], [0, 0, 1, 1], [], []>} : vector<10x32xf32>, vector<32x64xf32>, vector<10x64xf32> -> vector<10x64xf32>
    %c1_393 = arith.constant 1 : index
    %c0_394 = arith.constant 0 : index
    %c0_395 = arith.constant 0 : index
    %896 = vector.load %arg37[%c1_393, %c0_394, %c0_395] : memref<2x1x64xf32, #tpu.memory_space<vmem>>, vector<1x1x64xf32>
    %897 = vector.shape_cast %896 : vector<1x1x64xf32> to vector<1x64xf32>
    %898 = vector.broadcast %897 : vector<1x64xf32> to vector<10x64xf32>
    %899 = arith.addf %895, %898 : vector<10x64xf32>
    %900 = vector.extract_strided_slice %899 {offsets = [0, 0], sizes = [10, 32], strides = [1, 1]} : vector<10x64xf32> to vector<10x32xf32>
    %901 = vector.extract_strided_slice %899 {offsets = [0, 32], sizes = [10, 32], strides = [1, 1]} : vector<10x64xf32> to vector<10x32xf32>
    %c1_396 = arith.constant 1 : index
    %c0_397 = arith.constant 0 : index
    %c0_398 = arith.constant 0 : index
    %902 = vector.load %arg38[%c1_396, %c0_397, %c0_398] : memref<2x32x32xf32, #tpu.memory_space<vmem>>, vector<1x32x32xf32>
    %903 = vector.shape_cast %902 : vector<1x32x32xf32> to vector<32x32xf32>
    %cst_399 = arith.constant 0.000000e+00 : f32
    %904 = vector.broadcast %cst_399 : f32 to vector<16x32xf32>
    %905 = vector.extract_strided_slice %892 {offsets = [0, 0], sizes = [16, 8], strides = [1, 1]} : vector<16x32xf32> to vector<16x8xf32>
    %906 = vector.extract_strided_slice %900 {offsets = [0, 0], sizes = [10, 8], strides = [1, 1]} : vector<10x32xf32> to vector<10x8xf32>
    %cst_400 = arith.constant dense<0.000000e+00> : vector<16x10xf32>
    %907 = tpu.matmul %905, %906, %cst_400 {dimension_numbers = #tpu.dot_dimension_numbers<[1], [1], [0], [0], [0, 0, 1, 0], [], []>} : vector<16x8xf32>, vector<10x8xf32>, vector<16x10xf32> -> vector<16x10xf32>
    %cst_401 = arith.constant 0.353553385 : f32
    %908 = vector.broadcast %cst_401 : f32 to vector<16x10xf32>
    %909 = arith.mulf %907, %908 : vector<16x10xf32>
    %910 = arith.addf %909, %415 : vector<16x10xf32>
    %cst_402 = arith.constant dense<0xFF800000> : vector<16xf32>
    %911 = vector.multi_reduction <maximumf>, %910, %cst_402 [1] : vector<16x10xf32> to vector<16xf32>
    %912 = vector.shape_cast %911 : vector<16xf32> to vector<16x1xf32>
    %913 = vector.broadcast %912 : vector<16x1xf32> to vector<16x10xf32>
    %914 = arith.subf %910, %913 : vector<16x10xf32>
    %915 = math.exp %914 : vector<16x10xf32>
    %cst_403 = arith.constant dense<0.000000e+00> : vector<16xf32>
    %916 = vector.multi_reduction <add>, %915, %cst_403 [1] : vector<16x10xf32> to vector<16xf32>
    %917 = vector.shape_cast %916 : vector<16xf32> to vector<16x1xf32>
    %918 = tpu.reciprocal %917 {approx = true} : vector<16x1xf32> -> vector<16x1xf32>
    %919 = vector.broadcast %918 : vector<16x1xf32> to vector<16x10xf32>
    %920 = arith.mulf %915, %919 : vector<16x10xf32>
    %921 = vector.extract_strided_slice %901 {offsets = [0, 0], sizes = [10, 8], strides = [1, 1]} : vector<10x32xf32> to vector<10x8xf32>
    %cst_404 = arith.constant dense<0.000000e+00> : vector<16x8xf32>
    %922 = tpu.matmul %920, %921, %cst_404 {dimension_numbers = #tpu.dot_dimension_numbers<[1], [0], [0], [1], [0, 0, 1, 1], [], []>} : vector<16x10xf32>, vector<10x8xf32>, vector<16x8xf32> -> vector<16x8xf32>
    %923 = vector.extract_strided_slice %903 {offsets = [0, 0], sizes = [8, 32], strides = [1, 1]} : vector<32x32xf32> to vector<8x32xf32>
    %cst_405 = arith.constant dense<0.000000e+00> : vector<16x32xf32>
    %924 = tpu.matmul %922, %923, %cst_405 {dimension_numbers = #tpu.dot_dimension_numbers<[1], [0], [0], [1], [0, 0, 1, 1], [], []>} : vector<16x8xf32>, vector<8x32xf32>, vector<16x32xf32> -> vector<16x32xf32>
    %925 = arith.addf %904, %924 : vector<16x32xf32>
    %926 = vector.extract_strided_slice %892 {offsets = [0, 8], sizes = [16, 8], strides = [1, 1]} : vector<16x32xf32> to vector<16x8xf32>
    %927 = vector.extract_strided_slice %900 {offsets = [0, 8], sizes = [10, 8], strides = [1, 1]} : vector<10x32xf32> to vector<10x8xf32>
    %cst_406 = arith.constant dense<0.000000e+00> : vector<16x10xf32>
    %928 = tpu.matmul %926, %927, %cst_406 {dimension_numbers = #tpu.dot_dimension_numbers<[1], [1], [0], [0], [0, 0, 1, 0], [], []>} : vector<16x8xf32>, vector<10x8xf32>, vector<16x10xf32> -> vector<16x10xf32>
    %cst_407 = arith.constant 0.353553385 : f32
    %929 = vector.broadcast %cst_407 : f32 to vector<16x10xf32>
    %930 = arith.mulf %928, %929 : vector<16x10xf32>
    %931 = arith.addf %930, %415 : vector<16x10xf32>
    %cst_408 = arith.constant dense<0xFF800000> : vector<16xf32>
    %932 = vector.multi_reduction <maximumf>, %931, %cst_408 [1] : vector<16x10xf32> to vector<16xf32>
    %933 = vector.shape_cast %932 : vector<16xf32> to vector<16x1xf32>
    %934 = vector.broadcast %933 : vector<16x1xf32> to vector<16x10xf32>
    %935 = arith.subf %931, %934 : vector<16x10xf32>
    %936 = math.exp %935 : vector<16x10xf32>
    %cst_409 = arith.constant dense<0.000000e+00> : vector<16xf32>
    %937 = vector.multi_reduction <add>, %936, %cst_409 [1] : vector<16x10xf32> to vector<16xf32>
    %938 = vector.shape_cast %937 : vector<16xf32> to vector<16x1xf32>
    %939 = tpu.reciprocal %938 {approx = true} : vector<16x1xf32> -> vector<16x1xf32>
    %940 = vector.broadcast %939 : vector<16x1xf32> to vector<16x10xf32>
    %941 = arith.mulf %936, %940 : vector<16x10xf32>
    %942 = vector.extract_strided_slice %901 {offsets = [0, 8], sizes = [10, 8], strides = [1, 1]} : vector<10x32xf32> to vector<10x8xf32>
    %cst_410 = arith.constant dense<0.000000e+00> : vector<16x8xf32>
    %943 = tpu.matmul %941, %942, %cst_410 {dimension_numbers = #tpu.dot_dimension_numbers<[1], [0], [0], [1], [0, 0, 1, 1], [], []>} : vector<16x10xf32>, vector<10x8xf32>, vector<16x8xf32> -> vector<16x8xf32>
    %944 = vector.extract_strided_slice %903 {offsets = [8, 0], sizes = [8, 32], strides = [1, 1]} : vector<32x32xf32> to vector<8x32xf32>
    %cst_411 = arith.constant dense<0.000000e+00> : vector<16x32xf32>
    %945 = tpu.matmul %943, %944, %cst_411 {dimension_numbers = #tpu.dot_dimension_numbers<[1], [0], [0], [1], [0, 0, 1, 1], [], []>} : vector<16x8xf32>, vector<8x32xf32>, vector<16x32xf32> -> vector<16x32xf32>
    %946 = arith.addf %925, %945 : vector<16x32xf32>
    %947 = vector.extract_strided_slice %892 {offsets = [0, 16], sizes = [16, 8], strides = [1, 1]} : vector<16x32xf32> to vector<16x8xf32>
    %948 = vector.extract_strided_slice %900 {offsets = [0, 16], sizes = [10, 8], strides = [1, 1]} : vector<10x32xf32> to vector<10x8xf32>
    %cst_412 = arith.constant dense<0.000000e+00> : vector<16x10xf32>
    %949 = tpu.matmul %947, %948, %cst_412 {dimension_numbers = #tpu.dot_dimension_numbers<[1], [1], [0], [0], [0, 0, 1, 0], [], []>} : vector<16x8xf32>, vector<10x8xf32>, vector<16x10xf32> -> vector<16x10xf32>
    %cst_413 = arith.constant 0.353553385 : f32
    %950 = vector.broadcast %cst_413 : f32 to vector<16x10xf32>
    %951 = arith.mulf %949, %950 : vector<16x10xf32>
    %952 = arith.addf %951, %415 : vector<16x10xf32>
    %cst_414 = arith.constant dense<0xFF800000> : vector<16xf32>
    %953 = vector.multi_reduction <maximumf>, %952, %cst_414 [1] : vector<16x10xf32> to vector<16xf32>
    %954 = vector.shape_cast %953 : vector<16xf32> to vector<16x1xf32>
    %955 = vector.broadcast %954 : vector<16x1xf32> to vector<16x10xf32>
    %956 = arith.subf %952, %955 : vector<16x10xf32>
    %957 = math.exp %956 : vector<16x10xf32>
    %cst_415 = arith.constant dense<0.000000e+00> : vector<16xf32>
    %958 = vector.multi_reduction <add>, %957, %cst_415 [1] : vector<16x10xf32> to vector<16xf32>
    %959 = vector.shape_cast %958 : vector<16xf32> to vector<16x1xf32>
    %960 = tpu.reciprocal %959 {approx = true} : vector<16x1xf32> -> vector<16x1xf32>
    %961 = vector.broadcast %960 : vector<16x1xf32> to vector<16x10xf32>
    %962 = arith.mulf %957, %961 : vector<16x10xf32>
    %963 = vector.extract_strided_slice %901 {offsets = [0, 16], sizes = [10, 8], strides = [1, 1]} : vector<10x32xf32> to vector<10x8xf32>
    %cst_416 = arith.constant dense<0.000000e+00> : vector<16x8xf32>
    %964 = tpu.matmul %962, %963, %cst_416 {dimension_numbers = #tpu.dot_dimension_numbers<[1], [0], [0], [1], [0, 0, 1, 1], [], []>} : vector<16x10xf32>, vector<10x8xf32>, vector<16x8xf32> -> vector<16x8xf32>
    %965 = vector.extract_strided_slice %903 {offsets = [16, 0], sizes = [8, 32], strides = [1, 1]} : vector<32x32xf32> to vector<8x32xf32>
    %cst_417 = arith.constant dense<0.000000e+00> : vector<16x32xf32>
    %966 = tpu.matmul %964, %965, %cst_417 {dimension_numbers = #tpu.dot_dimension_numbers<[1], [0], [0], [1], [0, 0, 1, 1], [], []>} : vector<16x8xf32>, vector<8x32xf32>, vector<16x32xf32> -> vector<16x32xf32>
    %967 = arith.addf %946, %966 : vector<16x32xf32>
    %968 = vector.extract_strided_slice %892 {offsets = [0, 24], sizes = [16, 8], strides = [1, 1]} : vector<16x32xf32> to vector<16x8xf32>
    %969 = vector.extract_strided_slice %900 {offsets = [0, 24], sizes = [10, 8], strides = [1, 1]} : vector<10x32xf32> to vector<10x8xf32>
    %cst_418 = arith.constant dense<0.000000e+00> : vector<16x10xf32>
    %970 = tpu.matmul %968, %969, %cst_418 {dimension_numbers = #tpu.dot_dimension_numbers<[1], [1], [0], [0], [0, 0, 1, 0], [], []>} : vector<16x8xf32>, vector<10x8xf32>, vector<16x10xf32> -> vector<16x10xf32>
    %cst_419 = arith.constant 0.353553385 : f32
    %971 = vector.broadcast %cst_419 : f32 to vector<16x10xf32>
    %972 = arith.mulf %970, %971 : vector<16x10xf32>
    %973 = arith.addf %972, %415 : vector<16x10xf32>
    %cst_420 = arith.constant dense<0xFF800000> : vector<16xf32>
    %974 = vector.multi_reduction <maximumf>, %973, %cst_420 [1] : vector<16x10xf32> to vector<16xf32>
    %975 = vector.shape_cast %974 : vector<16xf32> to vector<16x1xf32>
    %976 = vector.broadcast %975 : vector<16x1xf32> to vector<16x10xf32>
    %977 = arith.subf %973, %976 : vector<16x10xf32>
    %978 = math.exp %977 : vector<16x10xf32>
    %cst_421 = arith.constant dense<0.000000e+00> : vector<16xf32>
    %979 = vector.multi_reduction <add>, %978, %cst_421 [1] : vector<16x10xf32> to vector<16xf32>
    %980 = vector.shape_cast %979 : vector<16xf32> to vector<16x1xf32>
    %981 = tpu.reciprocal %980 {approx = true} : vector<16x1xf32> -> vector<16x1xf32>
    %982 = vector.broadcast %981 : vector<16x1xf32> to vector<16x10xf32>
    %983 = arith.mulf %978, %982 : vector<16x10xf32>
    %984 = vector.extract_strided_slice %901 {offsets = [0, 24], sizes = [10, 8], strides = [1, 1]} : vector<10x32xf32> to vector<10x8xf32>
    %cst_422 = arith.constant dense<0.000000e+00> : vector<16x8xf32>
    %985 = tpu.matmul %983, %984, %cst_422 {dimension_numbers = #tpu.dot_dimension_numbers<[1], [0], [0], [1], [0, 0, 1, 1], [], []>} : vector<16x10xf32>, vector<10x8xf32>, vector<16x8xf32> -> vector<16x8xf32>
    %986 = vector.extract_strided_slice %903 {offsets = [24, 0], sizes = [8, 32], strides = [1, 1]} : vector<32x32xf32> to vector<8x32xf32>
    %cst_423 = arith.constant dense<0.000000e+00> : vector<16x32xf32>
    %987 = tpu.matmul %985, %986, %cst_423 {dimension_numbers = #tpu.dot_dimension_numbers<[1], [0], [0], [1], [0, 0, 1, 1], [], []>} : vector<16x8xf32>, vector<8x32xf32>, vector<16x32xf32> -> vector<16x32xf32>
    %988 = arith.addf %967, %987 : vector<16x32xf32>
    %989 = arith.addf %859, %988 : vector<16x32xf32>
    %c1_424 = arith.constant 1 : index
    %c0_425 = arith.constant 0 : index
    %c0_426 = arith.constant 0 : index
    %990 = vector.load %arg39[%c1_424, %c0_425, %c0_426] : memref<2x1x32xf32, #tpu.memory_space<vmem>>, vector<1x1x32xf32>
    %991 = vector.shape_cast %990 : vector<1x1x32xf32> to vector<1x32xf32>
    %992 = vector.broadcast %991 : vector<1x32xf32> to vector<16x32xf32>
    %993 = arith.addf %989, %992 : vector<16x32xf32>
    %c1_427 = arith.constant 1 : index
    %c0_428 = arith.constant 0 : index
    %c0_429 = arith.constant 0 : index
    %994 = vector.load %arg40[%c1_427, %c0_428, %c0_429] : memref<2x1x32xf32, #tpu.memory_space<vmem>>, vector<1x1x32xf32>
    %995 = vector.shape_cast %994 : vector<1x1x32xf32> to vector<1x32xf32>
    %c1_430 = arith.constant 1 : index
    %c0_431 = arith.constant 0 : index
    %c0_432 = arith.constant 0 : index
    %996 = vector.load %arg41[%c1_430, %c0_431, %c0_432] : memref<2x1x32xf32, #tpu.memory_space<vmem>>, vector<1x1x32xf32>
    %997 = vector.shape_cast %996 : vector<1x1x32xf32> to vector<1x32xf32>
    %cst_433 = arith.constant dense<0.000000e+00> : vector<16xf32>
    %998 = vector.multi_reduction <add>, %993, %cst_433 [1] : vector<16x32xf32> to vector<16xf32>
    %999 = vector.shape_cast %998 : vector<16xf32> to vector<16x1xf32>
    %cst_434 = arith.constant 3.200000e+01 : f32
    %1000 = vector.broadcast %cst_434 : f32 to vector<16x1xf32>
    %1001 = arith.divf %999, %1000 : vector<16x1xf32>
    %1002 = vector.broadcast %1001 : vector<16x1xf32> to vector<16x32xf32>
    %1003 = arith.subf %993, %1002 : vector<16x32xf32>
    %1004 = arith.mulf %1003, %1003 : vector<16x32xf32>
    %cst_435 = arith.constant dense<0.000000e+00> : vector<16xf32>
    %1005 = vector.multi_reduction <add>, %1004, %cst_435 [1] : vector<16x32xf32> to vector<16xf32>
    %1006 = vector.shape_cast %1005 : vector<16xf32> to vector<16x1xf32>
    %cst_436 = arith.constant 3.200000e+01 : f32
    %1007 = vector.broadcast %cst_436 : f32 to vector<16x1xf32>
    %1008 = arith.divf %1006, %1007 : vector<16x1xf32>
    %1009 = vector.broadcast %1001 : vector<16x1xf32> to vector<16x32xf32>
    %1010 = arith.subf %993, %1009 : vector<16x32xf32>
    %cst_437 = arith.constant 9.99999974E-6 : f32
    %1011 = vector.broadcast %cst_437 : f32 to vector<16x1xf32>
    %1012 = arith.addf %1008, %1011 : vector<16x1xf32>
    %1013 = math.rsqrt %1012 : vector<16x1xf32>
    %1014 = vector.broadcast %1013 : vector<16x1xf32> to vector<16x32xf32>
    %1015 = arith.mulf %1010, %1014 : vector<16x32xf32>
    %1016 = vector.broadcast %995 : vector<1x32xf32> to vector<16x32xf32>
    %1017 = arith.mulf %1015, %1016 : vector<16x32xf32>
    %1018 = vector.broadcast %997 : vector<1x32xf32> to vector<16x32xf32>
    %1019 = arith.addf %1017, %1018 : vector<16x32xf32>
    %c1_438 = arith.constant 1 : index
    %c0_439 = arith.constant 0 : index
    %c0_440 = arith.constant 0 : index
    %1020 = vector.load %arg42[%c1_438, %c0_439, %c0_440] : memref<2x32x128xf32, #tpu.memory_space<vmem>>, vector<1x32x128xf32>
    %1021 = vector.shape_cast %1020 : vector<1x32x128xf32> to vector<32x128xf32>
    %cst_441 = arith.constant dense<0.000000e+00> : vector<16x128xf32>
    %1022 = tpu.matmul %1019, %1021, %cst_441 {dimension_numbers = #tpu.dot_dimension_numbers<[1], [0], [0], [1], [0, 0, 1, 1], [], []>} : vector<16x32xf32>, vector<32x128xf32>, vector<16x128xf32> -> vector<16x128xf32>
    %c1_442 = arith.constant 1 : index
    %c0_443 = arith.constant 0 : index
    %c0_444 = arith.constant 0 : index
    %1023 = vector.load %arg43[%c1_442, %c0_443, %c0_444] : memref<2x1x128xf32, #tpu.memory_space<vmem>>, vector<1x1x128xf32>
    %1024 = vector.shape_cast %1023 : vector<1x1x128xf32> to vector<1x128xf32>
    %1025 = vector.broadcast %1024 : vector<1x128xf32> to vector<16x128xf32>
    %1026 = arith.addf %1022, %1025 : vector<16x128xf32>
    %1027 = arith.mulf %1026, %1026 : vector<16x128xf32>
    %1028 = arith.mulf %1026, %1027 : vector<16x128xf32>
    %cst_445 = arith.constant 4.471500e-02 : f32
    %1029 = vector.broadcast %cst_445 : f32 to vector<16x128xf32>
    %1030 = arith.mulf %1029, %1028 : vector<16x128xf32>
    %1031 = arith.addf %1026, %1030 : vector<16x128xf32>
    %cst_446 = arith.constant 0.797884583 : f32
    %1032 = vector.broadcast %cst_446 : f32 to vector<16x128xf32>
    %1033 = arith.mulf %1032, %1031 : vector<16x128xf32>
    %1034 = math.tanh %1033 : vector<16x128xf32>
    %cst_447 = arith.constant 1.000000e+00 : f32
    %1035 = vector.broadcast %cst_447 : f32 to vector<16x128xf32>
    %1036 = arith.addf %1035, %1034 : vector<16x128xf32>
    %cst_448 = arith.constant 5.000000e-01 : f32
    %1037 = vector.broadcast %cst_448 : f32 to vector<16x128xf32>
    %1038 = arith.mulf %1037, %1036 : vector<16x128xf32>
    %1039 = arith.mulf %1026, %1038 : vector<16x128xf32>
    %c1_449 = arith.constant 1 : index
    %c0_450 = arith.constant 0 : index
    %c0_451 = arith.constant 0 : index
    %1040 = vector.load %arg44[%c1_449, %c0_450, %c0_451] : memref<2x128x32xf32, #tpu.memory_space<vmem>>, vector<1x128x32xf32>
    %1041 = vector.shape_cast %1040 : vector<1x128x32xf32> to vector<128x32xf32>
    %cst_452 = arith.constant dense<0.000000e+00> : vector<16x32xf32>
    %1042 = tpu.matmul %1039, %1041, %cst_452 {dimension_numbers = #tpu.dot_dimension_numbers<[1], [0], [0], [1], [0, 0, 1, 1], [], []>} : vector<16x128xf32>, vector<128x32xf32>, vector<16x32xf32> -> vector<16x32xf32>
    %1043 = arith.addf %993, %1042 : vector<16x32xf32>
    %c1_453 = arith.constant 1 : index
    %c0_454 = arith.constant 0 : index
    %c0_455 = arith.constant 0 : index
    %1044 = vector.load %arg45[%c1_453, %c0_454, %c0_455] : memref<2x1x32xf32, #tpu.memory_space<vmem>>, vector<1x1x32xf32>
    %1045 = vector.shape_cast %1044 : vector<1x1x32xf32> to vector<1x32xf32>
    %1046 = vector.broadcast %1045 : vector<1x32xf32> to vector<16x32xf32>
    %1047 = arith.addf %1043, %1046 : vector<16x32xf32>
    %c0_456 = arith.constant 0 : index
    %c0_457 = arith.constant 0 : index
    %1048 = vector.load %arg46[%c0_456, %c0_457] : memref<1x32xf32, #tpu.memory_space<vmem>>, vector<1x32xf32>
    %c0_458 = arith.constant 0 : index
    %c0_459 = arith.constant 0 : index
    %1049 = vector.load %arg47[%c0_458, %c0_459] : memref<1x32xf32, #tpu.memory_space<vmem>>, vector<1x32xf32>
    %cst_460 = arith.constant dense<0.000000e+00> : vector<16xf32>
    %1050 = vector.multi_reduction <add>, %1047, %cst_460 [1] : vector<16x32xf32> to vector<16xf32>
    %1051 = vector.shape_cast %1050 : vector<16xf32> to vector<16x1xf32>
    %cst_461 = arith.constant 3.200000e+01 : f32
    %1052 = vector.broadcast %cst_461 : f32 to vector<16x1xf32>
    %1053 = arith.divf %1051, %1052 : vector<16x1xf32>
    %1054 = vector.broadcast %1053 : vector<16x1xf32> to vector<16x32xf32>
    %1055 = arith.subf %1047, %1054 : vector<16x32xf32>
    %1056 = arith.mulf %1055, %1055 : vector<16x32xf32>
    %cst_462 = arith.constant dense<0.000000e+00> : vector<16xf32>
    %1057 = vector.multi_reduction <add>, %1056, %cst_462 [1] : vector<16x32xf32> to vector<16xf32>
    %1058 = vector.shape_cast %1057 : vector<16xf32> to vector<16x1xf32>
    %cst_463 = arith.constant 3.200000e+01 : f32
    %1059 = vector.broadcast %cst_463 : f32 to vector<16x1xf32>
    %1060 = arith.divf %1058, %1059 : vector<16x1xf32>
    %1061 = vector.broadcast %1053 : vector<16x1xf32> to vector<16x32xf32>
    %1062 = arith.subf %1047, %1061 : vector<16x32xf32>
    %cst_464 = arith.constant 9.99999974E-6 : f32
    %1063 = vector.broadcast %cst_464 : f32 to vector<16x1xf32>
    %1064 = arith.addf %1060, %1063 : vector<16x1xf32>
    %1065 = math.rsqrt %1064 : vector<16x1xf32>
    %1066 = vector.broadcast %1065 : vector<16x1xf32> to vector<16x32xf32>
    %1067 = arith.mulf %1062, %1066 : vector<16x32xf32>
    %1068 = vector.broadcast %1048 : vector<1x32xf32> to vector<16x32xf32>
    %1069 = arith.mulf %1067, %1068 : vector<16x32xf32>
    %1070 = vector.broadcast %1049 : vector<1x32xf32> to vector<16x32xf32>
    %1071 = arith.addf %1069, %1070 : vector<16x32xf32>
    %c0_465 = arith.constant 0 : index
    %c0_466 = arith.constant 0 : index
    %1072 = vector.load %arg24[%c0_465, %c0_466] : memref<64x32xf32, #tpu.memory_space<vmem>>, vector<64x32xf32>
    %cst_467 = arith.constant dense<0.000000e+00> : vector<16x64xf32>
    %1073 = tpu.matmul %1071, %1072, %cst_467 {dimension_numbers = #tpu.dot_dimension_numbers<[1], [1], [0], [0], [0, 0, 1, 0], [], []>} : vector<16x32xf32>, vector<64x32xf32>, vector<16x64xf32> -> vector<16x64xf32>
    %c0_468 = arith.constant 0 : index
    %c0_469 = arith.constant 0 : index
    %1074 = vector.load %arg48[%c0_468, %c0_469] : memref<16x64xf32, #tpu.memory_space<vmem>>, vector<16x64xf32>
    tpu.vector_store %arg48[%c0_468, %c0_469], %1073 {strides = array<i32>} : memref<16x64xf32, #tpu.memory_space<vmem>>, vector<16x64xf32>,
    %c0_470 = arith.constant 0 : index
    %c0_471 = arith.constant 0 : index
    %1075 = vector.load %arg5[%c0_470, %c0_471] : memref<16x1xi32, #tpu.memory_space<vmem>>, vector<16x1xi32>
    %cst_472 = arith.constant dense<0xFF800000> : vector<16xf32>
    %1076 = vector.multi_reduction <maximumf>, %1073, %cst_472 [1] : vector<16x64xf32> to vector<16xf32>
    %1077 = vector.shape_cast %1076 : vector<16xf32> to vector<16x1xf32>
    %1078 = vector.broadcast %1077 : vector<16x1xf32> to vector<16x64xf32>
    %1079 = arith.subf %1073, %1078 : vector<16x64xf32>
    %1080 = math.exp %1079 : vector<16x64xf32>
    %cst_473 = arith.constant dense<0.000000e+00> : vector<16xf32>
    %1081 = vector.multi_reduction <add>, %1080, %cst_473 [1] : vector<16x64xf32> to vector<16xf32>
    %1082 = vector.shape_cast %1081 : vector<16xf32> to vector<16x1xf32>
    %1083 = math.log %1082 : vector<16x1xf32>
    %1084 = arith.addf %1083, %1077 : vector<16x1xf32>
    %1085 = vector.broadcast %1075 : vector<16x1xi32> to vector<16x64xi32>
    %1086 = arith.cmpi eq, %404, %1085 : vector<16x64xi32>
    %1087 = arith.extui %1086 : vector<16x64xi1> to vector<16x64xi32>
    %1088 = arith.sitofp %1087 : vector<16x64xi32> to vector<16x64xf32>
    %1089 = arith.mulf %1073, %1088 : vector<16x64xf32>
    %cst_474 = arith.constant dense<0.000000e+00> : vector<16xf32>
    %1090 = vector.multi_reduction <add>, %1089, %cst_474 [1] : vector<16x64xf32> to vector<16xf32>
    %1091 = vector.shape_cast %1090 : vector<16xf32> to vector<16x1xf32>
    %c-100_i32 = arith.constant -100 : i32
    %1092 = vector.broadcast %c-100_i32 : i32 to vector<16x1xi32>
    %1093 = arith.cmpi ne, %1075, %1092 : vector<16x1xi32>
    %1094 = arith.extui %1093 : vector<16x1xi1> to vector<16x1xi32>
    %1095 = arith.sitofp %1094 : vector<16x1xi32> to vector<16x1xf32>
    %1096 = vector.shape_cast %1095 : vector<16x1xf32> to vector<1x16x1xf32>
    %cst_475 = arith.constant dense<0.000000e+00> : vector<1xf32>
    %1097 = vector.multi_reduction <add>, %1096, %cst_475 [1, 2] : vector<1x16x1xf32> to vector<1xf32>
    %1098 = vector.shape_cast %1097 : vector<1xf32> to vector<1x1x1xf32>
    %1099 = vector.extract %1098[0, 0, 0] : f32 from vector<1x1x1xf32>
    %cst_476 = arith.constant 1.000000e+00 : f32
    %1100 = arith.maximumf %1099, %cst_476 : f32
    %1101 = arith.subf %1084, %1091 : vector<16x1xf32>
    %1102 = arith.mulf %1101, %1095 : vector<16x1xf32>
    %1103 = vector.shape_cast %1102 : vector<16x1xf32> to vector<1x16x1xf32>
    %cst_477 = arith.constant dense<0.000000e+00> : vector<1xf32>
    %1104 = vector.multi_reduction <add>, %1103, %cst_477 [1, 2] : vector<1x16x1xf32> to vector<1xf32>
    %1105 = vector.shape_cast %1104 : vector<1xf32> to vector<1x1x1xf32>
    %1106 = vector.extract %1105[0, 0, 0] : f32 from vector<1x1x1xf32>
    %1107 = arith.divf %1106, %1100 : f32
    %c0_478 = arith.constant 0 : index
    %c0_479 = arith.constant 0 : index
    %1108 = memref.load %arg49[%c0_478, %c0_479] : memref<1x1xf32, #tpu.memory_space<smem>>
    memref.store %1107, %arg49[%c0_478, %c0_479] : memref<1x1xf32, #tpu.memory_space<smem>>
    return
  }
}

</mosaic_0001>

<bundles_post_ra>
// kernel: imgcap_forward.1
= control target key start
LH: loop header
LB: loop body
LE: loop exit
PB: predicated region body
PF: predicated region fallthrough
CT: control target
= control target key end

     0   :  { %s13076_s6 = smov 1   ;;  %s13077_s10 = smov 2   ;;  %s14698_s0 = inlined_call_operand.smem [shape: u32[50], index: -1, kind: input, shape index: {}] }
   0x1   :  { %s13154_s5 = sld [smem:[%s14698_s0]]   ;;  %s13078_s14 = smov 3  }
   0x2   :  { %s13159_s9 = sld [smem:[%s14698_s0 + %s13076_s6]]   ;;  %s13079_s18 = smov 4  }
   0x3   :  { %s13164_s13 = sld [smem:[%s14698_s0 + %s13077_s10]]   ;;  %s13080_s22 = smov 5  }
   0x4   :  { %s13169_s17 = sld [smem:[%s14698_s0 + %s13078_s14]]   ;;  %s13081_s26 = smov 6  }
   0x5   :  { %s13174_s21 = sld [smem:[%s14698_s0 + %s13079_s18]]   ;;  %s13082_s30 = smov 7  }
   0x6   :  { %s13179_s25 = sld [smem:[%s14698_s0 + %s13080_s22]]   ;;  %s13083_s4 = smov 8  }
   0x7   :  { %s13184_s29 = sld [smem:[%s14698_s0 + %s13081_s26]]   ;;  %s13084_s10 = smov 9  }
   0x8   :  { %s13189_s3 = sld [smem:[%s14698_s0 + %s13082_s30]]   ;;  %s13085_s15 = smov 10  }
   0x9   :  { %14734 = sst [smem:[#allocation14_spill]] %s13164_s13  ;;  %s13086_s20 = smov 11  }
   0xa   :  { %14735 = sst [smem:[#allocation15_spill]] %s13169_s17  ;;  %s13087_s26 = smov 12  }
   0xb   :  { %14736 = sst [smem:[#allocation16_spill]] %s13174_s21  ;;  %s13088_s1 = smov 13  }
   0xc   :  { %14737 = sst [smem:[#allocation17_spill]] %s13179_s25  ;;  %s13089_s7 = smov 14  }
   0xd   :  { %s13194_s8 = sld [smem:[%s14698_s0 + %s13083_s4]]   ;;  %s13091_s22 = smov 16  }
   0xe   :  { %s13199_s14 = sld [smem:[%s14698_s0 + %s13084_s10]]   ;;  %s13092_s28 = smov 17  }
   0xf   :  { %s13204_s19 = sld [smem:[%s14698_s0 + %s13085_s15]]   ;;  %s13090_s15 = smov 15  }
  0x10   :  { %s13209_s24 = sld [smem:[%s14698_s0 + %s13086_s20]]  }
  0x11   :  { %s13214_s30 = sld [smem:[%s14698_s0 + %s13087_s26]]  }
  0x12   :  { %s13219_s6 = sld [smem:[%s14698_s0 + %s13088_s1]]  }
  0x13   :  { %s13224_s12 = sld [smem:[%s14698_s0 + %s13089_s7]]   ;;  %s13093_s7 = smov 18  }
  0x14   :  { %s13229_s20 = sld [smem:[%s14698_s0 + %s13090_s15]]   ;;  %s13094_s15 = smov 19  }
  0x15   :  { %s13234_s27 = sld [smem:[%s14698_s0 + %s13091_s22]]   ;;  %s13095_s22 = smov 20  }
  0x16   :  { %s13239_s4 = sld [smem:[%s14698_s0 + %s13092_s28]]   ;;  %s13096_s28 = smov 21  }
  0x17   :  { %s13244_s25 = sld [smem:[%s14698_s0 + %s13093_s7]]   ;;  %s13097_s7 = smov 22  }
  0x18   :  { %s13249_s17 = sld [smem:[%s14698_s0 + %s13094_s15]]   ;;  %s13098_s15 = smov 23  }
  0x19   :  { %s13254_s13 = sld [smem:[%s14698_s0 + %s13095_s22]]   ;;  %s13099_s22 = smov 24  }
  0x1a   :  { %s13259_s21 = sld [smem:[%s14698_s0 + %s13096_s28]]   ;;  %s13100_s28 = smov 25  }
  0x1c   :  { %14738 = sst [smem:[#allocation18_spill]] %s13239_s4 }
  0x1d   :  { %s13264_s4 = sld [smem:[%s14698_s0 + %s13097_s7]]   ;;  %s13101_s7 = smov 26  }
  0x1e   :  { %14739 = sst [smem:[#allocation19_spill]] %s13249_s17 }
  0x1f   :  { %14740 = sst [smem:[#allocation20_spill]] %s13254_s13 }
  0x20   :  { %14741 = sst [smem:[#allocation21_spill]] %s13259_s21 }
  0x21   :  { %s13269_s17 = sld [smem:[%s14698_s0 + %s13098_s15]]   ;;  %s13102_s15 = smov 27  }
  0x22   :  { %s13274_s13 = sld [smem:[%s14698_s0 + %s13099_s22]]   ;;  %s13103_s22 = smov 28  }
  0x23   :  { %14742 = sst [smem:[#allocation22_spill]] %s13264_s4 }
  0x24   :  { %s13279_s21 = sld [smem:[%s14698_s0 + %s13100_s28]]   ;;  %s13104_s28 = smov 29  }
  0x25   :  { %s13284_s4 = sld [smem:[%s14698_s0 + %s13101_s7]]   ;;  %s13105_s7 = smov 30  }
  0x27   :  { %14743 = sst [smem:[#allocation23_spill]] %s13269_s17 }
  0x28   :  { %14744 = sst [smem:[#allocation24_spill]] %s13274_s13 }
  0x29   :  { %s13289_s17 = sld [smem:[%s14698_s0 + %s13102_s15]]   ;;  %s13106_s15 = smov 31  }
  0x2a   :  { %14745 = sst [smem:[#allocation25_spill]] %s13279_s21 }
  0x2b   :  { %14746 = sst [smem:[#allocation26_spill]] %s13284_s4 }
  0x2c   :  { %s13294_s13 = sld [smem:[%s14698_s0 + %s13103_s22]]   ;;  %s13107_s22 = smov 32  }
  0x2d   :  { %s13299_s21 = sld [smem:[%s14698_s0 + %s13104_s28]]   ;;  %s13108_s28 = smov 33  }
  0x2e   :  { %s13304_s4 = sld [smem:[%s14698_s0 + %s13105_s7]]   ;;  %s13109_s7 = smov 34  }
  0x2f   :  { %14747 = sst [smem:[#allocation27_spill]] %s13289_s17 }
  0x30   :  { %s13309_s17 = sld [smem:[%s14698_s0 + %s13106_s15]]   ;;  %s13110_s15 = smov 35  }
  0x32   :  { %14748 = sst [smem:[#allocation28_spill]] %s13294_s13 }
  0x33   :  { %14749 = sst [smem:[#allocation29_spill]] %s13299_s21 }
  0x34   :  { %14750 = sst [smem:[#allocation30_spill]] %s13304_s4 }
  0x35   :  { %s13314_s13 = sld [smem:[%s14698_s0 + %s13107_s22]]   ;;  %s13111_s22 = smov 36  }
  0x36   :  { %14751 = sst [smem:[#allocation31_spill]] %s13309_s17 }
  0x37   :  { %s13319_s21 = sld [smem:[%s14698_s0 + %s13108_s28]]   ;;  %s13112_s28 = smov 37  }
  0x38   :  { %s13324_s4 = sld [smem:[%s14698_s0 + %s13109_s7]]   ;;  %s13113_s7 = smov 38  }
  0x39   :  { %s13329_s17 = sld [smem:[%s14698_s0 + %s13110_s15]]   ;;  %s13114_s15 = smov 39  }
  0x3b   :  { %14752 = sst [smem:[#allocation32_spill]] %s13314_s13 }
  0x3c   :  { %s13334_s13 = sld [smem:[%s14698_s0 + %s13111_s22]]   ;;  %s13115_s22 = smov 40  }
  0x3d   :  { %14753 = sst [smem:[#allocation33_spill]] %s13319_s21 }
  0x3e   :  { %14754 = sst [smem:[#allocation34_spill]] %s13324_s4 }
  0x3f   :  { %14755 = sst [smem:[#allocation35_spill]] %s13329_s17 }
  0x40   :  { %s13339_s21 = sld [smem:[%s14698_s0 + %s13112_s28]]   ;;  %s13116_s28 = smov 41  }
  0x41   :  { %s13344_s4 = sld [smem:[%s14698_s0 + %s13113_s7]]   ;;  %s13117_s7 = smov 42  }
  0x42   :  { %14756 = sst [smem:[#allocation36_spill]] %s13334_s13 }
  0x43   :  { %s13349_s17 = sld [smem:[%s14698_s0 + %s13114_s15]]   ;;  %s13118_s15 = smov 43  }
  0x44   :  { %s13354_s13 = sld [smem:[%s14698_s0 + %s13115_s22]]   ;;  %s13119_s22 = smov 44  }
  0x46   :  { %14757 = sst [smem:[#allocation37_spill]] %s13339_s21 }
  0x47   :  { %14758 = sst [smem:[#allocation38_spill]] %s13344_s4 }
  0x48   :  { %s13359_s21 = sld [smem:[%s14698_s0 + %s13116_s28]]   ;;  %s13120_s28 = smov 45  }
  0x49   :  { %14759 = sst [smem:[#allocation39_spill]] %s13349_s17 }
  0x4a   :  { %14760 = sst [smem:[#allocation40_spill]] %s13354_s13 }
  0x4b   :  { %s13364_s4 = sld [smem:[%s14698_s0 + %s13117_s7]]   ;;  %s13121_s7 = smov 46  }
  0x4c   :  { %s13369_s17 = sld [smem:[%s14698_s0 + %s13118_s15]]   ;;  %s13122_s15 = smov 47  }
  0x4d   :  { %s13374_s13 = sld [smem:[%s14698_s0 + %s13119_s22]]   ;;  %s13123_s22 = smov 48  }
  0x4e   :  { %14761 = sst [smem:[#allocation41_spill]] %s13359_s21 }
  0x4f   :  { %s13379_s21 = sld [smem:[%s14698_s0 + %s13120_s28]]   ;;  %s13124_s28 = smov 49  }
  0x51   :  { %14762 = sst [smem:[#allocation42_spill]] %s13364_s4 }
  0x52   :  { %14763 = sst [smem:[#allocation43_spill]] %s13369_s17 }
  0x53   :  { %14764 = sst [smem:[#allocation44_spill]] %s13374_s13 }
  0x54   :  { %s13384_s4 = sld [smem:[%s14698_s0 + %s13121_s7]]  }
  0x55   :  { %14765 = sst [smem:[#allocation45_spill]] %s13379_s21 }
  0x56   :  { %s13389_s17 = sld [smem:[%s14698_s0 + %s13122_s15]]  }
  0x57   :  { %s13394_s13 = sld [smem:[%s14698_s0 + %s13123_s22]]  }
  0x58   :  { %s13399_s21 = sld [smem:[%s14698_s0 + %s13124_s28]]  }
  0x59   :  { %105 = vsyncpa [#allocation3], 0 }
  0x5a   :  { %106 = vsyncpa [#allocation7], 0 }
  0x5b   :  { %107 = vsyncpa [#allocation4], 0 }
  0x5c   :  { %108 = vsyncpa [#allocation5], 0  ;;  %s13125_s7 = smov [#allocation2]   ;;  %s13126_s11 = smov [#allocation6]  }
  0x5d   :  { %s207_s10 = sshll.u32 %s13125_s7, 4  ;;  %s217_s15 = sshll.u32 %s13126_s11, 4  ;;  %s208_s10 = int_to_ptr.vmem [resolvable:$true] %s207_s10  ;;  %s218_s15 = int_to_ptr.vmem [resolvable:$true] %s217_s15 }
  0x5e   :  { %s12992_s16 = scalar_lea.hbm %s13384_s4, 16 }
  0x5f   :  { %p12993_p0 = scmp.ne.s32.totalorder %s13384_s4, %s12992_s16  ;;  %p12996_p1 = scmp.lt.u32.totalorder %s12992_s16, %s13384_s4 }
  0x61   :  { %p12998_p2 = pnand %p12996_p1, %p12993_p0 }
  0x63   :  { %13001 = shalt.err (!%p12998_p2)
}
  0x64   :  { %s13002_s0 = scalar_lea.vmem %s208_s10, 16  ;;  %s13006_s18 = scalar_lea.vmem %s208_s10, 32 }
  0x65   :  { %p13003_p3 = scmp.ne.s32.totalorder %s208_s10, %s13002_s0  ;;  %p13007_p4 = scmp.lt.s32.totalorder %s208_s10, %s208_s10 }
  0x66   :  { %p13008_p5 = scmp.lt.s32.totalorder %s13006_s18, %s13002_s0 }
  0x68   :  { %p13009_p6 = por %p13008_p5, %p13007_p4 }
  0x6a   :  { %p13010_p7 = pnand %p13009_p6, %p13003_p3 }
  0x6c   :  { %13013 = shalt.err (!%p13010_p7)
}
  0x6d   :  { %210 = dma.hbm_to_vmem [thread:$0]  %s13384_s4, 16, %s208_s10, [#allocation3]  }
  0x6e   :  { %s13014_s22 = scalar_lea.hbm %s13389_s17, 16 }
  0x6f   :  { %p13015_p8 = scmp.ne.s32.totalorder %s13389_s17, %s13014_s22  ;;  %p13018_p9 = scmp.lt.u32.totalorder %s13014_s22, %s13389_s17 }
  0x71   :  { %p13020_p10 = pnand %p13018_p9, %p13015_p8 }
  0x73   :  { %13023 = shalt.err (!%p13020_p10)
}
  0x74   :  { %s13024_s23 = scalar_lea.vmem %s218_s15, 16  ;;  %s13028_s26 = scalar_lea.vmem %s218_s15, 32 }
  0x75   :  { %p13025_p11 = scmp.ne.s32.totalorder %s218_s15, %s13024_s23  ;;  %p13029_p12 = scmp.lt.s32.totalorder %s218_s15, %s218_s15 }
  0x76   :  { %p13030_p13 = scmp.lt.s32.totalorder %s13028_s26, %s13024_s23 }
  0x78   :  { %p13031_p0 = por %p13030_p13, %p13029_p12 }
  0x7a   :  { %p13032_p1 = pnand %p13031_p0, %p13025_p11 }
  0x7c   :  { %13035 = shalt.err (!%p13032_p1)
}
  0x7d   :  { %220 = dma.hbm_to_vmem [thread:$0]  %s13389_s17, 16, %s218_s15, [#allocation7]  }
  0x7e   :  { %13068 = dma.done.wait [#allocation3], 16  }
  0x7f   :  { %13069 = vsyncadd [#allocation3], 4294967280 }
  0x80   :  { %13070 = dma.done.wait [#allocation7], 16  }
  0x81   :  { %13071 = vsyncadd [#allocation7], 4294967280  ;;  %v249_v0 = vld [vmem:[%s13184_s29 + $0x80] sm:$0xff]  ;;  %v250_v1 = vld [vmem:[%s13184_s29 + $0x88] sm:$0xff]  ;;  %vm564_vm0 = vcmask 1040384   ;;  %vm551_vm1 = vcmask 1044480  }
  0x82   :  { %v233_v2 = vld [vmem:[%s13184_s29] sm:$0xff]  ;;  %v11744_v3 = vpack.c.bf16 %v250_v1, %v249_v0  ;;  %v234_v4 = vld [vmem:[%s13184_s29 + $0x8] sm:$0xff]  ;;  %v251_v11 = vld [vmem:[%s13184_s29 + $0x90] sm:$0xff]  ;;  %vm567_vm2 = vcmask 1045504   ;;  %vm575_vm3 = vcmask 261120   ;;  %vm579_vm4 = vcmask 254976  }
  0x83   :  { %v281_v5 = vld [vmem:[%s13184_s29 + $0x180] sm:$0xff]  ;;  %v282_v6 = vld [vmem:[%s13184_s29 + $0x188] sm:$0xff]  ;;  %v11746_v7 = vpack.c.bf16 %v234_v4, %v233_v2  ;;  %v252_v13 = vld [vmem:[%s13184_s29 + $0x98] sm:$0xff]  ;;  %vm722_vm5 = vcmask 64512   ;;  %s13128_s17 = smov 88   ;;  %vm810_vm7 = vcmask 80896  }
  0x84   :  { %v11776_v8 = vpack.c.bf16 %v282_v6, %v281_v5  ;;  %v265_v9 = vld [vmem:[%s13184_s29 + $0x100] sm:$0xff]  ;;  %v266_v10 = vld [vmem:[%s13184_s29 + $0x108] sm:$0xff]  ;;  %11745 = vmatprep.subr.bf16.mxu0 %v11744_v3  ;;  %v235_v14 = vld [vmem:[%s13184_s29 + $0x10] sm:$0xff]  ;;  %v11748_v16 = vpack.c.bf16 %v252_v13, %v251_v11  ;;  %vm814_vm8 = vcmask 74752   ;;  %vm845_vm9 = vcmask 1041408   ;;  %s14732_s4 = smov 72  }
  0x85   :  { %v11778_v12 = vpack.c.bf16 %v266_v10, %v265_v9  ;;  %v236_v15 = vld [vmem:[%s13184_s29 + $0x18] sm:$0xff]  ;;  %11747 = vmatpush3.bf16.msra.mxu0 %v11746_v7  ;;  %v283_v18 = vld [vmem:[%s13184_s29 + $0x190] sm:$0xff]  ;;  %v253_v23 = vld [vmem:[%s13184_s29 + $0xa0] sm:$0xff]  ;;  %vm13131_vm10 = vmmov 1   ;;  %s14730_s28 = smov 104   ;;  %s13136_s1 = smov 80  }
  0x86   :  { %11777 = vmatprep.subr.bf16.mxu1 %v11776_v8  ;;  %v11750_v17 = vpack.c.bf16 %v236_v15, %v235_v14  ;;  %v284_v19 = vld [vmem:[%s13184_s29 + $0x198] sm:$0xff]  ;;  %v267_v20 = vld [vmem:[%s13184_s29 + $0x110] sm:$0xff]  ;;  %v254_v24 = vld [vmem:[%s13184_s29 + $0xa8] sm:$0xff]  ;;  %11749 = vmatprep.subr.bf16.mxu0 %v11748_v16  ;;  %s14729_s2 = smov 48   ;;  %s14728_s7 = smov 40   ;;  %vm3767_vm13 = vcmask 523264  }
  0x87   :  { %11779 = vmatpush3.bf16.msra.mxu1 %v11778_v12  ;;  %v11780_v21 = vpack.c.bf16 %v284_v19, %v283_v18  ;;  %v268_v22 = vld [vmem:[%s13184_s29 + $0x118] sm:$0xff]  ;;  %v11752_v26 = vpack.c.bf16 %v254_v24, %v253_v23  ;;  %v237_v27 = vld [vmem:[%s13184_s29 + $0x20] sm:$0xff]  ;;  %v238_v28 = vld [vmem:[%s13184_s29 + $0x28] sm:$0xff]  ;;  %s14770_s10 = sld [smem:[#allocation18_spill]]  ;;  %s14771_s11 = sld [smem:[#allocation20_spill]]  ;;  %vm4086_vm15 = vcmask 130048  }
  0x88   :  { %v11782_v25 = vpack.c.bf16 %v268_v22, %v267_v20  ;;  %v285_v29 = vld [vmem:[%s13184_s29 + $0x1a0] sm:$0xff]  ;;  %v286_v30 = vld [vmem:[%s13184_s29 + $0x1a8] sm:$0xff]  ;;  %v11754_v33 = vpack.c.bf16 %v238_v28, %v237_v27  ;;  %v255_v35 = vld [vmem:[%s13184_s29 + $0xb0] sm:$0xff]  ;;  %s14772_s15 = sld [smem:[#allocation19_spill]]  ;;  %s14773_s16 = sld [smem:[#allocation21_spill]] }
  0x89   :  { %11781 = vmatprep.subr.bf16.mxu1 %v11780_v21  ;;  %v269_v31 = vld [vmem:[%s13184_s29 + $0x120] sm:$0xff]  ;;  %v270_v32 = vld [vmem:[%s13184_s29 + $0x128] sm:$0xff]  ;;  %11751 = vmatpush3.bf16.msra.mxu0 %v11750_v17  ;;  %v11784_v34 = vpack.c.bf16 %v286_v30, %v285_v29  ;;  %v256_v36 = vld [vmem:[%s13184_s29 + $0xb8] sm:$0xff]  ;;  %s14783_s0 = sld [smem:[#allocation31_spill]]  ;;  %s14784_s18 = sld [smem:[#allocation36_spill]] }
  0x8a   :  { %v239_v37 = vld [vmem:[%s13184_s29 + $0x30] sm:$0xff]  ;;  %11753 = vmatprep.subr.bf16.mxu0 %v11752_v26  ;;  %v11786_v38 = vpack.c.bf16 %v270_v32, %v269_v31  ;;  %v11756_v39 = vpack.c.bf16 %v256_v36, %v255_v35  ;;  %v240_v40 = vld [vmem:[%s13184_s29 + $0x38] sm:$0xff]  ;;  %v257_v46 = vld [vmem:[%s13184_s29 + $0xc0] sm:$0xff]  ;;  %s14785_s22 = sld [smem:[#allocation22_spill]]  ;;  %s14786_s23 = sld [smem:[#allocation23_spill]] }
  0x8b   :  { %11783 = vmatpush3.bf16.msra.mxu1 %v11782_v25  ;;  %v287_v41 = vld [vmem:[%s13184_s29 + $0x1b0] sm:$0xff]  ;;  %v288_v42 = vld [vmem:[%s13184_s29 + $0x1b8] sm:$0xff]  ;;  %v258_v47 = vld [vmem:[%s13184_s29 + $0xc8] sm:$0xff]  ;;  %v11758_v48 = vpack.c.bf16 %v240_v40, %v239_v37  ;;  %s14787_s26 = sld [smem:[#allocation34_spill]] }
  0x8c   :  { %11785 = vmatprep.subr.bf16.mxu1 %v11784_v34  ;;  %v11788_v43 = vpack.c.bf16 %v288_v42, %v287_v41  ;;  %v271_v44 = vld [vmem:[%s13184_s29 + $0x130] sm:$0xff]  ;;  %v272_v45 = vld [vmem:[%s13184_s29 + $0x138] sm:$0xff]  ;;  %v289_v49 = vld [vmem:[%s13184_s29 + $0x1c0] sm:$0xff]  ;;  %v11760_v52 = vpack.c.bf16 %v258_v47, %v257_v46 }
  0x8d   :  { %11755 = vmatpush3.bf16.msra.mxu0 %v11754_v33  ;;  %v290_v50 = vld [vmem:[%s13184_s29 + $0x1c8] sm:$0xff]  ;;  %v11790_v51 = vpack.c.bf16 %v272_v45, %v271_v44  ;;  %v241_v53 = vld [vmem:[%s13184_s29 + $0x40] sm:$0xff]  ;;  %v259_v58 = vld [vmem:[%s13184_s29 + $0xd0] sm:$0xff] }
  0x8e   :  { %11757 = vmatprep.subr.bf16.mxu0 %v11756_v39  ;;  %v242_v54 = vld [vmem:[%s13184_s29 + $0x48] sm:$0xff]  ;;  %v273_v55 = vld [vmem:[%s13184_s29 + $0x140] sm:$0xff]  ;;  %v11792_v56 = vpack.c.bf16 %v290_v50, %v289_v49  ;;  %v260_v59 = vld [vmem:[%s13184_s29 + $0xd8] sm:$0xff] }
  0x8f   :  { %11787 = vmatpush3.bf16.msra.mxu1 %v11786_v38  ;;  %v274_v57 = vld [vmem:[%s13184_s29 + $0x148] sm:$0xff]  ;;  %v291_v60 = vld [vmem:[%s13184_s29 + $0x1d0] sm:$0xff]  ;;  %v292_v61 = vld [vmem:[%s13184_s29 + $0x1d8] sm:$0xff]  ;;  %v11762_v62 = vpack.c.bf16 %v242_v54, %v241_v53  ;;  %v11764_v0 = vpack.c.bf16 %v260_v59, %v259_v58 }
  0x90   :  { %11789 = vmatprep.subr.bf16.mxu1 %v11788_v43  ;;  %v11794_v63 = vpack.c.bf16 %v274_v57, %v273_v55  ;;  %v243_v1 = vld [vmem:[%s13184_s29 + $0x50] sm:$0xff]  ;;  %v244_v2 = vld [vmem:[%s13184_s29 + $0x58] sm:$0xff]  ;;  %v11796_v4 = vpack.c.bf16 %v292_v61, %v291_v60  ;;  %v261_v6 = vld [vmem:[%s13184_s29 + $0xe0] sm:$0xff] }
  0x91   :  { %11759 = vmatpush3.bf16.msra.mxu0 %v11758_v48  ;;  %v275_v3 = vld [vmem:[%s13184_s29 + $0x150] sm:$0xff]  ;;  %v276_v5 = vld [vmem:[%s13184_s29 + $0x158] sm:$0xff]  ;;  %v262_v7 = vld [vmem:[%s13184_s29 + $0xe8] sm:$0xff]  ;;  %v11766_v10 = vpack.c.bf16 %v244_v2, %v243_v1 }
  0x92   :  { %11761 = vmatprep.subr.bf16.mxu0 %v11760_v52  ;;  %v293_v8 = vld [vmem:[%s13184_s29 + $0x1e0] sm:$0xff]  ;;  %v294_v9 = vld [vmem:[%s13184_s29 + $0x1e8] sm:$0xff]  ;;  %v11798_v13 = vpack.c.bf16 %v276_v5, %v275_v3  ;;  %v11768_v14 = vpack.c.bf16 %v262_v7, %v261_v6  ;;  %v263_v19 = vld [vmem:[%s13184_s29 + $0xf0] sm:$0xff] }
  0x93   :  { %11791 = vmatpush3.bf16.msra.mxu1 %v11790_v51  ;;  %v245_v11 = vld [vmem:[%s13184_s29 + $0x60] sm:$0xff]  ;;  %v228_v12 = vld [vmem:[%s13154_s5 + $0x8] sm:$0xff]  ;;  %v11800_v18 = vpack.c.bf16 %v294_v9, %v293_v8  ;;  %v264_v20 = vld [vmem:[%s13184_s29 + $0xf8] sm:$0xff] }
  0x94   :  { %11793 = vmatprep.subr.bf16.mxu1 %v11792_v56  ;;  %v246_v15 = vld [vmem:[%s13184_s29 + $0x68] sm:$0xff]  ;;  %v277_v16 = vld [vmem:[%s13184_s29 + $0x160] sm:$0xff]  ;;  %400 = vmatprep.mubr.f32.mxu0 %v228_v12  ;;  %v230_v21 = vld [vmem:[%s13154_s5 + $0x18] sm:$0xff]  ;;  %v11772_v26 = vpack.c.bf16 %v264_v20, %v263_v19 }
  0x95   :  { %11763 = vmatpush3.bf16.msra.mxu0 %v11762_v62  ;;  %v278_v17 = vld [vmem:[%s13184_s29 + $0x168] sm:$0xff]  ;;  %v295_v22 = vld [vmem:[%s13184_s29 + $0x1f0] sm:$0xff]  ;;  %v296_v23 = vld [vmem:[%s13184_s29 + $0x1f8] sm:$0xff]  ;;  %470 = vmatprep.mubr.f32.mxu1 %v230_v21  ;;  %v11770_v24 = vpack.c.bf16 %v246_v15, %v245_v11 }
  0x96   :  { %11765 = vmatprep.subr.bf16.mxu0 %v11764_v0  ;;  %v11802_v25 = vpack.c.bf16 %v278_v17, %v277_v16  ;;  %v247_v27 = vld [vmem:[%s13184_s29 + $0x70] sm:$0xff]  ;;  %v248_v28 = vld [vmem:[%s13184_s29 + $0x78] sm:$0xff]  ;;  %v11804_v30 = vpack.c.bf16 %v296_v23, %v295_v22  ;;  %v313_v32 = vld [vmem:[%s13184_s29 + $0x280] sm:$0xff] }
  0x97   :  { %11795 = vmatpush3.bf16.msra.mxu1 %v11794_v63  ;;  %v279_v29 = vld [vmem:[%s13184_s29 + $0x170] sm:$0xff]  ;;  %v280_v31 = vld [vmem:[%s13184_s29 + $0x178] sm:$0xff]  ;;  %v314_v33 = vld [vmem:[%s13184_s29 + $0x288] sm:$0xff]  ;;  %v11774_v34 = vpack.c.bf16 %v248_v28, %v247_v27 }
  0x98   :  { %11797 = vmatprep.subr.bf16.mxu1 %v11796_v4  ;;  %v11806_v35 = vpack.c.bf16 %v280_v31, %v279_v29  ;;  %v11808_v36 = vpack.c.bf16 %v314_v33, %v313_v32  ;;  %v297_v37 = vld [vmem:[%s13184_s29 + $0x200] sm:$0xff]  ;;  %v298_v38 = vld [vmem:[%s13184_s29 + $0x208] sm:$0xff]  ;;  %v315_v39 = vld [vmem:[%s13184_s29 + $0x290] sm:$0xff]  ;;  %v557_v31 = vlaneseq }
  0x99   :  { %11767 = vmatpush3.bf16.msra.mxu0 %v11766_v10  ;;  %v316_v40 = vld [vmem:[%s13184_s29 + $0x298] sm:$0xff]  ;;  %v227_v41 = vld [vmem:[%s13154_s5] sm:$0xff]  ;;  %v11810_v42 = vpack.c.bf16 %v298_v38, %v297_v37  ;;  %v229_v43 = vld [vmem:[%s13154_s5 + $0x10] sm:$0xff] }
  0x9a   :  { %11769 = vmatprep.subr.bf16.mxu0 %v11768_v14  ;;  %v11812_v44 = vpack.c.bf16 %v316_v40, %v315_v39  ;;  %v299_v45 = vld [vmem:[%s13184_s29 + $0x210] sm:$0xff]  ;;  %v300_v46 = vld [vmem:[%s13184_s29 + $0x218] sm:$0xff]  ;;  %v317_v47 = vld [vmem:[%s13184_s29 + $0x2a0] sm:$0xff]  ;;  %v558_v32 = vshrl.u32 %v557_v31, 7 }
  0x9b   :  { %11799 = vmatpush3.bf16.msra.mxu1 %v11798_v13  ;;  %v318_v48 = vld [vmem:[%s13184_s29 + $0x2a8] sm:$0xff]  ;;  %v11814_v50 = vpack.c.bf16 %v300_v46, %v299_v45  ;;  %v301_v52 = vld [vmem:[%s13184_s29 + $0x220] sm:$0xff]  ;;  %v319_v54 = vld [vmem:[%s13184_s29 + $0x2b0] sm:$0xff] }
  0x9c   :  { %11801 = vmatprep.subr.bf16.mxu1 %v11800_v18  ;;  %v232_v49 = vld [vmem:[%s13154_s5 + $0x28] sm:$0xff]  ;;  %v11816_v51 = vpack.c.bf16 %v318_v48, %v317_v47  ;;  %v320_v55 = vld [vmem:[%s13184_s29 + $0x2b8] sm:$0xff]  ;;  %v303_v58 = vld [vmem:[%s13184_s29 + $0x230] sm:$0xff] }
  0x9d   :  { %11771 = vmatpush3.bf16.msra.mxu0 %v11770_v24  ;;  %v302_v53 = vld [vmem:[%s13184_s29 + $0x228] sm:$0xff]  ;;  %v11820_v57 = vpack.c.bf16 %v320_v55, %v319_v54  ;;  %v304_v59 = vld [vmem:[%s13184_s29 + $0x238] sm:$0xff]  ;;  %v321_v60 = vld [vmem:[%s13184_s29 + $0x2c0] sm:$0xff] }
  0x9e   :  { %11773 = vmatprep.subr.bf16.mxu0 %v11772_v26  ;;  %v11818_v56 = vpack.c.bf16 %v302_v53, %v301_v52  ;;  %v322_v61 = vld [vmem:[%s13184_s29 + $0x2c8] sm:$0xff]  ;;  %v11822_v62 = vpack.c.bf16 %v304_v59, %v303_v58  ;;  %v305_v0 = vld [vmem:[%s13184_s29 + $0x240] sm:$0xff]  ;;  %v323_v2 = vld [vmem:[%s13184_s29 + $0x2d0] sm:$0xff] }
  0x9f   :  { %11803 = vmatpush3.bf16.msra.mxu1 %v11802_v25  ;;  %v11824_v63 = vpack.c.bf16 %v322_v61, %v321_v60  ;;  %v306_v1 = vld [vmem:[%s13184_s29 + $0x248] sm:$0xff]  ;;  %v324_v3 = vld [vmem:[%s13184_s29 + $0x2d8] sm:$0xff]  ;;  %v307_v6 = vld [vmem:[%s13184_s29 + $0x250] sm:$0xff] }
  0xa0   :  { %11805 = vmatprep.subr.bf16.mxu1 %v11804_v30  ;;  %v11826_v4 = vpack.c.bf16 %v306_v1, %v305_v0  ;;  %v11828_v5 = vpack.c.bf16 %v324_v3, %v323_v2  ;;  %v308_v7 = vld [vmem:[%s13184_s29 + $0x258] sm:$0xff]  ;;  %v325_v8 = vld [vmem:[%s13184_s29 + $0x2e0] sm:$0xff]  ;;  %v326_v9 = vld [vmem:[%s13184_s29 + $0x2e8] sm:$0xff] }
  0xa1   :  { %11775 = vmatpush3.bf16.msra.mxu0 %v11774_v34  ;;  %v11830_v10 = vpack.c.bf16 %v308_v7, %v307_v6  ;;  %v11832_v11 = vpack.c.bf16 %v326_v9, %v325_v8  ;;  %v309_v12 = vld [vmem:[%s13184_s29 + $0x260] sm:$0xff]  ;;  %v310_v13 = vld [vmem:[%s13184_s29 + $0x268] sm:$0xff]  ;;  %v327_v14 = vld [vmem:[%s13184_s29 + $0x2f0] sm:$0xff] }
  0xa2   :  { %11809 = vmatprep.subr.bf16.mxu0 %v11808_v36  ;;  %v328_v15 = vld [vmem:[%s13184_s29 + $0x2f8] sm:$0xff]  ;;  %v11834_v16 = vpack.c.bf16 %v310_v13, %v309_v12  ;;  %v311_v18 = vld [vmem:[%s13184_s29 + $0x270] sm:$0xff]  ;;  %v231_v21 = vld [vmem:[%s13154_s5 + $0x20] sm:$0xff]  ;;  %s13127_s5 = smov 96  }
  0xa3   :  { %11807 = vmatpush3.bf16.msra.mxu1 %v11806_v35  ;;  %v11836_v17 = vpack.c.bf16 %v328_v15, %v327_v14  ;;  %v312_v19 = vld [vmem:[%s13184_s29 + $0x278] sm:$0xff]  ;;  %v10059_v23 = vld [vmem:[%s13189_s3] ss:$0 sm:$0xff]  ;;  %v559_v35 = vsub.s32 0, %v558_v32  ;;  %v622_v0 = vld [vmem:[%s13214_s30 + $0x10] sm:$0xff]  ;;  %s13129_s29 = smov 120  }
  0xa4   :  { %401 = vmatmul.mubr.f32.vlgmr.msra.gmra.mrb[0].mxu0 %v227_v41  ;;  %v11838_v20 = vpack.c.bf16 %v312_v19, %v311_v18  ;;  %v546_v37 = vld [vmem:[%s13194_s8] sm:$0x1]  ;;  %v623_v2 = vld [vmem:[%s13214_s30 + $0x18] sm:$0xff]  ;;  %vm13556_vm6 = vmpackc.low %vm722_vm5, %vm722_vm5  ;;  %s13130_s3 = smov 64   ;;  %s13132_s8 = smov 56  }
  0xa5   :  { %11811 = vmatpush3.bf16.msra.mxu0 %v11810_v42  ;;  %540 = vmatprep.mubr.f32.mxu0 %v232_v49  ;;  %v547_v38 = vld [vmem:[%s13199_s14] sm:$0x1f]  ;;  %v560_v40 = vrot.slane %v546_v37, %v559_v35  ;;  %v11844_v3 = vpack.c.bf16 %v623_v2, %v622_v0  ;;  %vm13580_vm11 = vmpackc.low %vm845_vm9, %vm13131_vm10  ;;  %s13133_s14 = smov 112  }
  0xa6   :  { %471 = vmatmul.mubr.f32.vlgmr.msra.gmra.mrb[0].mxu1 %v229_v43  ;;  %11813 = vmatprep.subr.bf16.mxu0 %v11812_v44  ;;  %v549_v42 = vrot.slane %v547_v38, 3  ;;  %v10061_v13 = vld [vmem:[%s13209_s24] ss:$0 sm:$0xff] }
  0xa8   :  { %v552_v45 = vsel %vm551_vm1, %v547_v38, %v549_v42 }
  0xa9   :  { %11815 = vmatpush3.bf16.msra.mxu0 %v11814_v50 }
  0xaa   :  { %11817 = vmatprep.subr.bf16.mxu0 %v11816_v51 }
  0xad   :  { %11819 = vmatpush3.bf16.msra.mxu0 %v11818_v56 }
  0xae   :  { %11821 = vmatprep.subr.bf16.mxu0 %v11820_v57 }
  0xb1   :  { %11823 = vmatpush3.bf16.msra.mxu0 %v11822_v62  ;;  %v620_v62 = vld [vmem:[%s13214_s30] sm:$0xff] }
  0xb2   :  { %11825 = vmatprep.subr.bf16.mxu0 %v11824_v63  ;;  %v621_v63 = vld [vmem:[%s13214_s30 + $0x8] sm:$0xff] }
  0xb3   :  { %v11840_v1 = vpack.c.bf16 %v621_v63, %v620_v62 }
  0xb5   :  { %11827 = vmatpush3.bf16.msra.mxu0 %v11826_v4  ;;  %11841 = vmatprep.subr.bf16.mxu1 %v11840_v1 }
  0xb6   :  { %11829 = vmatprep.subr.bf16.mxu0 %v11828_v5  ;;  %11843 = vmatpush3.bf16.msra.mxu1 %v11840_v1 }
  0xb7   :  { %11845 = vmatprep.subr.bf16.mxu1 %v11844_v3 }
  0xb9   :  { %11831 = vmatpush3.bf16.msra.mxu0 %v11830_v10 }
  0xba   :  { %11833 = vmatprep.subr.bf16.mxu0 %v11832_v11  ;;  %11847 = vmatpush3.bf16.msra.mxu1 %v11844_v3  ;;  %v10060_v11 = vld [vmem:[%s13204_s19] ss:$0 sm:$0xff] }
  0xbd   :  { %11835 = vmatpush3.bf16.msra.mxu0 %v11834_v16 }
  0xbe   :  { %11837 = vmatprep.subr.bf16.mxu0 %v11836_v17 }
  0xc1   :  { %11839 = vmatpush3.bf16.msra.mxu0 %v11838_v20  ;;  %v10062_v20 = vld [vmem:[%s13219_s6] ss:$0 sm:$0xff] }
  0xc4   :  { %541 = vmatmul.mubr.f32.vlgmr.msra.gmra.mrb[2].mxu0 %v231_v21 }
 0x177   :  { %v10477_v22 = vpop.f32.mrb[0].mxu0 }
 0x178   :  { %v10478_v24 = vpop.f32.mrb[1].mxu0 }
 0x179   :  { %v10512_v25 = vpop.f32.mrb[0].mxu1  ;;  %v10479_v26 = vadd.f32 %v10478_v24, %v10477_v22 }
 0x17a   :  { %v10513_v27 = vpop.f32.mrb[1].mxu1 }
 0x17b   :  { %v10514_v28 = vadd.f32 %v10513_v27, %v10512_v25  ;;  %v403_v29 = vadd.f32 %v10479_v26, %v10059_v23 }
 0x17d   :  { %v473_v30 = vadd.f32 %v10514_v28, %v403_v29 }
 0x197   :  { %v10547_v33 = vpop.f32.mrb[2].mxu0 }
 0x198   :  { %v10548_v34 = vpop.f32.mrb[3].mxu0 }
 0x199   :  { %v10549_v36 = vadd.f32 %v10548_v34, %v10547_v33  ;;  %v13567_v34 = vld [vmem:[%s13159_s9] sm:$0xff] }
 0x19b   :  { %v543_v39 = vadd.f32 %v10549_v36, %v473_v30 }
 0x19d   :  { %v554_v41 = vrot.slane %v543_v39, 7  ;;  %v562_v43 = vrot.slane %v543_v39, 6 }
 0x19f   :  { %v565_v44 = vsel %vm564_vm0, %v546_v37, %v554_v41  ;;  %v13519_v50 = vadd.f32 %v562_v43, %v549_v42  ;;  %v13570_v37 = vld [vmem:[%s13159_s9 + $0x8] sm:$0x3]  ;;  %vm12353_vm0 = vmpackc.low %vm575_vm3, %vm575_vm3 }
 0x1a0   :  { %v566_v46 = vsel %vm551_vm1, %v565_v44, %v560_v40 }
 0x1a1   :  { %v568_v47 = vsel %vm567_vm2, %v566_v46, %v562_v43  ;;  %v580_v51 = vsel %vm579_vm4, %v13519_v50, 0.0 }
 0x1a2   :  { %v13515_v48 = vadd.f32 %v568_v47, %v552_v45 }
 0x1a4   :  { %v576_v49 = vsel %vm575_vm3, %v13515_v48, 0.0 }
 0x1a5   :  { %577 = vadd.xlane.f32.xlu0 %v576_v49 }
 0x1a9   :  { %581 = vadd.xlane.f32.xlu0 %v580_v51 }
 0x232   :  { %v578_v52 = vpop.xlane.xlu0 %577 }
 0x233   :  { %v584_v53 = vmul.f32 0.03125, %v578_v52 }
 0x235   :  { %v586_v54 = vsub.f32 %v13515_v48, %v584_v53 }
 0x236   :  { %v582_v55 = vpop.xlane.xlu0 %581 }
 0x237   :  { %v585_v56 = vmul.f32 0.03125, %v582_v55  ;;  %v588_v57 = vmul.f32 %v586_v54, %v586_v54 }
 0x239   :  { %v587_v58 = vsub.f32 %v13519_v50, %v585_v56  ;;  %v590_v59 = vsel %vm575_vm3, %v588_v57, 0.0 }
 0x23a   :  { %591 = vadd.xlane.f32.xlu1 %v590_v59 }
 0x23b   :  { %v589_v60 = vmul.f32 %v587_v58, %v587_v58 }
 0x23d   :  { %v593_v61 = vsel %vm579_vm4, %v589_v60, 0.0 }
 0x23e   :  { %594 = vadd.xlane.f32.xlu1 %v593_v61 }
 0x2c7   :  { %v592_v4 = vpop.xlane.xlu1 %591 }
 0x2c8   :  { %v596_v5 = vmul.f32 0.03125, %v592_v4 }
 0x2ca   :  { %v598_v6 = vadd.f32 1e-05, %v596_v5 }
 0x2cb   :  { %v595_v7 = vpop.xlane.xlu1 %594 }
 0x2cc   :  { %12720 = vrsqrt.f32 %v598_v6  ;;  %v597_v8 = vmul.f32 0.03125, %v595_v7 }
 0x2ce   :  { %v599_v9 = vadd.f32 1e-05, %v597_v8 }
 0x2d0   :  { %12722 = vrsqrt.f32 %v599_v9 }
 0x2d6   :  { %v12721_v10 = vpop.eup %12720 }
 0x2d7   :  { %v602_v12 = vmul.f32 %v12721_v10, %v586_v54 }
 0x2d9   :  { %v610_v14 = vmul.f32 %v10060_v11, %v602_v12 }
 0x2da   :  { %v12723_v15 = vpop.eup %12722 }
 0x2db   :  { %v603_v16 = vmul.f32 %v12723_v15, %v587_v58  ;;  %v618_v17 = vadd.f32 %v10061_v13, %v610_v14 }
 0x2dd   :  { %v611_v18 = vmul.f32 %v10060_v11, %v603_v16  ;;  %10986 = vmatprep.mubr.msk.f32.mxu1 %vm575_vm3, %v618_v17 }
 0x2df   :  { %v619_v19 = vadd.f32 %v10061_v13, %v611_v18 }
 0x2e1   :  { %10987 = vmatmul.mubr.msk.f32.vlgmr.msra.gmra.mrb[2].mxu1 %vm575_vm3, %v619_v19 }
 0x3b4   :  { %v10988_v21 = vpop.f32.mrb[2].mxu1 }
 0x3b5   :  { %v13536_v22 = vadd.f32 %v10988_v21, %v10062_v20  ;;  %v703_v23 = vpop.f32.mrb[3].mxu1 }
 0x3b6   :  { %v13538_v24 = vadd.f32 %v10062_v20, %v703_v23 }
 0x3b8   :  { %10993 = vmatprep.mubr.msk.f32.mxu1 %vm722_vm5, %v13538_v24  ;;  %v13544_v25 = vpack.i.bf16 %v13536_v22, %v13538_v24 }
 0x3ba   :  { %12489 = vrot.lane.b32.xlu0 %v13544_v25, %s13127_s5 }
 0x3be   :  { %12499 = vrot.lane.b32.xlu0 %v13544_v25, %s13128_s17 }
 0x3c2   :  { %923 = vrot.lane.b32.xlu0 %v13538_v24, %s13129_s29 }
 0x3c6   :  { %925 = vrot.lane.b32.xlu0 %v13536_v22, %s13129_s29 }
 0x42c   :  { %v12490_v26 = vpop.permute.xlu0 %12489 }
 0x42d   :  { %v12492_v27 = vunpack.i.h.bf16 %v12490_v26  ;;  %v12491_v28 = vunpack.i.l.bf16 %v12490_v26 }
 0x42f   :  { %v11848_v30 = vpack.c.bf16 %v12492_v27, %v12491_v28 }
 0x430   :  { %v12500_v56 = vpop.permute.xlu0 %12499 }
 0x431   :  { %11850 = vmatprep.subr.msk.bf16.mxu1 %vm13556_vm6, %v11848_v30  ;;  %v12502_v58 = vunpack.i.h.bf16 %v12500_v56  ;;  %v12501_v59 = vunpack.i.l.bf16 %v12500_v56  ;;  %v713_v56 = vld [vmem:[%s13224_s12 + $0x8] sm:$0xff] }
 0x432   :  { %11853 = vmatpush3.bf16.xpose.msk.msra.mxu1 %vm13556_vm6, %v11848_v30  ;;  %11017 = vmatprep.subr.mxu0 %v713_v56 }
 0x433   :  { %v11860_v0 = vpack.c.bf16 %v12502_v58, %v12501_v59  ;;  %11018 = vmatpush3.msra.mxu0 %v713_v56 }
 0x434   :  { %v924_v5 = vpop.permute.xlu0 %923 }
 0x438   :  { %v926_v6 = vpop.permute.xlu0 %925 }
 0x439   :  { %10994 = vmatmul.mubr.msk.f32.vlgmr.msra.gmra.mrb[4].mxu1 %vm722_vm5, %v13536_v22 }
 0x50c   :  { %v10995_v32 = vpop.f32.mrb[4].mxu1 }
 0x50d   :  { %v797_v33 = vpop.f32.mrb[5].mxu1  ;;  %v807_v35 = vmul.f32 0.35355338, %v10995_v32 }
 0x50e   :  { %v806_v36 = vmul.f32 0.35355338, %v797_v33 }
 0x50f   :  { %v809_v40 = vadd.f32 %v807_v35, %v13570_v37 }
 0x510   :  { %v808_v38 = vadd.f32 %v806_v36, %v13567_v34 }
 0x511   :  { %v815_v41 = vsel %vm814_vm8, %v809_v40, -inf }
 0x512   :  { %v811_v39 = vsel %vm810_vm7, %v808_v38, -inf }
 0x513   :  { %812 = vmax.xlane.f32.xlu1 %v811_v39 }
 0x517   :  { %816 = vmax.xlane.f32.xlu1 %v815_v41 }
 0x5a0   :  { %v813_v42 = vpop.xlane.xlu1 %812 }
 0x5a1   :  { %v818_v43 = vsub.f32 %v808_v38, %v813_v42 }
 0x5a3   :  { %v820_v46 = vmul.f32 1.442695, %v818_v43 }
 0x5a4   :  { %v817_v44 = vpop.xlane.xlu1 %816 }
 0x5a5   :  { %v819_v45 = vsub.f32 %v809_v40, %v817_v44 }
 0x5a7   :  { %v822_v47 = vmul.f32 1.442695, %v819_v45 }
 0x5a9   :  { %12724 = vpow2.f32 %v822_v47 }
 0x5aa   :  { %12726 = vpow2.f32 %v820_v46 }
 0x5b3   :  { %v12725_v49 = vpop.eup %12724 }
 0x5b4   :  { %v827_v51 = vsel %vm814_vm8, %v12725_v49, 0.0  ;;  %v12727_v52 = vpop.eup %12726 }
 0x5b5   :  { %828 = vadd.xlane.f32.xlu1 %v827_v51  ;;  %v824_v53 = vsel %vm810_vm7, %v12727_v52, 0.0 }
 0x5b9   :  { %825 = vadd.xlane.f32.xlu1 %v824_v53 }
 0x5ca   :  { %12494 = vrot.lane.b32.xlu1 %v13544_v25, %s13130_s3 }
 0x642   :  { %v829_v54 = vpop.xlane.xlu1 %828 }
 0x643   :  { %12728 = vrcp.f32 %v829_v54 }
 0x646   :  { %v826_v55 = vpop.xlane.xlu1 %825 }
 0x647   :  { %12730 = vrcp.f32 %v826_v55 }
 0x64a   :  { %v12495_v57 = vpop.permute.xlu1 %12494 }
 0x64b   :  { %v12497_v60 = vunpack.i.h.bf16 %v12495_v57  ;;  %v12496_v61 = vunpack.i.l.bf16 %v12495_v57  ;;  %v712_v57 = vld [vmem:[%s13224_s12] sm:$0xff] }
 0x64c   :  { %11022 = vmatprep.subr.mxu0 %v712_v57 }
 0x64d   :  { %v11854_v63 = vpack.c.bf16 %v12497_v60, %v12496_v61  ;;  %v12729_v1 = vpop.eup %12728 }
 0x64e   :  { %v833_v4 = vmul.f32 %v12729_v1, %v12725_v49 }
 0x64f   :  { %11856 = vmatprep.subr.msk.bf16.mxu1 %vm13580_vm11, %v11854_v63 }
 0x650   :  { %11859 = vmatpush3.bf16.msk.msra.mxu1 %vm13580_vm11, %v11854_v63 }
 0x651   :  { %v12731_v2 = vpop.eup %12730  ;;  %11862 = vmatprep.subr.msk.bf16.mxu1 %vm13556_vm6, %v11860_v0 }
 0x652   :  { %v832_v3 = vmul.f32 %v12731_v2, %v12727_v52 }
 0x654   :  { %11000 = vmatprep.mubr.msk.f32.mxu1 %vm810_vm7, %v832_v3 }
 0x655   :  { %11001 = vmatmul.mubr.msk.f32.vlgmr.msra.gmra.mrb[6].mxu1 %vm810_vm7, %v833_v4 }
 0x656   :  { %11007 = vmatprep.mubr.msk.f32.mxu1 %vm722_vm5, %v924_v5 }
 0x659   :  { %11865 = vmatpush3.bf16.xpose.msk.msra.mxu1 %vm13556_vm6, %v11860_v0 }
 0x660   :  { %11008 = vmatmul.mubr.msk.f32.vlgmr.msra.gmra.mrb[8].mxu1 %vm722_vm5, %v926_v6 }
 0x728   :  { %v13596_v7 = vpop.f32.mrb[6].mxu1 }
 0x729   :  { %v13598_v8 = vpop.f32.mrb[7].mxu1 }
 0x733   :  { %v11009_v9 = vpop.f32.mrb[8].mxu1 }
 0x734   :  { %v1015_v10 = vmul.f32 0.35355338, %v11009_v9  ;;  %v1005_v11 = vpop.f32.mrb[9].mxu1 }
 0x735   :  { %v1014_v12 = vmul.f32 0.35355338, %v1005_v11 }
 0x736   :  { %v1017_v13 = vadd.f32 %v1015_v10, %v13570_v37 }
 0x737   :  { %v1016_v14 = vadd.f32 %v1014_v12, %v13567_v34 }
 0x738   :  { %v1021_v15 = vsel %vm814_vm8, %v1017_v13, -inf }
 0x739   :  { %1022 = vmax.xlane.f32.xlu0 %v1021_v15  ;;  %v1018_v16 = vsel %vm810_vm7, %v1016_v14, -inf }
 0x73a   :  { %1019 = vmax.xlane.f32.xlu1 %v1018_v16 }
 0x74b   :  { %12504 = vrot.lane.b32.xlu1 %v13544_v25, %s13132_s8 }
 0x74f   :  { %1290 = vrot.lane.b32.xlu1 %v13538_v24, %s13133_s14 }
 0x753   :  { %1292 = vrot.lane.b32.xlu1 %v13536_v22, %s13133_s14 }
 0x757   :  { %12514 = vrot.lane.b32.xlu1 %v13544_v25, %s14732_s4 }
 0x75b   :  { %1580 = vrot.lane.b32.xlu1 %v13536_v22, %s14730_s28 }
 0x7c6   :  { %v1023_v17 = vpop.xlane.xlu0 %1022 }
 0x7c7   :  { %v1025_v18 = vsub.f32 %v1017_v13, %v1023_v17  ;;  %v1020_v19 = vpop.xlane.xlu1 %1019 }
 0x7c8   :  { %v1024_v20 = vsub.f32 %v1016_v14, %v1020_v19 }
 0x7c9   :  { %v1028_v21 = vmul.f32 1.442695, %v1025_v18 }
 0x7ca   :  { %v1026_v23 = vmul.f32 1.442695, %v1024_v20 }
 0x7cb   :  { %12732 = vpow2.f32 %v1028_v21  ;;  %v12505_v26 = vpop.permute.xlu1 %12504 }
 0x7cc   :  { %v12507_v27 = vunpack.i.h.bf16 %v12505_v26  ;;  %v12506_v28 = vunpack.i.l.bf16 %v12505_v26  ;;  %12734 = vpow2.f32 %v1026_v23 }
 0x7ce   :  { %v11866_v30 = vpack.c.bf16 %v12507_v27, %v12506_v28 }
 0x7cf   :  { %v1291_v36 = vpop.permute.xlu1 %1290 }
 0x7d0   :  { %11868 = vmatprep.subr.msk.bf16.mxu1 %vm13580_vm11, %v11866_v30 }
 0x7d1   :  { %11871 = vmatpush3.bf16.msk.msra.mxu1 %vm13580_vm11, %v11866_v30 }
 0x7d3   :  { %v1293_v40 = vpop.permute.xlu1 %1292 }
 0x7d5   :  { %v12733_v32 = vpop.eup %12732 }
 0x7d6   :  { %v1033_v22 = vsel %vm814_vm8, %v12733_v32, 0.0  ;;  %v12735_v33 = vpop.eup %12734 }
 0x7d7   :  { %1034 = vadd.xlane.f32.xlu0 %v1033_v22  ;;  %v1030_v35 = vsel %vm810_vm7, %v12735_v33, 0.0  ;;  %v12515_v45 = vpop.permute.xlu1 %12514 }
 0x7d8   :  { %v12517_v49 = vunpack.i.h.bf16 %v12515_v45  ;;  %v12516_v51 = vunpack.i.l.bf16 %v12515_v45  ;;  %v714_v45 = vld [vmem:[%s13224_s12 + $0x10] sm:$0xff] }
 0x7da   :  { %v11884_v53 = vpack.c.bf16 %v12517_v49, %v12516_v51 }
 0x7db   :  { %1031 = vadd.xlane.f32.xlu0 %v1030_v35  ;;  %v1581_v55 = vpop.permute.xlu1 %1580 }
 0x7f1   :  { %12509 = vrot.lane.b32.xlu0 %v13544_v25, %s13136_s1 }
 0x7f5   :  { %1578 = vrot.lane.b32.xlu0 %v13538_v24, %s14730_s28 }
 0x864   :  { %v1035_v38 = vpop.xlane.xlu0 %1034 }
 0x865   :  { %12736 = vrcp.f32 %v1035_v38 }
 0x868   :  { %v1032_v39 = vpop.xlane.xlu0 %1031 }
 0x869   :  { %12738 = vrcp.f32 %v1032_v39 }
 0x86c   :  { %v12510_v41 = vpop.permute.xlu0 %12509 }
 0x86d   :  { %v12512_v42 = vunpack.i.h.bf16 %v12510_v41  ;;  %v12511_v43 = vunpack.i.l.bf16 %v12510_v41 }
 0x86f   :  { %v11872_v44 = vpack.c.bf16 %v12512_v42, %v12511_v43  ;;  %v12737_v46 = vpop.eup %12736 }
 0x870   :  { %v1039_v52 = vmul.f32 %v12737_v46, %v12733_v32  ;;  %v1579_v54 = vpop.permute.xlu0 %1578 }
 0x871   :  { %11874 = vmatprep.subr.msk.bf16.mxu1 %vm13556_vm6, %v11872_v44 }
 0x873   :  { %v12739_v47 = vpop.eup %12738 }
 0x874   :  { %v1038_v24 = vmul.f32 %v12739_v47, %v12735_v33 }
 0x876   :  { %11014 = vmatprep.mubr.msk.f32.mxu1 %vm810_vm7, %v1038_v24 }
 0x877   :  { %11015 = vmatmul.mubr.msk.f32.vlgmr.msra.gmra.mrb[10].mxu1 %vm810_vm7, %v1039_v52 }
 0x878   :  { %11877 = vmatpush3.bf16.xpose.msk.msra.mxu1 %vm13556_vm6, %v11872_v44  ;;  %11031 = vmatprep.mubr.msk.f32.mxu1 %vm722_vm5, %v1291_v36 }
 0x879   :  { %11886 = vmatprep.subr.msk.bf16.mxu1 %vm13556_vm6, %v11884_v53 }
 0x87f   :  { %11032 = vmatmul.mubr.msk.f32.vlgmr.msra.gmra.mrb[12].mxu1 %vm722_vm5, %v1293_v40 }
 0x880   :  { %11889 = vmatpush3.bf16.xpose.msk.msra.mxu1 %vm13556_vm6, %v11884_v53  ;;  %11050 = vmatprep.mubr.msk.f32.mxu1 %vm722_vm5, %v1579_v54 }
 0x887   :  { %11051 = vmatmul.mubr.msk.f32.vlgmr.msra.gmra.mrb[14].mxu1 %vm722_vm5, %v1581_v55 }
 0x94a   :  { %v11016_v58 = vpop.f32.mrb[10].mxu1 }
 0x94b   :  { %v1119_v59 = vpop.f32.mrb[11].mxu1 }
 0x94c   :  { %11019 = vmatprep.mubr.msk.f32.mxu0 %vm722_vm5, %v1119_v59 }
 0x94d   :  { %11020 = vmatmul.mubr.msk.f32.vlgmr.msra.gmra.mrb[4].mxu0 %vm722_vm5, %v11016_v58 }
 0x94e   :  { %11024 = vmatprep.mubr.msk.f32.mxu0 %vm722_vm5, %v13598_v8  ;;  %11023 = vmatpush3.msra.mxu0 %v712_v57 }
 0x952   :  { %v11033_v60 = vpop.f32.mrb[12].mxu1 }
 0x953   :  { %v1382_v61 = vmul.f32 0.35355338, %v11033_v60  ;;  %v1372_v63 = vpop.f32.mrb[13].mxu1 }
 0x954   :  { %v1381_v0 = vmul.f32 0.35355338, %v1372_v63 }
 0x955   :  { %11025 = vmatmul.mubr.msk.f32.vlgmr.msra.gmra.mrb[4].mxu0 %vm722_vm5, %v13596_v7  ;;  %v1384_v1 = vadd.f32 %v1382_v61, %v13570_v37  ;;  %v715_v61 = vld [vmem:[%s13224_s12 + $0x18] sm:$0xff] }
 0x956   :  { %v1383_v2 = vadd.f32 %v1381_v0, %v13567_v34 }
 0x957   :  { %v1388_v3 = vsel %vm814_vm8, %v1384_v1, -inf }
 0x958   :  { %1389 = vmax.xlane.f32.xlu1 %v1388_v3  ;;  %v1385_v4 = vsel %vm810_vm7, %v1383_v2, -inf  ;;  %v10101_v3 = vld [vmem:[%s13229_s20] ss:$0 sm:$0xff] }
 0x959   :  { %1386 = vmax.xlane.f32.xlu0 %v1385_v4 }
 0x95a   :  { %v11052_v5 = vpop.f32.mrb[14].mxu1 }
 0x95b   :  { %v1660_v6 = vpop.f32.mrb[15].mxu1  ;;  %v1670_v8 = vmul.f32 0.35355338, %v11052_v5 }
 0x95c   :  { %v1669_v9 = vmul.f32 0.35355338, %v1660_v6 }
 0x95d   :  { %v1672_v7 = vadd.f32 %v1670_v8, %v13570_v37 }
 0x95e   :  { %v1671_v10 = vadd.f32 %v1669_v9, %v13567_v34 }
 0x95f   :  { %v1676_v12 = vsel %vm814_vm8, %v1672_v7, -inf }
 0x960   :  { %v1673_v11 = vsel %vm810_vm7, %v1671_v10, -inf }
 0x961   :  { %1674 = vmax.xlane.f32.xlu1 %v1673_v11 }
 0x965   :  { %1677 = vmax.xlane.f32.xlu1 %v1676_v12 }
 0x9e5   :  { %v1390_v13 = vpop.xlane.xlu1 %1389 }
 0x9e6   :  { %v1392_v14 = vsub.f32 %v1384_v1, %v1390_v13  ;;  %v1387_v15 = vpop.xlane.xlu0 %1386 }
 0x9e7   :  { %v1391_v16 = vsub.f32 %v1383_v2, %v1387_v15 }
 0x9e8   :  { %v1395_v17 = vmul.f32 1.442695, %v1392_v14 }
 0x9e9   :  { %v1393_v18 = vmul.f32 1.442695, %v1391_v16 }
 0x9ea   :  { %12740 = vpow2.f32 %v1395_v17 }
 0x9eb   :  { %12742 = vpow2.f32 %v1393_v18 }
 0x9ee   :  { %v1675_v19 = vpop.xlane.xlu1 %1674 }
 0x9ef   :  { %v1679_v20 = vsub.f32 %v1671_v10, %v1675_v19  ;;  %v1921_v19 = vld [vmem:[%s13244_s25] sm:$0xff] }
 0x9f1   :  { %v1681_v27 = vmul.f32 1.442695, %v1679_v20  ;;  %v1922_v20 = vld [vmem:[%s13244_s25 + $0x8] sm:$0xff] }
 0x9f2   :  { %v1678_v21 = vpop.xlane.xlu1 %1677 }
 0x9f3   :  { %v1680_v23 = vsub.f32 %v1672_v7, %v1678_v21  ;;  %v1923_v21 = vld [vmem:[%s13244_s25 + $0x10] sm:$0xff] }
 0x9f4   :  { %v12741_v26 = vpop.eup %12740 }
 0x9f5   :  { %v1683_v28 = vmul.f32 1.442695, %v1680_v23  ;;  %v1400_v30 = vsel %vm814_vm8, %v12741_v26, 0.0  ;;  %v12743_v32 = vpop.eup %12742  ;;  %v11896_v23 = vpack.c.bf16 %v1922_v20, %v1921_v19 }
 0x9f6   :  { %1401 = vadd.xlane.f32.xlu0 %v1400_v30  ;;  %v1397_v22 = vsel %vm810_vm7, %v12743_v32, 0.0 }
 0x9f7   :  { %12744 = vpow2.f32 %v1683_v28  ;;  %11897 = vmatprep.subr.bf16.mxu1 %v11896_v23 }
 0x9f8   :  { %12746 = vpow2.f32 %v1681_v27  ;;  %11899 = vmatpush3.bf16.msra.mxu1 %v11896_v23 }
 0x9fa   :  { %1398 = vadd.xlane.f32.xlu0 %v1397_v22 }
 0xa01   :  { %v12745_v33 = vpop.eup %12744 }
 0xa02   :  { %v1688_v35 = vsel %vm814_vm8, %v12745_v33, 0.0  ;;  %v12747_v36 = vpop.eup %12746 }
 0xa03   :  { %1689 = vadd.xlane.f32.xlu1 %v1688_v35  ;;  %v1685_v38 = vsel %vm810_vm7, %v12747_v36, 0.0 }
 0xa07   :  { %1686 = vadd.xlane.f32.xlu1 %v1685_v38  ;;  %v10102_v38 = vld [vmem:[%s13234_s27] ss:$0 sm:$0xff] }
 0xa10   :  { %12519 = vrot.lane.b32.xlu0 %v13544_v25, %s14729_s2 }
 0xa18   :  { %12524 = vrot.lane.b32.xlu1 %v13544_v25, %s14728_s7 }
 0xa83   :  { %v1402_v39 = vpop.xlane.xlu0 %1401 }
 0xa84   :  { %12748 = vrcp.f32 %v1402_v39 }
 0xa87   :  { %v1399_v40 = vpop.xlane.xlu0 %1398 }
 0xa88   :  { %12750 = vrcp.f32 %v1399_v40  ;;  %v10103_v40 = vld [vmem:[%s14770_s10] ss:$0 sm:$0xff] }
 0xa8b   :  { %v12520_v41 = vpop.permute.xlu0 %12519 }
 0xa8c   :  { %v12522_v42 = vunpack.i.h.bf16 %v12520_v41  ;;  %v12521_v43 = vunpack.i.l.bf16 %v12520_v41 }
 0xa8e   :  { %v11878_v44 = vpack.c.bf16 %v12522_v42, %v12521_v43  ;;  %v12749_v47 = vpop.eup %12748 }
 0xa8f   :  { %v1406_v24 = vmul.f32 %v12749_v47, %v12741_v26  ;;  %v1924_v26 = vld [vmem:[%s13244_s25 + $0x18] sm:$0xff]  ;;  %v2031_v47 = vld [vmem:[%s14771_s11] sm:$0xff] }
 0xa90   :  { %v1690_v46 = vpop.xlane.xlu1 %1689  ;;  %11880 = vmatprep.subr.msk.bf16.mxu0 %vm13580_vm11, %v11878_v44  ;;  %v11900_v27 = vpack.c.bf16 %v1924_v26, %v1923_v21 }
 0xa91   :  { %11883 = vmatpush3.bf16.msk.msra.mxu0 %vm13580_vm11, %v11878_v44 }
 0xa92   :  { %v12751_v49 = vpop.eup %12750  ;;  %11041 = vmatprep.subr.mxu0 %v714_v45  ;;  %11901 = vmatprep.subr.bf16.mxu1 %v11900_v27 }
 0xa93   :  { %v1405_v25 = vmul.f32 %v12751_v49, %v12743_v32  ;;  %11903 = vmatpush3.bf16.msra.mxu1 %v11900_v27  ;;  %v2032_v49 = vld [vmem:[%s14771_s11 + $0x8] sm:$0xff] }
 0xa94   :  { %v1687_v51 = vpop.xlane.xlu1 %1686 }
 0xa95   :  { %11038 = vmatprep.mubr.msk.f32.mxu0 %vm810_vm7, %v1405_v25  ;;  %12752 = vrcp.f32 %v1687_v51  ;;  %v11904_v25 = vpack.c.bf16 %v2032_v49, %v2031_v47  ;;  %v2033_v51 = vld [vmem:[%s14771_s11 + $0x10] sm:$0xff] }
 0xa96   :  { %11039 = vmatmul.mubr.msk.f32.vlgmr.msra.gmra.mrb[6].mxu0 %vm810_vm7, %v1406_v24  ;;  %12754 = vrcp.f32 %v1690_v46  ;;  %v2034_v24 = vld [vmem:[%s14771_s11 + $0x18] sm:$0xff] }
 0xa97   :  { %11042 = vmatpush3.msra.mxu0 %v714_v45 }
 0xa98   :  { %v12525_v52 = vpop.permute.xlu1 %12524 }
 0xa99   :  { %v12527_v53 = vunpack.i.h.bf16 %v12525_v52  ;;  %v12526_v54 = vunpack.i.l.bf16 %v12525_v52  ;;  %v11908_v52 = vpack.c.bf16 %v2034_v24, %v2033_v51 }
 0xa9b   :  { %v11890_v55 = vpack.c.bf16 %v12527_v53, %v12526_v54  ;;  %v2035_v53 = vld [vmem:[%s14771_s11 + $0x20] sm:$0xff]  ;;  %v2036_v54 = vld [vmem:[%s14771_s11 + $0x28] sm:$0xff] }
 0xa9d   :  { %11892 = vmatprep.subr.msk.bf16.mxu0 %vm13580_vm11, %v11890_v55 }
 0xa9f   :  { %v12753_v56 = vpop.eup %12752 }
 0xaa0   :  { %v12755_v59 = vpop.eup %12754  ;;  %v1693_v60 = vmul.f32 %v12753_v56, %v12747_v36  ;;  %v2037_v56 = vld [vmem:[%s14771_s11 + $0x30] sm:$0xff] }
 0xaa1   :  { %v1694_v63 = vmul.f32 %v12755_v59, %v12745_v33  ;;  %v2039_v59 = vld [vmem:[%s14771_s11 + $0x40] sm:$0xff] }
 0xb69   :  { %v11040_v57 = vpop.f32.mrb[6].mxu0 }
 0xb6a   :  { %v1486_v58 = vpop.f32.mrb[7].mxu0 }
 0xb6b   :  { %11043 = vmatprep.mubr.msk.f32.mxu0 %vm722_vm5, %v1486_v58 }
 0xb6c   :  { %11044 = vmatmul.mubr.msk.f32.vlgmr.msra.gmra.mrb[4].mxu0 %vm722_vm5, %v11040_v57  ;;  %v2038_v57 = vld [vmem:[%s14771_s11 + $0x38] sm:$0xff] }
 0xb6d   :  { %11895 = vmatpush3.bf16.msk.msra.mxu0 %vm13580_vm11, %v11890_v55  ;;  %11057 = vmatprep.mubr.msk.f32.mxu0 %vm810_vm7, %v1693_v60  ;;  %v11912_v55 = vpack.c.bf16 %v2036_v54, %v2035_v53  ;;  %v11916_v58 = vpack.c.bf16 %v2038_v57, %v2037_v56  ;;  %v2040_v60 = vld [vmem:[%s14771_s11 + $0x48] sm:$0xff]  ;;  %v10112_v54 = vld [vmem:[%s13214_s30 + $0x20] sm:$0xff]  ;;  %v10114_v56 = vld [vmem:[%s13214_s30 + $0x30] sm:$0xff] }
 0xb6e   :  { %11060 = vmatprep.subr.mxu0 %v715_v61 }
 0xb70   :  { %11058 = vmatmul.mubr.msk.f32.vlgmr.msra.gmra.mrb[8].mxu0 %vm810_vm7, %v1694_v63  ;;  %v11920_v63 = vpack.c.bf16 %v2040_v60, %v2039_v59 }
 0xb71   :  { %11061 = vmatpush3.msra.mxu0 %v715_v61  ;;  %v2041_v61 = vld [vmem:[%s14771_s11 + $0x50] sm:$0xff] }
 0xb72   :  { %11905 = vmatprep.subr.bf16.mxu0 %v11904_v25 }
 0xc43   :  { %v11059_v0 = vpop.f32.mrb[8].mxu0 }
 0xc44   :  { %v1774_v1 = vpop.f32.mrb[9].mxu0 }
 0xc45   :  { %11062 = vmatprep.mubr.msk.f32.mxu0 %vm722_vm5, %v1774_v1 }
 0xc46   :  { %11063 = vmatmul.mubr.msk.f32.vlgmr.msra.gmra.mrb[4].mxu0 %vm722_vm5, %v11059_v0  ;;  %v2042_v0 = vld [vmem:[%s14771_s11 + $0x58] sm:$0xff] }
 0xc47   :  { %11907 = vmatpush3.bf16.msra.mxu0 %v11904_v25  ;;  %v11924_v1 = vpack.c.bf16 %v2042_v0, %v2041_v61 }
 0xc48   :  { %11909 = vmatprep.subr.bf16.mxu0 %v11908_v52 }
 0xc4b   :  { %11911 = vmatpush3.bf16.msra.mxu0 %v11908_v52 }
 0xc4c   :  { %11913 = vmatprep.subr.bf16.mxu0 %v11912_v55 }
 0xc4f   :  { %11915 = vmatpush3.bf16.msra.mxu0 %v11912_v55  ;;  %v10113_v55 = vld [vmem:[%s13214_s30 + $0x28] sm:$0xff] }
 0xc50   :  { %11917 = vmatprep.subr.bf16.mxu0 %v11916_v58  ;;  %v11936_v57 = vpack.c.bf16 %v10113_v55, %v10112_v54 }
 0xc52   :  { %11937 = vmatprep.subr.bf16.mxu1 %v11936_v57 }
 0xc53   :  { %11919 = vmatpush3.bf16.msra.mxu0 %v11916_v58  ;;  %v10115_v58 = vld [vmem:[%s13214_s30 + $0x38] sm:$0xff]  ;;  %s14778_s30 = sld [smem:[#allocation26_spill]] }
 0xc54   :  { %11921 = vmatprep.subr.bf16.mxu0 %v11920_v63  ;;  %v11940_v59 = vpack.c.bf16 %v10115_v58, %v10114_v56 }
 0xc57   :  { %11923 = vmatpush3.bf16.msra.mxu0 %v11920_v63 }
 0xc58   :  { %11925 = vmatprep.subr.bf16.mxu0 %v11924_v1 }
 0xc5b   :  { %11927 = vmatpush3.bf16.msra.mxu0 %v11924_v1 }
 0xd19   :  { %v11064_v2 = vpop.f32.mrb[4].mxu0 }
 0xd1a   :  { %v1867_v4 = vadd.f32 %v11064_v2, %v13519_v50  ;;  %v1855_v5 = vpop.f32.mrb[5].mxu0  ;;  %v2043_v2 = vld [vmem:[%s14771_s11 + $0x60] sm:$0xff] }
 0xd1b   :  { %v1866_v6 = vadd.f32 %v1855_v5, %v13515_v48  ;;  %v2045_v5 = vld [vmem:[%s14771_s11 + $0x70] sm:$0xff] }
 0xd1c   :  { %v13683_v8 = vadd.f32 %v10101_v3, %v1867_v4 }
 0xd1d   :  { %v13685_v9 = vadd.f32 %v10101_v3, %v1866_v6  ;;  %v2044_v3 = vld [vmem:[%s14771_s11 + $0x68] sm:$0xff]  ;;  %v2046_v6 = vld [vmem:[%s14771_s11 + $0x78] sm:$0xff] }
 0xd1e   :  { %v1882_v10 = vsel %vm579_vm4, %v13683_v8, 0.0  ;;  %v11928_v4 = vpack.c.bf16 %v2044_v3, %v2043_v2 }
 0xd1f   :  { %1883 = vadd.xlane.f32.xlu1 %v1882_v10  ;;  %v1879_v11 = vsel %vm575_vm3, %v13685_v9, 0.0  ;;  %v11932_v10 = vpack.c.bf16 %v2046_v6, %v2045_v5  ;;  %v10111_v6 = vld [vmem:[%s13209_s24 + $0x1] ss:$0 sm:$0xff]  ;;  %s14777_s24 = sld [smem:[#allocation28_spill]] }
 0xd20   :  { %1880 = vadd.xlane.f32.xlu0 %v1879_v11  ;;  %11929 = vmatprep.subr.bf16.mxu0 %v11928_v4  ;;  %v10104_v11 = vld [vmem:[%s14772_s15] ss:$0 sm:$0xff] }
 0xd21   :  { %11931 = vmatpush3.bf16.msra.mxu0 %v11928_v4  ;;  %v10110_v4 = vld [vmem:[%s13204_s19 + $0x1] ss:$0 sm:$0xff]  ;;  %s14775_s19 = sld [smem:[#allocation24_spill]] }
 0xd22   :  { %11933 = vmatprep.subr.bf16.mxu0 %v11932_v10 }
 0xd25   :  { %11935 = vmatpush3.bf16.msra.mxu0 %v11932_v10 }
 0xdac   :  { %v1884_v7 = vpop.xlane.xlu1 %1883 }
 0xdad   :  { %v1886_v50 = vmul.f32 0.03125, %v1884_v7  ;;  %v1881_v12 = vpop.xlane.xlu0 %1880 }
 0xdae   :  { %v1885_v48 = vmul.f32 0.03125, %v1881_v12 }
 0xdaf   :  { %v1888_v13 = vsub.f32 %v13683_v8, %v1886_v50 }
 0xdb0   :  { %v1887_v14 = vsub.f32 %v13685_v9, %v1885_v48 }
 0xdb1   :  { %v1890_v17 = vmul.f32 %v1888_v13, %v1888_v13 }
 0xdb2   :  { %v1889_v15 = vmul.f32 %v1887_v14, %v1887_v14 }
 0xdb3   :  { %v1894_v18 = vsel %vm579_vm4, %v1890_v17, 0.0 }
 0xdb4   :  { %v1891_v16 = vsel %vm575_vm3, %v1889_v15, 0.0 }
 0xdb5   :  { %1892 = vadd.xlane.f32.xlu0 %v1891_v16 }
 0xdb9   :  { %1895 = vadd.xlane.f32.xlu0 %v1894_v18 }
 0xe42   :  { %v1893_v28 = vpop.xlane.xlu0 %1892 }
 0xe43   :  { %v1897_v30 = vmul.f32 0.03125, %v1893_v28 }
 0xe45   :  { %v1899_v32 = vadd.f32 1e-05, %v1897_v30 }
 0xe46   :  { %v1896_v22 = vpop.xlane.xlu0 %1895 }
 0xe47   :  { %12756 = vrsqrt.f32 %v1899_v32  ;;  %v1898_v33 = vmul.f32 0.03125, %v1896_v22 }
 0xe49   :  { %v1900_v35 = vadd.f32 1e-05, %v1898_v33 }
 0xe4b   :  { %12758 = vrsqrt.f32 %v1900_v35 }
 0xe51   :  { %v12757_v36 = vpop.eup %12756 }
 0xe52   :  { %v1903_v39 = vmul.f32 %v12757_v36, %v1887_v14 }
 0xe54   :  { %v1911_v41 = vmul.f32 %v10102_v38, %v1903_v39 }
 0xe55   :  { %v12759_v42 = vpop.eup %12758 }
 0xe56   :  { %v1904_v43 = vmul.f32 %v12759_v42, %v1888_v13  ;;  %v1919_v44 = vadd.f32 %v10103_v40, %v1911_v41 }
 0xe58   :  { %v1912_v45 = vmul.f32 %v10102_v38, %v1904_v43  ;;  %11073 = vmatprep.mubr.msk.f32.mxu1 %vm575_vm3, %v1919_v44  ;;  %v10107_v38 = vld [vmem:[%s14773_s16] ss:$0 sm:$0xff] }
 0xe5a   :  { %v1920_v46 = vadd.f32 %v10103_v40, %v1912_v45 }
 0xe5c   :  { %11074 = vmatmul.mubr.msk.f32.vlgmr.msra.gmra.mrb[16].mxu1 %vm575_vm3, %v1920_v46 }
 0xe5d   :  { %11939 = vmatpush3.bf16.msra.mxu1 %v11936_v57 }
 0xe5e   :  { %11941 = vmatprep.subr.bf16.mxu1 %v11940_v59 }
 0xe61   :  { %11943 = vmatpush3.bf16.msra.mxu1 %v11940_v59 }
 0xf2f   :  { %v11075_v7 = vpop.f32.mrb[16].mxu1 }
 0xf30   :  { %v2010_v50 = vadd.f32 %v11075_v7, %v10104_v11  ;;  %v2004_v12 = vpop.f32.mrb[17].mxu1 }
 0xf31   :  { %v2005_v48 = vadd.f32 %v10104_v11, %v2004_v12 }
 0xf32   :  { %v2014_v13 = vmul.f32 %v2010_v50, %v2010_v50 }
 0xf33   :  { %v2013_v14 = vmul.f32 %v2005_v48, %v2005_v48 }
 0xf34   :  { %v2016_v15 = vmul.f32 %v2014_v13, %v2010_v50  ;;  %v10117_v13 = vld [vmem:[%s13219_s6 + $0x1] ss:$0 sm:$0xff]  ;;  %s14779_s6 = sld [smem:[#allocation27_spill]] }
 0xf35   :  { %v2015_v16 = vmul.f32 %v2013_v14, %v2005_v48 }
 0xf36   :  { %v2018_v17 = vmul.f32 0.044715, %v2016_v15 }
 0xf37   :  { %v2017_v18 = vmul.f32 0.044715, %v2015_v16 }
 0xf38   :  { %v2020_v19 = vadd.f32 %v2018_v17, %v2010_v50 }
 0xf39   :  { %v2019_v20 = vadd.f32 %v2017_v18, %v2005_v48 }
 0xf3a   :  { %v2022_v21 = vmul.f32 0.7978846, %v2020_v19 }
 0xf3b   :  { %v2021_v23 = vmul.f32 0.7978846, %v2019_v20 }
 0xf3c   :  { %12760 = vtanh.f32 %v2022_v21 }
 0xf3d   :  { %12762 = vtanh.f32 %v2021_v23 }
 0xf46   :  { %v12761_v26 = vpop.eup %12760 }
 0xf47   :  { %v12763_v27 = vpop.eup %12762  ;;  %v2026_v28 = vadd.f32 1.0, %v12761_v26 }
 0xf48   :  { %v2025_v30 = vadd.f32 1.0, %v12763_v27 }
 0xf49   :  { %v2028_v32 = vmul.f32 0.5, %v2026_v28 }
 0xf4a   :  { %v2027_v22 = vmul.f32 0.5, %v2025_v30 }
 0xf4b   :  { %v2030_v35 = vmul.f32 %v2028_v32, %v2010_v50 }
 0xf4c   :  { %v2029_v33 = vmul.f32 %v2027_v22, %v2005_v48 }
 0xf4e   :  { %11108 = vmatprep.mubr.f32.mxu0 %v2029_v33 }
 0xf4f   :  { %11109 = vmatmul.mubr.f32.vlgmr.msra.gmra.mrb[10].mxu0 %v2030_v35 }
0x1022   :  { %v11110_v36 = vpop.f32.mrb[10].mxu0 }
0x1023   :  { %v2113_v39 = vpop.f32.mrb[11].mxu0  ;;  %v2123_v40 = vadd.f32 %v11110_v36, %v13683_v8 }
0x1024   :  { %v2122_v41 = vadd.f32 %v2113_v39, %v13685_v9 }
0x1025   :  { %v13725_v43 = vadd.f32 %v10107_v38, %v2123_v40 }
0x1026   :  { %v13723_v42 = vadd.f32 %v10107_v38, %v2122_v41 }
0x1027   :  { %v2140_v45 = vsel %vm579_vm4, %v13725_v43, 0.0 }
0x1028   :  { %v2137_v44 = vsel %vm575_vm3, %v13723_v42, 0.0 }
0x1029   :  { %2138 = vadd.xlane.f32.xlu0 %v2137_v44 }
0x102d   :  { %2141 = vadd.xlane.f32.xlu0 %v2140_v45 }
0x10b6   :  { %v2139_v46 = vpop.xlane.xlu0 %2138 }
0x10b7   :  { %v2143_v8 = vmul.f32 0.03125, %v2139_v46 }
0x10b9   :  { %v2145_v9 = vsub.f32 %v13723_v42, %v2143_v8 }
0x10ba   :  { %v2142_v47 = vpop.xlane.xlu0 %2141 }
0x10bb   :  { %v2144_v49 = vmul.f32 0.03125, %v2142_v47  ;;  %v2147_v25 = vmul.f32 %v2145_v9, %v2145_v9 }
0x10bd   :  { %v2146_v51 = vsub.f32 %v13725_v43, %v2144_v49  ;;  %v2149_v24 = vsel %vm575_vm3, %v2147_v25, 0.0 }
0x10be   :  { %2150 = vadd.xlane.f32.xlu0 %v2149_v24 }
0x10bf   :  { %v2148_v52 = vmul.f32 %v2146_v51, %v2146_v51 }
0x10c1   :  { %v2152_v53 = vsel %vm579_vm4, %v2148_v52, 0.0 }
0x10c2   :  { %2153 = vadd.xlane.f32.xlu1 %v2152_v53 }
0x114b   :  { %v2151_v60 = vpop.xlane.xlu0 %2150 }
0x114c   :  { %v2155_v61 = vmul.f32 0.03125, %v2151_v60 }
0x114e   :  { %v2157_v63 = vadd.f32 1e-05, %v2155_v61 }
0x114f   :  { %v2154_v0 = vpop.xlane.xlu1 %2153 }
0x1150   :  { %12764 = vrsqrt.f32 %v2157_v63  ;;  %v2156_v1 = vmul.f32 0.03125, %v2154_v0 }
0x1152   :  { %v2158_v2 = vadd.f32 1e-05, %v2156_v1 }
0x1154   :  { %12766 = vrsqrt.f32 %v2158_v2 }
0x115a   :  { %v12765_v3 = vpop.eup %12764 }
0x115b   :  { %v2161_v5 = vmul.f32 %v12765_v3, %v2145_v9 }
0x115d   :  { %v2169_v10 = vmul.f32 %v10110_v4, %v2161_v5 }
0x115e   :  { %v12767_v11 = vpop.eup %12766 }
0x115f   :  { %v2162_v7 = vmul.f32 %v12767_v11, %v2146_v51  ;;  %v2177_v50 = vadd.f32 %v10111_v6, %v2169_v10 }
0x1161   :  { %v2170_v12 = vmul.f32 %v10110_v4, %v2162_v7  ;;  %11119 = vmatprep.mubr.msk.f32.mxu1 %vm575_vm3, %v2177_v50 }
0x1163   :  { %v2178_v48 = vadd.f32 %v10111_v6, %v2170_v12 }
0x1165   :  { %11120 = vmatmul.mubr.msk.f32.vlgmr.msra.gmra.mrb[18].mxu1 %vm575_vm3, %v2178_v48 }
0x1238   :  { %v11121_v14 = vpop.f32.mrb[18].mxu1 }
0x1239   :  { %v13744_v15 = vadd.f32 %v11121_v14, %v10117_v13  ;;  %v2264_v16 = vpop.f32.mrb[19].mxu1 }
0x123a   :  { %v13746_v17 = vadd.f32 %v10117_v13, %v2264_v16 }
0x123c   :  { %11126 = vmatprep.mubr.msk.f32.mxu1 %vm722_vm5, %v13746_v17  ;;  %v13752_v18 = vpack.i.bf16 %v13744_v15, %v13746_v17 }
0x123e   :  { %12529 = vrot.lane.b32.xlu0 %v13752_v18, %s13127_s5 }
0x1242   :  { %12539 = vrot.lane.b32.xlu0 %v13752_v18, %s13128_s17 }
0x1246   :  { %2481 = vrot.lane.b32.xlu0 %v13746_v17, %s13129_s29 }
0x124a   :  { %2483 = vrot.lane.b32.xlu0 %v13744_v15, %s13129_s29 }
0x12b0   :  { %v12530_v19 = vpop.permute.xlu0 %12529 }
0x12b1   :  { %v12532_v20 = vunpack.i.h.bf16 %v12530_v19  ;;  %v12531_v21 = vunpack.i.l.bf16 %v12530_v19 }
0x12b3   :  { %v11944_v23 = vpack.c.bf16 %v12532_v20, %v12531_v21 }
0x12b4   :  { %v12540_v25 = vpop.permute.xlu0 %12539 }
0x12b5   :  { %11946 = vmatprep.subr.msk.bf16.mxu1 %vm13556_vm6, %v11944_v23  ;;  %v12542_v24 = vunpack.i.h.bf16 %v12540_v25  ;;  %v12541_v52 = vunpack.i.l.bf16 %v12540_v25 }
0x12b6   :  { %11949 = vmatpush3.bf16.xpose.msk.msra.mxu1 %vm13556_vm6, %v11944_v23 }
0x12b7   :  { %v11956_v56 = vpack.c.bf16 %v12542_v24, %v12541_v52 }
0x12b8   :  { %v2482_v61 = vpop.permute.xlu0 %2481 }
0x12bc   :  { %v2484_v63 = vpop.permute.xlu0 %2483 }
0x12bd   :  { %11127 = vmatmul.mubr.msk.f32.vlgmr.msra.gmra.mrb[20].mxu1 %vm722_vm5, %v13744_v15 }
0x1390   :  { %v11128_v26 = vpop.f32.mrb[20].mxu1 }
0x1391   :  { %v2358_v27 = vpop.f32.mrb[21].mxu1  ;;  %v2368_v28 = vmul.f32 0.35355338, %v11128_v26 }
0x1392   :  { %v2367_v30 = vmul.f32 0.35355338, %v2358_v27 }
0x1393   :  { %v2370_v33 = vadd.f32 %v2368_v28, %v13570_v37 }
0x1394   :  { %v2369_v32 = vadd.f32 %v2367_v30, %v13567_v34 }
0x1395   :  { %v2374_v35 = vsel %vm814_vm8, %v2370_v33, -inf }
0x1396   :  { %v2371_v22 = vsel %vm810_vm7, %v2369_v32, -inf }
0x1397   :  { %2372 = vmax.xlane.f32.xlu1 %v2371_v22 }
0x139b   :  { %2375 = vmax.xlane.f32.xlu1 %v2374_v35 }
0x1424   :  { %v2373_v36 = vpop.xlane.xlu1 %2372 }
0x1425   :  { %v2377_v38 = vsub.f32 %v2369_v32, %v2373_v36 }
0x1427   :  { %v2379_v41 = vmul.f32 1.442695, %v2377_v38 }
0x1428   :  { %v2376_v39 = vpop.xlane.xlu1 %2375 }
0x1429   :  { %v2378_v40 = vsub.f32 %v2370_v33, %v2376_v39 }
0x142b   :  { %v2381_v44 = vmul.f32 1.442695, %v2378_v40 }
0x142d   :  { %12768 = vpow2.f32 %v2381_v44 }
0x142e   :  { %12770 = vpow2.f32 %v2379_v41 }
0x1437   :  { %v12769_v45 = vpop.eup %12768 }
0x1438   :  { %v2386_v46 = vsel %vm814_vm8, %v12769_v45, 0.0  ;;  %v12771_v8 = vpop.eup %12770 }
0x1439   :  { %2387 = vadd.xlane.f32.xlu1 %v2386_v46  ;;  %v2383_v9 = vsel %vm810_vm7, %v12771_v8, 0.0 }
0x143d   :  { %2384 = vadd.xlane.f32.xlu1 %v2383_v9 }
0x144e   :  { %12534 = vrot.lane.b32.xlu1 %v13752_v18, %s13130_s3 }
0x14c6   :  { %v2388_v47 = vpop.xlane.xlu1 %2387 }
0x14c7   :  { %12772 = vrcp.f32 %v2388_v47  ;;  %v10121_v47 = vld [vmem:[%s13224_s12 + $0x28] sm:$0xff] }
0x14c8   :  { %11150 = vmatprep.subr.mxu0 %v10121_v47 }
0x14c9   :  { %11151 = vmatpush3.msra.mxu0 %v10121_v47 }
0x14ca   :  { %v2385_v49 = vpop.xlane.xlu1 %2384 }
0x14cb   :  { %12774 = vrcp.f32 %v2385_v49  ;;  %v10120_v49 = vld [vmem:[%s13224_s12 + $0x20] sm:$0xff] }
0x14cc   :  { %11155 = vmatprep.subr.mxu0 %v10120_v49 }
0x14ce   :  { %v12535_v51 = vpop.permute.xlu1 %12534 }
0x14cf   :  { %v12537_v53 = vunpack.i.h.bf16 %v12535_v51  ;;  %v12536_v54 = vunpack.i.l.bf16 %v12535_v51 }
0x14d1   :  { %v11950_v55 = vpack.c.bf16 %v12537_v53, %v12536_v54  ;;  %v12773_v57 = vpop.eup %12772 }
0x14d2   :  { %v2392_v60 = vmul.f32 %v12773_v57, %v12769_v45  ;;  %v12987_v57 = vld [vmem:[%s13159_s9] sm:$0xff] }
0x14d3   :  { %11952 = vmatprep.subr.msk.bf16.mxu1 %vm13580_vm11, %v11950_v55 }
0x14d4   :  { %11955 = vmatpush3.bf16.msk.msra.mxu1 %vm13580_vm11, %v11950_v55  ;;  %v12986_v55 = vld [vmem:[%s13159_s9 + $0x8] sm:$0x3]  ;;  %s14774_s9 = sld [smem:[#allocation16_spill]] }
0x14d5   :  { %v12775_v58 = vpop.eup %12774  ;;  %11958 = vmatprep.subr.msk.bf16.mxu1 %vm13556_vm6, %v11956_v56 }
0x14d6   :  { %v2391_v59 = vmul.f32 %v12775_v58, %v12771_v8 }
0x14d8   :  { %11133 = vmatprep.mubr.msk.f32.mxu1 %vm810_vm7, %v2391_v59 }
0x14d9   :  { %11134 = vmatmul.mubr.msk.f32.vlgmr.msra.gmra.mrb[22].mxu1 %vm810_vm7, %v2392_v60 }
0x14da   :  { %11140 = vmatprep.mubr.msk.f32.mxu1 %vm722_vm5, %v2482_v61 }
0x14dd   :  { %11961 = vmatpush3.bf16.xpose.msk.msra.mxu1 %vm13556_vm6, %v11956_v56 }
0x14e4   :  { %11141 = vmatmul.mubr.msk.f32.vlgmr.msra.gmra.mrb[24].mxu1 %vm722_vm5, %v2484_v63 }
0x15ac   :  { %v13788_v0 = vpop.f32.mrb[22].mxu1 }
0x15ad   :  { %v13790_v1 = vpop.f32.mrb[23].mxu1 }
0x15b7   :  { %v11142_v2 = vpop.f32.mrb[24].mxu1 }
0x15b8   :  { %v2573_v3 = vmul.f32 0.35355338, %v11142_v2  ;;  %v2563_v4 = vpop.f32.mrb[25].mxu1 }
0x15b9   :  { %v2572_v5 = vmul.f32 0.35355338, %v2563_v4 }
0x15ba   :  { %v2575_v6 = vadd.f32 %v2573_v3, %v13570_v37 }
0x15bb   :  { %v2574_v10 = vadd.f32 %v2572_v5, %v13567_v34 }
0x15bc   :  { %v2579_v11 = vsel %vm814_vm8, %v2575_v6, -inf }
0x15bd   :  { %2580 = vmax.xlane.f32.xlu0 %v2579_v11  ;;  %v2576_v7 = vsel %vm810_vm7, %v2574_v10, -inf }
0x15be   :  { %2577 = vmax.xlane.f32.xlu1 %v2576_v7 }
0x15cf   :  { %12544 = vrot.lane.b32.xlu1 %v13752_v18, %s13132_s8 }
0x15d3   :  { %2848 = vrot.lane.b32.xlu1 %v13746_v17, %s13133_s14 }
0x15d7   :  { %2850 = vrot.lane.b32.xlu1 %v13744_v15, %s13133_s14 }
0x15db   :  { %12554 = vrot.lane.b32.xlu1 %v13752_v18, %s14732_s4 }
0x15df   :  { %3138 = vrot.lane.b32.xlu1 %v13744_v15, %s14730_s28 }
0x164a   :  { %v2581_v34 = vpop.xlane.xlu0 %2580 }
0x164b   :  { %v2583_v37 = vsub.f32 %v2575_v6, %v2581_v34  ;;  %v2578_v50 = vpop.xlane.xlu1 %2577 }
0x164c   :  { %v2582_v12 = vsub.f32 %v2574_v10, %v2578_v50 }
0x164d   :  { %v2586_v48 = vmul.f32 1.442695, %v2583_v37 }
0x164e   :  { %v2584_v13 = vmul.f32 1.442695, %v2582_v12 }
0x164f   :  { %12776 = vpow2.f32 %v2586_v48  ;;  %v12545_v14 = vpop.permute.xlu1 %12544 }
0x1650   :  { %v12547_v16 = vunpack.i.h.bf16 %v12545_v14  ;;  %v12546_v19 = vunpack.i.l.bf16 %v12545_v14  ;;  %12778 = vpow2.f32 %v2584_v13 }
0x1652   :  { %v11962_v20 = vpack.c.bf16 %v12547_v16, %v12546_v19 }
0x1653   :  { %v2849_v27 = vpop.permute.xlu1 %2848 }
0x1654   :  { %11964 = vmatprep.subr.msk.bf16.mxu1 %vm13580_vm11, %v11962_v20 }
0x1655   :  { %11967 = vmatpush3.bf16.msk.msra.mxu1 %vm13580_vm11, %v11962_v20 }
0x1657   :  { %v2851_v32 = vpop.permute.xlu1 %2850 }
0x1659   :  { %v12777_v21 = vpop.eup %12776 }
0x165a   :  { %v2591_v15 = vsel %vm814_vm8, %v12777_v21, 0.0  ;;  %v12779_v23 = vpop.eup %12778 }
0x165b   :  { %2592 = vadd.xlane.f32.xlu0 %v2591_v15  ;;  %v2588_v26 = vsel %vm810_vm7, %v12779_v23, 0.0  ;;  %v12555_v38 = vpop.permute.xlu1 %12554 }
0x165c   :  { %v12557_v41 = vunpack.i.h.bf16 %v12555_v38  ;;  %v12556_v44 = vunpack.i.l.bf16 %v12555_v38  ;;  %v10122_v38 = vld [vmem:[%s13224_s12 + $0x30] sm:$0xff] }
0x165e   :  { %v11980_v46 = vpack.c.bf16 %v12557_v41, %v12556_v44 }
0x165f   :  { %2589 = vadd.xlane.f32.xlu0 %v2588_v26  ;;  %v3139_v9 = vpop.permute.xlu1 %3138 }
0x1675   :  { %12549 = vrot.lane.b32.xlu0 %v13752_v18, %s13136_s1 }
0x1679   :  { %3136 = vrot.lane.b32.xlu0 %v13746_v17, %s14730_s28 }
0x16e8   :  { %v2593_v28 = vpop.xlane.xlu0 %2592 }
0x16e9   :  { %12780 = vrcp.f32 %v2593_v28 }
0x16ec   :  { %v2590_v30 = vpop.xlane.xlu0 %2589 }
0x16ed   :  { %12782 = vrcp.f32 %v2590_v30 }
0x16f0   :  { %v12550_v22 = vpop.permute.xlu0 %12549 }
0x16f1   :  { %v12552_v33 = vunpack.i.h.bf16 %v12550_v22  ;;  %v12551_v35 = vunpack.i.l.bf16 %v12550_v22 }
0x16f3   :  { %v11968_v36 = vpack.c.bf16 %v12552_v33, %v12551_v35  ;;  %v12781_v39 = vpop.eup %12780 }
0x16f4   :  { %v2597_v45 = vmul.f32 %v12781_v39, %v12777_v21  ;;  %v3137_v8 = vpop.permute.xlu0 %3136 }
0x16f5   :  { %11970 = vmatprep.subr.msk.bf16.mxu1 %vm13556_vm6, %v11968_v36 }
0x16f7   :  { %v12783_v40 = vpop.eup %12782 }
0x16f8   :  { %v2596_v17 = vmul.f32 %v12783_v40, %v12779_v23 }
0x16fa   :  { %11147 = vmatprep.mubr.msk.f32.mxu1 %vm810_vm7, %v2596_v17 }
0x16fb   :  { %11148 = vmatmul.mubr.msk.f32.vlgmr.msra.gmra.mrb[26].mxu1 %vm810_vm7, %v2597_v45 }
0x16fc   :  { %11973 = vmatpush3.bf16.xpose.msk.msra.mxu1 %vm13556_vm6, %v11968_v36  ;;  %11164 = vmatprep.mubr.msk.f32.mxu1 %vm722_vm5, %v2849_v27 }
0x16fd   :  { %11982 = vmatprep.subr.msk.bf16.mxu1 %vm13556_vm6, %v11980_v46 }
0x1703   :  { %11165 = vmatmul.mubr.msk.f32.vlgmr.msra.gmra.mrb[28].mxu1 %vm722_vm5, %v2851_v32 }
0x1704   :  { %11985 = vmatpush3.bf16.xpose.msk.msra.mxu1 %vm13556_vm6, %v11980_v46  ;;  %11183 = vmatprep.mubr.msk.f32.mxu1 %vm722_vm5, %v3137_v8 }
0x170b   :  { %11184 = vmatmul.mubr.msk.f32.vlgmr.msra.gmra.mrb[30].mxu1 %vm722_vm5, %v3139_v9 }
0x17ce   :  { %v11149_v25 = vpop.f32.mrb[26].mxu1 }
0x17cf   :  { %v2677_v51 = vpop.f32.mrb[27].mxu1 }
0x17d0   :  { %11152 = vmatprep.mubr.msk.f32.mxu0 %vm722_vm5, %v2677_v51 }
0x17d1   :  { %11153 = vmatmul.mubr.msk.f32.vlgmr.msra.gmra.mrb[12].mxu0 %vm722_vm5, %v11149_v25 }
0x17d2   :  { %11157 = vmatprep.mubr.msk.f32.mxu0 %vm722_vm5, %v13790_v1  ;;  %11156 = vmatpush3.msra.mxu0 %v10120_v49 }
0x17d6   :  { %v11166_v24 = vpop.f32.mrb[28].mxu1 }
0x17d7   :  { %v2940_v52 = vmul.f32 0.35355338, %v11166_v24  ;;  %v2930_v53 = vpop.f32.mrb[29].mxu1 }
0x17d8   :  { %v2939_v54 = vmul.f32 0.35355338, %v2930_v53 }
0x17d9   :  { %11158 = vmatmul.mubr.msk.f32.vlgmr.msra.gmra.mrb[12].mxu0 %vm722_vm5, %v13788_v0  ;;  %v2942_v56 = vadd.f32 %v12986_v55, %v2940_v52  ;;  %v10123_v52 = vld [vmem:[%s13224_s12 + $0x38] sm:$0xff]  ;;  %s14780_s12 = sld [smem:[#allocation29_spill]] }
0x17da   :  { %v2941_v58 = vadd.f32 %v12987_v57, %v2939_v54 }
0x17db   :  { %v2946_v59 = vsel %vm814_vm8, %v2942_v56, -inf }
0x17dc   :  { %2947 = vmax.xlane.f32.xlu1 %v2946_v59  ;;  %v2943_v60 = vsel %vm810_vm7, %v2941_v58, -inf }
0x17dd   :  { %2944 = vmax.xlane.f32.xlu0 %v2943_v60 }
0x17de   :  { %v11185_v61 = vpop.f32.mrb[30].mxu1 }
0x17df   :  { %v3218_v63 = vpop.f32.mrb[31].mxu1  ;;  %v3228_v1 = vmul.f32 0.35355338, %v11185_v61 }
0x17e0   :  { %v3227_v2 = vmul.f32 0.35355338, %v3218_v63 }
0x17e1   :  { %v3230_v5 = vadd.f32 %v12986_v55, %v3228_v1 }
0x17e2   :  { %v3229_v3 = vadd.f32 %v12987_v57, %v3227_v2  ;;  %v10161_v57 = vld [vmem:[%s13229_s20 + $0x1] ss:$0 sm:$0xff]  ;;  %s14781_s20 = sld [smem:[#allocation14_spill]] }
0x17e3   :  { %v3234_v0 = vsel %vm814_vm8, %v3230_v5, -inf }
0x17e4   :  { %v3231_v4 = vsel %vm810_vm7, %v3229_v3, -inf }
0x17e5   :  { %3232 = vmax.xlane.f32.xlu1 %v3231_v4 }
0x17e9   :  { %3235 = vmax.xlane.f32.xlu1 %v3234_v0 }
0x1869   :  { %v2948_v6 = vpop.xlane.xlu1 %2947 }
0x186a   :  { %v2950_v10 = vsub.f32 %v2942_v56, %v2948_v6  ;;  %v2945_v11 = vpop.xlane.xlu0 %2944 }
0x186b   :  { %v2949_v7 = vsub.f32 %v2941_v58, %v2945_v11 }
0x186c   :  { %v2953_v34 = vmul.f32 1.442695, %v2950_v10 }
0x186d   :  { %v2951_v37 = vmul.f32 1.442695, %v2949_v7 }
0x186e   :  { %12784 = vpow2.f32 %v2953_v34 }
0x186f   :  { %12786 = vpow2.f32 %v2951_v37 }
0x1872   :  { %v3233_v50 = vpop.xlane.xlu1 %3232 }
0x1873   :  { %v3237_v12 = vsub.f32 %v3229_v3, %v3233_v50  ;;  %v13139_v3 = vmov 0   ;;  %v10166_v50 = vld [vmem:[%s13244_s25 + $0x20] sm:$0xff] }
0x1874   :  { %12568 = vset.pattern.permute.xlu0 %v13139_v3  ;;  %12569 = vset.pattern.permute.xlu1 %v13139_v3  ;;  %v10179_v3 = vld [vmem:[%s14771_s11 + $0xa8] sm:$0xff] }
0x1875   :  { %v3239_v16 = vmul.f32 1.442695, %v3237_v12  ;;  %v10167_v12 = vld [vmem:[%s13244_s25 + $0x28] sm:$0xff] }
0x1876   :  { %v3236_v48 = vpop.xlane.xlu1 %3235 }
0x1877   :  { %v3238_v13 = vsub.f32 %v3230_v5, %v3236_v48  ;;  %v10168_v48 = vld [vmem:[%s13244_s25 + $0x30] sm:$0xff] }
0x1878   :  { %v12785_v14 = vpop.eup %12784 }
0x1879   :  { %v3241_v19 = vmul.f32 1.442695, %v3238_v13  ;;  %v2958_v20 = vsel %vm814_vm8, %v12785_v14, 0.0  ;;  %v12787_v21 = vpop.eup %12786  ;;  %v3742_v13 = vld [vmem:[%s14774_s9] sm:$0xff] }
0x187a   :  { %2959 = vadd.xlane.f32.xlu0 %v2958_v20  ;;  %v2955_v15 = vsel %vm810_vm7, %v12787_v21, 0.0  ;;  %v3758_v20 = vld [vmem:[%s14775_s19] sm:$0xff] }
0x187b   :  { %12788 = vpow2.f32 %v3241_v19 }
0x187c   :  { %12790 = vpow2.f32 %v3239_v16  ;;  %v10169_v16 = vld [vmem:[%s13244_s25 + $0x38] sm:$0xff]  ;;  %s14776_s25 = sld [smem:[#allocation25_spill]] }
0x187d   :  { %v11996_v19 = vpack.c.bf16 %v10169_v16, %v10168_v48  ;;  %v10171_v16 = vld [vmem:[%s14772_s15 + $0x1] ss:$0 sm:$0xff]  ;;  %s14790_s15 = sld [smem:[#allocation37_spill]] }
0x187e   :  { %2956 = vadd.xlane.f32.xlu0 %v2955_v15 }
0x1885   :  { %v12789_v23 = vpop.eup %12788 }
0x1886   :  { %v3246_v26 = vsel %vm814_vm8, %v12789_v23, 0.0  ;;  %v12791_v27 = vpop.eup %12790 }
0x1887   :  { %3247 = vadd.xlane.f32.xlu1 %v3246_v26  ;;  %v3243_v28 = vsel %vm810_vm7, %v12791_v27, 0.0 }
0x188b   :  { %3244 = vadd.xlane.f32.xlu1 %v3243_v28 }
0x1894   :  { %12559 = vrot.lane.b32.xlu0 %v13752_v18, %s14729_s2 }
0x189c   :  { %12564 = vrot.lane.b32.xlu1 %v13752_v18, %s14728_s7 }
0x1907   :  { %v2960_v30 = vpop.xlane.xlu0 %2959 }
0x1908   :  { %12792 = vrcp.f32 %v2960_v30 }
0x190b   :  { %v2957_v32 = vpop.xlane.xlu0 %2956 }
0x190c   :  { %12794 = vrcp.f32 %v2957_v32 }
0x190f   :  { %v12560_v22 = vpop.permute.xlu0 %12559 }
0x1910   :  { %v12562_v33 = vunpack.i.h.bf16 %v12560_v22  ;;  %v12561_v35 = vunpack.i.l.bf16 %v12560_v22 }
0x1912   :  { %v11974_v36 = vpack.c.bf16 %v12562_v33, %v12561_v35  ;;  %v12793_v40 = vpop.eup %12792  ;;  %v10164_v33 = vld [vmem:[%s13234_s27 + $0x1] ss:$0 sm:$0xff]  ;;  %s14782_s27 = sld [smem:[#allocation30_spill]] }
0x1913   :  { %v2964_v17 = vmul.f32 %v12793_v40, %v12785_v14  ;;  %v11992_v14 = vpack.c.bf16 %v10167_v12, %v10166_v50  ;;  %v10187_v50 = vld [vmem:[%s14771_s11 + $0xe8] sm:$0xff]  ;;  %v10188_v12 = vld [vmem:[%s14771_s11 + $0xf0] sm:$0xff] }
0x1914   :  { %v3248_v39 = vpop.xlane.xlu1 %3247  ;;  %11976 = vmatprep.subr.msk.bf16.mxu0 %vm13580_vm11, %v11974_v36 }
0x1915   :  { %11979 = vmatpush3.bf16.msk.msra.mxu0 %vm13580_vm11, %v11974_v36  ;;  %11993 = vmatprep.subr.bf16.mxu1 %v11992_v14  ;;  %v10165_v36 = vld [vmem:[%s14770_s10 + $0x1] ss:$0 sm:$0xff]  ;;  %s14788_s10 = sld [smem:[#allocation32_spill]] }
0x1916   :  { %v12795_v41 = vpop.eup %12794  ;;  %11174 = vmatprep.subr.mxu0 %v10122_v38  ;;  %11995 = vmatpush3.bf16.msra.mxu1 %v11992_v14 }
0x1917   :  { %v2963_v18 = vmul.f32 %v12795_v41, %v12787_v21  ;;  %11997 = vmatprep.subr.bf16.mxu1 %v11996_v19  ;;  %v3759_v21 = vld [vmem:[%s14775_s19 + $0x8] sm:$0xff] }
0x1918   :  { %v3245_v44 = vpop.xlane.xlu1 %3244  ;;  %v13893_v15 = vpack.c.bf16 %v3759_v21, %v3758_v20 }
0x1919   :  { %11171 = vmatprep.mubr.msk.f32.mxu0 %vm810_vm7, %v2963_v18  ;;  %12796 = vrcp.f32 %v3245_v44 }
0x191a   :  { %11172 = vmatmul.mubr.msk.f32.vlgmr.msra.gmra.mrb[14].mxu0 %vm810_vm7, %v2964_v17  ;;  %12798 = vrcp.f32 %v3248_v39  ;;  %11999 = vmatpush3.bf16.msra.mxu1 %v11996_v19  ;;  %v3760_v17 = vld [vmem:[%s14775_s19 + $0x10] sm:$0xff] }
0x191b   :  { %11175 = vmatpush3.msra.mxu0 %v10122_v38  ;;  %12033 = vmatprep.subr.bf16.mxu1 %v13893_v15  ;;  %v13899_v38 = vand.u32 127, %v557_v31  ;;  %v13140_v31 = vmov 0.0  }
0x191c   :  { %v12565_v45 = vpop.permute.xlu1 %12564 }
0x191d   :  { %v12567_v46 = vunpack.i.h.bf16 %v12565_v45  ;;  %v12566_v8 = vunpack.i.l.bf16 %v12565_v45  ;;  %v3761_v45 = vld [vmem:[%s14775_s19 + $0x18] sm:$0xff] }
0x191f   :  { %v11986_v9 = vpack.c.bf16 %v12567_v46, %v12566_v8 }
0x1921   :  { %11988 = vmatprep.subr.msk.bf16.mxu0 %vm13580_vm11, %v11986_v9 }
0x1923   :  { %v12797_v47 = vpop.eup %12796 }
0x1924   :  { %v12799_v51 = vpop.eup %12798  ;;  %v3251_v24 = vmul.f32 %v12797_v47, %v12791_v27 }
0x1925   :  { %v3252_v53 = vmul.f32 %v12799_v51, %v12789_v23 }
0x19ed   :  { %v11173_v49 = vpop.f32.mrb[14].mxu0 }
0x19ee   :  { %v3044_v25 = vpop.f32.mrb[15].mxu0 }
0x19ef   :  { %11176 = vmatprep.mubr.msk.f32.mxu0 %vm722_vm5, %v3044_v25  ;;  %v3763_v25 = vld [vmem:[%s14775_s19 + $0x28] sm:$0xff] }
0x19f0   :  { %11177 = vmatmul.mubr.msk.f32.vlgmr.msra.gmra.mrb[12].mxu0 %vm722_vm5, %v11173_v49  ;;  %v3762_v49 = vld [vmem:[%s14775_s19 + $0x20] sm:$0xff] }
0x19f1   :  { %11991 = vmatpush3.bf16.msk.msra.mxu0 %vm13580_vm11, %v11986_v9  ;;  %11190 = vmatprep.mubr.msk.f32.mxu0 %vm810_vm7, %v3251_v24  ;;  %v13905_v9 = vpack.c.bf16 %v3761_v45, %v3760_v17  ;;  %v13914_v51 = vpack.c.bf16 %v3763_v25, %v3762_v49  ;;  %v3764_v24 = vld [vmem:[%s14775_s19 + $0x30] sm:$0xff] }
0x19f2   :  { %11193 = vmatprep.subr.mxu0 %v10123_v52 }
0x19f4   :  { %11191 = vmatmul.mubr.msk.f32.vlgmr.msra.gmra.mrb[16].mxu0 %vm810_vm7, %v3252_v53 }
0x19f5   :  { %11194 = vmatpush3.msra.mxu0 %v10123_v52  ;;  %v3765_v52 = vld [vmem:[%s14775_s19 + $0x38] sm:$0xff]  ;;  %s14793_s19 = sld [smem:[#allocation38_spill]] }
0x19f6   :  { %v13920_v53 = vpack.c.bf16 %v3765_v52, %v3764_v24 }
0x1ac7   :  { %v11192_v54 = vpop.f32.mrb[16].mxu0 }
0x1ac8   :  { %v3332_v55 = vpop.f32.mrb[17].mxu0 }
0x1ac9   :  { %11195 = vmatprep.mubr.msk.f32.mxu0 %vm722_vm5, %v3332_v55 }
0x1aca   :  { %11196 = vmatmul.mubr.msk.f32.vlgmr.msra.gmra.mrb[12].mxu0 %vm722_vm5, %v11192_v54 }
0x1b9d   :  { %v11197_v56 = vpop.f32.mrb[12].mxu0 }
0x1b9e   :  { %v3425_v58 = vadd.f32 %v11197_v56, %v13725_v43  ;;  %v3413_v59 = vpop.f32.mrb[13].mxu0  ;;  %v3743_v43 = vld [vmem:[%s14774_s9 + $0x8] sm:$0xff]  ;;  %v10174_v56 = vld [vmem:[%s14771_s11 + $0x80] sm:$0xff]  ;;  %s14792_s9 = sld [smem:[#allocation15_spill]] }
0x1b9f   :  { %v3424_v60 = vadd.f32 %v3413_v59, %v13723_v42  ;;  %v10176_v59 = vld [vmem:[%s14771_s11 + $0x90] sm:$0xff] }
0x1ba0   :  { %v13873_v61 = vadd.f32 %v10161_v57, %v3425_v58 }
0x1ba1   :  { %v13875_v63 = vadd.f32 %v10161_v57, %v3424_v60  ;;  %v10175_v57 = vld [vmem:[%s14771_s11 + $0x88] sm:$0xff]  ;;  %v10177_v60 = vld [vmem:[%s14771_s11 + $0x98] sm:$0xff] }
0x1ba2   :  { %v3443_v1 = vsel %vm579_vm4, %v13873_v61, 0.0  ;;  %v12000_v58 = vpack.c.bf16 %v10175_v57, %v10174_v56 }
0x1ba3   :  { %3444 = vadd.xlane.f32.xlu1 %v3443_v1  ;;  %v3440_v2 = vsel %vm575_vm3, %v13875_v63, 0.0  ;;  %v12004_v1 = vpack.c.bf16 %v10177_v60, %v10176_v59 }
0x1ba4   :  { %3441 = vadd.xlane.f32.xlu0 %v3440_v2  ;;  %12001 = vmatprep.subr.bf16.mxu0 %v12000_v58  ;;  %v10178_v2 = vld [vmem:[%s14771_s11 + $0xa0] sm:$0xff] }
0x1ba5   :  { %12003 = vmatpush3.bf16.msra.mxu0 %v12000_v58 }
0x1ba6   :  { %12005 = vmatprep.subr.bf16.mxu0 %v12004_v1 }
0x1ba9   :  { %12007 = vmatpush3.bf16.msra.mxu0 %v12004_v1 }
0x1bb4   :  { %3750 = vperm.xlu1 %12569, %v3743_v43   ;;  %v12008_v43 = vpack.c.bf16 %v10179_v3, %v10178_v2 }
0x1bb6   :  { %12009 = vmatprep.subr.bf16.mxu0 %v12008_v43 }
0x1bb7   :  { %12011 = vmatpush3.bf16.msra.mxu0 %v12008_v43 }
0x1c30   :  { %v3445_v42 = vpop.xlane.xlu1 %3444 }
0x1c31   :  { %v3447_v4 = vmul.f32 0.03125, %v3445_v42  ;;  %v3442_v5 = vpop.xlane.xlu0 %3441  ;;  %v10180_v42 = vld [vmem:[%s14771_s11 + $0xb0] sm:$0xff] }
0x1c32   :  { %v3446_v0 = vmul.f32 0.03125, %v3442_v5 }
0x1c33   :  { %v3449_v6 = vsub.f32 %v13873_v61, %v3447_v4  ;;  %v10181_v4 = vld [vmem:[%s14771_s11 + $0xb8] sm:$0xff] }
0x1c34   :  { %v3448_v10 = vsub.f32 %v13875_v63, %v3446_v0  ;;  %v3751_v54 = vpop.permute.xlu1 %3750  ;;  %v12012_v5 = vpack.c.bf16 %v10181_v4, %v10180_v42  ;;  %v10182_v0 = vld [vmem:[%s14771_s11 + $0xc0] sm:$0xff] }
0x1c35   :  { %v3451_v34 = vmul.f32 %v3449_v6, %v3449_v6  ;;  %vm3753_vm14 = vcmp.eq.s32.totalorder %v13899_v38, %v3751_v54  ;;  %v3897_v4 = vld [vmem:[%s14777_s24] sm:$0xff] }
0x1c36   :  { %v3450_v11 = vmul.f32 %v3448_v10, %v3448_v10  ;;  %v10195_v55 = vsel %vm3753_vm14, 1.0, %v13140_v31  ;;  %12013 = vmatprep.subr.bf16.mxu0 %v12012_v5 }
0x1c37   :  { %v3455_v37 = vsel %vm579_vm4, %v3451_v34, 0.0  ;;  %12015 = vmatpush3.bf16.msra.mxu0 %v12012_v5  ;;  %v3898_v5 = vld [vmem:[%s14777_s24 + $0x8] sm:$0xff] }
0x1c38   :  { %v3452_v7 = vsel %vm575_vm3, %v3450_v11, 0.0  ;;  %v10184_v11 = vld [vmem:[%s14771_s11 + $0xd0] sm:$0xff] }
0x1c39   :  { %3453 = vadd.xlane.f32.xlu0 %v3452_v7  ;;  %v10185_v7 = vld [vmem:[%s14771_s11 + $0xd8] sm:$0xff] }
0x1c3a   :  { %v12020_v34 = vpack.c.bf16 %v10185_v7, %v10184_v11 }
0x1c3d   :  { %3456 = vadd.xlane.f32.xlu0 %v3455_v37  ;;  %v10186_v37 = vld [vmem:[%s14771_s11 + $0xe0] sm:$0xff] }
0x1c3e   :  { %v12024_v48 = vpack.c.bf16 %v10187_v50, %v10186_v37 }
0x1c53   :  { %3747 = vperm.xlu0 %12568, %v3742_v13   ;;  %v10189_v13 = vld [vmem:[%s14771_s11 + $0xf8] sm:$0xff] }
0x1c54   :  { %v12028_v14 = vpack.c.bf16 %v10189_v13, %v10188_v12 }
0x1cc6   :  { %v3454_v23 = vpop.xlane.xlu0 %3453 }
0x1cc7   :  { %v3458_v26 = vmul.f32 0.03125, %v3454_v23 }
0x1cc9   :  { %v3460_v27 = vadd.f32 1e-05, %v3458_v26 }
0x1cca   :  { %v3457_v28 = vpop.xlane.xlu0 %3456 }
0x1ccb   :  { %12800 = vrsqrt.f32 %v3460_v27  ;;  %v3459_v30 = vmul.f32 0.03125, %v3457_v28 }
0x1ccd   :  { %v3461_v32 = vadd.f32 1e-05, %v3459_v30 }
0x1ccf   :  { %12802 = vrsqrt.f32 %v3461_v32 }
0x1cd2   :  { %v3748_v40 = vpop.permute.xlu0 %3747 }
0x1cd3   :  { %vm3752_vm12 = vcmp.eq.s32.totalorder %v13899_v38, %v3748_v40  ;;  %v3766_v40 = vld [vmem:[%s14776_s25] sm:$0xff]  ;;  %s14794_s25 = sld [smem:[#allocation39_spill]] }
0x1cd4   :  { %v10194_v47 = vsel %vm3752_vm12, 1.0, %v13140_v31 }
0x1cd5   :  { %v12801_v22 = vpop.eup %12800 }
0x1cd6   :  { %v3464_v35 = vmul.f32 %v12801_v22, %v3448_v10 }
0x1cd8   :  { %v3472_v39 = vmul.f32 %v10164_v33, %v3464_v35 }
0x1cd9   :  { %v12803_v41 = vpop.eup %12802 }
0x1cda   :  { %v3465_v18 = vmul.f32 %v12803_v41, %v3449_v6  ;;  %v3480_v44 = vadd.f32 %v10165_v36, %v3472_v39  ;;  %v10183_v6 = vld [vmem:[%s14771_s11 + $0xc8] sm:$0xff]  ;;  %s14789_s11 = sld [smem:[#allocation33_spill]] }
0x1cdb   :  { %v12016_v10 = vpack.c.bf16 %v10183_v6, %v10182_v0  ;;  %v3899_v0 = vld [vmem:[%s14777_s24 + $0x10] sm:$0xff]  ;;  %v12048_v6 = vpack.c.bf16 %v3898_v5, %v3897_v4  ;;  %v14022_v4 = vld [vmem:[%s14781_s20] sm:$0xff] }
0x1cdc   :  { %v3473_v46 = vmul.f32 %v10164_v33, %v3465_v18  ;;  %11206 = vmatprep.mubr.msk.f32.mxu1 %vm575_vm3, %v3480_v44 }
0x1cdd   :  { %12017 = vmatprep.subr.bf16.mxu0 %v12016_v10 }
0x1cde   :  { %v3481_v8 = vadd.f32 %v10165_v36, %v3473_v46  ;;  %12019 = vmatpush3.bf16.msra.mxu0 %v12016_v10  ;;  %v3900_v10 = vld [vmem:[%s14777_s24 + $0x18] sm:$0xff] }
0x1cdf   :  { %12021 = vmatprep.subr.bf16.mxu0 %v12020_v34  ;;  %v12052_v11 = vpack.c.bf16 %v3900_v10, %v3899_v0 }
0x1ce0   :  { %11207 = vmatmul.mubr.msk.f32.vlgmr.msra.gmra.mrb[32].mxu1 %vm575_vm3, %v3481_v8 }
0x1ce1   :  { %12035 = vmatpush3.bf16.msra.mxu1 %v13893_v15  ;;  %11260 = vmatprep.mubr.msk.f32.mxu1 %vm3767_vm13, %v10194_v47 }
0x1ce2   :  { %12037 = vmatprep.subr.bf16.mxu1 %v13905_v9  ;;  %12023 = vmatpush3.bf16.msra.mxu0 %v12020_v34  ;;  %v13963_v34 = vld [vmem:[%s14773_s16 + $0x1] ss:$0 sm:$0xff]  ;;  %s14791_s16 = sld [smem:[#allocation35_spill]] }
0x1ce3   :  { %12025 = vmatprep.subr.bf16.mxu0 %v12024_v48 }
0x1ce5   :  { %12039 = vmatpush3.bf16.msra.mxu1 %v13905_v9 }
0x1ce6   :  { %12041 = vmatprep.subr.bf16.mxu1 %v13914_v51  ;;  %12027 = vmatpush3.bf16.msra.mxu0 %v12024_v48 }
0x1ce7   :  { %12029 = vmatprep.subr.bf16.mxu0 %v12028_v14 }
0x1ce9   :  { %12043 = vmatpush3.bf16.msra.mxu1 %v13914_v51 }
0x1cea   :  { %12045 = vmatprep.subr.bf16.mxu1 %v13920_v53  ;;  %12031 = vmatpush3.bf16.msra.mxu0 %v12028_v14 }
0x1ced   :  { %12047 = vmatpush3.bf16.msra.mxu1 %v13920_v53 }
0x1cee   :  { %12049 = vmatprep.subr.bf16.mxu1 %v12048_v6 }
0x1cf0   :  { %11261 = vmatmul.mubr.msk.f32.vlgmr.msra.gmra.mrb[34].mxu1 %vm3767_vm13, %v10195_v55 }
0x1cf1   :  { %12051 = vmatpush3.bf16.msra.mxu1 %v12048_v6 }
0x1cf2   :  { %12053 = vmatprep.subr.bf16.mxu1 %v12052_v11 }
0x1cf5   :  { %12055 = vmatpush3.bf16.msra.mxu1 %v12052_v11 }
0x1db3   :  { %v11208_v19 = vpop.f32.mrb[32].mxu1 }
0x1db4   :  { %v3573_v20 = vadd.f32 %v11208_v19, %v10171_v16  ;;  %v3567_v21 = vpop.f32.mrb[33].mxu1 }
0x1db5   :  { %v3568_v23 = vadd.f32 %v10171_v16, %v3567_v21 }
0x1db6   :  { %v3577_v26 = vmul.f32 %v3573_v20, %v3573_v20 }
0x1db7   :  { %v3576_v27 = vmul.f32 %v3568_v23, %v3568_v23 }
0x1db8   :  { %v3579_v28 = vmul.f32 %v3577_v26, %v3573_v20 }
0x1db9   :  { %v3578_v30 = vmul.f32 %v3576_v27, %v3568_v23  ;;  %v10199_v27 = vld [vmem:[%s14779_s6] ss:$0 sm:$0xff] }
0x1dba   :  { %v3581_v32 = vmul.f32 0.044715, %v3579_v28 }
0x1dbb   :  { %v3580_v22 = vmul.f32 0.044715, %v3578_v30 }
0x1dbc   :  { %v3583_v33 = vadd.f32 %v3581_v32, %v3573_v20 }
0x1dbd   :  { %v3582_v35 = vadd.f32 %v3580_v22, %v3568_v23 }
0x1dbe   :  { %v3585_v36 = vmul.f32 0.7978846, %v3583_v33 }
0x1dbf   :  { %v3584_v39 = vmul.f32 0.7978846, %v3582_v35  ;;  %v10200_v35 = vld [vmem:[%s14780_s12] ss:$0 sm:$0xff] }
0x1dc0   :  { %12804 = vtanh.f32 %v3585_v36 }
0x1dc1   :  { %12806 = vtanh.f32 %v3584_v39 }
0x1dc3   :  { %v11262_v41 = vpop.f32.mrb[34].mxu1 }
0x1dc4   :  { %v13946_v18 = vadd.f32 %v11262_v41, %v3766_v40  ;;  %v3840_v44 = vpop.f32.mrb[35].mxu1 }
0x1dc5   :  { %v13948_v17 = vadd.f32 %v3840_v44, %v3766_v40 }
0x1dc6   :  { %v3858_v45 = vsel %vm575_vm3, %v13946_v18, 0.0 }
0x1dc7   :  { %3859 = vadd.xlane.f32.xlu0 %v3858_v45  ;;  %v3855_v46 = vsel %vm575_vm3, %v13948_v17, 0.0 }
0x1dc8   :  { %3856 = vadd.xlane.f32.xlu1 %v3855_v46 }
0x1dca   :  { %v12805_v8 = vpop.eup %12804 }
0x1dcb   :  { %v12807_v47 = vpop.eup %12806  ;;  %v3589_v49 = vadd.f32 1.0, %v12805_v8 }
0x1dcc   :  { %v3588_v25 = vadd.f32 1.0, %v12807_v47 }
0x1dcd   :  { %v3591_v24 = vmul.f32 0.5, %v3589_v49 }
0x1dce   :  { %v3590_v52 = vmul.f32 0.5, %v3588_v25 }
0x1dcf   :  { %v3593_v55 = vmul.f32 %v3591_v24, %v3573_v20 }
0x1dd0   :  { %v3592_v54 = vmul.f32 %v3590_v52, %v3568_v23  ;;  %v10198_v23 = vld [vmem:[%s14778_s30] ss:$0 sm:$0xff] }
0x1dd2   :  { %11241 = vmatprep.mubr.f32.mxu0 %v3592_v54 }
0x1dd3   :  { %11242 = vmatmul.mubr.f32.vlgmr.msra.gmra.mrb[18].mxu0 %v3593_v55 }
0x1e54   :  { %v3860_v56 = vpop.xlane.xlu0 %3859 }
0x1e55   :  { %v3862_v57 = vmul.f32 0.03125, %v3860_v56  ;;  %v3857_v58 = vpop.xlane.xlu1 %3856 }
0x1e56   :  { %v3861_v59 = vmul.f32 0.03125, %v3857_v58 }
0x1e57   :  { %v3864_v60 = vsub.f32 %v13946_v18, %v3862_v57 }
0x1e58   :  { %v3863_v1 = vsub.f32 %v13948_v17, %v3861_v59 }
0x1e59   :  { %v3866_v43 = vmul.f32 %v3864_v60, %v3864_v60 }
0x1e5a   :  { %v3865_v2 = vmul.f32 %v3863_v1, %v3863_v1 }
0x1e5b   :  { %v3870_v42 = vsel %vm575_vm3, %v3866_v43, 0.0 }
0x1e5c   :  { %v3867_v3 = vsel %vm575_vm3, %v3865_v2, 0.0 }
0x1e5d   :  { %3868 = vadd.xlane.f32.xlu1 %v3867_v3  ;;  %v14019_v3 = vld [vmem:[%s14781_s20 + $0x8] sm:$0xff] }
0x1e61   :  { %3871 = vadd.xlane.f32.xlu1 %v3870_v42 }
0x1ea6   :  { %v11243_v7 = vpop.f32.mrb[18].mxu0 }
0x1ea7   :  { %v3687_v37 = vadd.f32 %v11243_v7, %v13873_v61  ;;  %v13966_v50 = vpop.f32.mrb[19].mxu0 }
0x1ea9   :  { %v13969_v12 = vadd.f32 %v13963_v34, %v3687_v37 }
0x1eea   :  { %v3869_v48 = vpop.xlane.xlu1 %3868 }
0x1eeb   :  { %v3873_v13 = vmul.f32 0.03125, %v3869_v48 }
0x1eed   :  { %v3875_v14 = vadd.f32 1e-05, %v3873_v13 }
0x1eee   :  { %v3872_v16 = vpop.xlane.xlu1 %3871 }
0x1eef   :  { %12808 = vrsqrt.f32 %v3875_v14  ;;  %v3874_v19 = vmul.f32 0.03125, %v3872_v16 }
0x1ef1   :  { %v3876_v20 = vadd.f32 1e-05, %v3874_v19 }
0x1ef3   :  { %12810 = vrsqrt.f32 %v3876_v20 }
0x1ef9   :  { %v12809_v21 = vpop.eup %12808 }
0x1efa   :  { %v3879_v26 = vmul.f32 %v12809_v21, %v3863_v1 }
0x1efc   :  { %v3887_v28 = vmul.f32 %v10198_v23, %v3879_v26 }
0x1efd   :  { %v12811_v61 = vpop.eup %12810 }
0x1efe   :  { %v3880_v30 = vmul.f32 %v12811_v61, %v3864_v60  ;;  %v3895_v32 = vadd.f32 %v10199_v27, %v3887_v28 }
0x1f00   :  { %v3888_v22 = vmul.f32 %v10198_v23, %v3880_v30  ;;  %11271 = vmatprep.mubr.msk.f32.mxu1 %vm575_vm3, %v3895_v32 }
0x1f02   :  { %v3896_v33 = vadd.f32 %v10199_v27, %v3888_v22 }
0x1f04   :  { %11272 = vmatmul.mubr.msk.f32.vlgmr.msra.gmra.mrb[36].mxu1 %vm575_vm3, %v3896_v33 }
0x1fd7   :  { %v11273_v36 = vpop.f32.mrb[36].mxu1 }
0x1fd8   :  { %v13976_v39 = vadd.f32 %v11273_v36, %v10200_v35  ;;  %v3980_v40 = vpop.f32.mrb[37].mxu1 }
0x1fd9   :  { %v13978_v41 = vadd.f32 %v10200_v35, %v3980_v40 }
0x1fdb   :  { %11278 = vmatprep.mubr.msk.f32.mxu1 %vm722_vm5, %v13978_v41  ;;  %v13984_v44 = vpack.i.bf16 %v13976_v39, %v13978_v41 }
0x1fdd   :  { %12576 = vrot.lane.b32.xlu0 %v13984_v44, %s13128_s17  ;;  %12571 = vrot.lane.b32.xlu1 %v13984_v44, %s13127_s5 }
0x1fe1   :  { %4562 = vrot.lane.b32.xlu0 %v13978_v41, %s13133_s14  ;;  %4196 = vrot.lane.b32.xlu1 %v13978_v41, %s13129_s29 }
0x1fe5   :  { %4198 = vrot.lane.b32.xlu1 %v13976_v39, %s13129_s29 }
0x1fe9   :  { %12581 = vrot.lane.b32.xlu1 %v13984_v44, %s13136_s1 }
0x1fed   :  { %4564 = vrot.lane.b32.xlu1 %v13976_v39, %s13133_s14 }
0x204f   :  { %v12577_v45 = vpop.permute.xlu0 %12576  ;;  %v12572_v46 = vpop.permute.xlu1 %12571 }
0x2050   :  { %v12579_v8 = vunpack.i.h.bf16 %v12577_v45  ;;  %v12578_v47 = vunpack.i.l.bf16 %v12577_v45  ;;  %v12574_v49 = vunpack.i.h.bf16 %v12572_v46  ;;  %v12573_v25 = vunpack.i.l.bf16 %v12572_v46 }
0x2052   :  { %v12056_v24 = vpack.c.bf16 %v12574_v49, %v12573_v25  ;;  %v12066_v54 = vpack.c.bf16 %v12579_v8, %v12578_v47 }
0x2053   :  { %v4197_v52 = vpop.permute.xlu1 %4196  ;;  %v4563_v60 = vpop.permute.xlu0 %4562 }
0x2054   :  { %12058 = vmatprep.subr.msk.bf16.mxu1 %vm13556_vm6, %v12056_v24 }
0x2055   :  { %12061 = vmatpush3.bf16.xpose.msk.msra.mxu1 %vm13556_vm6, %v12056_v24 }
0x2056   :  { %12068 = vmatprep.subr.msk.bf16.mxu1 %vm13556_vm6, %v12066_v54 }
0x2057   :  { %v4199_v55 = vpop.permute.xlu1 %4198 }
0x205b   :  { %v12582_v56 = vpop.permute.xlu1 %12581 }
0x205c   :  { %v12584_v57 = vunpack.i.h.bf16 %v12582_v56  ;;  %v12583_v58 = vunpack.i.l.bf16 %v12582_v56  ;;  %11279 = vmatmul.mubr.msk.f32.vlgmr.msra.gmra.mrb[38].mxu1 %vm722_vm5, %v13976_v39 }
0x205d   :  { %12071 = vmatpush3.bf16.xpose.msk.msra.mxu1 %vm13556_vm6, %v12066_v54  ;;  %11292 = vmatprep.mubr.msk.f32.mxu1 %vm722_vm5, %v4197_v52 }
0x205e   :  { %v12076_v59 = vpack.c.bf16 %v12584_v57, %v12583_v58 }
0x205f   :  { %v4565_v1 = vpop.permute.xlu1 %4564 }
0x2060   :  { %12078 = vmatprep.subr.msk.bf16.mxu1 %vm13556_vm6, %v12076_v59 }
0x2064   :  { %11293 = vmatmul.mubr.msk.f32.vlgmr.msra.gmra.mrb[40].mxu1 %vm722_vm5, %v4199_v55 }
0x2065   :  { %12081 = vmatpush3.bf16.xpose.msk.msra.mxu1 %vm13556_vm6, %v12076_v59  ;;  %11316 = vmatprep.mubr.msk.f32.mxu1 %vm722_vm5, %v4563_v60 }
0x206c   :  { %11317 = vmatmul.mubr.msk.f32.vlgmr.msra.gmra.mrb[42].mxu1 %vm722_vm5, %v4565_v1 }
0x212f   :  { %v11280_v2 = vpop.f32.mrb[38].mxu1 }
0x2130   :  { %v4083_v43 = vmul.f32 0.35355338, %v11280_v2  ;;  %v4073_v42 = vpop.f32.mrb[39].mxu1 }
0x2131   :  { %v4082_v5 = vmul.f32 0.35355338, %v4073_v42 }
0x2132   :  { %v4085_v0 = vadd.f32 %v4083_v43, %v14019_v3 }
0x2133   :  { %v4084_v6 = vadd.f32 %v4082_v5, %v14022_v4 }
0x2134   :  { %v4090_v10 = vsel %vm4086_vm15, %v4085_v0, -inf }
0x2135   :  { %4091 = vmax.xlane.f32.xlu1 %v4090_v10  ;;  %v4087_v11 = vsel %vm4086_vm15, %v4084_v6, -inf }
0x2136   :  { %4088 = vmax.xlane.f32.xlu0 %v4087_v11 }
0x2137   :  { %v11294_v7 = vpop.f32.mrb[40].mxu1 }
0x2138   :  { %v4278_v37 = vpop.f32.mrb[41].mxu1  ;;  %v4288_v48 = vmul.f32 0.35355338, %v11294_v7 }
0x2139   :  { %v4287_v13 = vmul.f32 0.35355338, %v4278_v37 }
0x213a   :  { %v4290_v19 = vadd.f32 %v4288_v48, %v14019_v3 }
0x213b   :  { %v4289_v14 = vadd.f32 %v4287_v13, %v14022_v4 }
0x213c   :  { %v4294_v23 = vsel %vm4086_vm15, %v4290_v19, -inf }
0x213d   :  { %v4291_v16 = vsel %vm4086_vm15, %v4289_v14, -inf }
0x213e   :  { %4292 = vmax.xlane.f32.xlu0 %v4291_v16 }
0x213f   :  { %v11318_v20 = vpop.f32.mrb[42].mxu1 }
0x2140   :  { %v4644_v21 = vpop.f32.mrb[43].mxu1  ;;  %v4654_v55 = vmul.f32 0.35355338, %v11318_v20 }
0x2141   :  { %v4653_v56 = vmul.f32 0.35355338, %v4644_v21 }
0x2142   :  { %4295 = vmax.xlane.f32.xlu0 %v4294_v23  ;;  %v4656_v58 = vadd.f32 %v4654_v55, %v14019_v3 }
0x2143   :  { %v4655_v57 = vadd.f32 %v4653_v56, %v14022_v4 }
0x2144   :  { %v4660_v60 = vsel %vm4086_vm15, %v4656_v58, -inf }
0x2145   :  { %v4657_v59 = vsel %vm4086_vm15, %v4655_v57, -inf }
0x21c2   :  { %v4092_v26 = vpop.xlane.xlu1 %4091 }
0x21c3   :  { %v4094_v27 = vsub.f32 %v4085_v0, %v4092_v26  ;;  %v4089_v28 = vpop.xlane.xlu0 %4088 }
0x21c4   :  { %v4093_v61 = vsub.f32 %v4084_v6, %v4089_v28 }
0x21c5   :  { %v4097_v30 = vmul.f32 1.442695, %v4094_v27 }
0x21c6   :  { %v4095_v32 = vmul.f32 1.442695, %v4093_v61 }
0x21c7   :  { %12812 = vpow2.f32 %v4097_v30 }
0x21c8   :  { %12814 = vpow2.f32 %v4095_v32 }
0x21cb   :  { %v4293_v22 = vpop.xlane.xlu0 %4292 }
0x21cc   :  { %v4297_v33 = vsub.f32 %v4289_v14, %v4293_v22 }
0x21ce   :  { %v4299_v35 = vmul.f32 1.442695, %v4297_v33 }
0x21cf   :  { %v4296_v36 = vpop.xlane.xlu0 %4295 }
0x21d0   :  { %12816 = vpow2.f32 %v4299_v35  ;;  %v4298_v40 = vsub.f32 %v4290_v19, %v4296_v36 }
0x21d1   :  { %v12813_v45 = vpop.eup %12812 }
0x21d2   :  { %v12815_v46 = vpop.eup %12814  ;;  %v4301_v8 = vmul.f32 1.442695, %v4298_v40  ;;  %v4102_v47 = vsel %vm4086_vm15, %v12813_v45, 0.0 }
0x21d3   :  { %4103 = vadd.xlane.f32.xlu0 %v4102_v47  ;;  %v4099_v49 = vsel %vm4086_vm15, %v12815_v46, 0.0 }
0x21d4   :  { %12818 = vpow2.f32 %v4301_v8  ;;  %4100 = vadd.xlane.f32.xlu1 %v4099_v49  ;;  %v3990_v49 = vld [vmem:[%s14782_s27 + $0x8] sm:$0xff] }
0x21da   :  { %v12817_v25 = vpop.eup %12816 }
0x21db   :  { %v4303_v24 = vsel %vm4086_vm15, %v12817_v25, 0.0 }
0x21dc   :  { %4304 = vadd.xlane.f32.xlu1 %v4303_v24  ;;  %v3686_v24 = vadd.f32 %v13966_v50, %v13875_v63 }
0x21de   :  { %v12819_v52 = vpop.eup %12818 }
0x21df   :  { %v4306_v54 = vsel %vm4086_vm15, %v12819_v52, 0.0 }
0x21e0   :  { %4307 = vadd.xlane.f32.xlu0 %v4306_v54 }
0x21ed   :  { %12586 = vrot.lane.b32.xlu1 %v13984_v44, %s13130_s3 }
0x21f1   :  { %12596 = vrot.lane.b32.xlu1 %v13984_v44, %s14732_s4 }
0x21f5   :  { %4849 = vrot.lane.b32.xlu1 %v13978_v41, %s14730_s28 }
0x21f6   :  { %12591 = vrot.lane.b32.xlu0 %v13984_v44, %s13132_s8 }
0x21fa   :  { %4851 = vrot.lane.b32.xlu0 %v13976_v39, %s14730_s28 }
0x2219   :  { %4658 = vmax.xlane.f32.xlu1 %v4657_v59  ;;  %4661 = vmax.xlane.f32.xlu0 %v4660_v60 }
0x2260   :  { %v4104_v41 = vpop.xlane.xlu0 %4103 }
0x2261   :  { %v4101_v1 = vpop.xlane.xlu1 %4100 }
0x2262   :  { %12820 = vrcp.f32 %v4101_v1 }
0x2263   :  { %12822 = vrcp.f32 %v4104_v41 }
0x2269   :  { %v4305_v2 = vpop.xlane.xlu1 %4304 }
0x226a   :  { %12824 = vrcp.f32 %v4305_v2 }
0x226c   :  { %v12821_v43 = vpop.eup %12820 }
0x226d   :  { %v12587_v39 = vpop.permute.xlu1 %12586  ;;  %v4308_v42 = vpop.xlane.xlu0 %4307  ;;  %v4107_v5 = vmul.f32 %v12821_v43, %v12815_v46 }
0x226e   :  { %v12589_v0 = vunpack.i.h.bf16 %v12587_v39  ;;  %v12588_v6 = vunpack.i.l.bf16 %v12587_v39  ;;  %12826 = vrcp.f32 %v4308_v42  ;;  %v12823_v11 = vpop.eup %12822 }
0x226f   :  { %11285 = vmatprep.mubr.msk.f32.mxu0 %vm4086_vm15, %v4107_v5  ;;  %v4108_v21 = vmul.f32 %v12823_v11, %v12813_v45 }
0x2270   :  { %v12062_v10 = vpack.c.bf16 %v12589_v0, %v12588_v6 }
0x2271   :  { %v12597_v7 = vpop.permute.xlu1 %12596  ;;  %v12592_v37 = vpop.permute.xlu0 %12591 }
0x2272   :  { %v12599_v48 = vunpack.i.h.bf16 %v12597_v7  ;;  %v12598_v13 = vunpack.i.l.bf16 %v12597_v7  ;;  %v12594_v14 = vunpack.i.h.bf16 %v12592_v37  ;;  %v12593_v16 = vunpack.i.l.bf16 %v12592_v37  ;;  %12063 = vmatprep.subr.bf16.mxu0 %v12062_v10 }
0x2273   :  { %12065 = vmatpush3.bf16.msra.mxu0 %v12062_v10 }
0x2274   :  { %v12825_v19 = vpop.eup %12824  ;;  %v12086_v20 = vpack.c.bf16 %v12599_v48, %v12598_v13  ;;  %v12072_v23 = vpack.c.bf16 %v12594_v14, %v12593_v16  ;;  %v3991_v48 = vld [vmem:[%s14782_s27 + $0x10] sm:$0xff] }
0x2275   :  { %v4850_v26 = vpop.permute.xlu1 %4849  ;;  %v4311_v27 = vmul.f32 %v12825_v19, %v12817_v25  ;;  %v4852_v30 = vpop.permute.xlu0 %4851  ;;  %v3989_v25 = vld [vmem:[%s14782_s27] sm:$0xff] }
0x2276   :  { %11286 = vmatmul.mubr.msk.f32.vlgmr.msra.gmra.mrb[20].mxu0 %vm4086_vm15, %v4108_v21  ;;  %12073 = vmatprep.subr.bf16.mxu0 %v12072_v23 }
0x2277   :  { %12088 = vmatprep.subr.msk.bf16.mxu1 %vm13556_vm6, %v12086_v20  ;;  %11335 = vmatprep.mubr.msk.f32.mxu1 %vm722_vm5, %v4850_v26 }
0x2278   :  { %v12827_v28 = vpop.eup %12826  ;;  %12075 = vmatpush3.bf16.msra.mxu0 %v12072_v23  ;;  %11299 = vmatprep.mubr.msk.f32.mxu0 %vm4086_vm15, %v4311_v27 }
0x2279   :  { %12091 = vmatpush3.bf16.xpose.msk.msra.mxu1 %vm13556_vm6, %v12086_v20  ;;  %v4312_v61 = vmul.f32 %v12827_v28, %v12819_v52  ;;  %11302 = vmatprep.subr.mxu0 %v3990_v49  ;;  %v14069_v52 = vadd.f32 %v13963_v34, %v3686_v24 }
0x227b   :  { %11300 = vmatmul.mubr.msk.f32.vlgmr.msra.gmra.mrb[22].mxu0 %vm4086_vm15, %v4312_v61  ;;  %v3700_v54 = vsel %vm575_vm3, %v14069_v52, 0.0  ;;  %v3703_v61 = vsel %vm579_vm4, %v13969_v12, 0.0 }
0x227c   :  { %11303 = vmatpush3.msra.mxu0 %v3990_v49 }
0x227d   :  { %11307 = vmatprep.subr.mxu0 %v3989_v25 }
0x2280   :  { %11336 = vmatmul.mubr.msk.f32.vlgmr.msra.gmra.mrb[44].mxu1 %vm722_vm5, %v4852_v30 }
0x22a6   :  { %v4659_v32 = vpop.xlane.xlu1 %4658  ;;  %v4662_v22 = vpop.xlane.xlu0 %4661 }
0x22a7   :  { %v4663_v33 = vsub.f32 %v4655_v57, %v4659_v32  ;;  %v4664_v35 = vsub.f32 %v4656_v58, %v4662_v22 }
0x22a9   :  { %v4665_v36 = vmul.f32 1.442695, %v4663_v33  ;;  %v4667_v40 = vmul.f32 1.442695, %v4664_v35 }
0x22ab   :  { %12828 = vpow2.f32 %v4665_v36 }
0x22ac   :  { %12830 = vpow2.f32 %v4667_v40  ;;  %v3992_v40 = vld [vmem:[%s14782_s27 + $0x18] sm:$0xff] }
0x22b5   :  { %v12829_v45 = vpop.eup %12828 }
0x22b6   :  { %v12831_v46 = vpop.eup %12830  ;;  %v4669_v8 = vsel %vm4086_vm15, %v12829_v45, 0.0 }
0x22b7   :  { %4670 = vadd.xlane.f32.xlu0 %v4669_v8  ;;  %v4672_v47 = vsel %vm4086_vm15, %v12831_v46, 0.0 }
0x22b8   :  { %4673 = vadd.xlane.f32.xlu1 %v4672_v47 }
0x22cd   :  { %12601 = vrot.lane.b32.xlu0 %v13984_v44, %s14729_s2  ;;  %s14798_s2 = sld [smem:[#allocation44_spill]] }
0x22ec   :  { %3701 = vadd.xlane.f32.xlu0 %v3700_v54  ;;  %v10235_v54 = vld [vmem:[%s14783_s0] ss:$0 sm:$0xff] }
0x2344   :  { %v4671_v55 = vpop.xlane.xlu0 %4670 }
0x2345   :  { %v4674_v59 = vpop.xlane.xlu1 %4673  ;;  %12832 = vrcp.f32 %v4671_v55 }
0x2346   :  { %12834 = vrcp.f32 %v4674_v59 }
0x2348   :  { %v12602_v57 = vpop.permute.xlu0 %12601 }
0x2349   :  { %v11287_v56 = vpop.f32.mrb[20].mxu0  ;;  %v12604_v60 = vunpack.i.h.bf16 %v12602_v57  ;;  %v12603_v1 = vunpack.i.l.bf16 %v12602_v57 }
0x234a   :  { %v4187_v58 = vpop.f32.mrb[21].mxu0 }
0x234b   :  { %v12082_v63 = vpack.c.bf16 %v12604_v60, %v12603_v1 }
0x234e   :  { %v11301_v41 = vpop.f32.mrb[22].mxu0 }
0x234f   :  { %v4391_v2 = vpop.f32.mrb[23].mxu0  ;;  %v12833_v42 = vpop.eup %12832 }
0x2350   :  { %11304 = vmatprep.mubr.msk.f32.mxu0 %vm722_vm5, %v4391_v2  ;;  %v12835_v0 = vpop.eup %12834  ;;  %v4677_v11 = vmul.f32 %v12833_v42, %v12829_v45  ;;  %v5284_v42 = vld [vmem:[%s14784_s18 + $0x8] sm:$0xff] }
0x2351   :  { %11305 = vmatmul.mubr.msk.f32.vlgmr.msra.gmra.mrb[24].mxu0 %vm722_vm5, %v11301_v41  ;;  %v4678_v7 = vmul.f32 %v12835_v0, %v12831_v46 }
0x2352   :  { %11308 = vmatpush3.msra.mxu0 %v3989_v25  ;;  %11309 = vmatprep.mubr.msk.f32.mxu0 %vm722_vm5, %v4187_v58 }
0x2353   :  { %v11337_v34 = vpop.f32.mrb[44].mxu1  ;;  %12083 = vmatprep.subr.bf16.mxu0 %v12082_v63 }
0x2354   :  { %v4931_v50 = vpop.f32.mrb[45].mxu1  ;;  %v4941_v43 = vmul.f32 0.35355338, %v11337_v34 }
0x2355   :  { %v4940_v39 = vmul.f32 0.35355338, %v4931_v50 }
0x2356   :  { %v4943_v6 = vadd.f32 %v4941_v43, %v14019_v3 }
0x2357   :  { %v4942_v5 = vadd.f32 %v4940_v39, %v14022_v4  ;;  %v5283_v39 = vld [vmem:[%s14784_s18] sm:$0xff] }
0x2358   :  { %v4947_v37 = vsel %vm4086_vm15, %v4943_v6, -inf  ;;  %v12104_v0 = vpack.c.bf16 %v5284_v42, %v5283_v39  ;;  %v10241_v39 = vld [vmem:[%s14790_s15] ss:$0 sm:$0xff] }
0x2359   :  { %v4944_v10 = vsel %vm4086_vm15, %v4942_v5, -inf  ;;  %11310 = vmatmul.mubr.msk.f32.vlgmr.msra.gmra.mrb[24].mxu0 %vm722_vm5, %v11287_v56 }
0x235a   :  { %4945 = vmax.xlane.f32.xlu1 %v4944_v10  ;;  %12085 = vmatpush3.bf16.msra.mxu0 %v12082_v63 }
0x235b   :  { %11323 = vmatprep.mubr.msk.f32.mxu0 %vm4086_vm15, %v4677_v11  ;;  %11326 = vmatprep.subr.mxu0 %v3991_v48 }
0x235d   :  { %11324 = vmatmul.mubr.msk.f32.vlgmr.msra.gmra.mrb[26].mxu0 %vm4086_vm15, %v4678_v7 }
0x235e   :  { %4948 = vmax.xlane.f32.xlu1 %v4947_v37  ;;  %11327 = vmatpush3.msra.mxu0 %v3991_v48 }
0x2379   :  { %v3702_v25 = vpop.xlane.xlu0 %3701 }
0x237a   :  { %v3706_v56 = vmul.f32 0.03125, %v3702_v25 }
0x237c   :  { %v3708_v1 = vsub.f32 %v14069_v52, %v3706_v56 }
0x237e   :  { %v3710_v34 = vmul.f32 %v3708_v1, %v3708_v1 }
0x2380   :  { %v3712_v50 = vsel %vm575_vm3, %v3710_v34, 0.0 }
0x23e7   :  { %v4946_v4 = vpop.xlane.xlu1 %4945 }
0x23e8   :  { %v4950_v3 = vsub.f32 %v4942_v5, %v4946_v4  ;;  %v5285_v5 = vld [vmem:[%s14784_s18 + $0x10] sm:$0xff] }
0x23ea   :  { %v4952_v16 = vmul.f32 1.442695, %v4950_v3 }
0x23eb   :  { %v4949_v13 = vpop.xlane.xlu1 %4948 }
0x23ec   :  { %v4951_v14 = vsub.f32 %v4943_v6, %v4949_v13  ;;  %v5286_v6 = vld [vmem:[%s14784_s18 + $0x18] sm:$0xff] }
0x23ed   :  { %v12108_v10 = vpack.c.bf16 %v5286_v6, %v5285_v5 }
0x23ee   :  { %v4954_v19 = vmul.f32 1.442695, %v4951_v14 }
0x23f0   :  { %12836 = vpow2.f32 %v4954_v19 }
0x23f1   :  { %12838 = vpow2.f32 %v4952_v16 }
0x23fa   :  { %v12837_v20 = vpop.eup %12836 }
0x23fb   :  { %v4959_v21 = vsel %vm4086_vm15, %v12837_v20, 0.0  ;;  %v12839_v23 = vpop.eup %12838 }
0x23fc   :  { %4960 = vadd.xlane.f32.xlu1 %v4959_v21  ;;  %v4956_v26 = vsel %vm4086_vm15, %v12839_v23, 0.0 }
0x2400   :  { %4957 = vadd.xlane.f32.xlu1 %v4956_v26 }
0x2411   :  { %12606 = vrot.lane.b32.xlu1 %v13984_v44, %s14728_s7  ;;  %s14797_s7 = sld [smem:[#allocation41_spill]] }
0x2430   :  { %v11325_v27 = vpop.f32.mrb[26].mxu0 }
0x2431   :  { %v4757_v28 = vpop.f32.mrb[27].mxu0 }
0x2432   :  { %11328 = vmatprep.mubr.msk.f32.mxu0 %vm722_vm5, %v4757_v28 }
0x2433   :  { %11329 = vmatmul.mubr.msk.f32.vlgmr.msra.gmra.mrb[24].mxu0 %vm722_vm5, %v11325_v27 }
0x2435   :  { %3704 = vadd.xlane.f32.xlu1 %v3703_v61  ;;  %v10192_v61 = vld [vmem:[%s14785_s22] ss:$0 sm:$0xff]  ;;  %s14795_s22 = sld [smem:[#allocation42_spill]] }
0x2489   :  { %v4961_v30 = vpop.xlane.xlu1 %4960 }
0x248a   :  { %12840 = vrcp.f32 %v4961_v30 }
0x248d   :  { %v4958_v32 = vpop.xlane.xlu1 %4957 }
0x248e   :  { %12842 = vrcp.f32 %v4958_v32  ;;  %v10193_v32 = vld [vmem:[%s14786_s23] ss:$0 sm:$0xff]  ;;  %s14796_s23 = sld [smem:[#allocation40_spill]] }
0x2491   :  { %v12607_v22 = vpop.permute.xlu1 %12606 }
0x2492   :  { %v12609_v33 = vunpack.i.h.bf16 %v12607_v22  ;;  %v12608_v35 = vunpack.i.l.bf16 %v12607_v22 }
0x2494   :  { %v12092_v36 = vpack.c.bf16 %v12609_v33, %v12608_v35  ;;  %v12841_v44 = vpop.eup %12840 }
0x2495   :  { %v4965_v8 = vmul.f32 %v12841_v44, %v12837_v20  ;;  %v5191_v44 = vld [vmem:[%s14787_s26] sm:$0xff] }
0x2496   :  { %12093 = vmatprep.subr.bf16.mxu0 %v12092_v36 }
0x2497   :  { %12095 = vmatpush3.bf16.msra.mxu0 %v12092_v36 }
0x2498   :  { %v12843_v45 = vpop.eup %12842  ;;  %11345 = vmatprep.subr.mxu0 %v3992_v40 }
0x2499   :  { %v4964_v46 = vmul.f32 %v12843_v45, %v12839_v23  ;;  %v5192_v45 = vld [vmem:[%s14787_s26 + $0x8] sm:$0xff] }
0x249b   :  { %11342 = vmatprep.mubr.msk.f32.mxu0 %vm4086_vm15, %v4964_v46  ;;  %v5193_v46 = vld [vmem:[%s14787_s26 + $0x10] sm:$0xff] }
0x249c   :  { %11343 = vmatmul.mubr.msk.f32.vlgmr.msra.gmra.mrb[28].mxu0 %vm4086_vm15, %v4965_v8  ;;  %v12096_v8 = vpack.c.bf16 %v5192_v45, %v5191_v44 }
0x249d   :  { %11346 = vmatpush3.msra.mxu0 %v3992_v40 }
0x249e   :  { %12105 = vmatprep.subr.bf16.mxu0 %v12104_v0  ;;  %12097 = vmatprep.subr.bf16.mxu1 %v12096_v8 }
0x249f   :  { %12099 = vmatpush3.bf16.msra.mxu1 %v12096_v8 }
0x24c2   :  { %v3705_v59 = vpop.xlane.xlu1 %3704 }
0x24c3   :  { %v3707_v41 = vmul.f32 0.03125, %v3705_v59 }
0x256f   :  { %v11344_v47 = vpop.f32.mrb[28].mxu0 }
0x2570   :  { %v5044_v49 = vpop.f32.mrb[29].mxu0 }
0x2571   :  { %11347 = vmatprep.mubr.msk.f32.mxu0 %vm722_vm5, %v5044_v49 }
0x2572   :  { %11348 = vmatmul.mubr.msk.f32.vlgmr.msra.gmra.mrb[24].mxu0 %vm722_vm5, %v11344_v47  ;;  %v5194_v47 = vld [vmem:[%s14787_s26 + $0x18] sm:$0xff] }
0x2573   :  { %12107 = vmatpush3.bf16.msra.mxu0 %v12104_v0  ;;  %v12100_v25 = vpack.c.bf16 %v5194_v47, %v5193_v46 }
0x2574   :  { %12109 = vmatprep.subr.bf16.mxu0 %v12108_v10 }
0x2575   :  { %12101 = vmatprep.subr.bf16.mxu1 %v12100_v25 }
0x2576   :  { %12103 = vmatpush3.bf16.msra.mxu1 %v12100_v25 }
0x2577   :  { %12111 = vmatpush3.bf16.msra.mxu0 %v12108_v10 }
0x2645   :  { %v11349_v24 = vpop.f32.mrb[24].mxu0 }
0x2646   :  { %v5125_v55 = vpop.f32.mrb[25].mxu0  ;;  %v5137_v57 = vadd.f32 %v11349_v24, %v13946_v18  ;;  %v3709_v18 = vsub.f32 %v13969_v12, %v3707_v41 }
0x2647   :  { %v5136_v58 = vadd.f32 %v5125_v55, %v13948_v17 }
0x2648   :  { %v14103_v2 = vadd.f32 %v10235_v54, %v5137_v57  ;;  %v3711_v43 = vmul.f32 %v3709_v18, %v3709_v18 }
0x2649   :  { %v14100_v60 = vadd.f32 %v10235_v54, %v5136_v58 }
0x264a   :  { %v5152_v17 = vsel %vm575_vm3, %v14103_v2, 0.0  ;;  %v3715_v52 = vsel %vm579_vm4, %v3711_v43, 0.0 }
0x264b   :  { %v5149_v63 = vsel %vm575_vm3, %v14100_v60, 0.0 }
0x264c   :  { %5150 = vadd.xlane.f32.xlu0 %v5149_v63  ;;  %v10237_v63 = vld [vmem:[%s14789_s11] ss:$0 sm:$0xff] }
0x2650   :  { %5153 = vadd.xlane.f32.xlu0 %v5152_v17 }
0x2654   :  { %3713 = vadd.xlane.f32.xlu0 %v3712_v50 }
0x2658   :  { %3716 = vadd.xlane.f32.xlu0 %v3715_v52 }
0x26d9   :  { %v5151_v12 = vpop.xlane.xlu0 %5150 }
0x26da   :  { %v5155_v11 = vmul.f32 0.03125, %v5151_v12 }
0x26dc   :  { %v5157_v7 = vsub.f32 %v14100_v60, %v5155_v11 }
0x26dd   :  { %v5154_v37 = vpop.xlane.xlu0 %5153 }
0x26de   :  { %v5156_v48 = vmul.f32 0.03125, %v5154_v37  ;;  %v5159_v4 = vmul.f32 %v5157_v7, %v5157_v7 }
0x26e0   :  { %v5158_v3 = vsub.f32 %v14103_v2, %v5156_v48  ;;  %v5161_v13 = vsel %vm575_vm3, %v5159_v4, 0.0 }
0x26e1   :  { %5162 = vadd.xlane.f32.xlu0 %v5161_v13  ;;  %v3714_v14 = vpop.xlane.xlu0 %3713 }
0x26e2   :  { %v3718_v16 = vmul.f32 0.03125, %v3714_v14  ;;  %v5160_v19 = vmul.f32 %v5158_v3, %v5158_v3 }
0x26e4   :  { %v3720_v20 = vadd.f32 1e-05, %v3718_v16  ;;  %v5164_v21 = vsel %vm575_vm3, %v5160_v19, 0.0 }
0x26e5   :  { %5165 = vadd.xlane.f32.xlu1 %v5164_v21  ;;  %v3717_v23 = vpop.xlane.xlu0 %3716 }
0x26e6   :  { %12844 = vrsqrt.f32 %v3720_v20  ;;  %v3719_v26 = vmul.f32 0.03125, %v3717_v23 }
0x26e8   :  { %v3721_v27 = vadd.f32 1e-05, %v3719_v26 }
0x26ea   :  { %12846 = vrsqrt.f32 %v3721_v27 }
0x26f0   :  { %v12845_v28 = vpop.eup %12844 }
0x26f1   :  { %v3724_v30 = vmul.f32 %v12845_v28, %v3708_v1  ;;  %v10236_v1 = vld [vmem:[%s14788_s10] ss:$0 sm:$0xff] }
0x26f3   :  { %v3732_v22 = vmul.f32 %v10192_v61, %v3724_v30  ;;  %v14179_v30 = vld [vmem:[%s14792_s9 + $0x8] sm:$0xff] }
0x26f4   :  { %v12847_v33 = vpop.eup %12846 }
0x26f5   :  { %v3725_v35 = vmul.f32 %v12847_v33, %v3709_v18  ;;  %v14122_v36 = vadd.f32 %v10193_v32, %v3732_v22  ;;  %v14182_v33 = vld [vmem:[%s14792_s9] sm:$0xff] }
0x26f7   :  { %v3733_v40 = vmul.f32 %v10192_v61, %v3725_v35  ;;  %11369 = vmatprep.mubr.msk.f32.mxu0 %vm575_vm3, %v14122_v36 }
0x26f9   :  { %v14130_v49 = vadd.f32 %v10193_v32, %v3733_v40 }
0x26fb   :  { %11370 = vmatmul.mubr.msk.f32.vlgmr.msra.gmra.mrb[30].mxu0 %vm575_vm3, %v14130_v49 }
0x276e   :  { %v5163_v24 = vpop.xlane.xlu0 %5162 }
0x276f   :  { %v5167_v54 = vmul.f32 0.03125, %v5163_v24 }
0x2771   :  { %v5169_v55 = vadd.f32 1e-05, %v5167_v54 }
0x2772   :  { %v5166_v56 = vpop.xlane.xlu1 %5165 }
0x2773   :  { %12848 = vrsqrt.f32 %v5169_v55  ;;  %v5168_v57 = vmul.f32 0.03125, %v5166_v56 }
0x2775   :  { %v5170_v58 = vadd.f32 1e-05, %v5168_v57 }
0x2777   :  { %12850 = vrsqrt.f32 %v5170_v58 }
0x277d   :  { %v12849_v59 = vpop.eup %12848 }
0x277e   :  { %v5173_v41 = vmul.f32 %v12849_v59, %v5157_v7 }
0x2780   :  { %v5181_v18 = vmul.f32 %v10236_v1, %v5173_v41 }
0x2781   :  { %v12851_v17 = vpop.eup %12850 }
0x2782   :  { %v5174_v34 = vmul.f32 %v12851_v17, %v5158_v3  ;;  %v5189_v50 = vadd.f32 %v10237_v63, %v5181_v18  ;;  %v10238_v3 = vld [vmem:[%s14791_s16] ss:$0 sm:$0xff] }
0x2784   :  { %v5182_v43 = vmul.f32 %v10236_v1, %v5174_v34  ;;  %11358 = vmatprep.mubr.msk.f32.mxu1 %vm575_vm3, %v5189_v50 }
0x2786   :  { %v5190_v52 = vadd.f32 %v10237_v63, %v5182_v43 }
0x2788   :  { %11359 = vmatmul.mubr.msk.f32.vlgmr.msra.gmra.mrb[46].mxu1 %vm575_vm3, %v5190_v52 }
0x27ce   :  { %v11371_v42 = vpop.f32.mrb[30].mxu0 }
0x27cf   :  { %v5372_v5 = vadd.f32 %v11371_v42, %v10241_v39  ;;  %v5366_v0 = vpop.f32.mrb[31].mxu0 }
0x27d0   :  { %v5367_v6 = vadd.f32 %v10241_v39, %v5366_v0 }
0x27d2   :  { %v14139_v10 = vpack.i.bf16 %v5372_v5, %v5367_v6  ;;  %v12112_v12 = vpack.c.bf16 %v5372_v5, %v5367_v6 }
0x27d4   :  { %12611 = vrot.lane.b32.xlu0 %v14139_v10, %s13129_s29  ;;  %12114 = vmatprep.subr.msk.bf16.mxu1 %vm13556_vm6, %v12112_v12 }
0x27d5   :  { %12117 = vmatpush3.bf16.xpose.msk.msra.mxu1 %vm13556_vm6, %v12112_v12 }
0x27d8   :  { %12616 = vrot.lane.b32.xlu0 %v14139_v10, %s13133_s14 }
0x2846   :  { %v12612_v11 = vpop.permute.xlu0 %12611 }
0x2847   :  { %v12614_v7 = vunpack.i.h.bf16 %v12612_v11  ;;  %v12613_v37 = vunpack.i.l.bf16 %v12612_v11 }
0x2849   :  { %v12124_v48 = vpack.c.bf16 %v12614_v7, %v12613_v37 }
0x284a   :  { %v12617_v4 = vpop.permute.xlu0 %12616 }
0x284b   :  { %12126 = vmatprep.subr.msk.bf16.mxu1 %vm13556_vm6, %v12124_v48  ;;  %v12619_v14 = vunpack.i.h.bf16 %v12617_v4  ;;  %v12618_v16 = vunpack.i.l.bf16 %v12617_v4 }
0x284d   :  { %v12136_v23 = vpack.c.bf16 %v12619_v14, %v12618_v16 }
0x285b   :  { %v11360_v13 = vpop.f32.mrb[46].mxu1 }
0x285c   :  { %v14152_v19 = vadd.f32 %v11360_v13, %v10238_v3  ;;  %v5274_v20 = vpop.f32.mrb[47].mxu1 }
0x285d   :  { %v14154_v21 = vadd.f32 %v10238_v3, %v5274_v20 }
0x285e   :  { %5949 = vrot.lane.b32.xlu0 %v14152_v19, %s13133_s14 }
0x285f   :  { %5580 = vrot.lane.b32.xlu1 %v14154_v21, %s13129_s29  ;;  %11376 = vmatprep.mubr.msk.f32.mxu1 %vm722_vm5, %v14154_v21 }
0x2860   :  { %11377 = vmatmul.mubr.msk.f32.vlgmr.msra.gmra.mrb[48].mxu1 %vm722_vm5, %v14152_v19 }
0x2861   :  { %12129 = vmatpush3.bf16.xpose.msk.msra.mxu1 %vm13556_vm6, %v12124_v48 }
0x2862   :  { %12138 = vmatprep.subr.msk.bf16.mxu1 %vm13556_vm6, %v12136_v23 }
0x2863   :  { %5582 = vrot.lane.b32.xlu1 %v14152_v19, %s13129_s29 }
0x2867   :  { %5947 = vrot.lane.b32.xlu1 %v14154_v21, %s13133_s14 }
0x28d0   :  { %v5950_v61 = vpop.permute.xlu0 %5949 }
0x28d1   :  { %v5581_v26 = vpop.permute.xlu1 %5580 }
0x28d2   :  { %11390 = vmatprep.mubr.msk.f32.mxu1 %vm722_vm5, %v5581_v26 }
0x28d5   :  { %v5583_v27 = vpop.permute.xlu1 %5582 }
0x28d6   :  { %11391 = vmatmul.mubr.msk.f32.vlgmr.msra.gmra.mrb[50].mxu1 %vm722_vm5, %v5583_v27 }
0x28d7   :  { %12141 = vmatpush3.bf16.xpose.msk.msra.mxu1 %vm13556_vm6, %v12136_v23 }
0x28d9   :  { %v5948_v28 = vpop.permute.xlu1 %5947 }
0x28da   :  { %11414 = vmatprep.mubr.msk.f32.mxu1 %vm722_vm5, %v5948_v28 }
0x28de   :  { %11415 = vmatmul.mubr.msk.f32.vlgmr.msra.gmra.mrb[52].mxu1 %vm722_vm5, %v5950_v61 }
0x2933   :  { %v11378_v32 = vpop.f32.mrb[48].mxu1 }
0x2934   :  { %v5467_v22 = vmul.f32 0.35355338, %v11378_v32  ;;  %v5457_v35 = vpop.f32.mrb[49].mxu1 }
0x2935   :  { %v5466_v40 = vmul.f32 0.35355338, %v5457_v35 }
0x2936   :  { %v5469_v44 = vadd.f32 %v5467_v22, %v14179_v30 }
0x2937   :  { %v5468_v45 = vadd.f32 %v5466_v40, %v14182_v33 }
0x2938   :  { %v5473_v46 = vsel %vm810_vm7, %v5469_v44, -inf }
0x2939   :  { %5474 = vmax.xlane.f32.xlu0 %v5473_v46  ;;  %v5470_v8 = vsel %vm810_vm7, %v5468_v45, -inf }
0x293a   :  { %5471 = vmax.xlane.f32.xlu1 %v5470_v8 }
0x29a9   :  { %v11392_v47 = vpop.f32.mrb[50].mxu1 }
0x29aa   :  { %v5672_v25 = vmul.f32 0.35355338, %v11392_v47  ;;  %v5662_v24 = vpop.f32.mrb[51].mxu1 }
0x29ab   :  { %v5671_v54 = vmul.f32 0.35355338, %v5662_v24 }
0x29ac   :  { %v5674_v55 = vadd.f32 %v5672_v25, %v14179_v30 }
0x29ad   :  { %v5673_v56 = vadd.f32 %v5671_v54, %v14182_v33 }
0x29ae   :  { %v5678_v57 = vsel %vm810_vm7, %v5674_v55, -inf }
0x29af   :  { %5679 = vmax.xlane.f32.xlu1 %v5678_v57  ;;  %v5675_v58 = vsel %vm810_vm7, %v5673_v56, -inf }
0x29b0   :  { %5676 = vmax.xlane.f32.xlu0 %v5675_v58 }
0x29b1   :  { %v11416_v59 = vpop.f32.mrb[52].mxu1 }
0x29b2   :  { %v6029_v1 = vpop.f32.mrb[53].mxu1  ;;  %v6039_v23 = vmul.f32 0.35355338, %v11416_v59 }
0x29b3   :  { %v6038_v20 = vmul.f32 0.35355338, %v6029_v1 }
0x29b4   :  { %v6041_v27 = vadd.f32 %v6039_v23, %v14179_v30 }
0x29b5   :  { %v6040_v26 = vadd.f32 %v6038_v20, %v14182_v33 }
0x29b6   :  { %v6045_v61 = vsel %vm810_vm7, %v6041_v27, -inf }
0x29b7   :  { %v6042_v28 = vsel %vm810_vm7, %v6040_v26, -inf }
0x29c6   :  { %v5475_v41 = vpop.xlane.xlu0 %5474 }
0x29c7   :  { %v5477_v63 = vsub.f32 %v5469_v44, %v5475_v41  ;;  %v5472_v18 = vpop.xlane.xlu1 %5471 }
0x29c8   :  { %v5476_v17 = vsub.f32 %v5468_v45, %v5472_v18 }
0x29c9   :  { %v5480_v34 = vmul.f32 1.442695, %v5477_v63 }
0x29ca   :  { %v5478_v50 = vmul.f32 1.442695, %v5476_v17 }
0x29cb   :  { %12852 = vpow2.f32 %v5480_v34 }
0x29cc   :  { %12854 = vpow2.f32 %v5478_v50 }
0x29d5   :  { %v14192_v43 = vpop.eup %12852 }
0x29d6   :  { %v12855_v52 = vpop.eup %12854  ;;  %v5485_v39 = vsel %vm810_vm7, %v14192_v43, 0.0 }
0x29d7   :  { %5486 = vadd.xlane.f32.xlu1 %v5485_v39  ;;  %v5482_v42 = vsel %vm810_vm7, %v12855_v52, 0.0 }
0x29d8   :  { %5483 = vadd.xlane.f32.xlu0 %v5482_v42 }
0x2a3c   :  { %v5680_v5 = vpop.xlane.xlu1 %5679 }
0x2a3d   :  { %v5682_v0 = vsub.f32 %v5674_v55, %v5680_v5  ;;  %v5677_v6 = vpop.xlane.xlu0 %5676 }
0x2a3e   :  { %v5681_v12 = vsub.f32 %v5673_v56, %v5677_v6  ;;  %v5376_v6 = vld [vmem:[%s14793_s19 + $0x8] sm:$0xff] }
0x2a3f   :  { %v5685_v11 = vmul.f32 1.442695, %v5682_v0 }
0x2a40   :  { %v5683_v7 = vmul.f32 1.442695, %v5681_v12  ;;  %v5375_v12 = vld [vmem:[%s14793_s19] sm:$0xff] }
0x2a41   :  { %12856 = vpow2.f32 %v5685_v11 }
0x2a42   :  { %12858 = vpow2.f32 %v5683_v7 }
0x2a4b   :  { %v12857_v37 = vpop.eup %12856 }
0x2a4c   :  { %v12859_v48 = vpop.eup %12858  ;;  %v5690_v4 = vsel %vm810_vm7, %v12857_v37, 0.0 }
0x2a4d   :  { %5691 = vadd.xlane.f32.xlu1 %v5690_v4  ;;  %v5687_v3 = vsel %vm810_vm7, %v12859_v48, 0.0 }
0x2a4e   :  { %5688 = vadd.xlane.f32.xlu0 %v5687_v3 }
0x2a5e   :  { %12626 = vrot.lane.b32.xlu1 %v14139_v10, %s13128_s17 }
0x2a62   :  { %12631 = vrot.lane.b32.xlu1 %v14139_v10, %s14730_s28 }
0x2a64   :  { %12621 = vrot.lane.b32.xlu0 %v14139_v10, %s13127_s5 }
0x2a65   :  { %v5484_v13 = vpop.xlane.xlu0 %5483 }
0x2a66   :  { %12860 = vrcp.f32 %v5484_v13  ;;  %6237 = vrot.lane.b32.xlu1 %v14152_v19, %s14730_s28  ;;  %v5487_v19 = vpop.xlane.xlu1 %5486 }
0x2a67   :  { %12862 = vrcp.f32 %v5487_v19 }
0x2a68   :  { %6235 = vrot.lane.b32.xlu0 %v14154_v21, %s14730_s28  ;;  %s14799_s28 = sld [smem:[#allocation43_spill]] }
0x2a70   :  { %v12861_v14 = vpop.eup %12860 }
0x2a71   :  { %v5490_v16 = vmul.f32 %v12861_v14, %v12855_v52  ;;  %v12863_v25 = vpop.eup %12862 }
0x2a72   :  { %v5491_v58 = vmul.f32 %v12863_v25, %v14192_v43 }
0x2a73   :  { %11383 = vmatprep.mubr.msk.f32.mxu0 %vm810_vm7, %v5490_v16 }
0x2a87   :  { %6043 = vmax.xlane.f32.xlu0 %v6042_v28 }
0x2a8a   :  { %6046 = vmax.xlane.f32.xlu1 %v6045_v61 }
0x2a9b   :  { %12636 = vrot.lane.b32.xlu1 %v14139_v10, %s13136_s1 }
0x2a9f   :  { %12641 = vrot.lane.b32.xlu1 %v14139_v10, %s14732_s4  ;;  %s14800_s4 = sld [smem:[#allocation45_spill]] }
0x2ada   :  { %v5692_v21 = vpop.xlane.xlu1 %5691 }
0x2adb   :  { %v5689_v32 = vpop.xlane.xlu0 %5688 }
0x2adc   :  { %12864 = vrcp.f32 %v5689_v32 }
0x2add   :  { %12866 = vrcp.f32 %v5692_v21 }
0x2ade   :  { %v12627_v22 = vpop.permute.xlu1 %12626 }
0x2adf   :  { %v12622_v35 = vpop.permute.xlu0 %12621  ;;  %v12629_v40 = vunpack.i.h.bf16 %v12627_v22  ;;  %v12628_v44 = vunpack.i.l.bf16 %v12627_v22 }
0x2ae0   :  { %v12624_v45 = vunpack.i.h.bf16 %v12622_v35  ;;  %v12623_v46 = vunpack.i.l.bf16 %v12622_v35 }
0x2ae1   :  { %v12130_v56 = vpack.c.bf16 %v12629_v40, %v12628_v44  ;;  %v5377_v44 = vld [vmem:[%s14793_s19 + $0x10] sm:$0xff] }
0x2ae2   :  { %v12118_v8 = vpack.c.bf16 %v12624_v45, %v12623_v46  ;;  %v12632_v47 = vpop.permute.xlu1 %12631 }
0x2ae3   :  { %v12634_v24 = vunpack.i.h.bf16 %v12632_v47  ;;  %v12633_v54 = vunpack.i.l.bf16 %v12632_v47  ;;  %v6236_v55 = vpop.permute.xlu0 %6235 }
0x2ae4   :  { %12120 = vmatprep.subr.msk.bf16.mxu0 %vm13580_vm11, %v12118_v8  ;;  %11433 = vmatprep.mubr.msk.f32.mxu1 %vm722_vm5, %v6236_v55 }
0x2ae5   :  { %v12148_v10 = vpack.c.bf16 %v12634_v24, %v12633_v54  ;;  %12123 = vmatpush3.bf16.msk.msra.mxu0 %vm13580_vm11, %v12118_v8 }
0x2ae6   :  { %v12865_v57 = vpop.eup %12864  ;;  %12132 = vmatprep.subr.msk.bf16.mxu0 %vm13580_vm11, %v12130_v56  ;;  %v6238_v63 = vpop.permute.xlu1 %6237 }
0x2ae7   :  { %v12867_v59 = vpop.eup %12866  ;;  %12150 = vmatprep.subr.msk.bf16.mxu1 %vm13556_vm6, %v12148_v10  ;;  %v5695_v1 = vmul.f32 %v12865_v57, %v12859_v48 }
0x2ae8   :  { %11384 = vmatmul.mubr.msk.f32.vlgmr.msra.gmra.mrb[32].mxu0 %vm810_vm7, %v5491_v58  ;;  %12153 = vmatpush3.bf16.xpose.msk.msra.mxu1 %vm13556_vm6, %v12148_v10  ;;  %v5696_v41 = vmul.f32 %v12867_v59, %v12857_v37 }
0x2ae9   :  { %12135 = vmatpush3.bf16.msk.msra.mxu0 %vm13580_vm11, %v12130_v56  ;;  %11397 = vmatprep.mubr.msk.f32.mxu0 %vm810_vm7, %v5695_v1 }
0x2aea   :  { %11400 = vmatprep.subr.mxu0 %v5376_v6 }
0x2aec   :  { %11398 = vmatmul.mubr.msk.f32.vlgmr.msra.gmra.mrb[34].mxu0 %vm810_vm7, %v5696_v41 }
0x2aed   :  { %11401 = vmatpush3.msra.mxu0 %v5376_v6 }
0x2aee   :  { %11405 = vmatprep.subr.mxu0 %v5375_v12 }
0x2aef   :  { %11434 = vmatmul.mubr.msk.f32.vlgmr.msra.gmra.mrb[54].mxu1 %vm722_vm5, %v6238_v63  ;;  %v5378_v63 = vld [vmem:[%s14793_s19 + $0x18] sm:$0xff] }
0x2b14   :  { %v6044_v18 = vpop.xlane.xlu0 %6043 }
0x2b15   :  { %v6048_v17 = vsub.f32 %v6040_v26, %v6044_v18 }
0x2b17   :  { %v6050_v34 = vmul.f32 1.442695, %v6048_v17  ;;  %v6047_v50 = vpop.xlane.xlu1 %6046 }
0x2b18   :  { %v6049_v43 = vsub.f32 %v6041_v27, %v6047_v50 }
0x2b19   :  { %12868 = vpow2.f32 %v6050_v34 }
0x2b1a   :  { %v6052_v52 = vmul.f32 1.442695, %v6049_v43 }
0x2b1b   :  { %v12637_v7 = vpop.permute.xlu1 %12636 }
0x2b1c   :  { %12870 = vpow2.f32 %v6052_v52  ;;  %v12639_v3 = vunpack.i.h.bf16 %v12637_v7  ;;  %v12638_v13 = vunpack.i.l.bf16 %v12637_v7 }
0x2b1e   :  { %v12142_v20 = vpack.c.bf16 %v12639_v3, %v12638_v13 }
0x2b1f   :  { %v12642_v21 = vpop.permute.xlu1 %12641 }
0x2b20   :  { %v12644_v45 = vunpack.i.h.bf16 %v12642_v21  ;;  %v12643_v46 = vunpack.i.l.bf16 %v12642_v21  ;;  %v6580_v21 = vld [vmem:[%s14795_s22 + $0x10] sm:$0xff] }
0x2b23   :  { %v12869_v39 = vpop.eup %12868 }
0x2b24   :  { %v6054_v42 = vsel %vm810_vm7, %v12869_v39, 0.0 }
0x2b25   :  { %6055 = vadd.xlane.f32.xlu0 %v6054_v42 }
0x2b26   :  { %v12871_v5 = vpop.eup %12870 }
0x2b27   :  { %v6057_v0 = vsel %vm810_vm7, %v12871_v5, 0.0 }
0x2b29   :  { %6058 = vadd.xlane.f32.xlu0 %v6057_v0  ;;  %v10280_v0 = vld [vmem:[%s14794_s25] ss:$0 sm:$0xff] }
0x2bb2   :  { %v6056_v11 = vpop.xlane.xlu0 %6055 }
0x2bb3   :  { %12872 = vrcp.f32 %v6056_v11 }
0x2bb6   :  { %v6059_v48 = vpop.xlane.xlu0 %6058 }
0x2bb7   :  { %12874 = vrcp.f32 %v6059_v48 }
0x2bbb   :  { %v11385_v37 = vpop.f32.mrb[32].mxu0 }
0x2bbc   :  { %v5571_v4 = vpop.f32.mrb[33].mxu0 }
0x2bbd   :  { %v12873_v61 = vpop.eup %12872 }
0x2bbe   :  { %v6062_v40 = vmul.f32 %v12873_v61, %v12869_v39  ;;  %v6579_v61 = vld [vmem:[%s14795_s22 + $0x8] sm:$0xff] }
0x2bbf   :  { %v11399_v14 = vpop.f32.mrb[34].mxu0 }
0x2bc0   :  { %v5776_v16 = vpop.f32.mrb[35].mxu0 }
0x2bc1   :  { %11402 = vmatprep.mubr.msk.f32.mxu0 %vm722_vm5, %v5776_v16  ;;  %v12875_v35 = vpop.eup %12874 }
0x2bc2   :  { %11403 = vmatmul.mubr.msk.f32.vlgmr.msra.gmra.mrb[36].mxu0 %vm722_vm5, %v11399_v14  ;;  %v11435_v23 = vpop.f32.mrb[54].mxu1  ;;  %v6063_v8 = vmul.f32 %v12875_v35, %v12871_v5 }
0x2bc3   :  { %11406 = vmatpush3.msra.mxu0 %v5375_v12  ;;  %11407 = vmatprep.mubr.msk.f32.mxu0 %vm722_vm5, %v5571_v4  ;;  %v6317_v26 = vpop.f32.mrb[55].mxu1  ;;  %v6327_v27 = vmul.f32 0.35355338, %v11435_v23 }
0x2bc4   :  { %12144 = vmatprep.subr.msk.bf16.mxu0 %vm13580_vm11, %v12142_v20  ;;  %v6326_v28 = vmul.f32 0.35355338, %v6317_v26 }
0x2bc5   :  { %v6329_v32 = vadd.f32 %v6327_v27, %v14179_v30  ;;  %v12154_v30 = vpack.c.bf16 %v12644_v45, %v12643_v46 }
0x2bc6   :  { %v6328_v19 = vadd.f32 %v6326_v28, %v14182_v33  ;;  %v6578_v28 = vld [vmem:[%s14795_s22] sm:$0xff] }
0x2bc7   :  { %v6333_v33 = vsel %vm810_vm7, %v6329_v32, -inf }
0x2bc8   :  { %v6330_v22 = vsel %vm810_vm7, %v6328_v19, -inf }
0x2bc9   :  { %6331 = vmax.xlane.f32.xlu0 %v6330_v22 }
0x2bca   :  { %11408 = vmatmul.mubr.msk.f32.vlgmr.msra.gmra.mrb[36].mxu0 %vm722_vm5, %v11385_v37 }
0x2bcb   :  { %12147 = vmatpush3.bf16.msk.msra.mxu0 %vm13580_vm11, %v12142_v20  ;;  %11421 = vmatprep.mubr.msk.f32.mxu0 %vm810_vm7, %v6062_v40 }
0x2bcc   :  { %11424 = vmatprep.subr.mxu0 %v5377_v44 }
0x2bcd   :  { %6334 = vmax.xlane.f32.xlu0 %v6333_v33 }
0x2bce   :  { %11422 = vmatmul.mubr.msk.f32.vlgmr.msra.gmra.mrb[38].mxu0 %vm810_vm7, %v6063_v8 }
0x2bcf   :  { %11425 = vmatpush3.msra.mxu0 %v5377_v44 }
0x2bd0   :  { %12156 = vmatprep.subr.msk.bf16.mxu0 %vm13580_vm11, %v12154_v30 }
0x2c56   :  { %v6332_v47 = vpop.xlane.xlu0 %6331 }
0x2c57   :  { %v6336_v25 = vsub.f32 %v6328_v19, %v6332_v47  ;;  %v12160_v19 = vpack.c.bf16 %v6579_v61, %v6578_v28 }
0x2c59   :  { %v6338_v24 = vmul.f32 1.442695, %v6336_v25  ;;  %12161 = vmatprep.subr.bf16.mxu1 %v12160_v19  ;;  %v10282_v25 = vld [vmem:[%s14797_s7] ss:$0 sm:$0xff] }
0x2c5a   :  { %v6335_v54 = vpop.xlane.xlu0 %6334  ;;  %12163 = vmatpush3.bf16.msra.mxu1 %v12160_v19 }
0x2c5b   :  { %12876 = vpow2.f32 %v6338_v24  ;;  %v6337_v55 = vsub.f32 %v6329_v32, %v6335_v54  ;;  %v6581_v32 = vld [vmem:[%s14795_s22 + $0x18] sm:$0xff] }
0x2c5c   :  { %v12164_v22 = vpack.c.bf16 %v6581_v32, %v6580_v21 }
0x2c5d   :  { %v6340_v56 = vmul.f32 1.442695, %v6337_v55 }
0x2c5e   :  { %12165 = vmatprep.subr.bf16.mxu1 %v12164_v22 }
0x2c5f   :  { %12878 = vpow2.f32 %v6340_v56  ;;  %12167 = vmatpush3.bf16.msra.mxu1 %v12164_v22 }
0x2c65   :  { %v12877_v10 = vpop.eup %12876 }
0x2c66   :  { %v6342_v57 = vsel %vm810_vm7, %v12877_v10, 0.0 }
0x2c67   :  { %6343 = vadd.xlane.f32.xlu0 %v6342_v57 }
0x2c69   :  { %v12879_v58 = vpop.eup %12878 }
0x2c6a   :  { %v6345_v59 = vsel %vm810_vm7, %v12879_v58, 0.0 }
0x2c6b   :  { %6346 = vadd.xlane.f32.xlu0 %v6345_v59  ;;  %v6689_v59 = vld [vmem:[%s14798_s2 + $0x8] sm:$0xff] }
0x2ca1   :  { %v11423_v1 = vpop.f32.mrb[38].mxu0 }
0x2ca2   :  { %v6143_v41 = vpop.f32.mrb[39].mxu0 }
0x2ca3   :  { %11426 = vmatprep.mubr.msk.f32.mxu0 %vm722_vm5, %v6143_v41  ;;  %v6690_v41 = vld [vmem:[%s14798_s2 + $0x10] sm:$0xff] }
0x2ca4   :  { %11427 = vmatmul.mubr.msk.f32.vlgmr.msra.gmra.mrb[36].mxu0 %vm722_vm5, %v11423_v1 }
0x2ca5   :  { %12159 = vmatpush3.bf16.msk.msra.mxu0 %vm13580_vm11, %v12154_v30  ;;  %v10281_v30 = vld [vmem:[%s14796_s23] ss:$0 sm:$0xff] }
0x2ca6   :  { %11443 = vmatprep.subr.mxu0 %v5378_v63 }
0x2cf4   :  { %v6344_v18 = vpop.xlane.xlu0 %6343 }
0x2cf5   :  { %12880 = vrcp.f32 %v6344_v18 }
0x2cf8   :  { %v6347_v17 = vpop.xlane.xlu0 %6346 }
0x2cf9   :  { %12882 = vrcp.f32 %v6347_v17  ;;  %v6692_v17 = vld [vmem:[%s14798_s2 + $0x20] sm:$0xff] }
0x2cff   :  { %v12881_v34 = vpop.eup %12880 }
0x2d00   :  { %v6350_v50 = vmul.f32 %v12881_v34, %v12877_v10  ;;  %v6693_v34 = vld [vmem:[%s14798_s2 + $0x28] sm:$0xff] }
0x2d02   :  { %11440 = vmatprep.mubr.msk.f32.mxu0 %vm810_vm7, %v6350_v50  ;;  %v12176_v50 = vpack.c.bf16 %v6693_v34, %v6692_v17 }
0x2d03   :  { %v12883_v43 = vpop.eup %12882 }
0x2d04   :  { %v6351_v52 = vmul.f32 %v12883_v43, %v12879_v58  ;;  %v6688_v58 = vld [vmem:[%s14798_s2] sm:$0xff]  ;;  %v6694_v43 = vld [vmem:[%s14798_s2 + $0x30] sm:$0xff] }
0x2d05   :  { %v12168_v1 = vpack.c.bf16 %v6689_v59, %v6688_v58 }
0x2d06   :  { %11441 = vmatmul.mubr.msk.f32.vlgmr.msra.gmra.mrb[40].mxu0 %vm810_vm7, %v6351_v52  ;;  %v6695_v52 = vld [vmem:[%s14798_s2 + $0x38] sm:$0xff] }
0x2d07   :  { %11444 = vmatpush3.msra.mxu0 %v5378_v63  ;;  %v6691_v63 = vld [vmem:[%s14798_s2 + $0x18] sm:$0xff] }
0x2d08   :  { %12169 = vmatprep.subr.bf16.mxu0 %v12168_v1  ;;  %v12172_v18 = vpack.c.bf16 %v6691_v63, %v6690_v41 }
0x2dd9   :  { %v11442_v39 = vpop.f32.mrb[40].mxu0 }
0x2dda   :  { %v6431_v42 = vpop.f32.mrb[41].mxu0 }
0x2ddb   :  { %11445 = vmatprep.mubr.msk.f32.mxu0 %vm722_vm5, %v6431_v42  ;;  %v6696_v42 = vld [vmem:[%s14798_s2 + $0x40] sm:$0xff] }
0x2ddc   :  { %11446 = vmatmul.mubr.msk.f32.vlgmr.msra.gmra.mrb[36].mxu0 %vm722_vm5, %v11442_v39  ;;  %v12180_v39 = vpack.c.bf16 %v6695_v52, %v6694_v43 }
0x2ddd   :  { %12171 = vmatpush3.bf16.msra.mxu0 %v12168_v1 }
0x2dde   :  { %12173 = vmatprep.subr.bf16.mxu0 %v12172_v18 }
0x2de1   :  { %12175 = vmatpush3.bf16.msra.mxu0 %v12172_v18 }
0x2de2   :  { %12177 = vmatprep.subr.bf16.mxu0 %v12176_v50 }
0x2de5   :  { %12179 = vmatpush3.bf16.msra.mxu0 %v12176_v50 }
0x2de6   :  { %12181 = vmatprep.subr.bf16.mxu0 %v12180_v39 }
0x2de9   :  { %12183 = vmatpush3.bf16.msra.mxu0 %v12180_v39 }
0x2eaf   :  { %v11447_v5 = vpop.f32.mrb[36].mxu0 }
0x2eb0   :  { %v6524_v6 = vadd.f32 %v11447_v5, %v14103_v2  ;;  %v6512_v12 = vpop.f32.mrb[37].mxu0  ;;  %v6697_v5 = vld [vmem:[%s14798_s2 + $0x48] sm:$0xff] }
0x2eb1   :  { %v6523_v11 = vadd.f32 %v6512_v12, %v14100_v60  ;;  %v6699_v12 = vld [vmem:[%s14798_s2 + $0x58] sm:$0xff] }
0x2eb2   :  { %v14271_v7 = vadd.f32 %v10280_v0, %v6524_v6  ;;  %v12184_v6 = vpack.c.bf16 %v6697_v5, %v6696_v42  ;;  %v10291_v42 = vld [vmem:[%s14777_s24 + $0x20] sm:$0xff]  ;;  %v10292_v5 = vld [vmem:[%s14777_s24 + $0x28] sm:$0xff] }
0x2eb3   :  { %v14273_v37 = vadd.f32 %v10280_v0, %v6523_v11  ;;  %v6698_v0 = vld [vmem:[%s14798_s2 + $0x50] sm:$0xff] }
0x2eb4   :  { %v6539_v48 = vsel %vm575_vm3, %v14271_v7, 0.0  ;;  %v12188_v11 = vpack.c.bf16 %v6699_v12, %v6698_v0  ;;  %12185 = vmatprep.subr.bf16.mxu0 %v12184_v6  ;;  %v12200_v0 = vpack.c.bf16 %v10292_v5, %v10291_v42  ;;  %v10294_v12 = vld [vmem:[%s14777_s24 + $0x38] sm:$0xff] }
0x2eb5   :  { %6540 = vadd.xlane.f32.xlu1 %v6539_v48  ;;  %v6536_v4 = vsel %vm575_vm3, %v14273_v37, 0.0  ;;  %v6700_v48 = vld [vmem:[%s14798_s2 + $0x60] sm:$0xff]  ;;  %12187 = vmatpush3.bf16.msra.mxu0 %v12184_v6  ;;  %v10293_v6 = vld [vmem:[%s14777_s24 + $0x30] sm:$0xff]  ;;  %s14803_s24 = smov 48  }
0x2eb6   :  { %6537 = vadd.xlane.f32.xlu0 %v6536_v4  ;;  %v6701_v4 = vld [vmem:[%s14798_s2 + $0x68] sm:$0xff]  ;;  %12189 = vmatprep.subr.bf16.mxu0 %v12188_v11 }
0x2eb7   :  { %12201 = vmatprep.subr.bf16.mxu1 %v12200_v0 }
0x2eb9   :  { %12191 = vmatpush3.bf16.msra.mxu0 %v12188_v11  ;;  %v12204_v11 = vpack.c.bf16 %v10294_v12, %v10293_v6 }
0x2f42   :  { %v6541_v3 = vpop.xlane.xlu1 %6540 }
0x2f43   :  { %v6543_v13 = vmul.f32 0.03125, %v6541_v3  ;;  %v6538_v2 = vpop.xlane.xlu0 %6537  ;;  %v12192_v3 = vpack.c.bf16 %v6701_v4, %v6700_v48 }
0x2f44   :  { %v6542_v60 = vmul.f32 0.03125, %v6538_v2  ;;  %v6703_v2 = vld [vmem:[%s14798_s2 + $0x78] sm:$0xff] }
0x2f45   :  { %v6545_v14 = vsub.f32 %v14271_v7, %v6543_v13  ;;  %v6702_v13 = vld [vmem:[%s14798_s2 + $0x70] sm:$0xff]  ;;  %12193 = vmatprep.subr.bf16.mxu0 %v12192_v3 }
0x2f46   :  { %v6544_v16 = vsub.f32 %v14273_v37, %v6542_v60  ;;  %v12196_v60 = vpack.c.bf16 %v6703_v2, %v6702_v13  ;;  %12195 = vmatpush3.bf16.msra.mxu0 %v12192_v3 }
0x2f47   :  { %v6547_v26 = vmul.f32 %v6545_v14, %v6545_v14 }
0x2f48   :  { %v6546_v20 = vmul.f32 %v6544_v16, %v6544_v16  ;;  %12197 = vmatprep.subr.bf16.mxu0 %v12196_v60 }
0x2f49   :  { %v6551_v27 = vsel %vm575_vm3, %v6547_v26, 0.0 }
0x2f4a   :  { %v6548_v23 = vsel %vm575_vm3, %v6546_v20, 0.0  ;;  %12199 = vmatpush3.bf16.msra.mxu0 %v12196_v60 }
0x2f4b   :  { %6549 = vadd.xlane.f32.xlu0 %v6548_v23 }
0x2f4f   :  { %6552 = vadd.xlane.f32.xlu0 %v6551_v27 }
0x2fd8   :  { %v6550_v35 = vpop.xlane.xlu0 %6549 }
0x2fd9   :  { %v6554_v40 = vmul.f32 0.03125, %v6550_v35 }
0x2fdb   :  { %v6556_v44 = vadd.f32 1e-05, %v6554_v40 }
0x2fdc   :  { %v6553_v45 = vpop.xlane.xlu0 %6552 }
0x2fdd   :  { %12884 = vrsqrt.f32 %v6556_v44  ;;  %v6555_v46 = vmul.f32 0.03125, %v6553_v45 }
0x2fdf   :  { %v6557_v33 = vadd.f32 1e-05, %v6555_v46 }
0x2fe1   :  { %12886 = vrsqrt.f32 %v6557_v33 }
0x2fe7   :  { %v12885_v8 = vpop.eup %12884 }
0x2fe8   :  { %v6560_v47 = vmul.f32 %v12885_v8, %v6544_v16 }
0x2fea   :  { %v6568_v24 = vmul.f32 %v10281_v30, %v6560_v47 }
0x2feb   :  { %v12887_v54 = vpop.eup %12886 }
0x2fec   :  { %v6561_v55 = vmul.f32 %v12887_v54, %v6545_v14  ;;  %v6576_v56 = vadd.f32 %v10282_v25, %v6568_v24  ;;  %v10283_v14 = vld [vmem:[%s14799_s28] ss:$0 sm:$0xff] }
0x2fee   :  { %v6569_v10 = vmul.f32 %v10281_v30, %v6561_v55  ;;  %11456 = vmatprep.mubr.msk.f32.mxu1 %vm575_vm3, %v6576_v56  ;;  %v10286_v55 = vld [vmem:[%s14800_s4] ss:$0 sm:$0xff] }
0x2ff0   :  { %v6577_v57 = vadd.f32 %v10282_v25, %v6569_v10 }
0x2ff2   :  { %11457 = vmatmul.mubr.msk.f32.vlgmr.msra.gmra.mrb[56].mxu1 %vm575_vm3, %v6577_v57 }
0x2ff3   :  { %12203 = vmatpush3.bf16.msra.mxu1 %v12200_v0 }
0x2ff4   :  { %12205 = vmatprep.subr.bf16.mxu1 %v12204_v11 }
0x2ff7   :  { %12207 = vmatpush3.bf16.msra.mxu1 %v12204_v11 }
0x30c5   :  { %v11458_v16 = vpop.f32.mrb[56].mxu1 }
0x30c6   :  { %v6667_v20 = vadd.f32 %v11458_v16, %v10283_v14  ;;  %v6661_v23 = vpop.f32.mrb[57].mxu1  ;;  %v10289_v16 = vld [vmem:[%s14778_s30 + $0x1] ss:$0 sm:$0xff]  ;;  %s14804_s30 = smov 40  }
0x30c7   :  { %v6662_v26 = vadd.f32 %v10283_v14, %v6661_v23  ;;  %v10290_v23 = vld [vmem:[%s14779_s6 + $0x1] ss:$0 sm:$0xff] }
0x30c8   :  { %v6671_v27 = vmul.f32 %v6667_v20, %v6667_v20 }
0x30c9   :  { %v6670_v28 = vmul.f32 %v6662_v26, %v6662_v26 }
0x30ca   :  { %v6673_v61 = vmul.f32 %v6671_v27, %v6667_v20 }
0x30cb   :  { %v6672_v19 = vmul.f32 %v6670_v28, %v6662_v26 }
0x30cc   :  { %v6675_v21 = vmul.f32 0.044715, %v6673_v61 }
0x30cd   :  { %v6674_v32 = vmul.f32 0.044715, %v6672_v19 }
0x30ce   :  { %v6677_v22 = vadd.f32 %v6675_v21, %v6667_v20 }
0x30cf   :  { %v6676_v35 = vadd.f32 %v6674_v32, %v6662_v26  ;;  %v10296_v32 = vld [vmem:[%s14780_s12 + $0x1] ss:$0 sm:$0xff] }
0x30d0   :  { %v6679_v40 = vmul.f32 0.7978846, %v6677_v22 }
0x30d1   :  { %v6678_v44 = vmul.f32 0.7978846, %v6676_v35 }
0x30d2   :  { %12888 = vtanh.f32 %v6679_v40 }
0x30d3   :  { %12890 = vtanh.f32 %v6678_v44 }
0x30dc   :  { %v12889_v45 = vpop.eup %12888 }
0x30dd   :  { %v12891_v46 = vpop.eup %12890  ;;  %v6683_v33 = vadd.f32 1.0, %v12889_v45 }
0x30de   :  { %v6682_v8 = vadd.f32 1.0, %v12891_v46 }
0x30df   :  { %v6685_v30 = vmul.f32 0.5, %v6683_v33 }
0x30e0   :  { %v6684_v47 = vmul.f32 0.5, %v6682_v8 }
0x30e1   :  { %v6687_v24 = vmul.f32 %v6685_v30, %v6667_v20 }
0x30e2   :  { %v6686_v25 = vmul.f32 %v6684_v47, %v6662_v26 }
0x30e4   :  { %11491 = vmatprep.mubr.f32.mxu0 %v6686_v25 }
0x30e5   :  { %11492 = vmatmul.mubr.f32.vlgmr.msra.gmra.mrb[42].mxu0 %v6687_v24 }
0x31b8   :  { %v11493_v54 = vpop.f32.mrb[42].mxu0 }
0x31b9   :  { %v6770_v56 = vpop.f32.mrb[43].mxu0  ;;  %v6780_v10 = vadd.f32 %v11493_v54, %v14271_v7 }
0x31ba   :  { %v6779_v57 = vadd.f32 %v6770_v56, %v14273_v37 }
0x31bb   :  { %v14313_v59 = vadd.f32 %v10286_v55, %v6780_v10  ;;  %v14355_v10 = vld [vmem:[%s14781_s20 + $0x8] sm:$0xff] }
0x31bc   :  { %v14311_v58 = vadd.f32 %v10286_v55, %v6779_v57  ;;  %v14351_v55 = vld [vmem:[%s14781_s20] sm:$0xff] }
0x31bd   :  { %v6797_v41 = vsel %vm575_vm3, %v14313_v59, 0.0 }
0x31be   :  { %v6794_v1 = vsel %vm575_vm3, %v14311_v58, 0.0 }
0x31bf   :  { %6795 = vadd.xlane.f32.xlu0 %v6794_v1 }
0x31c3   :  { %6798 = vadd.xlane.f32.xlu0 %v6797_v41 }
0x324c   :  { %v6796_v63 = vpop.xlane.xlu0 %6795 }
0x324d   :  { %v6800_v18 = vmul.f32 0.03125, %v6796_v63 }
0x324f   :  { %v6802_v7 = vsub.f32 %v14311_v58, %v6800_v18 }
0x3250   :  { %v6799_v37 = vpop.xlane.xlu0 %6798 }
0x3251   :  { %v6801_v17 = vmul.f32 0.03125, %v6799_v37  ;;  %v6804_v34 = vmul.f32 %v6802_v7, %v6802_v7 }
0x3253   :  { %v6803_v50 = vsub.f32 %v14313_v59, %v6801_v17  ;;  %v6806_v43 = vsel %vm575_vm3, %v6804_v34, 0.0 }
0x3254   :  { %6807 = vadd.xlane.f32.xlu0 %v6806_v43 }
0x3255   :  { %v6805_v52 = vmul.f32 %v6803_v50, %v6803_v50 }
0x3257   :  { %v6809_v39 = vsel %vm575_vm3, %v6805_v52, 0.0 }
0x3258   :  { %6810 = vadd.xlane.f32.xlu0 %v6809_v39 }
0x32e1   :  { %v6808_v48 = vpop.xlane.xlu0 %6807 }
0x32e2   :  { %v6812_v4 = vmul.f32 0.03125, %v6808_v48 }
0x32e4   :  { %v6814_v3 = vadd.f32 1e-05, %v6812_v4 }
0x32e5   :  { %v6811_v13 = vpop.xlane.xlu0 %6810 }
0x32e6   :  { %12892 = vrsqrt.f32 %v6814_v3  ;;  %v6813_v2 = vmul.f32 0.03125, %v6811_v13 }
0x32e8   :  { %v6815_v60 = vadd.f32 1e-05, %v6813_v2 }
0x32ea   :  { %12894 = vrsqrt.f32 %v6815_v60 }
0x32f0   :  { %v12893_v14 = vpop.eup %12892 }
0x32f1   :  { %v6818_v20 = vmul.f32 %v12893_v14, %v6802_v7 }
0x32f3   :  { %v6826_v26 = vmul.f32 %v10289_v16, %v6818_v20 }
0x32f4   :  { %v12895_v27 = vpop.eup %12894 }
0x32f5   :  { %v6819_v28 = vmul.f32 %v12895_v27, %v6803_v50  ;;  %v6834_v61 = vadd.f32 %v10290_v23, %v6826_v26 }
0x32f7   :  { %v6827_v19 = vmul.f32 %v10289_v16, %v6819_v28  ;;  %11502 = vmatprep.mubr.msk.f32.mxu1 %vm575_vm3, %v6834_v61 }
0x32f9   :  { %v6835_v21 = vadd.f32 %v10290_v23, %v6827_v19 }
0x32fb   :  { %11503 = vmatmul.mubr.msk.f32.vlgmr.msra.gmra.mrb[58].mxu1 %vm575_vm3, %v6835_v21 }
0x33ce   :  { %v11504_v22 = vpop.f32.mrb[58].mxu1 }
0x33cf   :  { %v14332_v35 = vadd.f32 %v11504_v22, %v10296_v32  ;;  %v6921_v40 = vpop.f32.mrb[59].mxu1 }
0x33d0   :  { %v14334_v44 = vadd.f32 %v10296_v32, %v6921_v40 }
0x33d2   :  { %11509 = vmatprep.mubr.msk.f32.mxu1 %vm722_vm5, %v14334_v44  ;;  %v14340_v45 = vpack.i.bf16 %v14332_v35, %v14334_v44 }
0x33d4   :  { %12646 = vrot.lane.b32.xlu0 %v14340_v45, %s13127_s5 }
0x3446   :  { %v12647_v46 = vpop.permute.xlu0 %12646 }
0x3447   :  { %v12649_v33 = vunpack.i.h.bf16 %v12647_v46  ;;  %v12648_v8 = vunpack.i.l.bf16 %v12647_v46 }
0x3449   :  { %v12208_v30 = vpack.c.bf16 %v12649_v33, %v12648_v8 }
0x344b   :  { %12210 = vmatprep.subr.msk.bf16.mxu1 %vm13556_vm6, %v12208_v30 }
0x344c   :  { %12213 = vmatpush3.bf16.xpose.msk.msra.mxu1 %vm13556_vm6, %v12208_v30 }
0x3453   :  { %11510 = vmatmul.mubr.msk.f32.vlgmr.msra.gmra.mrb[60].mxu1 %vm722_vm5, %v14332_v35 }
0x3526   :  { %v11511_v47 = vpop.f32.mrb[60].mxu1 }
0x3527   :  { %v7015_v25 = vpop.f32.mrb[61].mxu1  ;;  %v7025_v24 = vmul.f32 0.35355338, %v11511_v47 }
0x3528   :  { %v7024_v54 = vmul.f32 0.35355338, %v7015_v25 }
0x3529   :  { %v7027_v57 = vadd.f32 %v14355_v10, %v7025_v24 }
0x352a   :  { %v7026_v56 = vadd.f32 %v14351_v55, %v7024_v54 }
0x352b   :  { %v7031_v41 = vsel %vm4086_vm15, %v7027_v57, -inf }
0x352c   :  { %v7028_v1 = vsel %vm4086_vm15, %v7026_v56, -inf }
0x352d   :  { %7029 = vmax.xlane.f32.xlu1 %v7028_v1 }
0x3531   :  { %7032 = vmax.xlane.f32.xlu1 %v7031_v41 }
0x3542   :  { %12651 = vrot.lane.b32.xlu1 %v14340_v45, %s13130_s3  ;;  %s14801_s3 = smov 72  }
0x3546   :  { %12656 = vrot.lane.b32.xlu1 %v14340_v45, %s13128_s17 }
0x354a   :  { %7137 = vrot.lane.b32.xlu1 %v14334_v44, %s13129_s29 }
0x35ba   :  { %v7030_v63 = vpop.xlane.xlu1 %7029 }
0x35bb   :  { %v7034_v18 = vsub.f32 %v7026_v56, %v7030_v63 }
0x35bd   :  { %v7036_v7 = vmul.f32 1.442695, %v7034_v18 }
0x35be   :  { %v7033_v37 = vpop.xlane.xlu1 %7032 }
0x35bf   :  { %12896 = vpow2.f32 %v7036_v7  ;;  %v7035_v17 = vsub.f32 %v7027_v57, %v7033_v37 }
0x35c1   :  { %v7038_v34 = vmul.f32 1.442695, %v7035_v17 }
0x35c2   :  { %v12652_v50 = vpop.permute.xlu1 %12651 }
0x35c3   :  { %12898 = vpow2.f32 %v7038_v34  ;;  %v12654_v43 = vunpack.i.h.bf16 %v12652_v50  ;;  %v12653_v52 = vunpack.i.l.bf16 %v12652_v50 }
0x35c5   :  { %v12214_v39 = vpack.c.bf16 %v12654_v43, %v12653_v52 }
0x35c6   :  { %v12657_v42 = vpop.permute.xlu1 %12656 }
0x35c7   :  { %v12659_v5 = vunpack.i.h.bf16 %v12657_v42  ;;  %v12658_v0 = vunpack.i.l.bf16 %v12657_v42  ;;  %12215 = vmatprep.subr.bf16.mxu1 %v12214_v39 }
0x35c8   :  { %12217 = vmatpush3.bf16.msra.mxu1 %v12214_v39 }
0x35c9   :  { %v12897_v6 = vpop.eup %12896  ;;  %v12218_v12 = vpack.c.bf16 %v12659_v5, %v12658_v0 }
0x35ca   :  { %v7040_v11 = vsel %vm4086_vm15, %v12897_v6, 0.0  ;;  %v7138_v3 = vpop.permute.xlu1 %7137 }
0x35cb   :  { %7041 = vadd.xlane.f32.xlu1 %v7040_v11  ;;  %12220 = vmatprep.subr.msk.bf16.mxu1 %vm13556_vm6, %v12218_v12 }
0x35cd   :  { %v12899_v48 = vpop.eup %12898 }
0x35ce   :  { %v7043_v4 = vsel %vm4086_vm15, %v12899_v48, 0.0 }
0x35cf   :  { %7044 = vadd.xlane.f32.xlu0 %v7043_v4 }
0x35dc   :  { %7139 = vrot.lane.b32.xlu1 %v14332_v35, %s13129_s29 }
0x3658   :  { %v7042_v13 = vpop.xlane.xlu1 %7041 }
0x3659   :  { %12900 = vrcp.f32 %v7042_v13  ;;  %v10300_v13 = vld [vmem:[%s14782_s27 + $0x28] sm:$0xff] }
0x365a   :  { %11533 = vmatprep.subr.mxu0 %v10300_v13 }
0x365b   :  { %11534 = vmatpush3.msra.mxu0 %v10300_v13 }
0x365c   :  { %v7045_v2 = vpop.xlane.xlu0 %7044  ;;  %v7140_v23 = vpop.permute.xlu1 %7139 }
0x365d   :  { %12902 = vrcp.f32 %v7045_v2  ;;  %v10299_v2 = vld [vmem:[%s14782_s27 + $0x20] sm:$0xff] }
0x365e   :  { %11538 = vmatprep.subr.mxu0 %v10299_v2 }
0x3663   :  { %v12901_v60 = vpop.eup %12900 }
0x3664   :  { %v7048_v14 = vmul.f32 %v12901_v60, %v12897_v6 }
0x3666   :  { %11516 = vmatprep.mubr.msk.f32.mxu1 %vm4086_vm15, %v7048_v14 }
0x3667   :  { %v12903_v16 = vpop.eup %12902 }
0x3668   :  { %v7049_v20 = vmul.f32 %v12903_v16, %v12899_v48 }
0x366a   :  { %11517 = vmatmul.mubr.msk.f32.vlgmr.msra.gmra.mrb[62].mxu1 %vm4086_vm15, %v7049_v20 }
0x366b   :  { %12223 = vmatpush3.bf16.xpose.msk.msra.mxu1 %vm13556_vm6, %v12218_v12  ;;  %11523 = vmatprep.mubr.msk.f32.mxu1 %vm722_vm5, %v7138_v3 }
0x3672   :  { %11524 = vmatmul.mubr.msk.f32.vlgmr.msra.gmra.mrb[64].mxu1 %vm722_vm5, %v7140_v23 }
0x373d   :  { %v14378_v26 = vpop.f32.mrb[62].mxu1 }
0x373e   :  { %v14380_v27 = vpop.f32.mrb[63].mxu1 }
0x3745   :  { %v11525_v28 = vpop.f32.mrb[64].mxu1 }
0x3746   :  { %v7229_v61 = vmul.f32 0.35355338, %v11525_v28  ;;  %v7219_v19 = vpop.f32.mrb[65].mxu1 }
0x3747   :  { %v7228_v21 = vmul.f32 0.35355338, %v7219_v19 }
0x3748   :  { %v7231_v32 = vadd.f32 %v14355_v10, %v7229_v61 }
0x3749   :  { %v7230_v22 = vadd.f32 %v14351_v55, %v7228_v21 }
0x374a   :  { %v7235_v40 = vsel %vm4086_vm15, %v7231_v32, -inf }
0x374b   :  { %7236 = vmax.xlane.f32.xlu0 %v7235_v40  ;;  %v7232_v46 = vsel %vm4086_vm15, %v7230_v22, -inf }
0x374c   :  { %7233 = vmax.xlane.f32.xlu1 %v7232_v46 }
0x375d   :  { %7503 = vrot.lane.b32.xlu1 %v14334_v44, %s13133_s14 }
0x3761   :  { %12661 = vrot.lane.b32.xlu0 %v14340_v45, %s13132_s8  ;;  %s14802_s8 = smov 104  }
0x37d8   :  { %v7237_v33 = vpop.xlane.xlu0 %7236 }
0x37d9   :  { %v7239_v8 = vsub.f32 %v7231_v32, %v7237_v33  ;;  %v7234_v30 = vpop.xlane.xlu1 %7233 }
0x37da   :  { %v7238_v47 = vsub.f32 %v7230_v22, %v7234_v30 }
0x37db   :  { %v7242_v25 = vmul.f32 1.442695, %v7239_v8 }
0x37dc   :  { %v7240_v24 = vmul.f32 1.442695, %v7238_v47  ;;  %v12662_v54 = vpop.permute.xlu0 %12661 }
0x37dd   :  { %12904 = vpow2.f32 %v7242_v25  ;;  %v12664_v56 = vunpack.i.h.bf16 %v12662_v54  ;;  %v12663_v57 = vunpack.i.l.bf16 %v12662_v54  ;;  %v7504_v11 = vpop.permute.xlu1 %7503 }
0x37de   :  { %12906 = vpow2.f32 %v7240_v24 }
0x37df   :  { %v12224_v1 = vpack.c.bf16 %v12664_v56, %v12663_v57 }
0x37e1   :  { %12225 = vmatprep.subr.bf16.mxu1 %v12224_v1 }
0x37e2   :  { %12227 = vmatpush3.bf16.msra.mxu1 %v12224_v1 }
0x37e7   :  { %v12905_v41 = vpop.eup %12904 }
0x37e8   :  { %v7247_v63 = vsel %vm4086_vm15, %v12905_v41, 0.0  ;;  %v12907_v18 = vpop.eup %12906 }
0x37e9   :  { %7248 = vadd.xlane.f32.xlu0 %v7247_v63  ;;  %v7244_v7 = vsel %vm4086_vm15, %v12907_v18, 0.0 }
0x37ed   :  { %7245 = vadd.xlane.f32.xlu0 %v7244_v7 }
0x3803   :  { %12666 = vrot.lane.b32.xlu0 %v14340_v45, %s13136_s1 }
0x3807   :  { %7505 = vrot.lane.b32.xlu0 %v14332_v35, %s13133_s14 }
0x380b   :  { %12671 = vrot.lane.b32.xlu0 %v14340_v45, %s14801_s3 }
0x380f   :  { %7790 = vrot.lane.b32.xlu0 %v14334_v44, %s14802_s8 }
0x3813   :  { %7792 = vrot.lane.b32.xlu0 %v14332_v35, %s14802_s8 }
0x3876   :  { %v7249_v37 = vpop.xlane.xlu0 %7248 }
0x3877   :  { %12908 = vrcp.f32 %v7249_v37 }
0x387a   :  { %v7246_v17 = vpop.xlane.xlu0 %7245 }
0x387b   :  { %12910 = vrcp.f32 %v7246_v17 }
0x387e   :  { %v12667_v34 = vpop.permute.xlu0 %12666 }
0x387f   :  { %v12669_v50 = vunpack.i.h.bf16 %v12667_v34  ;;  %v12668_v43 = vunpack.i.l.bf16 %v12667_v34 }
0x3881   :  { %v12228_v52 = vpack.c.bf16 %v12669_v50, %v12668_v43  ;;  %v12909_v42 = vpop.eup %12908 }
0x3882   :  { %v7506_v39 = vpop.permute.xlu0 %7505  ;;  %v7253_v44 = vmul.f32 %v12909_v42, %v12905_v41 }
0x3883   :  { %12230 = vmatprep.subr.msk.bf16.mxu1 %vm13556_vm6, %v12228_v52 }
0x3885   :  { %v12911_v5 = vpop.eup %12910 }
0x3886   :  { %v12672_v0 = vpop.permute.xlu0 %12671  ;;  %v7252_v6 = vmul.f32 %v12911_v5, %v12907_v18 }
0x3887   :  { %v12674_v12 = vunpack.i.h.bf16 %v12672_v0  ;;  %v12673_v35 = vunpack.i.l.bf16 %v12672_v0 }
0x3888   :  { %11530 = vmatprep.mubr.msk.f32.mxu1 %vm4086_vm15, %v7252_v6 }
0x3889   :  { %v12238_v48 = vpack.c.bf16 %v12674_v12, %v12673_v35  ;;  %11531 = vmatmul.mubr.msk.f32.vlgmr.msra.gmra.mrb[66].mxu1 %vm4086_vm15, %v7253_v44 }
0x388a   :  { %12233 = vmatpush3.bf16.xpose.msk.msra.mxu1 %vm13556_vm6, %v12228_v52  ;;  %11547 = vmatprep.mubr.msk.f32.mxu1 %vm722_vm5, %v7504_v11  ;;  %v7791_v4 = vpop.permute.xlu0 %7790 }
0x388b   :  { %12240 = vmatprep.subr.msk.bf16.mxu1 %vm13556_vm6, %v12238_v48 }
0x388e   :  { %v7793_v3 = vpop.permute.xlu0 %7792 }
0x3891   :  { %11548 = vmatmul.mubr.msk.f32.vlgmr.msra.gmra.mrb[68].mxu1 %vm722_vm5, %v7506_v39 }
0x3892   :  { %12243 = vmatpush3.bf16.xpose.msk.msra.mxu1 %vm13556_vm6, %v12238_v48  ;;  %11566 = vmatprep.mubr.msk.f32.mxu1 %vm722_vm5, %v7791_v4 }
0x3899   :  { %11567 = vmatmul.mubr.msk.f32.vlgmr.msra.gmra.mrb[70].mxu1 %vm722_vm5, %v7793_v3  ;;  %v10301_v3 = vld [vmem:[%s14782_s27 + $0x30] sm:$0xff] }
0x395c   :  { %v11532_v60 = vpop.f32.mrb[66].mxu1 }
0x395d   :  { %v7332_v14 = vpop.f32.mrb[67].mxu1 }
0x395e   :  { %11535 = vmatprep.mubr.msk.f32.mxu0 %vm722_vm5, %v7332_v14 }
0x395f   :  { %11536 = vmatmul.mubr.msk.f32.vlgmr.msra.gmra.mrb[44].mxu0 %vm722_vm5, %v11532_v60 }
0x3960   :  { %11540 = vmatprep.mubr.msk.f32.mxu0 %vm722_vm5, %v14380_v27  ;;  %11539 = vmatpush3.msra.mxu0 %v10299_v2 }
0x3964   :  { %v11549_v16 = vpop.f32.mrb[68].mxu1 }
0x3965   :  { %v7595_v20 = vmul.f32 0.35355338, %v11549_v16  ;;  %v7585_v23 = vpop.f32.mrb[69].mxu1 }
0x3966   :  { %v7594_v28 = vmul.f32 0.35355338, %v7585_v23 }
0x3967   :  { %v7597_v61 = vadd.f32 %v14355_v10, %v7595_v20  ;;  %11541 = vmatmul.mubr.msk.f32.vlgmr.msra.gmra.mrb[44].mxu0 %vm722_vm5, %v14378_v26 }
0x3968   :  { %v7596_v19 = vadd.f32 %v14351_v55, %v7594_v28 }
0x3969   :  { %v7601_v21 = vsel %vm4086_vm15, %v7597_v61, -inf }
0x396a   :  { %7602 = vmax.xlane.f32.xlu0 %v7601_v21  ;;  %v7598_v32 = vsel %vm4086_vm15, %v7596_v19, -inf  ;;  %v10302_v21 = vld [vmem:[%s14782_s27 + $0x38] sm:$0xff] }
0x396b   :  { %7599 = vmax.xlane.f32.xlu1 %v7598_v32 }
0x396c   :  { %v11568_v22 = vpop.f32.mrb[70].mxu1 }
0x396d   :  { %v7872_v27 = vpop.f32.mrb[71].mxu1  ;;  %v7882_v54 = vmul.f32 0.35355338, %v11568_v22  ;;  %v10349_v22 = vld [vmem:[%s14784_s18 + $0x20] sm:$0xff] }
0x396e   :  { %v7881_v25 = vmul.f32 0.35355338, %v7872_v27  ;;  %v10350_v27 = vld [vmem:[%s14784_s18 + $0x28] sm:$0xff] }
0x396f   :  { %v7884_v41 = vadd.f32 %v14355_v10, %v7882_v54  ;;  %v10343_v54 = vld [vmem:[%s14787_s26 + $0x30] sm:$0xff] }
0x3970   :  { %v7883_v56 = vadd.f32 %v14351_v55, %v7881_v25  ;;  %v10341_v25 = vld [vmem:[%s14787_s26 + $0x20] sm:$0xff] }
0x3971   :  { %v7888_v18 = vsel %vm4086_vm15, %v7884_v41, -inf }
0x3972   :  { %v7885_v63 = vsel %vm4086_vm15, %v7883_v56, -inf }
0x39f7   :  { %v7603_v40 = vpop.xlane.xlu0 %7602 }
0x39f8   :  { %v7605_v46 = vsub.f32 %v7597_v61, %v7603_v40  ;;  %v7600_v33 = vpop.xlane.xlu1 %7599  ;;  %v12256_v40 = vpack.c.bf16 %v10350_v27, %v10349_v22 }
0x39f9   :  { %v7604_v8 = vsub.f32 %v7596_v19, %v7600_v33  ;;  %v10352_v33 = vld [vmem:[%s14784_s18 + $0x38] sm:$0xff] }
0x39fa   :  { %v7608_v30 = vmul.f32 1.442695, %v7605_v46  ;;  %v10351_v46 = vld [vmem:[%s14784_s18 + $0x30] sm:$0xff] }
0x39fb   :  { %v7606_v47 = vmul.f32 1.442695, %v7604_v8 }
0x39fc   :  { %12912 = vpow2.f32 %v7608_v30 }
0x39fd   :  { %12914 = vpow2.f32 %v7606_v47  ;;  %v12260_v47 = vpack.c.bf16 %v10352_v33, %v10351_v46  ;;  %v10346_v33 = vld [vmem:[%s14791_s16 + $0x1] ss:$0 sm:$0xff] }
0x3a06   :  { %v12913_v26 = vpop.eup %12912 }
0x3a07   :  { %v12915_v24 = vpop.eup %12914  ;;  %v7613_v57 = vsel %vm4086_vm15, %v12913_v26, 0.0 }
0x3a08   :  { %7614 = vadd.xlane.f32.xlu1 %v7613_v57  ;;  %v7610_v1 = vsel %vm4086_vm15, %v12915_v24, 0.0 }
0x3a09   :  { %7611 = vadd.xlane.f32.xlu0 %v7610_v1 }
0x3a0c   :  { %7886 = vmax.xlane.f32.xlu1 %v7885_v63 }
0x3a10   :  { %7889 = vmax.xlane.f32.xlu1 %v7888_v18 }
0x3a1f   :  { %12676 = vrot.lane.b32.xlu0 %v14340_v45, %s14803_s24 }
0x3a95   :  { %v7615_v7 = vpop.xlane.xlu1 %7614 }
0x3a96   :  { %12916 = vrcp.f32 %v7615_v7  ;;  %v7612_v55 = vpop.xlane.xlu0 %7611 }
0x3a97   :  { %12918 = vrcp.f32 %v7612_v55 }
0x3a99   :  { %v7887_v37 = vpop.xlane.xlu1 %7886 }
0x3a9a   :  { %v12677_v17 = vpop.permute.xlu0 %12676  ;;  %v7891_v43 = vsub.f32 %v7883_v56, %v7887_v37  ;;  %v10344_v56 = vld [vmem:[%s14787_s26 + $0x38] sm:$0xff]  ;;  %v10354_v37 = vld [vmem:[%s14790_s15 + $0x1] ss:$0 sm:$0xff] }
0x3a9b   :  { %v12679_v34 = vunpack.i.h.bf16 %v12677_v17  ;;  %v12678_v50 = vunpack.i.l.bf16 %v12677_v17  ;;  %v12252_v57 = vpack.c.bf16 %v10344_v56, %v10343_v54 }
0x3a9c   :  { %v7893_v5 = vmul.f32 1.442695, %v7891_v43 }
0x3a9d   :  { %v12234_v52 = vpack.c.bf16 %v12679_v34, %v12678_v50  ;;  %v7890_v10 = vpop.xlane.xlu1 %7889 }
0x3a9e   :  { %v7892_v39 = vsub.f32 %v7884_v41, %v7890_v10  ;;  %v10336_v41 = vld [vmem:[%s14783_s0 + $0x1] ss:$0 sm:$0xff] }
0x3a9f   :  { %12235 = vmatprep.subr.bf16.mxu0 %v12234_v52 }
0x3aa0   :  { %v12917_v42 = vpop.eup %12916  ;;  %v7895_v0 = vmul.f32 1.442695, %v7892_v39  ;;  %12237 = vmatpush3.bf16.msra.mxu0 %v12234_v52 }
0x3aa1   :  { %v12919_v6 = vpop.eup %12918  ;;  %v7619_v12 = vmul.f32 %v12917_v42, %v12913_v26  ;;  %11557 = vmatprep.subr.mxu0 %v10301_v3  ;;  %v10342_v26 = vld [vmem:[%s14787_s26 + $0x28] sm:$0xff] }
0x3aa2   :  { %12920 = vpow2.f32 %v7895_v0  ;;  %v7618_v44 = vmul.f32 %v12919_v6, %v12915_v24  ;;  %v12248_v24 = vpack.c.bf16 %v10342_v26, %v10341_v25 }
0x3aa3   :  { %12922 = vpow2.f32 %v7893_v5 }
0x3aa4   :  { %11554 = vmatprep.mubr.msk.f32.mxu0 %vm4086_vm15, %v7618_v44  ;;  %12249 = vmatprep.subr.bf16.mxu1 %v12248_v24 }
0x3aa5   :  { %11555 = vmatmul.mubr.msk.f32.vlgmr.msra.gmra.mrb[46].mxu0 %vm4086_vm15, %v7619_v12  ;;  %12251 = vmatpush3.bf16.msra.mxu1 %v12248_v24 }
0x3aa6   :  { %11558 = vmatpush3.msra.mxu0 %v10301_v3  ;;  %12253 = vmatprep.subr.bf16.mxu1 %v12252_v57 }
0x3aa9   :  { %12255 = vmatpush3.bf16.msra.mxu1 %v12252_v57 }
0x3aac   :  { %v12921_v35 = vpop.eup %12920 }
0x3aad   :  { %v7900_v11 = vsel %vm4086_vm15, %v12921_v35, 0.0  ;;  %v12923_v48 = vpop.eup %12922 }
0x3aae   :  { %7901 = vadd.xlane.f32.xlu1 %v7900_v11  ;;  %v7897_v4 = vsel %vm4086_vm15, %v12923_v48, 0.0 }
0x3ab2   :  { %7898 = vadd.xlane.f32.xlu1 %v7897_v4 }
0x3ac3   :  { %12681 = vrot.lane.b32.xlu1 %v14340_v45, %s14804_s30 }
0x3b3b   :  { %v7902_v13 = vpop.xlane.xlu1 %7901 }
0x3b3f   :  { %v7899_v2 = vpop.xlane.xlu1 %7898 }
0x3b40   :  { %12924 = vrcp.f32 %v7899_v2 }
0x3b41   :  { %12926 = vrcp.f32 %v7902_v13 }
0x3b43   :  { %v12682_v60 = vpop.permute.xlu1 %12681 }
0x3b44   :  { %v12684_v14 = vunpack.i.h.bf16 %v12682_v60  ;;  %v12683_v16 = vunpack.i.l.bf16 %v12682_v60 }
0x3b46   :  { %v12244_v20 = vpack.c.bf16 %v12684_v14, %v12683_v16  ;;  %v10339_v16 = vld [vmem:[%s14788_s10 + $0x1] ss:$0 sm:$0xff] }
0x3b48   :  { %12245 = vmatprep.subr.bf16.mxu0 %v12244_v20 }
0x3b4a   :  { %v12925_v23 = vpop.eup %12924 }
0x3b4b   :  { %v12927_v45 = vpop.eup %12926  ;;  %v7905_v19 = vmul.f32 %v12925_v23, %v12923_v48  ;;  %v10340_v23 = vld [vmem:[%s14789_s11 + $0x1] ss:$0 sm:$0xff] }
0x3b4c   :  { %v7906_v32 = vmul.f32 %v12927_v45, %v12921_v35 }
0x3b78   :  { %v11556_v28 = vpop.f32.mrb[46].mxu0 }
0x3b79   :  { %v7698_v61 = vpop.f32.mrb[47].mxu0 }
0x3b7a   :  { %11559 = vmatprep.mubr.msk.f32.mxu0 %vm722_vm5, %v7698_v61 }
0x3b7b   :  { %11560 = vmatmul.mubr.msk.f32.vlgmr.msra.gmra.mrb[44].mxu0 %vm722_vm5, %v11556_v28 }
0x3b7c   :  { %12247 = vmatpush3.bf16.msra.mxu0 %v12244_v20  ;;  %11573 = vmatprep.mubr.msk.f32.mxu0 %vm4086_vm15, %v7905_v19 }
0x3b7d   :  { %11576 = vmatprep.subr.mxu0 %v10302_v21 }
0x3b7f   :  { %11574 = vmatmul.mubr.msk.f32.vlgmr.msra.gmra.mrb[48].mxu0 %vm4086_vm15, %v7906_v32 }
0x3b80   :  { %11577 = vmatpush3.msra.mxu0 %v10302_v21 }
0x3b81   :  { %12257 = vmatprep.subr.bf16.mxu0 %v12256_v40 }
0x3c52   :  { %v11575_v8 = vpop.f32.mrb[48].mxu0 }
0x3c53   :  { %v7985_v30 = vpop.f32.mrb[49].mxu0 }
0x3c54   :  { %11578 = vmatprep.mubr.msk.f32.mxu0 %vm722_vm5, %v7985_v30 }
0x3c55   :  { %11579 = vmatmul.mubr.msk.f32.vlgmr.msra.gmra.mrb[44].mxu0 %vm722_vm5, %v11575_v8 }
0x3c56   :  { %12259 = vmatpush3.bf16.msra.mxu0 %v12256_v40  ;;  %11600 = vmatprep.mubr.msk.f32.mxu0 %vm575_vm3, %v14122_v36 }
0x3c57   :  { %12261 = vmatprep.subr.bf16.mxu0 %v12260_v47 }
0x3c5a   :  { %12263 = vmatpush3.bf16.msra.mxu0 %v12260_v47 }
0x3c5d   :  { %11601 = vmatmul.mubr.msk.f32.vlgmr.msra.gmra.mrb[50].mxu0 %vm575_vm3, %v14130_v49 }
0x3d28   :  { %v11580_v1 = vpop.f32.mrb[44].mxu0 }
0x3d29   :  { %v8078_v36 = vadd.f32 %v11580_v1, %v14313_v59  ;;  %v8066_v63 = vpop.f32.mrb[45].mxu0 }
0x3d2a   :  { %v8077_v18 = vadd.f32 %v8066_v63, %v14311_v58 }
0x3d2b   :  { %v14465_v7 = vadd.f32 %v10336_v41, %v8078_v36 }
0x3d2c   :  { %v14467_v49 = vadd.f32 %v10336_v41, %v8077_v18 }
0x3d2d   :  { %v8096_v55 = vsel %vm575_vm3, %v14465_v7, 0.0 }
0x3d2e   :  { %8097 = vadd.xlane.f32.xlu1 %v8096_v55  ;;  %v8093_v17 = vsel %vm575_vm3, %v14467_v49, 0.0 }
0x3d2f   :  { %8094 = vadd.xlane.f32.xlu0 %v8093_v17  ;;  %v14522_v17 = vld [vmem:[%s14792_s9 + $0x8] sm:$0xff] }
0x3d30   :  { %v11602_v34 = vpop.f32.mrb[50].mxu0 }
0x3d31   :  { %v8314_v50 = vadd.f32 %v11602_v34, %v10354_v37  ;;  %v8308_v43 = vpop.f32.mrb[51].mxu0 }
0x3d32   :  { %v8309_v59 = vadd.f32 %v10354_v37, %v8308_v43 }
0x3d34   :  { %v12264_v52 = vpack.c.bf16 %v8314_v50, %v8309_v59  ;;  %v14474_v10 = vpack.i.bf16 %v8314_v50, %v8309_v59  ;;  %v14526_v50 = vld [vmem:[%s14792_s9] sm:$0xff] }
0x3d36   :  { %12266 = vmatprep.subr.msk.bf16.mxu1 %vm13556_vm6, %v12264_v52 }
0x3dbb   :  { %v8098_v58 = vpop.xlane.xlu1 %8097 }
0x3dbc   :  { %v8100_v39 = vmul.f32 0.03125, %v8098_v58  ;;  %v8095_v42 = vpop.xlane.xlu0 %8094 }
0x3dbd   :  { %v8099_v5 = vmul.f32 0.03125, %v8095_v42 }
0x3dbe   :  { %v8102_v0 = vsub.f32 %v14465_v7, %v8100_v39 }
0x3dbf   :  { %v8101_v6 = vsub.f32 %v14467_v49, %v8099_v5 }
0x3dc0   :  { %v8104_v35 = vmul.f32 %v8102_v0, %v8102_v0 }
0x3dc1   :  { %v8103_v44 = vmul.f32 %v8101_v6, %v8101_v6 }
0x3dc2   :  { %v8108_v11 = vsel %vm575_vm3, %v8104_v35, 0.0 }
0x3dc3   :  { %v8105_v12 = vsel %vm575_vm3, %v8103_v44, 0.0 }
0x3dc4   :  { %8106 = vadd.xlane.f32.xlu0 %v8105_v12 }
0x3dc8   :  { %8109 = vadd.xlane.f32.xlu0 %v8108_v11 }
0x3dde   :  { %12686 = vrot.lane.b32.xlu0 %v14474_v10, %s13129_s29 }
0x3e51   :  { %v8107_v48 = vpop.xlane.xlu0 %8106 }
0x3e52   :  { %v8111_v4 = vmul.f32 0.03125, %v8107_v48 }
0x3e54   :  { %v8113_v3 = vadd.f32 1e-05, %v8111_v4 }
0x3e55   :  { %v8110_v13 = vpop.xlane.xlu0 %8109 }
0x3e56   :  { %12928 = vrsqrt.f32 %v8113_v3  ;;  %v8112_v2 = vmul.f32 0.03125, %v8110_v13 }
0x3e58   :  { %v8114_v60 = vadd.f32 1e-05, %v8112_v2 }
0x3e59   :  { %v12687_v45 = vpop.permute.xlu0 %12686 }
0x3e5a   :  { %12930 = vrsqrt.f32 %v8114_v60  ;;  %v12689_v32 = vunpack.i.h.bf16 %v12687_v45  ;;  %v12688_v22 = vunpack.i.l.bf16 %v12687_v45 }
0x3e5c   :  { %v12276_v46 = vpack.c.bf16 %v12689_v32, %v12688_v22 }
0x3e60   :  { %v12929_v14 = vpop.eup %12928 }
0x3e61   :  { %v8117_v20 = vmul.f32 %v12929_v14, %v8101_v6 }
0x3e63   :  { %v8125_v28 = vmul.f32 %v10339_v16, %v8117_v20 }
0x3e64   :  { %v12931_v61 = vpop.eup %12930 }
0x3e65   :  { %v8118_v19 = vmul.f32 %v12931_v61, %v8102_v0  ;;  %v8133_v21 = vadd.f32 %v10340_v23, %v8125_v28 }
0x3e67   :  { %v8126_v27 = vmul.f32 %v10339_v16, %v8118_v19  ;;  %11589 = vmatprep.mubr.msk.f32.mxu1 %vm575_vm3, %v8133_v21 }
0x3e69   :  { %v8134_v40 = vadd.f32 %v10340_v23, %v8126_v27 }
0x3e6b   :  { %11590 = vmatmul.mubr.msk.f32.vlgmr.msra.gmra.mrb[72].mxu1 %vm575_vm3, %v8134_v40 }
0x3e6c   :  { %12269 = vmatpush3.bf16.xpose.msk.msra.mxu1 %vm13556_vm6, %v12264_v52 }
0x3e6d   :  { %12278 = vmatprep.subr.msk.bf16.mxu1 %vm13556_vm6, %v12276_v46 }
0x3f3e   :  { %v11591_v8 = vpop.f32.mrb[72].mxu1 }
0x3f3f   :  { %v14493_v30 = vadd.f32 %v11591_v8, %v10346_v33  ;;  %v8220_v47 = vpop.f32.mrb[73].mxu1 }
0x3f40   :  { %v14495_v25 = vadd.f32 %v10346_v33, %v8220_v47 }
0x3f41   :  { %8525 = vrot.lane.b32.xlu0 %v14493_v30, %s13129_s29 }
0x3f42   :  { %8523 = vrot.lane.b32.xlu1 %v14495_v25, %s13129_s29  ;;  %11607 = vmatprep.mubr.msk.f32.mxu1 %vm722_vm5, %v14495_v25 }
0x3f43   :  { %11608 = vmatmul.mubr.msk.f32.vlgmr.msra.gmra.mrb[74].mxu1 %vm722_vm5, %v14493_v30 }
0x3f44   :  { %12281 = vmatpush3.bf16.xpose.msk.msra.mxu1 %vm13556_vm6, %v12276_v46 }
0x3f45   :  { %12691 = vrot.lane.b32.xlu0 %v14474_v10, %s13133_s14 }
0x3f46   :  { %8890 = vrot.lane.b32.xlu1 %v14495_v25, %s13133_s14 }
0x3f49   :  { %8892 = vrot.lane.b32.xlu0 %v14493_v30, %s13133_s14 }
0x3fb3   :  { %v8526_v26 = vpop.permute.xlu0 %8525 }
0x3fb4   :  { %v8524_v24 = vpop.permute.xlu1 %8523 }
0x3fb5   :  { %11621 = vmatprep.mubr.msk.f32.mxu1 %vm722_vm5, %v8524_v24 }
0x3fb6   :  { %11622 = vmatmul.mubr.msk.f32.vlgmr.msra.gmra.mrb[76].mxu1 %vm722_vm5, %v8526_v26 }
0x3fb7   :  { %v12692_v54 = vpop.permute.xlu0 %12691 }
0x3fb8   :  { %v12694_v56 = vunpack.i.h.bf16 %v12692_v54  ;;  %v12693_v57 = vunpack.i.l.bf16 %v12692_v54  ;;  %v8891_v1 = vpop.permute.xlu1 %8890 }
0x3fb9   :  { %11645 = vmatprep.mubr.msk.f32.mxu1 %vm722_vm5, %v8891_v1 }
0x3fba   :  { %v12288_v41 = vpack.c.bf16 %v12694_v56, %v12693_v57 }
0x3fbb   :  { %v8893_v36 = vpop.permute.xlu0 %8892 }
0x3fbc   :  { %12290 = vmatprep.subr.msk.bf16.mxu1 %vm13556_vm6, %v12288_v41 }
0x3fbd   :  { %12293 = vmatpush3.bf16.xpose.msk.msra.mxu1 %vm13556_vm6, %v12288_v41 }
0x3fc4   :  { %11646 = vmatmul.mubr.msk.f32.vlgmr.msra.gmra.mrb[78].mxu1 %vm722_vm5, %v8893_v36 }
0x4016   :  { %v11609_v63 = vpop.f32.mrb[74].mxu1 }
0x4017   :  { %v8410_v18 = vmul.f32 0.35355338, %v11609_v63  ;;  %v8400_v55 = vpop.f32.mrb[75].mxu1 }
0x4018   :  { %v8409_v37 = vmul.f32 0.35355338, %v8400_v55 }
0x4019   :  { %v8412_v34 = vadd.f32 %v14522_v17, %v8410_v18 }
0x401a   :  { %v8411_v43 = vadd.f32 %v14526_v50, %v8409_v37 }
0x401b   :  { %v8416_v59 = vsel %vm810_vm7, %v8412_v34, -inf }
0x401c   :  { %8417 = vmax.xlane.f32.xlu0 %v8416_v59  ;;  %v8413_v52 = vsel %vm810_vm7, %v8411_v43, -inf }
0x401d   :  { %8414 = vmax.xlane.f32.xlu1 %v8413_v52 }
0x4089   :  { %v11623_v58 = vpop.f32.mrb[76].mxu1 }
0x408a   :  { %v8615_v39 = vmul.f32 0.35355338, %v11623_v58  ;;  %v8605_v42 = vpop.f32.mrb[77].mxu1 }
0x408b   :  { %v8614_v5 = vmul.f32 0.35355338, %v8605_v42 }
0x408c   :  { %v8617_v0 = vadd.f32 %v14522_v17, %v8615_v39 }
0x408d   :  { %v8616_v6 = vadd.f32 %v14526_v50, %v8614_v5 }
0x408e   :  { %v8621_v44 = vsel %vm810_vm7, %v8617_v0, -inf }
0x408f   :  { %8622 = vmax.xlane.f32.xlu1 %v8621_v44  ;;  %v8618_v12 = vsel %vm810_vm7, %v8616_v6, -inf }
0x4090   :  { %8619 = vmax.xlane.f32.xlu0 %v8618_v12 }
0x4097   :  { %v11647_v35 = vpop.f32.mrb[78].mxu1 }
0x4098   :  { %v8972_v11 = vpop.f32.mrb[79].mxu1  ;;  %v8982_v24 = vmul.f32 0.35355338, %v11647_v35 }
0x4099   :  { %v8981_v26 = vmul.f32 0.35355338, %v8972_v11 }
0x409a   :  { %v8984_v56 = vadd.f32 %v14522_v17, %v8982_v24 }
0x409b   :  { %v8983_v54 = vadd.f32 %v14526_v50, %v8981_v26 }
0x409d   :  { %v8985_v57 = vsel %vm810_vm7, %v8983_v54, -inf }
0x40a9   :  { %v8418_v48 = vpop.xlane.xlu0 %8417 }
0x40aa   :  { %v8420_v4 = vsub.f32 %v8412_v34, %v8418_v48  ;;  %v8415_v3 = vpop.xlane.xlu1 %8414 }
0x40ab   :  { %v8419_v13 = vsub.f32 %v8411_v43, %v8415_v3 }
0x40ac   :  { %v8423_v2 = vmul.f32 1.442695, %v8420_v4 }
0x40ad   :  { %v8421_v60 = vmul.f32 1.442695, %v8419_v13 }
0x40ae   :  { %12932 = vpow2.f32 %v8423_v2 }
0x40af   :  { %12934 = vpow2.f32 %v8421_v60 }
0x40b8   :  { %v14535_v14 = vpop.eup %12932 }
0x40b9   :  { %v12935_v16 = vpop.eup %12934  ;;  %v8428_v20 = vsel %vm810_vm7, %v14535_v14, 0.0 }
0x40ba   :  { %8429 = vadd.xlane.f32.xlu1 %v8428_v20  ;;  %v8425_v23 = vsel %vm810_vm7, %v12935_v16, 0.0 }
0x40bb   :  { %8426 = vadd.xlane.f32.xlu0 %v8425_v23 }
0x411c   :  { %v8623_v28 = vpop.xlane.xlu1 %8622 }
0x411d   :  { %v8625_v61 = vsub.f32 %v8617_v0, %v8623_v28  ;;  %v8620_v45 = vpop.xlane.xlu0 %8619  ;;  %v10358_v28 = vld [vmem:[%s14793_s19 + $0x28] sm:$0xff] }
0x411e   :  { %v8624_v19 = vsub.f32 %v8616_v6, %v8620_v45 }
0x411f   :  { %v8628_v21 = vmul.f32 1.442695, %v8625_v61  ;;  %v10357_v61 = vld [vmem:[%s14793_s19 + $0x20] sm:$0xff] }
0x4120   :  { %v8626_v32 = vmul.f32 1.442695, %v8624_v19 }
0x4121   :  { %12936 = vpow2.f32 %v8628_v21 }
0x4122   :  { %12938 = vpow2.f32 %v8626_v32 }
0x412b   :  { %v12937_v22 = vpop.eup %12936 }
0x412c   :  { %v12939_v27 = vpop.eup %12938  ;;  %v8633_v40 = vsel %vm810_vm7, %v12937_v22, 0.0 }
0x412d   :  { %8634 = vadd.xlane.f32.xlu1 %v8633_v40  ;;  %v8630_v46 = vsel %vm810_vm7, %v12939_v27, 0.0 }
0x412e   :  { %8631 = vadd.xlane.f32.xlu0 %v8630_v46 }
0x413e   :  { %12701 = vrot.lane.b32.xlu1 %v14474_v10, %s13128_s17  ;;  %s13141_s17 = smov [#allocation8]  }
0x413f   :  { %s9984_s29 = sshll.u32 %s13141_s17, 4  ;;  %s9985_s29 = int_to_ptr.vmem [resolvable:$true] %s9984_s29 }
0x4140   :  { %s13036_s14 = scalar_lea.vmem %s9985_s29, 256  ;;  %p13041_p3 = scmp.lt.s32.totalorder %s9985_s29, %s9985_s29 }
0x4141   :  { %p13037_p2 = scmp.ne.s32.totalorder %s9985_s29, %s13036_s14  ;;  %p13042_p4 = scmp.lt.s32.totalorder %s13036_s14, %s13036_s14 }
0x4142   :  { %12706 = vrot.lane.b32.xlu1 %v14474_v10, %s14802_s8 }
0x4143   :  { %p13043_p5 = por %p13042_p4, %p13041_p3 }
0x4144   :  { %12696 = vrot.lane.b32.xlu0 %v14474_v10, %s13127_s5  ;;  %s14805_s5 = sld [smem:[#allocation17_spill]] }
0x4145   :  { %p13044_p6 = pnand %p13043_p5, %p13037_p2 }
0x4146   :  { %9180 = vrot.lane.b32.xlu1 %v14493_v30, %s14802_s8  ;;  %v8988_v30 = vsel %vm810_vm7, %v8984_v56, -inf }
0x4148   :  { %9178 = vrot.lane.b32.xlu0 %v14495_v25, %s14802_s8  ;;  %v8427_v33 = vpop.xlane.xlu0 %8426  ;;  %v8430_v25 = vpop.xlane.xlu1 %8429 }
0x4149   :  { %12940 = vrcp.f32 %v8427_v33 }
0x414a   :  { %12942 = vrcp.f32 %v8430_v25 }
0x4153   :  { %v12941_v8 = vpop.eup %12940 }
0x4154   :  { %v8433_v47 = vmul.f32 %v12941_v8, %v12935_v16  ;;  %v12943_v52 = vpop.eup %12942 }
0x4155   :  { %v8434_v44 = vmul.f32 %v12943_v52, %v14535_v14 }
0x4156   :  { %11614 = vmatprep.mubr.msk.f32.mxu0 %vm810_vm7, %v8433_v47 }
0x4167   :  { %8986 = vmax.xlane.f32.xlu0 %v8985_v57 }
0x416a   :  { %8989 = vmax.xlane.f32.xlu1 %v8988_v30 }
0x417b   :  { %12711 = vrot.lane.b32.xlu1 %v14474_v10, %s13136_s1 }
0x41ba   :  { %v8635_v1 = vpop.xlane.xlu1 %8634 }
0x41bb   :  { %v8632_v41 = vpop.xlane.xlu0 %8631 }
0x41bc   :  { %12944 = vrcp.f32 %v8632_v41 }
0x41bd   :  { %12946 = vrcp.f32 %v8635_v1 }
0x41be   :  { %v12702_v36 = vpop.permute.xlu1 %12701 }
0x41bf   :  { %v12697_v63 = vpop.permute.xlu0 %12696  ;;  %v12704_v18 = vunpack.i.h.bf16 %v12702_v36  ;;  %v12703_v55 = vunpack.i.l.bf16 %v12702_v36 }
0x41c0   :  { %v12699_v37 = vunpack.i.h.bf16 %v12697_v63  ;;  %v12698_v34 = vunpack.i.l.bf16 %v12697_v63 }
0x41c1   :  { %v12282_v5 = vpack.c.bf16 %v12704_v18, %v12703_v55 }
0x41c2   :  { %v12270_v43 = vpack.c.bf16 %v12699_v37, %v12698_v34  ;;  %v12707_v59 = vpop.permute.xlu1 %12706 }
0x41c3   :  { %v12709_v58 = vunpack.i.h.bf16 %v12707_v59  ;;  %v12708_v39 = vunpack.i.l.bf16 %v12707_v59  ;;  %v9179_v42 = vpop.permute.xlu0 %9178 }
0x41c4   :  { %12272 = vmatprep.subr.msk.bf16.mxu0 %vm13580_vm11, %v12270_v43  ;;  %11664 = vmatprep.mubr.msk.f32.mxu1 %vm722_vm5, %v9179_v42 }
0x41c5   :  { %v12300_v0 = vpack.c.bf16 %v12709_v58, %v12708_v39  ;;  %12275 = vmatpush3.bf16.msk.msra.mxu0 %vm13580_vm11, %v12270_v43 }
0x41c6   :  { %v12945_v6 = vpop.eup %12944  ;;  %12284 = vmatprep.subr.msk.bf16.mxu0 %vm13580_vm11, %v12282_v5  ;;  %v9181_v48 = vpop.permute.xlu1 %9180 }
0x41c7   :  { %v12947_v12 = vpop.eup %12946  ;;  %12302 = vmatprep.subr.msk.bf16.mxu1 %vm13556_vm6, %v12300_v0  ;;  %v8638_v35 = vmul.f32 %v12945_v6, %v12939_v27 }
0x41c8   :  { %11615 = vmatmul.mubr.msk.f32.vlgmr.msra.gmra.mrb[52].mxu0 %vm810_vm7, %v8434_v44  ;;  %12305 = vmatpush3.bf16.xpose.msk.msra.mxu1 %vm13556_vm6, %v12300_v0  ;;  %v8639_v11 = vmul.f32 %v12947_v12, %v12937_v22 }
0x41c9   :  { %12287 = vmatpush3.bf16.msk.msra.mxu0 %vm13580_vm11, %v12282_v5  ;;  %11628 = vmatprep.mubr.msk.f32.mxu0 %vm810_vm7, %v8638_v35 }
0x41ca   :  { %11631 = vmatprep.subr.mxu0 %v10358_v28 }
0x41cc   :  { %11629 = vmatmul.mubr.msk.f32.vlgmr.msra.gmra.mrb[54].mxu0 %vm810_vm7, %v8639_v11 }
0x41cd   :  { %11632 = vmatpush3.msra.mxu0 %v10358_v28 }
0x41ce   :  { %11636 = vmatprep.subr.mxu0 %v10357_v61 }
0x41cf   :  { %11665 = vmatmul.mubr.msk.f32.vlgmr.msra.gmra.mrb[80].mxu1 %vm722_vm5, %v9181_v48  ;;  %v10360_v48 = vld [vmem:[%s14793_s19 + $0x38] sm:$0xff] }
0x41f4   :  { %v8987_v4 = vpop.xlane.xlu0 %8986 }
0x41f5   :  { %v8991_v3 = vsub.f32 %v8983_v54, %v8987_v4 }
0x41f7   :  { %v8993_v13 = vmul.f32 1.442695, %v8991_v3  ;;  %v8990_v2 = vpop.xlane.xlu1 %8989 }
0x41f8   :  { %v8992_v60 = vsub.f32 %v8984_v56, %v8990_v2 }
0x41f9   :  { %12948 = vpow2.f32 %v8993_v13 }
0x41fa   :  { %v8995_v29 = vmul.f32 1.442695, %v8992_v60 }
0x41fb   :  { %v12712_v19 = vpop.permute.xlu1 %12711 }
0x41fc   :  { %12950 = vpow2.f32 %v8995_v29  ;;  %v12714_v27 = vunpack.i.h.bf16 %v12712_v19  ;;  %v12713_v40 = vunpack.i.l.bf16 %v12712_v19 }
0x41fe   :  { %v12294_v8 = vpack.c.bf16 %v12714_v27, %v12713_v40 }
0x4203   :  { %v12949_v14 = vpop.eup %12948 }
0x4204   :  { %v8997_v16 = vsel %vm810_vm7, %v12949_v14, 0.0 }
0x4205   :  { %8998 = vadd.xlane.f32.xlu0 %v8997_v16 }
0x4206   :  { %v12951_v20 = vpop.eup %12950 }
0x4207   :  { %v9000_v23 = vsel %vm810_vm7, %v12951_v20, 0.0 }
0x4209   :  { %9001 = vadd.xlane.f32.xlu0 %v9000_v23 }
0x4292   :  { %v8999_v45 = vpop.xlane.xlu0 %8998 }
0x4293   :  { %12952 = vrcp.f32 %v8999_v45 }
0x4296   :  { %v9002_v32 = vpop.xlane.xlu0 %9001 }
0x4297   :  { %12954 = vrcp.f32 %v9002_v32 }
0x429b   :  { %v11616_v21 = vpop.f32.mrb[52].mxu0 }
0x429c   :  { %v8514_v22 = vpop.f32.mrb[53].mxu0 }
0x429d   :  { %v12953_v56 = vpop.eup %12952 }
0x429e   :  { %v9005_v41 = vmul.f32 %v12953_v56, %v12949_v14  ;;  %v10398_v14 = vld [vmem:[%s14794_s25 + $0x1] ss:$0 sm:$0xff] }
0x429f   :  { %v11630_v46 = vpop.f32.mrb[54].mxu0 }
0x42a0   :  { %v8719_v33 = vpop.f32.mrb[55].mxu0 }
0x42a1   :  { %11633 = vmatprep.mubr.msk.f32.mxu0 %vm722_vm5, %v8719_v33  ;;  %v12955_v1 = vpop.eup %12954 }
0x42a2   :  { %11634 = vmatmul.mubr.msk.f32.vlgmr.msra.gmra.mrb[56].mxu0 %vm722_vm5, %v11630_v46  ;;  %v11666_v47 = vpop.f32.mrb[80].mxu1  ;;  %v9006_v36 = vmul.f32 %v12955_v1, %v12951_v20 }
0x42a3   :  { %11637 = vmatpush3.msra.mxu0 %v10357_v61  ;;  %11638 = vmatprep.mubr.msk.f32.mxu0 %vm722_vm5, %v8514_v22  ;;  %v9260_v26 = vpop.f32.mrb[81].mxu1  ;;  %v9270_v24 = vmul.f32 0.35355338, %v11666_v47  ;;  %v10404_v47 = vld [vmem:[%s14795_s22 + $0x28] sm:$0xff] }
0x42a4   :  { %12296 = vmatprep.subr.msk.bf16.mxu0 %vm13580_vm11, %v12294_v8  ;;  %v9269_v54 = vmul.f32 0.35355338, %v9260_v26 }
0x42a5   :  { %v9272_v30 = vadd.f32 %v14522_v17, %v9270_v24  ;;  %v10405_v24 = vld [vmem:[%s14795_s22 + $0x30] sm:$0xff] }
0x42a6   :  { %v9271_v57 = vadd.f32 %v14526_v50, %v9269_v54  ;;  %v10359_v50 = vld [vmem:[%s14793_s19 + $0x30] sm:$0xff]  ;;  %v10406_v54 = vld [vmem:[%s14795_s22 + $0x38] sm:$0xff] }
0x42a7   :  { %v9276_v63 = vsel %vm810_vm7, %v9272_v30, -inf  ;;  %v12316_v56 = vpack.c.bf16 %v10406_v54, %v10405_v24 }
0x42a8   :  { %v9273_v25 = vsel %vm810_vm7, %v9271_v57, -inf }
0x42a9   :  { %9274 = vmax.xlane.f32.xlu0 %v9273_v25 }
0x42aa   :  { %11639 = vmatmul.mubr.msk.f32.vlgmr.msra.gmra.mrb[56].mxu0 %vm722_vm5, %v11616_v21 }
0x42ab   :  { %12299 = vmatpush3.bf16.msk.msra.mxu0 %vm13580_vm11, %v12294_v8  ;;  %11652 = vmatprep.mubr.msk.f32.mxu0 %vm810_vm7, %v9005_v41  ;;  %v10403_v8 = vld [vmem:[%s14795_s22 + $0x20] sm:$0xff] }
0x42ac   :  { %11655 = vmatprep.subr.mxu0 %v10359_v50  ;;  %v12312_v26 = vpack.c.bf16 %v10404_v47, %v10403_v8 }
0x42ad   :  { %9277 = vmax.xlane.f32.xlu0 %v9276_v63 }
0x42ae   :  { %11653 = vmatmul.mubr.msk.f32.vlgmr.msra.gmra.mrb[58].mxu0 %vm810_vm7, %v9006_v36  ;;  %12313 = vmatprep.subr.bf16.mxu1 %v12312_v26 }
0x42af   :  { %11656 = vmatpush3.msra.mxu0 %v10359_v50  ;;  %12315 = vmatpush3.bf16.msra.mxu1 %v12312_v26  ;;  %v10401_v50 = vld [vmem:[%s14796_s23 + $0x1] ss:$0 sm:$0xff] }
0x42b0   :  { %12317 = vmatprep.subr.bf16.mxu1 %v12316_v56 }
0x42b3   :  { %12319 = vmatpush3.bf16.msra.mxu1 %v12316_v56 }
0x42b4   :  { %12354 = vmatprep.subr.msk.bf16.mxu1 %vm12353_vm0, %v13893_v15 }
0x4336   :  { %v9275_v17 = vpop.xlane.xlu0 %9274 }
0x4337   :  { %v9279_v18 = vsub.f32 %v9271_v57, %v9275_v17 }
0x4339   :  { %v9281_v34 = vmul.f32 1.442695, %v9279_v18  ;;  %v10402_v18 = vld [vmem:[%s14797_s7 + $0x1] ss:$0 sm:$0xff] }
0x433a   :  { %v9278_v55 = vpop.xlane.xlu0 %9277 }
0x433b   :  { %v9280_v37 = vsub.f32 %v9272_v30, %v9278_v55 }
0x433d   :  { %v9283_v43 = vmul.f32 1.442695, %v9280_v37 }
0x433f   :  { %12956 = vpow2.f32 %v9283_v43 }
0x4340   :  { %12958 = vpow2.f32 %v9281_v34 }
0x4349   :  { %v12957_v59 = vpop.eup %12956 }
0x434a   :  { %v9288_v52 = vsel %vm810_vm7, %v12957_v59, 0.0  ;;  %v12959_v58 = vpop.eup %12958 }
0x434b   :  { %9289 = vadd.xlane.f32.xlu0 %v9288_v52  ;;  %v9285_v39 = vsel %vm810_vm7, %v12959_v58, 0.0 }
0x434f   :  { %9286 = vadd.xlane.f32.xlu0 %v9285_v39  ;;  %v10412_v39 = vld [vmem:[%s14798_s2 + $0x88] sm:$0xff] }
0x4365   :  { %12716 = vrot.lane.b32.xlu0 %v14474_v10, %s14801_s3 }
0x4381   :  { %v11654_v42 = vpop.f32.mrb[58].mxu0 }
0x4382   :  { %v9086_v5 = vpop.f32.mrb[59].mxu0 }
0x4383   :  { %11657 = vmatprep.mubr.msk.f32.mxu0 %vm722_vm5, %v9086_v5  ;;  %v10413_v5 = vld [vmem:[%s14798_s2 + $0x90] sm:$0xff] }
0x4384   :  { %11658 = vmatmul.mubr.msk.f32.vlgmr.msra.gmra.mrb[56].mxu0 %vm722_vm5, %v11654_v42 }
0x43d8   :  { %v9290_v0 = vpop.xlane.xlu0 %9289 }
0x43d9   :  { %12960 = vrcp.f32 %v9290_v0  ;;  %v10414_v0 = vld [vmem:[%s14798_s2 + $0x98] sm:$0xff] }
0x43dc   :  { %v9287_v6 = vpop.xlane.xlu0 %9286 }
0x43dd   :  { %12962 = vrcp.f32 %v9287_v6  ;;  %v12324_v6 = vpack.c.bf16 %v10414_v0, %v10413_v5 }
0x43e0   :  { %v12717_v44 = vpop.permute.xlu0 %12716 }
0x43e1   :  { %v12719_v12 = vunpack.i.h.bf16 %v12717_v44  ;;  %v12718_v35 = vunpack.i.l.bf16 %v12717_v44  ;;  %v10415_v44 = vld [vmem:[%s14798_s2 + $0xa0] sm:$0xff] }
0x43e3   :  { %v12306_v11 = vpack.c.bf16 %v12719_v12, %v12718_v35  ;;  %v12961_v10 = vpop.eup %12960  ;;  %v10416_v12 = vld [vmem:[%s14798_s2 + $0xa8] sm:$0xff] }
0x43e4   :  { %v9294_v13 = vmul.f32 %v12961_v10, %v12957_v59  ;;  %v12328_v35 = vpack.c.bf16 %v10416_v12, %v10415_v44 }
0x43e5   :  { %12308 = vmatprep.subr.msk.bf16.mxu0 %vm13580_vm11, %v12306_v11 }
0x43e6   :  { %12311 = vmatpush3.bf16.msk.msra.mxu0 %vm13580_vm11, %v12306_v11  ;;  %v10417_v11 = vld [vmem:[%s14798_s2 + $0xb0] sm:$0xff] }
0x43e7   :  { %v12963_v4 = vpop.eup %12962  ;;  %11674 = vmatprep.subr.mxu0 %v10360_v48 }
0x43e8   :  { %v9293_v3 = vmul.f32 %v12963_v4, %v12959_v58  ;;  %v10411_v58 = vld [vmem:[%s14798_s2 + $0x80] sm:$0xff] }
0x43e9   :  { %v12320_v42 = vpack.c.bf16 %v10412_v39, %v10411_v58  ;;  %v10419_v4 = vld [vmem:[%s14798_s2 + $0xc0] sm:$0xff] }
0x43ea   :  { %11671 = vmatprep.mubr.msk.f32.mxu0 %vm810_vm7, %v9293_v3  ;;  %v10420_v3 = vld [vmem:[%s14798_s2 + $0xc8] sm:$0xff] }
0x43eb   :  { %11672 = vmatmul.mubr.msk.f32.vlgmr.msra.gmra.mrb[60].mxu0 %vm810_vm7, %v9294_v13  ;;  %v10421_v13 = vld [vmem:[%s14798_s2 + $0xd0] sm:$0xff] }
0x43ec   :  { %11675 = vmatpush3.msra.mxu0 %v10360_v48  ;;  %v10418_v48 = vld [vmem:[%s14798_s2 + $0xb8] sm:$0xff] }
0x43ed   :  { %12321 = vmatprep.subr.bf16.mxu0 %v12320_v42  ;;  %v12332_v10 = vpack.c.bf16 %v10418_v48, %v10417_v11 }
0x44be   :  { %v11673_v2 = vpop.f32.mrb[60].mxu0 }
0x44bf   :  { %v9374_v60 = vpop.f32.mrb[61].mxu0 }
0x44c0   :  { %11676 = vmatprep.mubr.msk.f32.mxu0 %vm722_vm5, %v9374_v60  ;;  %v10422_v60 = vld [vmem:[%s14798_s2 + $0xd8] sm:$0xff] }
0x44c1   :  { %11677 = vmatmul.mubr.msk.f32.vlgmr.msra.gmra.mrb[56].mxu0 %vm722_vm5, %v11673_v2  ;;  %v12336_v2 = vpack.c.bf16 %v10420_v3, %v10419_v4  ;;  %v10430_v3 = vld [vmem:[#allocation6] ss:$0 sm:$0xff]  ;;  %vm9943_vm5 = vcmask 7168  }
0x44c2   :  { %12323 = vmatpush3.bf16.msra.mxu0 %v12320_v42 }
0x44c3   :  { %12325 = vmatprep.subr.bf16.mxu0 %v12324_v6 }
0x44c6   :  { %12327 = vmatpush3.bf16.msra.mxu0 %v12324_v6 }
0x44c7   :  { %12329 = vmatprep.subr.bf16.mxu0 %v12328_v35 }
0x44ca   :  { %12331 = vmatpush3.bf16.msra.mxu0 %v12328_v35 }
0x44cb   :  { %12333 = vmatprep.subr.bf16.mxu0 %v12332_v10 }
0x44ce   :  { %12335 = vmatpush3.bf16.msra.mxu0 %v12332_v10  ;;  %v10429_v10 = vld [vmem:[#allocation2] ss:$0 sm:$0xff] }
0x44cf   :  { %12337 = vmatprep.subr.bf16.mxu0 %v12336_v2 }
0x44d2   :  { %12339 = vmatpush3.bf16.msra.mxu0 %v12336_v2 }
0x4594   :  { %v11678_v29 = vpop.f32.mrb[56].mxu0 }
0x4595   :  { %v9467_v62 = vadd.f32 %v11678_v29, %v14465_v7  ;;  %v9455_v16 = vpop.f32.mrb[57].mxu0  ;;  %v12340_v29 = vpack.c.bf16 %v10422_v60, %v10421_v13 }
0x4596   :  { %v9466_v20 = vadd.f32 %v9455_v16, %v14467_v49 }
0x4597   :  { %v14614_v23 = vadd.f32 %v10398_v14, %v9467_v62  ;;  %v10424_v62 = vld [vmem:[%s14798_s2 + $0xe8] sm:$0xff]  ;;  %12341 = vmatprep.subr.bf16.mxu0 %v12340_v29 }
0x4598   :  { %v14616_v28 = vadd.f32 %v10398_v14, %v9466_v20  ;;  %v10423_v14 = vld [vmem:[%s14798_s2 + $0xe0] sm:$0xff]  ;;  %v10425_v20 = vld [vmem:[%s14798_s2 + $0xf0] sm:$0xff]  ;;  %12343 = vmatpush3.bf16.msra.mxu0 %v12340_v29 }
0x4599   :  { %v9485_v61 = vsel %vm575_vm3, %v14614_v23, 0.0  ;;  %v12344_v16 = vpack.c.bf16 %v10424_v62, %v10423_v14 }
0x459a   :  { %9486 = vadd.xlane.f32.xlu0 %v9485_v61  ;;  %v9482_v45 = vsel %vm575_vm3, %v14616_v28, 0.0  ;;  %v10426_v61 = vld [vmem:[%s14798_s2 + $0xf8] sm:$0xff] }
0x459b   :  { %9483 = vadd.xlane.f32.xlu1 %v9482_v45  ;;  %12345 = vmatprep.subr.bf16.mxu0 %v12344_v16  ;;  %v12348_v45 = vpack.c.bf16 %v10426_v61, %v10425_v20 }
0x459c   :  { %12347 = vmatpush3.bf16.msra.mxu0 %v12344_v16 }
0x459d   :  { %12349 = vmatprep.subr.bf16.mxu0 %v12348_v45 }
0x45a0   :  { %12351 = vmatpush3.bf16.msra.mxu0 %v12348_v45 }
0x4627   :  { %v9487_v19 = vpop.xlane.xlu0 %9486 }
0x4628   :  { %v9489_v7 = vmul.f32 0.03125, %v9487_v19  ;;  %v9484_v21 = vpop.xlane.xlu1 %9483  ;;  %v10408_v19 = vld [vmem:[%s14799_s28 + $0x1] ss:$0 sm:$0xff] }
0x4629   :  { %v9488_v49 = vmul.f32 0.03125, %v9484_v21 }
0x462a   :  { %v9491_v32 = vsub.f32 %v14614_v23, %v9489_v7 }
0x462b   :  { %v9490_v22 = vsub.f32 %v14616_v28, %v9488_v49 }
0x462c   :  { %v9493_v46 = vmul.f32 %v9491_v32, %v9491_v32 }
0x462d   :  { %v9492_v27 = vmul.f32 %v9490_v22, %v9490_v22 }
0x462e   :  { %v9497_v33 = vsel %vm575_vm3, %v9493_v46, 0.0 }
0x462f   :  { %v9494_v40 = vsel %vm575_vm3, %v9492_v27, 0.0 }
0x4630   :  { %9495 = vadd.xlane.f32.xlu1 %v9494_v40 }
0x4634   :  { %9498 = vadd.xlane.f32.xlu1 %v9497_v33 }
0x46bd   :  { %v9496_v57 = vpop.xlane.xlu1 %9495 }
0x46be   :  { %v9500_v30 = vmul.f32 0.03125, %v9496_v57 }
0x46c0   :  { %v9502_v25 = vadd.f32 1e-05, %v9500_v30 }
0x46c1   :  { %v9499_v1 = vpop.xlane.xlu1 %9498 }
0x46c2   :  { %12964 = vrsqrt.f32 %v9502_v25  ;;  %v9501_v41 = vmul.f32 0.03125, %v9499_v1 }
0x46c4   :  { %v9503_v36 = vadd.f32 1e-05, %v9501_v41 }
0x46c6   :  { %12966 = vrsqrt.f32 %v9503_v36 }
0x46cc   :  { %v12965_v63 = vpop.eup %12964 }
0x46cd   :  { %v9506_v17 = vmul.f32 %v12965_v63, %v9490_v22 }
0x46cf   :  { %v9514_v55 = vmul.f32 %v10401_v50, %v9506_v17  ;;  %v10428_v17 = vld [vmem:[%s14800_s4 + $0x1] ss:$0 sm:$0xff] }
0x46d0   :  { %v12967_v37 = vpop.eup %12966 }
0x46d1   :  { %v9507_v34 = vmul.f32 %v12967_v37, %v9491_v32  ;;  %v9522_v43 = vadd.f32 %v10402_v18, %v9514_v55 }
0x46d3   :  { %v9515_v59 = vmul.f32 %v10401_v50, %v9507_v34  ;;  %11687 = vmatprep.mubr.msk.f32.mxu1 %vm575_vm3, %v9522_v43 }
0x46d5   :  { %v9523_v52 = vadd.f32 %v10402_v18, %v9515_v59 }
0x46d7   :  { %11688 = vmatmul.mubr.msk.f32.vlgmr.msra.gmra.mrb[82].mxu1 %vm575_vm3, %v9523_v52 }
0x46d8   :  { %12357 = vmatpush3.bf16.xpose.msk.msra.mxu1 %vm12353_vm0, %v13893_v15 }
0x46d9   :  { %12360 = vmatprep.subr.msk.bf16.mxu1 %vm12353_vm0, %v13905_v9 }
0x46e0   :  { %12363 = vmatpush3.bf16.xpose.msk.msra.mxu1 %vm12353_vm0, %v13905_v9 }
0x46e1   :  { %12366 = vmatprep.subr.msk.bf16.mxu1 %vm12353_vm0, %v13914_v51 }
0x46e8   :  { %12369 = vmatpush3.bf16.xpose.msk.msra.mxu1 %vm12353_vm0, %v13914_v51 }
0x46e9   :  { %12372 = vmatprep.subr.msk.bf16.mxu1 %vm12353_vm0, %v13920_v53 }
0x46f0   :  { %12375 = vmatpush3.bf16.xpose.msk.msra.mxu1 %vm12353_vm0, %v13920_v53 }
0x47aa   :  { %v11689_v7 = vpop.f32.mrb[82].mxu1 }
0x47ab   :  { %v9615_v21 = vadd.f32 %v11689_v7, %v10408_v19  ;;  %v9609_v49 = vpop.f32.mrb[83].mxu1  ;;  %v9892_v7 = vld [vmem:[%s14805_s5 + $0x8] sm:$0xff] }
0x47ac   :  { %v9610_v32 = vadd.f32 %v10408_v19, %v9609_v49  ;;  %v9891_v19 = vld [vmem:[%s14805_s5] sm:$0xff]  ;;  %vm9938_vm4 = vcmp.ne.s32.totalorder %v9892_v7, 4294967196 }
0x47ad   :  { %v9619_v22 = vmul.f32 %v9615_v21, %v9615_v21 }
0x47ae   :  { %v9618_v27 = vmul.f32 %v9610_v32, %v9610_v32 }
0x47af   :  { %v9621_v40 = vmul.f32 %v9619_v22, %v9615_v21 }
0x47b0   :  { %v9620_v46 = vmul.f32 %v9618_v27, %v9610_v32 }
0x47b1   :  { %v9623_v33 = vmul.f32 0.044715, %v9621_v40 }
0x47b2   :  { %v9622_v8 = vmul.f32 0.044715, %v9620_v46 }
0x47b3   :  { %v9625_v47 = vadd.f32 %v9623_v33, %v9615_v21 }
0x47b4   :  { %v9624_v26 = vadd.f32 %v9622_v8, %v9610_v32 }
0x47b5   :  { %v9627_v24 = vmul.f32 0.7978846, %v9625_v47 }
0x47b6   :  { %v9626_v54 = vmul.f32 0.7978846, %v9624_v26 }
0x47b7   :  { %12968 = vtanh.f32 %v9627_v24 }
0x47b8   :  { %12970 = vtanh.f32 %v9626_v54 }
0x47c1   :  { %v12969_v56 = vpop.eup %12968 }
0x47c2   :  { %v12971_v57 = vpop.eup %12970  ;;  %v9631_v30 = vadd.f32 1.0, %v12969_v56  ;;  %v10444_v56 = vsel %vm9938_vm4, 1.0, %v13140_v31 }
0x47c3   :  { %v9630_v25 = vadd.f32 1.0, %v12971_v57 }
0x47c4   :  { %v9633_v1 = vmul.f32 0.5, %v9631_v30 }
0x47c5   :  { %v9632_v41 = vmul.f32 0.5, %v9630_v25 }
0x47c6   :  { %v9635_v63 = vmul.f32 %v9633_v1, %v9615_v21 }
0x47c7   :  { %v9634_v36 = vmul.f32 %v9632_v41, %v9610_v32  ;;  %v9945_v41 = vsel %vm9943_vm5, %v10444_v56, 0.0 }
0x47c9   :  { %11722 = vmatprep.mubr.f32.mxu0 %v9634_v36 }
0x47ca   :  { %11723 = vmatmul.mubr.f32.vlgmr.msra.gmra.mrb[62].mxu0 %v9635_v63 }
0x489d   :  { %v11724_v50 = vpop.f32.mrb[62].mxu0 }
0x489e   :  { %v9719_v18 = vpop.f32.mrb[63].mxu0  ;;  %v9729_v55 = vadd.f32 %v11724_v50, %v14614_v23 }
0x489f   :  { %v9728_v37 = vadd.f32 %v9719_v18, %v14616_v28 }
0x48a0   :  { %v9739_v43 = vadd.f32 %v10428_v17, %v9729_v55 }
0x48a1   :  { %v9738_v34 = vadd.f32 %v10428_v17, %v9728_v37 }
0x48a2   :  { %v9745_v52 = vsel %vm575_vm3, %v9739_v43, 0.0 }
0x48a3   :  { %v9742_v59 = vsel %vm575_vm3, %v9738_v34, 0.0 }
0x48a4   :  { %9743 = vadd.xlane.f32.xlu1 %v9742_v59 }
0x48a8   :  { %9746 = vadd.xlane.f32.xlu1 %v9745_v52 }
0x4931   :  { %v9744_v23 = vpop.xlane.xlu1 %9743 }
0x4932   :  { %v9748_v28 = vmul.f32 0.03125, %v9744_v23 }
0x4934   :  { %v9750_v58 = vsub.f32 %v9738_v34, %v9748_v28 }
0x4935   :  { %v9747_v39 = vpop.xlane.xlu1 %9746 }
0x4936   :  { %v9749_v42 = vmul.f32 0.03125, %v9747_v39  ;;  %v9752_v5 = vmul.f32 %v9750_v58, %v9750_v58 }
0x4938   :  { %v9751_v0 = vsub.f32 %v9739_v43, %v9749_v42  ;;  %v9754_v15 = vsel %vm575_vm3, %v9752_v5, 0.0 }
0x4939   :  { %9755 = vadd.xlane.f32.xlu1 %v9754_v15 }
0x493a   :  { %v9753_v6 = vmul.f32 %v9751_v0, %v9751_v0 }
0x493c   :  { %v9757_v9 = vsel %vm575_vm3, %v9753_v6, 0.0 }
0x493d   :  { %9758 = vadd.xlane.f32.xlu0 %v9757_v9 }
0x49c6   :  { %v9756_v44 = vpop.xlane.xlu1 %9755 }
0x49c7   :  { %v9760_v51 = vmul.f32 0.03125, %v9756_v44 }
0x49c9   :  { %v9762_v12 = vadd.f32 1e-05, %v9760_v51 }
0x49ca   :  { %v9759_v35 = vpop.xlane.xlu0 %9758 }
0x49cb   :  { %12972 = vrsqrt.f32 %v9762_v12  ;;  %v9761_v53 = vmul.f32 0.03125, %v9759_v35 }
0x49cd   :  { %v9763_v11 = vadd.f32 1e-05, %v9761_v53 }
0x49cf   :  { %12974 = vrsqrt.f32 %v9763_v11 }
0x49d5   :  { %v12973_v48 = vpop.eup %12972 }
0x49d6   :  { %v9766_v4 = vmul.f32 %v12973_v48, %v9750_v58 }
0x49d8   :  { %v9774_v13 = vmul.f32 %v10429_v10, %v9766_v4 }
0x49d9   :  { %v12975_v2 = vpop.eup %12974 }
0x49da   :  { %v9767_v60 = vmul.f32 %v12975_v2, %v9751_v0  ;;  %v9782_v29 = vadd.f32 %v10430_v3, %v9774_v13 }
0x49dc   :  { %v9775_v14 = vmul.f32 %v10429_v10, %v9767_v60  ;;  %11741 = vmatprep.mubr.msk.f32.mxu1 %vm575_vm3, %v9782_v29 }
0x49de   :  { %v9783_v62 = vadd.f32 %v10430_v3, %v9775_v14 }
0x49e0   :  { %11742 = vmatmul.mubr.msk.f32.vlgmr.msra.gmra.mrb[84].mxu1 %vm575_vm3, %v9783_v62  ;;  %vm9937_vm3 = vcmp.ne.s32.totalorder %v9891_v19, 4294967196 }
0x49e1   :  { %v10443_v24 = vsel %vm9937_vm3, 1.0, %v13140_v31 }
0x49e2   :  { %v9944_v1 = vsel %vm9943_vm5, %v10443_v24, 0.0 }
0x4ab3   :  { %v11743_v16 = vpop.f32.mrb[84].mxu1 }
0x4ab4   :  { %9890 = vst.msk [vmem:[#allocation8 + $0x8] sm:$0xff] %vm3767_vm13, %v11743_v16  ;;  %v9880_v20 = vpop.f32.mrb[85].mxu1  ;;  %v9896_v61 = vsel %vm3767_vm13, %v11743_v16, -inf }
0x4ab5   :  { %9889 = vst.msk [vmem:[#allocation8] sm:$0xff] %vm3767_vm13, %v9880_v20  ;;  %9897 = vmax.xlane.f32.xlu0 %v9896_v61  ;;  %v9893_v45 = vsel %vm3767_vm13, %v9880_v20, -inf }
0x4ab6   :  { %9894 = vmax.xlane.f32.xlu1 %v9893_v45 }
0x4ac7   :  { %9918 = vperm.xlu1 %12569, %v9891_v19  }
0x4acb   :  { %9921 = vperm.xlu0 %12568, %v9892_v7  }
0x4b42   :  { %v9898_v21 = vpop.xlane.xlu0 %9897 }
0x4b43   :  { %v9900_v49 = vsub.f32 %v11743_v16, %v9898_v21  ;;  %v9895_v32 = vpop.xlane.xlu1 %9894 }
0x4b44   :  { %v9899_v22 = vsub.f32 %v9880_v20, %v9895_v32 }
0x4b45   :  { %v9903_v27 = vmul.f32 1.442695, %v9900_v49 }
0x4b46   :  { %v9901_v40 = vmul.f32 1.442695, %v9899_v22 }
0x4b47   :  { %12976 = vpow2.f32 %v9903_v27  ;;  %v9919_v46 = vpop.permute.xlu1 %9918 }
0x4b48   :  { %12978 = vpow2.f32 %v9901_v40  ;;  %vm9923_vm2 = vcmp.eq.s32.totalorder %v13899_v38, %v9919_v46 }
0x4b49   :  { %v10441_v47 = vsel %vm9923_vm2, 1.0, %v13140_v31 }
0x4b4a   :  { %v9922_v33 = vpop.permute.xlu0 %9921  ;;  %v9929_v25 = vmul.f32 %v10441_v47, %v9880_v20 }
0x4b4b   :  { %vm9924_vm1 = vcmp.eq.s32.totalorder %v13899_v38, %v9922_v33 }
0x4b4c   :  { %v10442_v8 = vsel %vm9924_vm1, 1.0, %v13140_v31  ;;  %v9931_v63 = vsel %vm3767_vm13, %v9929_v25, 0.0  ;;  %v9946_v31 = vadd.f32 %v9945_v41, %v9944_v1 }
0x4b4d   :  { %v9930_v57 = vmul.f32 %v11743_v16, %v10442_v8 }
0x4b4f   :  { %v9934_v36 = vsel %vm3767_vm13, %v9930_v57, 0.0 }
0x4b51   :  { %v12977_v26 = vpop.eup %12976 }
0x4b52   :  { %v12979_v54 = vpop.eup %12978  ;;  %v9908_v30 = vsel %vm3767_vm13, %v12977_v26, 0.0 }
0x4b53   :  { %9909 = vadd.xlane.f32.xlu0 %v9908_v30  ;;  %v9905_v38 = vsel %vm3767_vm13, %v12979_v54, 0.0 }
0x4b54   :  { %9906 = vadd.xlane.f32.xlu1 %v9905_v38 }
0x4b57   :  { %9935 = vadd.xlane.f32.xlu0 %v9934_v36 }
0x4b58   :  { %9932 = vadd.xlane.f32.xlu1 %v9931_v63 }
0x4b5c   :  { %9947 = vadd.xlane.f32.xlu1 %v9946_v31 }
0x4be0   :  { %v9910_v50 = vpop.xlane.xlu0 %9909 }
0x4be1   :  { %12980 = vlog2.f32 %v9910_v50  ;;  %v9907_v17 = vpop.xlane.xlu1 %9906 }
0x4be2   :  { %12982 = vlog2.f32 %v9907_v17 }
0x4be4   :  { %v9936_v39 = vpop.xlane.xlu0 %9935 }
0x4be5   :  { %v9933_v18 = vpop.xlane.xlu1 %9932 }
0x4be9   :  { %v9948_v55 = vpop.xlane.xlu1 %9947 }
0x4bea   :  { %v9949_v37 = vrot.slane %v9948_v55, 4 }
0x4beb   :  { %v12981_v34 = vpop.eup %12980 }
0x4bec   :  { %v12983_v43 = vpop.eup %12982  ;;  %v9914_v59 = vmul.f32 0.6931472, %v12981_v34  ;;  %v9950_v52 = vadd.f32 %v9949_v37, %v9948_v55 }
0x4bed   :  { %v9912_v23 = vmul.f32 0.6931472, %v12983_v43 }
0x4bee   :  { %v9916_v28 = vadd.f32 %v9914_v59, %v9898_v21  ;;  %v9951_v58 = vrot.slane %v9950_v52, 2 }
0x4bef   :  { %v9915_v42 = vadd.f32 %v9912_v23, %v9895_v32 }
0x4bf0   :  { %v9958_v5 = vsub.f32 %v9916_v28, %v9936_v39  ;;  %v9952_v0 = vadd.f32 %v9951_v58, %v9950_v52 }
0x4bf1   :  { %v9957_v15 = vsub.f32 %v9915_v42, %v9933_v18 }
0x4bf2   :  { %v9960_v6 = vmul.f32 %v10444_v56, %v9958_v5  ;;  %v9953_v9 = vrot.slane %v9952_v0, 1 }
0x4bf3   :  { %v9959_v44 = vmul.f32 %v10443_v24, %v9957_v15 }
0x4bf4   :  { %v9962_v51 = vsel %vm9943_vm5, %v9960_v6, 0.0  ;;  %v9954_v12 = vadd.f32 %v9953_v9, %v9952_v0 }
0x4bf5   :  { %v9961_v35 = vsel %vm9943_vm5, %v9959_v44, 0.0 }
0x4bf6   :  { %v9963_v53 = vadd.f32 %v9962_v51, %v9961_v35  ;;  %12412 = vpush %v9954_v12 }
0x4bf8   :  { %9964 = vadd.xlane.f32.xlu0 %v9963_v53 }
0x4bf9   :  { %13047 = shalt.err (!%p13044_p6)
}
0x4bfa   :  { %s13048_s4 = scalar_lea.hbm %s13394_s13, 256 }
0x4bfb   :  { %p13049_p7 = scmp.ne.s32.totalorder %s13394_s13, %s13048_s4  ;;  %p13052_p8 = scmp.lt.u32.totalorder %s13048_s4, %s13394_s13 }
0x4bfd   :  { %p13054_p9 = pnand %p13052_p8, %p13049_p7 }
0x4bff   :  { %13057 = shalt.err (!%p13054_p9)
}
0x4c00   :  { %s13142_s28 = smov 128   ;;  %s13143_s1 = smov 8  }
0x4c01   :  { %9990 = dma.vmem_to_hbm [thread:$0]  %s9985_s29, 256, %s13394_s13, [#allocation4], %s13142_s28, %s13142_s28, %s13143_s1  }
0x4c02   :  { %s13144_s7 = smov 1.0   ;;  %s13058_s27 = scalar_lea.hbm %s13399_s21, 16 }
0x4c03   :  { %p13059_p10 = scmp.ne.s32.totalorder %s13399_s21, %s13058_s27  ;;  %p13062_p11 = scmp.lt.u32.totalorder %s13058_s27, %s13399_s21 }
0x4c05   :  { %p13064_p12 = pnand %p13062_p11, %p13059_p10 }
0x4c27   :  { %s12413_s2 = spop %12412 }
0x4c28   :  { %s9956_s6 = smax.f32 %s13144_s7, %s12413_s2 }
0x4c29   :  { %v9973_v11 = vstv %s9956_s6 }
0x4c2a   :  { %12984 = vrcp.f32 %v9973_v11 }
0x4c34   :  { %v12985_v29 = vpop.eup %12984 }
0x4c85   :  { %v9965_v48 = vpop.xlane.xlu0 %9964 }
0x4c86   :  { %v9966_v10 = vrot.slane %v9965_v48, 4 }
0x4c88   :  { %v9967_v4 = vadd.f32 %v9966_v10, %v9965_v48 }
0x4c8a   :  { %v9968_v3 = vrot.slane %v9967_v4, 2 }
0x4c8c   :  { %v9969_v13 = vadd.f32 %v9968_v3, %v9967_v4 }
0x4c8e   :  { %v9970_v2 = vrot.slane %v9969_v13, 1 }
0x4c90   :  { %v9971_v60 = vadd.f32 %v9970_v2, %v9969_v13 }
0x4c92   :  { %12414 = vpush %v9971_v60 }
0x4c93   :  { %12416 = vpush %v12985_v29 }
0x4cc3   :  { %s12415_s12 = spop %12414 }
0x4cc4   :  { %s12417_s13 = spop %12416 }
0x4cc5   :  { %s9976_s20 = smul.f32 %s12417_s13, %s12415_s12 }
0x4cc7   :  { %9978 = sst [smem:[#allocation9]] %s9976_s20 }
0x4cc8   :  { %13067 = shalt.err (!%p13064_p12)
}
0x4cc9   :  { %s13145_s0 = smov [#allocation9]  }
0x4cca   :  { %9998 = dma.smem_to_hbm %s13145_s0, 16, %s13399_s21, [#allocation5]  }
0x4ccb   :  { %13072 = dma.done.wait [#allocation4], 256  }
0x4ccc   :  { %13073 = vsyncadd [#allocation4], 4294967040 }
0x4ccd   :  { %13074 = dma.done.wait [#allocation5], 16  }
0x4cce   :  { %13075 = vsyncadd [#allocation5], 4294967280 }
0x4ccf   :  { %10005 = sfence }
0x4cd0   :  { %10006 = vsyncpa [#allocation3], 1 }
0x4cd1   :  { %10007 = vsyncpa [#allocation7], 1 }
0x4cd2   :  { %10008 = vsyncpa [#allocation4], 1 }
0x4cd3   :  { %10009 = vsyncpa [#allocation5], 1 }

</bundles_post_ra>
